<compile_context>
chip_gen: v6e
topology: v6e:2x2x1
jax: 0.10.0
libtpu: 0.0.40
codegen_flags: <defaults>
</compile_context>

<pallas_src>
import functools

import jax
import jax.numpy as jnp
from jax.experimental import pallas as pl
from jax.experimental.pallas import tpu as pltpu

BN_EPS = 1e-5

# Conservative, generation-agnostic budgets (v7x has only 64 MiB physical
# VMEM; v5e's default scoped limit is 16 MiB, so raise it explicitly).
VMEM_BUDGET_BYTES = 24 * 1024 * 1024
VMEM_LIMIT_BYTES = 48 * 1024 * 1024
# Keep inter-layer activations channel-padded to a multiple of 128 only when
# the padding overhead is <= 2x (real ResNet widths); toy widths stay compact.
KEEP_PADDED_MIN_CHANNELS = 64


# ----------------------------------------------------------------------------
# Pallas kernels
# ----------------------------------------------------------------------------
def _fused_kernel_2d(x_ref, w_ref, b_ref, *rest, relu, has_res):
    """Full-K strip: one dot per output tile, fused bias/residual/ReLU."""
    if has_res:
        res_ref, o_ref = rest
    else:
        (o_ref,) = rest
    acc = jnp.dot(x_ref[...], w_ref[...], preferred_element_type=jnp.float32)
    acc = acc + b_ref[...]
    if has_res:
        acc = acc + res_ref[...].astype(jnp.float32)
    if relu:
        acc = jnp.maximum(acc, 0.0)
    o_ref[...] = acc.astype(o_ref.dtype)


def _fused_kernel_3d(x_ref, w_ref, b_ref, *rest, relu, has_res):
    """K-tiled: f32 VMEM accumulator, epilogue fused on the last K step."""
    if has_res:
        res_ref, o_ref, acc_ref = rest
    else:
        o_ref, acc_ref = rest

    k = pl.program_id(2)
    prod = jnp.dot(x_ref[...], w_ref[...], preferred_element_type=jnp.float32)

    @pl.when(k == 0)
    def _():                         # direct write: no zero-fill RMW
        acc_ref[...] = prod

    @pl.when(k > 0)
    def _():
        acc_ref[...] += prod

    @pl.when(k == pl.num_programs(2) - 1)
    def _():
        acc = acc_ref[...] + b_ref[...]
        if has_res:
            acc = acc + res_ref[...].astype(jnp.float32)
        if relu:
            acc = jnp.maximum(acc, 0.0)
        o_ref[...] = acc.astype(o_ref.dtype)


# ----------------------------------------------------------------------------
# Fused matmul + BN bias (+ residual) (+ ReLU) wrapper
# ----------------------------------------------------------------------------
def _round_up(v, m):
    return ((v + m - 1) // m) * m


def _pick_tm(M, grid_n):
    """Large M tiles when M is big; 16-aligned small tiles otherwise.  When
    both the M and N grids would be a single tile, split M so both v7x
    TensorCores get work."""
    if M >= 1024:
        return 512
    if M >= 512:
        return 256
    if M >= 64 and grid_n == 1:
        return _round_up((M + 1) // 2, 16)
    if M >= 16:
        return _round_up(M, 16)
    return M                      # tiny M: full-dim block (legal, no padding)


def matmul_bn_act(patches, weight, bias, residual=None, relu=True,
                  keep_padded_cols=False, out_dtype=jnp.bfloat16):
    """patches: (M, K) bf16; weight: (K, Cout) f32 (BN scale already folded);
    bias: (Cout,) f32; residual: optional (M, Cr) with Cr in {Cout, Cp}.

    Returns (out, out_channels): out is (M, Cp) if keep_padded_cols else
    (M, Cout)."""
    M, K = patches.shape
    Cout = weight.shape[1]
    has_res = residual is not None
    out_bytes = jnp.dtype(out_dtype).itemsize

    # ---- lane-dense output channels ----
    Cp = _round_up(Cout, 128)
    TN = 128                       # fills MXU columns; >=2 N tiles when Cp>=256
    grid_n = Cp // TN

    # ---- M tile ----
    TM = _pick_tm(M, grid_n)
    Mp = _round_up(M, TM)

    # ---- K handling: full-K strip (2-D grid) if it fits the VMEM budget,
    # otherwise K-tiled 3-D grid with TK chosen from the budget first. ----
    def _fits(tm, tk, k_tiled):
        per_step = (tm * tk * 2 + tk * TN * 2 + TN * 4 + tm * TN * out_bytes
                    + (tm * TN * 2 if has_res else 0))
        total = 2 * per_step                      # double-buffered pipeline
        if k_tiled:
            total += tm * TN * 4                  # f32 accumulator scratch
        return total <= VMEM_BUDGET_BYTES

    k_tiled = False
    if _fits(TM, K, False):
        TK = K
    else:
        TK = None
        for tm in (256, 128):                     # shrink TM, keep full-K form
            if tm < TM and M >= tm and _fits(tm, K, False):
                TM, TK = tm, K
                Mp = _round_up(M, TM)
                break
        if TK is None:                            # K-tiled fallback
            k_tiled = True
            for tk in (4096, 2048, 1024, 512, 256, 128):
                if _fits(TM, tk, True):
                    TK = tk
                    break
            if TK is None:
                TM, TK = 128, 128
                Mp = _round_up(M, TM)
    Kp = K if not k_tiled else _round_up(K, TK)

    # ---- pad operands (single combined pad where needed) ----
    x = patches if patches.dtype == jnp.bfloat16 else patches.astype(jnp.bfloat16)
    if (Mp, Kp) != (M, K):
        x = jnp.pad(x, ((0, Mp - M), (0, Kp - K)))
    w = weight.astype(jnp.bfloat16)
    if (Kp, Cp) != (K, Cout):
        w = jnp.pad(w, ((0, Kp - K), (0, Cp - Cout)))
    b = bias.astype(jnp.float32).reshape(1, Cout)
    if Cp != Cout:
        b = jnp.pad(b, ((0, 0), (0, Cp - Cout)))

    args = [x, w, b]
    if has_res:
        r = residual if residual.dtype == jnp.bfloat16 else residual.astype(jnp.bfloat16)
        Mr, Cr = r.shape
        if (Mp, Cp) != (Mr, Cr):
            r = jnp.pad(r, ((0, Mp - Mr), (0, Cp - Cr)))
        args.append(r)

    # ---- grid / specs ----
    if k_tiled:
        grid = (Mp // TM, Cp // TN, Kp // TK)
        in_specs = [pl.BlockSpec((TM, TK), lambda i, j, k: (i, k)),
                    pl.BlockSpec((TK, TN), lambda i, j, k: (k, j)),
                    pl.BlockSpec((1, TN), lambda i, j, k: (0, j))]
        if has_res:
            in_specs.append(pl.BlockSpec((TM, TN), lambda i, j, k: (i, j)))
        out_spec = pl.BlockSpec((TM, TN), lambda i, j, k: (i, j))
        scratch = [pltpu.VMEM((TM, TN), jnp.float32)]
        dim_sem = ("parallel", "parallel", "arbitrary")
        kernel = functools.partial(_fused_kernel_3d, relu=relu, has_res=has_res)
    else:
        grid = (Mp // TM, Cp // TN)
        in_specs = [pl.BlockSpec((TM, Kp), lambda i, j: (i, 0)),
                    pl.BlockSpec((Kp, TN), lambda i, j: (0, j)),
                    pl.BlockSpec((1, TN), lambda i, j: (0, j))]
        if has_res:
            in_specs.append(pl.BlockSpec((TM, TN), lambda i, j: (i, j)))
        out_spec = pl.BlockSpec((TM, TN), lambda i, j: (i, j))
        scratch = []
        dim_sem = ("parallel", "parallel")
        kernel = functools.partial(_fused_kernel_2d, relu=relu, has_res=has_res)

    flops = 2 * Mp * Kp * Cp
    bytes_accessed = ((Mp * Kp + Kp * Cp) * 2 + Cp * 4 + Mp * Cp * out_bytes
                      + (Mp * Cp * 2 if has_res else 0))

    out = pl.pallas_call(
        kernel,
        out_shape=jax.ShapeDtypeStruct((Mp, Cp), out_dtype),
        grid=grid,
        in_specs=in_specs,
        out_specs=out_spec,
        scratch_shapes=scratch,
        compiler_params=pltpu.CompilerParams(
            dimension_semantics=dim_sem,
            vmem_limit_bytes=VMEM_LIMIT_BYTES),
        cost_estimate=pl.CostEstimate(flops=flops, transcendentals=0,
                                      bytes_accessed=bytes_accessed),
    )(*args)

    if Mp != M:
        out = out[:M]
    if keep_padded_cols:
        return out, Cp
    if Cp != Cout:
        out = out[:, :Cout]
    return out, Cout


# ----------------------------------------------------------------------------
# Conv3d via im2col + fused Pallas matmul (channels-last NDHWC internally)
# ----------------------------------------------------------------------------
def _im2col(x, ksize, stride, pad):
    """x: (N,D,H,W,C) -> (N*Do*Ho*Wo, kd*kh*kw*C), patch order (kd,kh,kw,C)."""
    kd, kh, kw = ksize
    sd, sh, sw = stride
    pd, ph, pw = pad
    x = jnp.pad(x, ((0, 0), (pd, pd), (ph, ph), (pw, pw), (0, 0)))
    N, Dp, Hp, Wp, C = x.shape
    Do = (Dp - kd) // sd + 1
    Ho = (Hp - kh) // sh + 1
    Wo = (Wp - kw) // sw + 1
    cols = []
    for dz in range(kd):
        for dy in range(kh):
            for dx in range(kw):
                cols.append(x[:, dz:dz + Do * sd:sd,
                              dy:dy + Ho * sh:sh,
                              dx:dx + Wo * sw:sw, :])
    patches = jnp.stack(cols, axis=4)                    # (N,Do,Ho,Wo,T,C)
    patches = patches.reshape(N * Do * Ho * Wo, kd * kh * kw * C)
    return patches, (N, Do, Ho, Wo)


def conv3d_bn(x, w, bn, stride, pad, relu, residual=None):
    """x: (N,D,H,W,Cx) bf16 (Cx may be a zero-padded superset of the true
    Cin); w: PyTorch layout (Cout, Cin, kd, kh, kw) f32.
    Returns (out NDHWC with possibly-padded channels, true Cout)."""
    Cout, Cin, kd, kh, kw = w.shape
    Cx = x.shape[-1]
    patches, (N, Do, Ho, Wo) = _im2col(x, (kd, kh, kw), stride, pad)

    w2 = jnp.transpose(w, (2, 3, 4, 1, 0))               # (kd,kh,kw,Cin,Cout)
    if Cx != Cin:                                         # padded input chans
        w2 = jnp.pad(w2, ((0, 0), (0, 0), (0, 0), (0, Cx - Cin), (0, 0)))
    w2 = w2.reshape(kd * kh * kw * Cx, Cout)
    # Fold inference-mode BN scale into the weight; keep only bias in-kernel.
    scale = bn["gamma"] * jax.lax.rsqrt(bn["var"] + BN_EPS)
    bias = bn["beta"] - bn["mean"] * scale
    w2 = w2 * scale[None, :]

    res_flat = None
    if residual is not None:
        res_flat = residual.reshape(N * Do * Ho * Wo, residual.shape[-1])

    keep = Cout >= KEEP_PADDED_MIN_CHANNELS
    out, c_out = matmul_bn_act(patches, w2, bias, res_flat, relu,
                               keep_padded_cols=keep)
    return out.reshape(N, Do, Ho, Wo, c_out), Cout


# ----------------------------------------------------------------------------
# Parameters (deterministic init matching the module's __init__)
# ----------------------------------------------------------------------------
def _kaiming(key, shape):
    # kaiming_normal_, mode='fan_out', nonlinearity='relu'
    fan_out = shape[0] * shape[2] * shape[3] * shape[4]
    std = (2.0 / fan_out) ** 0.5
    return std * jax.random.normal(key, shape, jnp.float32)


def _bn_params(c):
    return dict(gamma=jnp.ones((c,), jnp.float32),
                beta=jnp.zeros((c,), jnp.float32),
                mean=jnp.zeros((c,), jnp.float32),
                var=jnp.ones((c,), jnp.float32))


def init_params(key, n_input_channels, block_inplanes, layers,
                conv1_t_size=7, widen_factor=1.0):
    block_inplanes = [int(x * widen_factor) for x in block_inplanes]
    params = {}
    key, k = jax.random.split(key)
    in_planes = block_inplanes[0]
    params["conv1_w"] = _kaiming(
        k, (in_planes, n_input_channels, conv1_t_size, 7, 7))
    params["bn1"] = _bn_params(in_planes)

    stage_params = []
    stage_strides = [1, 2, 2, 2]
    for stage in range(4):
        planes = block_inplanes[stage]
        blocks = []
        for b in range(layers[stage]):
            stride = stage_strides[stage] if b == 0 else 1
            blk = {}
            key, k1, k2, k3 = jax.random.split(key, 4)
            blk["conv1_w"] = _kaiming(k1, (planes, in_planes, 3, 3, 3))
            blk["bn1"] = _bn_params(planes)
            blk["conv2_w"] = _kaiming(k2, (planes, planes, 3, 3, 3))
            blk["bn2"] = _bn_params(planes)
            # shortcut_type='B' downsample (conv1x1x1 + BN), expansion = 1
            if stride != 1 or in_planes != planes:
                blk["ds_w"] = _kaiming(k3, (planes, in_planes, 1, 1, 1))
                blk["ds_bn"] = _bn_params(planes)
            blocks.append(blk)
            in_planes = planes
        stage_params.append(blocks)
    params["stages"] = stage_params
    return params


# ----------------------------------------------------------------------------
# Forward (ResNet_NoMaxPool with BasicBlock, return_stage=True)
# ----------------------------------------------------------------------------
def basic_block(x, blk, stride):
    out, _ = conv3d_bn(x, blk["conv1_w"], blk["bn1"],
                       stride=(stride, stride, stride), pad=(1, 1, 1),
                       relu=True)
    if "ds_w" in blk:
        res, _ = conv3d_bn(x, blk["ds_w"], blk["ds_bn"],
                           stride=(stride, stride, stride), pad=(0, 0, 0),
                           relu=False)
    else:
        res = x
    # out = relu(bn2(conv2(out)) + residual), fused in one Pallas call
    out, c = conv3d_bn(out, blk["conv2_w"], blk["bn2"],
                       stride=(1, 1, 1), pad=(1, 1, 1), relu=True,
                       residual=res)
    return out, c


def forward(params, x_ncdhw, conv1_t_size=7, conv1_t_stride=1):
    # NCDHW -> NDHWC, bf16 activations internally
    x = jnp.transpose(x_ncdhw, (0, 2, 3, 4, 1)).astype(jnp.bfloat16)
    x1, c1 = conv3d_bn(x, params["conv1_w"], params["bn1"],
                       stride=(conv1_t_stride, 2, 2),
                       pad=(conv1_t_size // 2, 3, 3), relu=True)
    feats = [(x1, c1)]
    cur = x1
    stage_strides = [1, 2, 2, 2]
    for stage_idx, blocks in enumerate(params["stages"]):
        c = None
        for b_idx, blk in enumerate(blocks):
            s = stage_strides[stage_idx] if b_idx == 0 else 1
            cur, c = basic_block(cur, blk, s)
        feats.append((cur, c))
    # back to PyTorch NCDHW f32 for [x1, x2, x3, x4, x5]; drop channel padding
    outs = []
    for f, c in feats:
        if f.shape[-1] != c:
            f = f[..., :c]
        outs.append(jnp.transpose(f, (0, 4, 1, 2, 3)).astype(jnp.float32))
    return outs


if __name__ == "__main__":
    key = jax.random.PRNGKey(0)
    key, pkey, xkey = jax.random.split(key, 3)

    layers = [1, 1, 1, 1]            # one BasicBlock per stage (small config)
    block_inplanes = [4, 8, 16, 32]  # small channel widths
    params = init_params(pkey, n_input_channels=3,
                         block_inplanes=block_inplanes, layers=layers)

    # NCDHW input, matching PyTorch Conv3d convention
    x = jax.random.normal(xkey, (2, 3, 8, 16, 16), jnp.float32)

    fwd = jax.jit(forward, static_argnames=("conv1_t_size", "conv1_t_stride"))
    outs = fwd(params, x, conv1_t_size=7, conv1_t_stride=1)
    outs = jax.block_until_ready(outs)

    expected = [
        (2, 4, 8, 8, 8),   # x1
        (2, 4, 8, 8, 8),   # x2 (layer1)
        (2, 8, 4, 4, 4),   # x3 (layer2)
        (2, 16, 2, 2, 2),  # x4 (layer3)
        (2, 32, 1, 1, 1),  # x5 (layer4)
    ]
    assert [tuple(o.shape) for o in outs] == expected, \
        [tuple(o.shape) for o in outs]
    assert all(bool(jnp.all(jnp.isfinite(o))) for o in outs)
    print("KERNEL_OK")
</pallas_src>

<mosaic_0001>
module attributes {stable_mosaic.version = 11 : i64} {
  func.func @_fused_kernel_2d(%arg0: i32, %arg1: i32, %arg2: memref<512x1029xbf16, #tpu.memory_space<vmem>>, %arg3: memref<1029x128xbf16, #tpu.memory_space<vmem>>, %arg4: memref<1x128xf32, #tpu.memory_space<vmem>>, %arg5: memref<512x128xbf16, #tpu.memory_space<vmem>>) attributes {dimension_semantics = [#tpu.dimension_semantics<parallel>, #tpu.dimension_semantics<parallel>], iteration_bounds = array<i64: 2, 1>, scalar_prefetch = 0 : i64, scratch_operands = 0 : i64, tpu.core_type = #tpu.core_type<tc>, window_params = [{transform_indices = @transform_0, window_bounds = array<i64: 512, 1029>}, {transform_indices = @transform_1, window_bounds = array<i64: 1029, 128>}, {transform_indices = @transform_2, window_bounds = array<i64: 1, 128>}, {transform_indices = @transform_3, window_bounds = array<i64: 512, 128>}]} {
    %c0 = arith.constant 0 : index
    %c0_0 = arith.constant 0 : index
    %0 = vector.load %arg2[%c0, %c0_0] : memref<512x1029xbf16, #tpu.memory_space<vmem>>, vector<512x1029xbf16>
    %c0_1 = arith.constant 0 : index
    %c0_2 = arith.constant 0 : index
    %1 = vector.load %arg3[%c0_1, %c0_2] : memref<1029x128xbf16, #tpu.memory_space<vmem>>, vector<1029x128xbf16>
    %cst = arith.constant dense<0.000000e+00> : vector<512x128xf32>
    %2 = tpu.matmul %0, %1, %cst {dimension_numbers = #tpu.dot_dimension_numbers<[1], [0], [0], [1], [0, 0, 1, 1], [], []>} : vector<512x1029xbf16>, vector<1029x128xbf16>, vector<512x128xf32> -> vector<512x128xf32>
    %c0_3 = arith.constant 0 : index
    %c0_4 = arith.constant 0 : index
    %3 = vector.load %arg4[%c0_3, %c0_4] : memref<1x128xf32, #tpu.memory_space<vmem>>, vector<1x128xf32>
    %4 = vector.broadcast %3 : vector<1x128xf32> to vector<512x128xf32>
    %5 = arith.addf %2, %4 : vector<512x128xf32>
    %cst_5 = arith.constant 0.000000e+00 : f32
    %6 = vector.broadcast %cst_5 : f32 to vector<512x128xf32>
    %7 = arith.maximumf %5, %6 : vector<512x128xf32>
    %8 = arith.truncf %7 : vector<512x128xf32> to vector<512x128xbf16>
    %c0_6 = arith.constant 0 : index
    %c0_7 = arith.constant 0 : index
    %9 = vector.load %arg5[%c0_6, %c0_7] : memref<512x128xbf16, #tpu.memory_space<vmem>>, vector<512x128xbf16>
    tpu.vector_store %arg5[%c0_6, %c0_7], %8 {strides = array<i32>} : memref<512x128xbf16, #tpu.memory_space<vmem>>, vector<512x128xbf16>,
    return
  }
  func.func @transform_0(%arg0: i32, %arg1: i32) -> (i32, i32) {
    %c0_i32 = arith.constant 0 : i32
    %c0_i32_0 = arith.constant 0 : i32
    return %arg0, %c0_i32 : i32, i32
  }
  func.func @transform_1(%arg0: i32, %arg1: i32) -> (i32, i32) {
    %c0_i32 = arith.constant 0 : i32
    %c0_i32_0 = arith.constant 0 : i32
    return %c0_i32, %arg1 : i32, i32
  }
  func.func @transform_2(%arg0: i32, %arg1: i32) -> (i32, i32) {
    %c0_i32 = arith.constant 0 : i32
    %c0_i32_0 = arith.constant 0 : i32
    return %c0_i32, %arg1 : i32, i32
  }
  func.func @transform_3(%arg0: i32, %arg1: i32) -> (i32, i32) {
    %c0_i32 = arith.constant 0 : i32
    return %arg0, %arg1 : i32, i32
  }
}

module attributes {stable_mosaic.version = 11 : i64} {
  func.func @_fused_kernel_2d(%arg0: i32, %arg1: i32, %arg2: memref<512x108xbf16, #tpu.memory_space<vmem>>, %arg3: memref<108x128xbf16, #tpu.memory_space<vmem>>, %arg4: memref<1x128xf32, #tpu.memory_space<vmem>>, %arg5: memref<512x128xbf16, #tpu.memory_space<vmem>>) attributes {dimension_semantics = [#tpu.dimension_semantics<parallel>, #tpu.dimension_semantics<parallel>], iteration_bounds = array<i64: 2, 1>, scalar_prefetch = 0 : i64, scratch_operands = 0 : i64, tpu.core_type = #tpu.core_type<tc>, window_params = [{transform_indices = @transform_0, window_bounds = array<i64: 512, 108>}, {transform_indices = @transform_1, window_bounds = array<i64: 108, 128>}, {transform_indices = @transform_2, window_bounds = array<i64: 1, 128>}, {transform_indices = @transform_3, window_bounds = array<i64: 512, 128>}]} {
    %c0 = arith.constant 0 : index
    %c0_0 = arith.constant 0 : index
    %0 = vector.load %arg2[%c0, %c0_0] : memref<512x108xbf16, #tpu.memory_space<vmem>>, vector<512x108xbf16>
    %c0_1 = arith.constant 0 : index
    %c0_2 = arith.constant 0 : index
    %1 = vector.load %arg3[%c0_1, %c0_2] : memref<108x128xbf16, #tpu.memory_space<vmem>>, vector<108x128xbf16>
    %cst = arith.constant dense<0.000000e+00> : vector<512x128xf32>
    %2 = tpu.matmul %0, %1, %cst {dimension_numbers = #tpu.dot_dimension_numbers<[1], [0], [0], [1], [0, 0, 1, 1], [], []>} : vector<512x108xbf16>, vector<108x128xbf16>, vector<512x128xf32> -> vector<512x128xf32>
    %c0_3 = arith.constant 0 : index
    %c0_4 = arith.constant 0 : index
    %3 = vector.load %arg4[%c0_3, %c0_4] : memref<1x128xf32, #tpu.memory_space<vmem>>, vector<1x128xf32>
    %4 = vector.broadcast %3 : vector<1x128xf32> to vector<512x128xf32>
    %5 = arith.addf %2, %4 : vector<512x128xf32>
    %cst_5 = arith.constant 0.000000e+00 : f32
    %6 = vector.broadcast %cst_5 : f32 to vector<512x128xf32>
    %7 = arith.maximumf %5, %6 : vector<512x128xf32>
    %8 = arith.truncf %7 : vector<512x128xf32> to vector<512x128xbf16>
    %c0_6 = arith.constant 0 : index
    %c0_7 = arith.constant 0 : index
    %9 = vector.load %arg5[%c0_6, %c0_7] : memref<512x128xbf16, #tpu.memory_space<vmem>>, vector<512x128xbf16>
    tpu.vector_store %arg5[%c0_6, %c0_7], %8 {strides = array<i32>} : memref<512x128xbf16, #tpu.memory_space<vmem>>, vector<512x128xbf16>,
    return
  }
  func.func @transform_0(%arg0: i32, %arg1: i32) -> (i32, i32) {
    %c0_i32 = arith.constant 0 : i32
    %c0_i32_0 = arith.constant 0 : i32
    return %arg0, %c0_i32 : i32, i32
  }
  func.func @transform_1(%arg0: i32, %arg1: i32) -> (i32, i32) {
    %c0_i32 = arith.constant 0 : i32
    %c0_i32_0 = arith.constant 0 : i32
    return %c0_i32, %arg1 : i32, i32
  }
  func.func @transform_2(%arg0: i32, %arg1: i32) -> (i32, i32) {
    %c0_i32 = arith.constant 0 : i32
    %c0_i32_0 = arith.constant 0 : i32
    return %c0_i32, %arg1 : i32, i32
  }
  func.func @transform_3(%arg0: i32, %arg1: i32) -> (i32, i32) {
    %c0_i32 = arith.constant 0 : i32
    return %arg0, %arg1 : i32, i32
  }
}

module attributes {stable_mosaic.version = 11 : i64} {
  func.func @_fused_kernel_2d(%arg0: i32, %arg1: i32, %arg2: memref<512x108xbf16, #tpu.memory_space<vmem>>, %arg3: memref<108x128xbf16, #tpu.memory_space<vmem>>, %arg4: memref<1x128xf32, #tpu.memory_space<vmem>>, %arg5: memref<512x128xbf16, #tpu.memory_space<vmem>>, %arg6: memref<512x128xbf16, #tpu.memory_space<vmem>>) attributes {dimension_semantics = [#tpu.dimension_semantics<parallel>, #tpu.dimension_semantics<parallel>], iteration_bounds = array<i64: 2, 1>, scalar_prefetch = 0 : i64, scratch_operands = 0 : i64, tpu.core_type = #tpu.core_type<tc>, window_params = [{transform_indices = @transform_0, window_bounds = array<i64: 512, 108>}, {transform_indices = @transform_1, window_bounds = array<i64: 108, 128>}, {transform_indices = @transform_2, window_bounds = array<i64: 1, 128>}, {transform_indices = @transform_3, window_bounds = array<i64: 512, 128>}, {transform_indices = @transform_4, window_bounds = array<i64: 512, 128>}]} {
    %c0 = arith.constant 0 : index
    %c0_0 = arith.constant 0 : index
    %0 = vector.load %arg2[%c0, %c0_0] : memref<512x108xbf16, #tpu.memory_space<vmem>>, vector<512x108xbf16>
    %c0_1 = arith.constant 0 : index
    %c0_2 = arith.constant 0 : index
    %1 = vector.load %arg3[%c0_1, %c0_2] : memref<108x128xbf16, #tpu.memory_space<vmem>>, vector<108x128xbf16>
    %cst = arith.constant dense<0.000000e+00> : vector<512x128xf32>
    %2 = tpu.matmul %0, %1, %cst {dimension_numbers = #tpu.dot_dimension_numbers<[1], [0], [0], [1], [0, 0, 1, 1], [], []>} : vector<512x108xbf16>, vector<108x128xbf16>, vector<512x128xf32> -> vector<512x128xf32>
    %c0_3 = arith.constant 0 : index
    %c0_4 = arith.constant 0 : index
    %3 = vector.load %arg4[%c0_3, %c0_4] : memref<1x128xf32, #tpu.memory_space<vmem>>, vector<1x128xf32>
    %4 = vector.broadcast %3 : vector<1x128xf32> to vector<512x128xf32>
    %5 = arith.addf %2, %4 : vector<512x128xf32>
    %c0_5 = arith.constant 0 : index
    %c0_6 = arith.constant 0 : index
    %6 = vector.load %arg5[%c0_5, %c0_6] : memref<512x128xbf16, #tpu.memory_space<vmem>>, vector<512x128xbf16>
    %7 = arith.extf %6 : vector<512x128xbf16> to vector<512x128xf32>
    %8 = arith.addf %5, %7 : vector<512x128xf32>
    %cst_7 = arith.constant 0.000000e+00 : f32
    %9 = vector.broadcast %cst_7 : f32 to vector<512x128xf32>
    %10 = arith.maximumf %8, %9 : vector<512x128xf32>
    %11 = arith.truncf %10 : vector<512x128xf32> to vector<512x128xbf16>
    %c0_8 = arith.constant 0 : index
    %c0_9 = arith.constant 0 : index
    %12 = vector.load %arg6[%c0_8, %c0_9] : memref<512x128xbf16, #tpu.memory_space<vmem>>, vector<512x128xbf16>
    tpu.vector_store %arg6[%c0_8, %c0_9], %11 {strides = array<i32>} : memref<512x128xbf16, #tpu.memory_space<vmem>>, vector<512x128xbf16>,
    return
  }
  func.func @transform_0(%arg0: i32, %arg1: i32) -> (i32, i32) {
    %c0_i32 = arith.constant 0 : i32
    %c0_i32_0 = arith.constant 0 : i32
    return %arg0, %c0_i32 : i32, i32
  }
  func.func @transform_1(%arg0: i32, %arg1: i32) -> (i32, i32) {
    %c0_i32 = arith.constant 0 : i32
    %c0_i32_0 = arith.constant 0 : i32
    return %c0_i32, %arg1 : i32, i32
  }
  func.func @transform_2(%arg0: i32, %arg1: i32) -> (i32, i32) {
    %c0_i32 = arith.constant 0 : i32
    %c0_i32_0 = arith.constant 0 : i32
    return %c0_i32, %arg1 : i32, i32
  }
  func.func @transform_3(%arg0: i32, %arg1: i32) -> (i32, i32) {
    %c0_i32 = arith.constant 0 : i32
    return %arg0, %arg1 : i32, i32
  }
  func.func @transform_4(%arg0: i32, %arg1: i32) -> (i32, i32) {
    %c0_i32 = arith.constant 0 : i32
    return %arg0, %arg1 : i32, i32
  }
}

module attributes {stable_mosaic.version = 11 : i64} {
  func.func @_fused_kernel_2d(%arg0: i32, %arg1: i32, %arg2: memref<64x108xbf16, #tpu.memory_space<vmem>>, %arg3: memref<108x128xbf16, #tpu.memory_space<vmem>>, %arg4: memref<1x128xf32, #tpu.memory_space<vmem>>, %arg5: memref<64x128xbf16, #tpu.memory_space<vmem>>) attributes {dimension_semantics = [#tpu.dimension_semantics<parallel>, #tpu.dimension_semantics<parallel>], iteration_bounds = array<i64: 2, 1>, scalar_prefetch = 0 : i64, scratch_operands = 0 : i64, tpu.core_type = #tpu.core_type<tc>, window_params = [{transform_indices = @transform_0, window_bounds = array<i64: 64, 108>}, {transform_indices = @transform_1, window_bounds = array<i64: 108, 128>}, {transform_indices = @transform_2, window_bounds = array<i64: 1, 128>}, {transform_indices = @transform_3, window_bounds = array<i64: 64, 128>}]} {
    %c0 = arith.constant 0 : index
    %c0_0 = arith.constant 0 : index
    %0 = vector.load %arg2[%c0, %c0_0] : memref<64x108xbf16, #tpu.memory_space<vmem>>, vector<64x108xbf16>
    %c0_1 = arith.constant 0 : index
    %c0_2 = arith.constant 0 : index
    %1 = vector.load %arg3[%c0_1, %c0_2] : memref<108x128xbf16, #tpu.memory_space<vmem>>, vector<108x128xbf16>
    %cst = arith.constant dense<0.000000e+00> : vector<64x128xf32>
    %2 = tpu.matmul %0, %1, %cst {dimension_numbers = #tpu.dot_dimension_numbers<[1], [0], [0], [1], [0, 0, 1, 1], [], []>} : vector<64x108xbf16>, vector<108x128xbf16>, vector<64x128xf32> -> vector<64x128xf32>
    %c0_3 = arith.constant 0 : index
    %c0_4 = arith.constant 0 : index
    %3 = vector.load %arg4[%c0_3, %c0_4] : memref<1x128xf32, #tpu.memory_space<vmem>>, vector<1x128xf32>
    %4 = vector.broadcast %3 : vector<1x128xf32> to vector<64x128xf32>
    %5 = arith.addf %2, %4 : vector<64x128xf32>
    %cst_5 = arith.constant 0.000000e+00 : f32
    %6 = vector.broadcast %cst_5 : f32 to vector<64x128xf32>
    %7 = arith.maximumf %5, %6 : vector<64x128xf32>
    %8 = arith.truncf %7 : vector<64x128xf32> to vector<64x128xbf16>
    %c0_6 = arith.constant 0 : index
    %c0_7 = arith.constant 0 : index
    %9 = vector.load %arg5[%c0_6, %c0_7] : memref<64x128xbf16, #tpu.memory_space<vmem>>, vector<64x128xbf16>
    tpu.vector_store %arg5[%c0_6, %c0_7], %8 {strides = array<i32>} : memref<64x128xbf16, #tpu.memory_space<vmem>>, vector<64x128xbf16>,
    return
  }
  func.func @transform_0(%arg0: i32, %arg1: i32) -> (i32, i32) {
    %c0_i32 = arith.constant 0 : i32
    %c0_i32_0 = arith.constant 0 : i32
    return %arg0, %c0_i32 : i32, i32
  }
  func.func @transform_1(%arg0: i32, %arg1: i32) -> (i32, i32) {
    %c0_i32 = arith.constant 0 : i32
    %c0_i32_0 = arith.constant 0 : i32
    return %c0_i32, %arg1 : i32, i32
  }
  func.func @transform_2(%arg0: i32, %arg1: i32) -> (i32, i32) {
    %c0_i32 = arith.constant 0 : i32
    %c0_i32_0 = arith.constant 0 : i32
    return %c0_i32, %arg1 : i32, i32
  }
  func.func @transform_3(%arg0: i32, %arg1: i32) -> (i32, i32) {
    %c0_i32 = arith.constant 0 : i32
    return %arg0, %arg1 : i32, i32
  }
}

module attributes {stable_mosaic.version = 11 : i64} {
  func.func @_fused_kernel_2d(%arg0: i32, %arg1: i32, %arg2: memref<64x4xbf16, #tpu.memory_space<vmem>>, %arg3: memref<4x128xbf16, #tpu.memory_space<vmem>>, %arg4: memref<1x128xf32, #tpu.memory_space<vmem>>, %arg5: memref<64x128xbf16, #tpu.memory_space<vmem>>) attributes {dimension_semantics = [#tpu.dimension_semantics<parallel>, #tpu.dimension_semantics<parallel>], iteration_bounds = array<i64: 2, 1>, scalar_prefetch = 0 : i64, scratch_operands = 0 : i64, tpu.core_type = #tpu.core_type<tc>, window_params = [{transform_indices = @transform_0, window_bounds = array<i64: 64, 4>}, {transform_indices = @transform_1, window_bounds = array<i64: 4, 128>}, {transform_indices = @transform_2, window_bounds = array<i64: 1, 128>}, {transform_indices = @transform_3, window_bounds = array<i64: 64, 128>}]} {
    %c0 = arith.constant 0 : index
    %c0_0 = arith.constant 0 : index
    %0 = vector.load %arg2[%c0, %c0_0] : memref<64x4xbf16, #tpu.memory_space<vmem>>, vector<64x4xbf16>
    %c0_1 = arith.constant 0 : index
    %c0_2 = arith.constant 0 : index
    %1 = vector.load %arg3[%c0_1, %c0_2] : memref<4x128xbf16, #tpu.memory_space<vmem>>, vector<4x128xbf16>
    %cst = arith.constant dense<0.000000e+00> : vector<64x128xf32>
    %2 = tpu.matmul %0, %1, %cst {dimension_numbers = #tpu.dot_dimension_numbers<[1], [0], [0], [1], [0, 0, 1, 1], [], []>} : vector<64x4xbf16>, vector<4x128xbf16>, vector<64x128xf32> -> vector<64x128xf32>
    %c0_3 = arith.constant 0 : index
    %c0_4 = arith.constant 0 : index
    %3 = vector.load %arg4[%c0_3, %c0_4] : memref<1x128xf32, #tpu.memory_space<vmem>>, vector<1x128xf32>
    %4 = vector.broadcast %3 : vector<1x128xf32> to vector<64x128xf32>
    %5 = arith.addf %2, %4 : vector<64x128xf32>
    %6 = arith.truncf %5 : vector<64x128xf32> to vector<64x128xbf16>
    %c0_5 = arith.constant 0 : index
    %c0_6 = arith.constant 0 : index
    %7 = vector.load %arg5[%c0_5, %c0_6] : memref<64x128xbf16, #tpu.memory_space<vmem>>, vector<64x128xbf16>
    tpu.vector_store %arg5[%c0_5, %c0_6], %6 {strides = array<i32>} : memref<64x128xbf16, #tpu.memory_space<vmem>>, vector<64x128xbf16>,
    return
  }
  func.func @transform_0(%arg0: i32, %arg1: i32) -> (i32, i32) {
    %c0_i32 = arith.constant 0 : i32
    %c0_i32_0 = arith.constant 0 : i32
    return %arg0, %c0_i32 : i32, i32
  }
  func.func @transform_1(%arg0: i32, %arg1: i32) -> (i32, i32) {
    %c0_i32 = arith.constant 0 : i32
    %c0_i32_0 = arith.constant 0 : i32
    return %c0_i32, %arg1 : i32, i32
  }
  func.func @transform_2(%arg0: i32, %arg1: i32) -> (i32, i32) {
    %c0_i32 = arith.constant 0 : i32
    %c0_i32_0 = arith.constant 0 : i32
    return %c0_i32, %arg1 : i32, i32
  }
  func.func @transform_3(%arg0: i32, %arg1: i32) -> (i32, i32) {
    %c0_i32 = arith.constant 0 : i32
    return %arg0, %arg1 : i32, i32
  }
}

module attributes {stable_mosaic.version = 11 : i64} {
  func.func @_fused_kernel_2d(%arg0: i32, %arg1: i32, %arg2: memref<64x216xbf16, #tpu.memory_space<vmem>>, %arg3: memref<216x128xbf16, #tpu.memory_space<vmem>>, %arg4: memref<1x128xf32, #tpu.memory_space<vmem>>, %arg5: memref<64x128xbf16, #tpu.memory_space<vmem>>, %arg6: memref<64x128xbf16, #tpu.memory_space<vmem>>) attributes {dimension_semantics = [#tpu.dimension_semantics<parallel>, #tpu.dimension_semantics<parallel>], iteration_bounds = array<i64: 2, 1>, scalar_prefetch = 0 : i64, scratch_operands = 0 : i64, tpu.core_type = #tpu.core_type<tc>, window_params = [{transform_indices = @transform_0, window_bounds = array<i64: 64, 216>}, {transform_indices = @transform_1, window_bounds = array<i64: 216, 128>}, {transform_indices = @transform_2, window_bounds = array<i64: 1, 128>}, {transform_indices = @transform_3, window_bounds = array<i64: 64, 128>}, {transform_indices = @transform_4, window_bounds = array<i64: 64, 128>}]} {
    %c0 = arith.constant 0 : index
    %c0_0 = arith.constant 0 : index
    %0 = vector.load %arg2[%c0, %c0_0] : memref<64x216xbf16, #tpu.memory_space<vmem>>, vector<64x216xbf16>
    %c0_1 = arith.constant 0 : index
    %c0_2 = arith.constant 0 : index
    %1 = vector.load %arg3[%c0_1, %c0_2] : memref<216x128xbf16, #tpu.memory_space<vmem>>, vector<216x128xbf16>
    %cst = arith.constant dense<0.000000e+00> : vector<64x128xf32>
    %2 = tpu.matmul %0, %1, %cst {dimension_numbers = #tpu.dot_dimension_numbers<[1], [0], [0], [1], [0, 0, 1, 1], [], []>} : vector<64x216xbf16>, vector<216x128xbf16>, vector<64x128xf32> -> vector<64x128xf32>
    %c0_3 = arith.constant 0 : index
    %c0_4 = arith.constant 0 : index
    %3 = vector.load %arg4[%c0_3, %c0_4] : memref<1x128xf32, #tpu.memory_space<vmem>>, vector<1x128xf32>
    %4 = vector.broadcast %3 : vector<1x128xf32> to vector<64x128xf32>
    %5 = arith.addf %2, %4 : vector<64x128xf32>
    %c0_5 = arith.constant 0 : index
    %c0_6 = arith.constant 0 : index
    %6 = vector.load %arg5[%c0_5, %c0_6] : memref<64x128xbf16, #tpu.memory_space<vmem>>, vector<64x128xbf16>
    %7 = arith.extf %6 : vector<64x128xbf16> to vector<64x128xf32>
    %8 = arith.addf %5, %7 : vector<64x128xf32>
    %cst_7 = arith.constant 0.000000e+00 : f32
    %9 = vector.broadcast %cst_7 : f32 to vector<64x128xf32>
    %10 = arith.maximumf %8, %9 : vector<64x128xf32>
    %11 = arith.truncf %10 : vector<64x128xf32> to vector<64x128xbf16>
    %c0_8 = arith.constant 0 : index
    %c0_9 = arith.constant 0 : index
    %12 = vector.load %arg6[%c0_8, %c0_9] : memref<64x128xbf16, #tpu.memory_space<vmem>>, vector<64x128xbf16>
    tpu.vector_store %arg6[%c0_8, %c0_9], %11 {strides = array<i32>} : memref<64x128xbf16, #tpu.memory_space<vmem>>, vector<64x128xbf16>,
    return
  }
  func.func @transform_0(%arg0: i32, %arg1: i32) -> (i32, i32) {
    %c0_i32 = arith.constant 0 : i32
    %c0_i32_0 = arith.constant 0 : i32
    return %arg0, %c0_i32 : i32, i32
  }
  func.func @transform_1(%arg0: i32, %arg1: i32) -> (i32, i32) {
    %c0_i32 = arith.constant 0 : i32
    %c0_i32_0 = arith.constant 0 : i32
    return %c0_i32, %arg1 : i32, i32
  }
  func.func @transform_2(%arg0: i32, %arg1: i32) -> (i32, i32) {
    %c0_i32 = arith.constant 0 : i32
    %c0_i32_0 = arith.constant 0 : i32
    return %c0_i32, %arg1 : i32, i32
  }
  func.func @transform_3(%arg0: i32, %arg1: i32) -> (i32, i32) {
    %c0_i32 = arith.constant 0 : i32
    return %arg0, %arg1 : i32, i32
  }
  func.func @transform_4(%arg0: i32, %arg1: i32) -> (i32, i32) {
    %c0_i32 = arith.constant 0 : i32
    return %arg0, %arg1 : i32, i32
  }
}

module attributes {stable_mosaic.version = 11 : i64} {
  func.func @_fused_kernel_2d(%arg0: i32, %arg1: i32, %arg2: memref<16x216xbf16, #tpu.memory_space<vmem>>, %arg3: memref<216x128xbf16, #tpu.memory_space<vmem>>, %arg4: memref<1x128xf32, #tpu.memory_space<vmem>>, %arg5: memref<16x128xbf16, #tpu.memory_space<vmem>>) attributes {dimension_semantics = [#tpu.dimension_semantics<parallel>, #tpu.dimension_semantics<parallel>], iteration_bounds = array<i64: 1, 1>, scalar_prefetch = 0 : i64, scratch_operands = 0 : i64, tpu.core_type = #tpu.core_type<tc>, window_params = [{transform_indices = @transform_0, window_bounds = array<i64: 16, 216>}, {transform_indices = @transform_1, window_bounds = array<i64: 216, 128>}, {transform_indices = @transform_2, window_bounds = array<i64: 1, 128>}, {transform_indices = @transform_3, window_bounds = array<i64: 16, 128>}]} {
    %c0 = arith.constant 0 : index
    %c0_0 = arith.constant 0 : index
    %0 = vector.load %arg2[%c0, %c0_0] : memref<16x216xbf16, #tpu.memory_space<vmem>>, vector<16x216xbf16>
    %c0_1 = arith.constant 0 : index
    %c0_2 = arith.constant 0 : index
    %1 = vector.load %arg3[%c0_1, %c0_2] : memref<216x128xbf16, #tpu.memory_space<vmem>>, vector<216x128xbf16>
    %cst = arith.constant dense<0.000000e+00> : vector<16x128xf32>
    %2 = tpu.matmul %0, %1, %cst {dimension_numbers = #tpu.dot_dimension_numbers<[1], [0], [0], [1], [0, 0, 1, 1], [], []>} : vector<16x216xbf16>, vector<216x128xbf16>, vector<16x128xf32> -> vector<16x128xf32>
    %c0_3 = arith.constant 0 : index
    %c0_4 = arith.constant 0 : index
    %3 = vector.load %arg4[%c0_3, %c0_4] : memref<1x128xf32, #tpu.memory_space<vmem>>, vector<1x128xf32>
    %4 = vector.broadcast %3 : vector<1x128xf32> to vector<16x128xf32>
    %5 = arith.addf %2, %4 : vector<16x128xf32>
    %cst_5 = arith.constant 0.000000e+00 : f32
    %6 = vector.broadcast %cst_5 : f32 to vector<16x128xf32>
    %7 = arith.maximumf %5, %6 : vector<16x128xf32>
    %8 = arith.truncf %7 : vector<16x128xf32> to vector<16x128xbf16>
    %c0_6 = arith.constant 0 : index
    %c0_7 = arith.constant 0 : index
    %9 = vector.load %arg5[%c0_6, %c0_7] : memref<16x128xbf16, #tpu.memory_space<vmem>>, vector<16x128xbf16>
    tpu.vector_store %arg5[%c0_6, %c0_7], %8 {strides = array<i32>} : memref<16x128xbf16, #tpu.memory_space<vmem>>, vector<16x128xbf16>,
    return
  }
  func.func @transform_0(%arg0: i32, %arg1: i32) -> (i32, i32) {
    %c0_i32 = arith.constant 0 : i32
    %c0_i32_0 = arith.constant 0 : i32
    return %arg0, %c0_i32 : i32, i32
  }
  func.func @transform_1(%arg0: i32, %arg1: i32) -> (i32, i32) {
    %c0_i32 = arith.constant 0 : i32
    %c0_i32_0 = arith.constant 0 : i32
    return %c0_i32, %arg1 : i32, i32
  }
  func.func @transform_2(%arg0: i32, %arg1: i32) -> (i32, i32) {
    %c0_i32 = arith.constant 0 : i32
    %c0_i32_0 = arith.constant 0 : i32
    return %c0_i32, %arg1 : i32, i32
  }
  func.func @transform_3(%arg0: i32, %arg1: i32) -> (i32, i32) {
    %c0_i32 = arith.constant 0 : i32
    return %arg0, %arg1 : i32, i32
  }
}

module attributes {stable_mosaic.version = 11 : i64} {
  func.func @_fused_kernel_2d(%arg0: i32, %arg1: i32, %arg2: memref<16x8xbf16, #tpu.memory_space<vmem>>, %arg3: memref<8x128xbf16, #tpu.memory_space<vmem>>, %arg4: memref<1x128xf32, #tpu.memory_space<vmem>>, %arg5: memref<16x128xbf16, #tpu.memory_space<vmem>>) attributes {dimension_semantics = [#tpu.dimension_semantics<parallel>, #tpu.dimension_semantics<parallel>], iteration_bounds = array<i64: 1, 1>, scalar_prefetch = 0 : i64, scratch_operands = 0 : i64, tpu.core_type = #tpu.core_type<tc>, window_params = [{transform_indices = @transform_0, window_bounds = array<i64: 16, 8>}, {transform_indices = @transform_1, window_bounds = array<i64: 8, 128>}, {transform_indices = @transform_2, window_bounds = array<i64: 1, 128>}, {transform_indices = @transform_3, window_bounds = array<i64: 16, 128>}]} {
    %c0 = arith.constant 0 : index
    %c0_0 = arith.constant 0 : index
    %0 = vector.load %arg2[%c0, %c0_0] : memref<16x8xbf16, #tpu.memory_space<vmem>>, vector<16x8xbf16>
    %c0_1 = arith.constant 0 : index
    %c0_2 = arith.constant 0 : index
    %1 = vector.load %arg3[%c0_1, %c0_2] : memref<8x128xbf16, #tpu.memory_space<vmem>>, vector<8x128xbf16>
    %cst = arith.constant dense<0.000000e+00> : vector<16x128xf32>
    %2 = tpu.matmul %0, %1, %cst {dimension_numbers = #tpu.dot_dimension_numbers<[1], [0], [0], [1], [0, 0, 1, 1], [], []>} : vector<16x8xbf16>, vector<8x128xbf16>, vector<16x128xf32> -> vector<16x128xf32>
    %c0_3 = arith.constant 0 : index
    %c0_4 = arith.constant 0 : index
    %3 = vector.load %arg4[%c0_3, %c0_4] : memref<1x128xf32, #tpu.memory_space<vmem>>, vector<1x128xf32>
    %4 = vector.broadcast %3 : vector<1x128xf32> to vector<16x128xf32>
    %5 = arith.addf %2, %4 : vector<16x128xf32>
    %6 = arith.truncf %5 : vector<16x128xf32> to vector<16x128xbf16>
    %c0_5 = arith.constant 0 : index
    %c0_6 = arith.constant 0 : index
    %7 = vector.load %arg5[%c0_5, %c0_6] : memref<16x128xbf16, #tpu.memory_space<vmem>>, vector<16x128xbf16>
    tpu.vector_store %arg5[%c0_5, %c0_6], %6 {strides = array<i32>} : memref<16x128xbf16, #tpu.memory_space<vmem>>, vector<16x128xbf16>,
    return
  }
  func.func @transform_0(%arg0: i32, %arg1: i32) -> (i32, i32) {
    %c0_i32 = arith.constant 0 : i32
    %c0_i32_0 = arith.constant 0 : i32
    return %arg0, %c0_i32 : i32, i32
  }
  func.func @transform_1(%arg0: i32, %arg1: i32) -> (i32, i32) {
    %c0_i32 = arith.constant 0 : i32
    %c0_i32_0 = arith.constant 0 : i32
    return %c0_i32, %arg1 : i32, i32
  }
  func.func @transform_2(%arg0: i32, %arg1: i32) -> (i32, i32) {
    %c0_i32 = arith.constant 0 : i32
    %c0_i32_0 = arith.constant 0 : i32
    return %c0_i32, %arg1 : i32, i32
  }
  func.func @transform_3(%arg0: i32, %arg1: i32) -> (i32, i32) {
    %c0_i32 = arith.constant 0 : i32
    return %arg0, %arg1 : i32, i32
  }
}

module attributes {stable_mosaic.version = 11 : i64} {
  func.func @_fused_kernel_2d(%arg0: i32, %arg1: i32, %arg2: memref<16x432xbf16, #tpu.memory_space<vmem>>, %arg3: memref<432x128xbf16, #tpu.memory_space<vmem>>, %arg4: memref<1x128xf32, #tpu.memory_space<vmem>>, %arg5: memref<16x128xbf16, #tpu.memory_space<vmem>>, %arg6: memref<16x128xbf16, #tpu.memory_space<vmem>>) attributes {dimension_semantics = [#tpu.dimension_semantics<parallel>, #tpu.dimension_semantics<parallel>], iteration_bounds = array<i64: 1, 1>, scalar_prefetch = 0 : i64, scratch_operands = 0 : i64, tpu.core_type = #tpu.core_type<tc>, window_params = [{transform_indices = @transform_0, window_bounds = array<i64: 16, 432>}, {transform_indices = @transform_1, window_bounds = array<i64: 432, 128>}, {transform_indices = @transform_2, window_bounds = array<i64: 1, 128>}, {transform_indices = @transform_3, window_bounds = array<i64: 16, 128>}, {transform_indices = @transform_4, window_bounds = array<i64: 16, 128>}]} {
    %c0 = arith.constant 0 : index
    %c0_0 = arith.constant 0 : index
    %0 = vector.load %arg2[%c0, %c0_0] : memref<16x432xbf16, #tpu.memory_space<vmem>>, vector<16x432xbf16>
    %c0_1 = arith.constant 0 : index
    %c0_2 = arith.constant 0 : index
    %1 = vector.load %arg3[%c0_1, %c0_2] : memref<432x128xbf16, #tpu.memory_space<vmem>>, vector<432x128xbf16>
    %cst = arith.constant dense<0.000000e+00> : vector<16x128xf32>
    %2 = tpu.matmul %0, %1, %cst {dimension_numbers = #tpu.dot_dimension_numbers<[1], [0], [0], [1], [0, 0, 1, 1], [], []>} : vector<16x432xbf16>, vector<432x128xbf16>, vector<16x128xf32> -> vector<16x128xf32>
    %c0_3 = arith.constant 0 : index
    %c0_4 = arith.constant 0 : index
    %3 = vector.load %arg4[%c0_3, %c0_4] : memref<1x128xf32, #tpu.memory_space<vmem>>, vector<1x128xf32>
    %4 = vector.broadcast %3 : vector<1x128xf32> to vector<16x128xf32>
    %5 = arith.addf %2, %4 : vector<16x128xf32>
    %c0_5 = arith.constant 0 : index
    %c0_6 = arith.constant 0 : index
    %6 = vector.load %arg5[%c0_5, %c0_6] : memref<16x128xbf16, #tpu.memory_space<vmem>>, vector<16x128xbf16>
    %7 = arith.extf %6 : vector<16x128xbf16> to vector<16x128xf32>
    %8 = arith.addf %5, %7 : vector<16x128xf32>
    %cst_7 = arith.constant 0.000000e+00 : f32
    %9 = vector.broadcast %cst_7 : f32 to vector<16x128xf32>
    %10 = arith.maximumf %8, %9 : vector<16x128xf32>
    %11 = arith.truncf %10 : vector<16x128xf32> to vector<16x128xbf16>
    %c0_8 = arith.constant 0 : index
    %c0_9 = arith.constant 0 : index
    %12 = vector.load %arg6[%c0_8, %c0_9] : memref<16x128xbf16, #tpu.memory_space<vmem>>, vector<16x128xbf16>
    tpu.vector_store %arg6[%c0_8, %c0_9], %11 {strides = array<i32>} : memref<16x128xbf16, #tpu.memory_space<vmem>>, vector<16x128xbf16>,
    return
  }
  func.func @transform_0(%arg0: i32, %arg1: i32) -> (i32, i32) {
    %c0_i32 = arith.constant 0 : i32
    %c0_i32_0 = arith.constant 0 : i32
    return %arg0, %c0_i32 : i32, i32
  }
  func.func @transform_1(%arg0: i32, %arg1: i32) -> (i32, i32) {
    %c0_i32 = arith.constant 0 : i32
    %c0_i32_0 = arith.constant 0 : i32
    return %c0_i32, %arg1 : i32, i32
  }
  func.func @transform_2(%arg0: i32, %arg1: i32) -> (i32, i32) {
    %c0_i32 = arith.constant 0 : i32
    %c0_i32_0 = arith.constant 0 : i32
    return %c0_i32, %arg1 : i32, i32
  }
  func.func @transform_3(%arg0: i32, %arg1: i32) -> (i32, i32) {
    %c0_i32 = arith.constant 0 : i32
    return %arg0, %arg1 : i32, i32
  }
  func.func @transform_4(%arg0: i32, %arg1: i32) -> (i32, i32) {
    %c0_i32 = arith.constant 0 : i32
    return %arg0, %arg1 : i32, i32
  }
}

module attributes {stable_mosaic.version = 11 : i64} {
  func.func @_fused_kernel_2d(%arg0: i32, %arg1: i32, %arg2: memref<2x432xbf16, #tpu.memory_space<vmem>>, %arg3: memref<432x128xbf16, #tpu.memory_space<vmem>>, %arg4: memref<1x128xf32, #tpu.memory_space<vmem>>, %arg5: memref<2x128xbf16, #tpu.memory_space<vmem>>) attributes {dimension_semantics = [#tpu.dimension_semantics<parallel>, #tpu.dimension_semantics<parallel>], iteration_bounds = array<i64: 1, 1>, scalar_prefetch = 0 : i64, scratch_operands = 0 : i64, tpu.core_type = #tpu.core_type<tc>, window_params = [{transform_indices = @transform_0, window_bounds = array<i64: 2, 432>}, {transform_indices = @transform_1, window_bounds = array<i64: 432, 128>}, {transform_indices = @transform_2, window_bounds = array<i64: 1, 128>}, {transform_indices = @transform_3, window_bounds = array<i64: 2, 128>}]} {
    %c0 = arith.constant 0 : index
    %c0_0 = arith.constant 0 : index
    %0 = vector.load %arg2[%c0, %c0_0] : memref<2x432xbf16, #tpu.memory_space<vmem>>, vector<2x432xbf16>
    %c0_1 = arith.constant 0 : index
    %c0_2 = arith.constant 0 : index
    %1 = vector.load %arg3[%c0_1, %c0_2] : memref<432x128xbf16, #tpu.memory_space<vmem>>, vector<432x128xbf16>
    %cst = arith.constant dense<0.000000e+00> : vector<2x128xf32>
    %2 = tpu.matmul %0, %1, %cst {dimension_numbers = #tpu.dot_dimension_numbers<[1], [0], [0], [1], [0, 0, 1, 1], [], []>} : vector<2x432xbf16>, vector<432x128xbf16>, vector<2x128xf32> -> vector<2x128xf32>
    %c0_3 = arith.constant 0 : index
    %c0_4 = arith.constant 0 : index
    %3 = vector.load %arg4[%c0_3, %c0_4] : memref<1x128xf32, #tpu.memory_space<vmem>>, vector<1x128xf32>
    %4 = vector.broadcast %3 : vector<1x128xf32> to vector<2x128xf32>
    %5 = arith.addf %2, %4 : vector<2x128xf32>
    %cst_5 = arith.constant 0.000000e+00 : f32
    %6 = vector.broadcast %cst_5 : f32 to vector<2x128xf32>
    %7 = arith.maximumf %5, %6 : vector<2x128xf32>
    %8 = arith.truncf %7 : vector<2x128xf32> to vector<2x128xbf16>
    %c0_6 = arith.constant 0 : index
    %c0_7 = arith.constant 0 : index
    %9 = vector.load %arg5[%c0_6, %c0_7] : memref<2x128xbf16, #tpu.memory_space<vmem>>, vector<2x128xbf16>
    tpu.vector_store %arg5[%c0_6, %c0_7], %8 {strides = array<i32>} : memref<2x128xbf16, #tpu.memory_space<vmem>>, vector<2x128xbf16>,
    return
  }
  func.func @transform_0(%arg0: i32, %arg1: i32) -> (i32, i32) {
    %c0_i32 = arith.constant 0 : i32
    %c0_i32_0 = arith.constant 0 : i32
    return %arg0, %c0_i32 : i32, i32
  }
  func.func @transform_1(%arg0: i32, %arg1: i32) -> (i32, i32) {
    %c0_i32 = arith.constant 0 : i32
    %c0_i32_0 = arith.constant 0 : i32
    return %c0_i32, %arg1 : i32, i32
  }
  func.func @transform_2(%arg0: i32, %arg1: i32) -> (i32, i32) {
    %c0_i32 = arith.constant 0 : i32
    %c0_i32_0 = arith.constant 0 : i32
    return %c0_i32, %arg1 : i32, i32
  }
  func.func @transform_3(%arg0: i32, %arg1: i32) -> (i32, i32) {
    %c0_i32 = arith.constant 0 : i32
    return %arg0, %arg1 : i32, i32
  }
}

module attributes {stable_mosaic.version = 11 : i64} {
  func.func @_fused_kernel_2d(%arg0: i32, %arg1: i32, %arg2: memref<2x16xbf16, #tpu.memory_space<vmem>>, %arg3: memref<16x128xbf16, #tpu.memory_space<vmem>>, %arg4: memref<1x128xf32, #tpu.memory_space<vmem>>, %arg5: memref<2x128xbf16, #tpu.memory_space<vmem>>) attributes {dimension_semantics = [#tpu.dimension_semantics<parallel>, #tpu.dimension_semantics<parallel>], iteration_bounds = array<i64: 1, 1>, scalar_prefetch = 0 : i64, scratch_operands = 0 : i64, tpu.core_type = #tpu.core_type<tc>, window_params = [{transform_indices = @transform_0, window_bounds = array<i64: 2, 16>}, {transform_indices = @transform_1, window_bounds = array<i64: 16, 128>}, {transform_indices = @transform_2, window_bounds = array<i64: 1, 128>}, {transform_indices = @transform_3, window_bounds = array<i64: 2, 128>}]} {
    %c0 = arith.constant 0 : index
    %c0_0 = arith.constant 0 : index
    %0 = vector.load %arg2[%c0, %c0_0] : memref<2x16xbf16, #tpu.memory_space<vmem>>, vector<2x16xbf16>
    %c0_1 = arith.constant 0 : index
    %c0_2 = arith.constant 0 : index
    %1 = vector.load %arg3[%c0_1, %c0_2] : memref<16x128xbf16, #tpu.memory_space<vmem>>, vector<16x128xbf16>
    %cst = arith.constant dense<0.000000e+00> : vector<2x128xf32>
    %2 = tpu.matmul %0, %1, %cst {dimension_numbers = #tpu.dot_dimension_numbers<[1], [0], [0], [1], [0, 0, 1, 1], [], []>} : vector<2x16xbf16>, vector<16x128xbf16>, vector<2x128xf32> -> vector<2x128xf32>
    %c0_3 = arith.constant 0 : index
    %c0_4 = arith.constant 0 : index
    %3 = vector.load %arg4[%c0_3, %c0_4] : memref<1x128xf32, #tpu.memory_space<vmem>>, vector<1x128xf32>
    %4 = vector.broadcast %3 : vector<1x128xf32> to vector<2x128xf32>
    %5 = arith.addf %2, %4 : vector<2x128xf32>
    %6 = arith.truncf %5 : vector<2x128xf32> to vector<2x128xbf16>
    %c0_5 = arith.constant 0 : index
    %c0_6 = arith.constant 0 : index
    %7 = vector.load %arg5[%c0_5, %c0_6] : memref<2x128xbf16, #tpu.memory_space<vmem>>, vector<2x128xbf16>
    tpu.vector_store %arg5[%c0_5, %c0_6], %6 {strides = array<i32>} : memref<2x128xbf16, #tpu.memory_space<vmem>>, vector<2x128xbf16>,
    return
  }
  func.func @transform_0(%arg0: i32, %arg1: i32) -> (i32, i32) {
    %c0_i32 = arith.constant 0 : i32
    %c0_i32_0 = arith.constant 0 : i32
    return %arg0, %c0_i32 : i32, i32
  }
  func.func @transform_1(%arg0: i32, %arg1: i32) -> (i32, i32) {
    %c0_i32 = arith.constant 0 : i32
    %c0_i32_0 = arith.constant 0 : i32
    return %c0_i32, %arg1 : i32, i32
  }
  func.func @transform_2(%arg0: i32, %arg1: i32) -> (i32, i32) {
    %c0_i32 = arith.constant 0 : i32
    %c0_i32_0 = arith.constant 0 : i32
    return %c0_i32, %arg1 : i32, i32
  }
  func.func @transform_3(%arg0: i32, %arg1: i32) -> (i32, i32) {
    %c0_i32 = arith.constant 0 : i32
    return %arg0, %arg1 : i32, i32
  }
}

module attributes {stable_mosaic.version = 11 : i64} {
  func.func @_fused_kernel_2d(%arg0: i32, %arg1: i32, %arg2: memref<2x864xbf16, #tpu.memory_space<vmem>>, %arg3: memref<864x128xbf16, #tpu.memory_space<vmem>>, %arg4: memref<1x128xf32, #tpu.memory_space<vmem>>, %arg5: memref<2x128xbf16, #tpu.memory_space<vmem>>, %arg6: memref<2x128xbf16, #tpu.memory_space<vmem>>) attributes {dimension_semantics = [#tpu.dimension_semantics<parallel>, #tpu.dimension_semantics<parallel>], iteration_bounds = array<i64: 1, 1>, scalar_prefetch = 0 : i64, scratch_operands = 0 : i64, tpu.core_type = #tpu.core_type<tc>, window_params = [{transform_indices = @transform_0, window_bounds = array<i64: 2, 864>}, {transform_indices = @transform_1, window_bounds = array<i64: 864, 128>}, {transform_indices = @transform_2, window_bounds = array<i64: 1, 128>}, {transform_indices = @transform_3, window_bounds = array<i64: 2, 128>}, {transform_indices = @transform_4, window_bounds = array<i64: 2, 128>}]} {
    %c0 = arith.constant 0 : index
    %c0_0 = arith.constant 0 : index
    %0 = vector.load %arg2[%c0, %c0_0] : memref<2x864xbf16, #tpu.memory_space<vmem>>, vector<2x864xbf16>
    %c0_1 = arith.constant 0 : index
    %c0_2 = arith.constant 0 : index
    %1 = vector.load %arg3[%c0_1, %c0_2] : memref<864x128xbf16, #tpu.memory_space<vmem>>, vector<864x128xbf16>
    %cst = arith.constant dense<0.000000e+00> : vector<2x128xf32>
    %2 = tpu.matmul %0, %1, %cst {dimension_numbers = #tpu.dot_dimension_numbers<[1], [0], [0], [1], [0, 0, 1, 1], [], []>} : vector<2x864xbf16>, vector<864x128xbf16>, vector<2x128xf32> -> vector<2x128xf32>
    %c0_3 = arith.constant 0 : index
    %c0_4 = arith.constant 0 : index
    %3 = vector.load %arg4[%c0_3, %c0_4] : memref<1x128xf32, #tpu.memory_space<vmem>>, vector<1x128xf32>
    %4 = vector.broadcast %3 : vector<1x128xf32> to vector<2x128xf32>
    %5 = arith.addf %2, %4 : vector<2x128xf32>
    %c0_5 = arith.constant 0 : index
    %c0_6 = arith.constant 0 : index
    %6 = vector.load %arg5[%c0_5, %c0_6] : memref<2x128xbf16, #tpu.memory_space<vmem>>, vector<2x128xbf16>
    %7 = arith.extf %6 : vector<2x128xbf16> to vector<2x128xf32>
    %8 = arith.addf %5, %7 : vector<2x128xf32>
    %cst_7 = arith.constant 0.000000e+00 : f32
    %9 = vector.broadcast %cst_7 : f32 to vector<2x128xf32>
    %10 = arith.maximumf %8, %9 : vector<2x128xf32>
    %11 = arith.truncf %10 : vector<2x128xf32> to vector<2x128xbf16>
    %c0_8 = arith.constant 0 : index
    %c0_9 = arith.constant 0 : index
    %12 = vector.load %arg6[%c0_8, %c0_9] : memref<2x128xbf16, #tpu.memory_space<vmem>>, vector<2x128xbf16>
    tpu.vector_store %arg6[%c0_8, %c0_9], %11 {strides = array<i32>} : memref<2x128xbf16, #tpu.memory_space<vmem>>, vector<2x128xbf16>,
    return
  }
  func.func @transform_0(%arg0: i32, %arg1: i32) -> (i32, i32) {
    %c0_i32 = arith.constant 0 : i32
    %c0_i32_0 = arith.constant 0 : i32
    return %arg0, %c0_i32 : i32, i32
  }
  func.func @transform_1(%arg0: i32, %arg1: i32) -> (i32, i32) {
    %c0_i32 = arith.constant 0 : i32
    %c0_i32_0 = arith.constant 0 : i32
    return %c0_i32, %arg1 : i32, i32
  }
  func.func @transform_2(%arg0: i32, %arg1: i32) -> (i32, i32) {
    %c0_i32 = arith.constant 0 : i32
    %c0_i32_0 = arith.constant 0 : i32
    return %c0_i32, %arg1 : i32, i32
  }
  func.func @transform_3(%arg0: i32, %arg1: i32) -> (i32, i32) {
    %c0_i32 = arith.constant 0 : i32
    return %arg0, %arg1 : i32, i32
  }
  func.func @transform_4(%arg0: i32, %arg1: i32) -> (i32, i32) {
    %c0_i32 = arith.constant 0 : i32
    return %arg0, %arg1 : i32, i32
  }
}

</mosaic_0001>

<bundles_post_ra>
// kernel: forward.12
= control target key start
LH: loop header
LB: loop body
LE: loop exit
PB: predicated region body
PF: predicated region fallthrough
CT: control target
= control target key end

     0   :  { %s5951_s12 = smov 0   ;;  %s5953_s13 = smov 0   ;;  %s7435_s0 = inlined_call_operand.vmem [shape: bf16[1024,1029], index: 0, kind: input, shape index: {}]   ;;  %s7436_s1 = inlined_call_operand.vmem [shape: bf16[1029,128], index: 1, kind: input, shape index: {}]   ;;  %s7437_s2 = inlined_call_operand.vmem [shape: f32[1,128], index: 2, kind: input, shape index: {}]   ;;  %s7438_s3 = inlined_call_operand.vmem [shape: bf16[1024,128], index: 3, kind: output, shape index: {}]  }
   0x1   :  { %s5955_s14 = smov 0  }
   0x2 LB: > { %s25_s15 = sadd.s32 1, %s5923_s13  ;;  %p4553_p0 = scmp.ge.s32.totalorder %s5927_s14, 1  ;;  %s5927_s14 = sphi %s5955_s14, %s13_s14   ;;  %s5923_s13 = sphi %s5953_s13, %s7536_s13   ;;  %s5919_s12 = sphi %s5951_s12, %s7535_s12  }
   0x3   : > { %p27_p1 = scmp.ge.s32.totalorder %s25_s15, 2  ;;  %p170_p2 = scmp.lt.s32.totalorder %s5927_s14, 3 }
   0x5   : > { %s7538_s15 = smov (%p27_p1, %s25_s15), 0  ;;  %p171_p3 = pnand %p4553_p0, %p170_p2 }
   0x7   : > { %174 = sbr.rel (%p171_p3) target bundleno = 851 (0x353), region = 32 }
   0xc   : > { %v5423_v0 = vld [vmem:[%s7436_s1 + $0x38] sm:$0xff]   ;;  %v5929_v1 = vmov 0   ;;  %s4554_s18 = sshll.u32 %s5919_s12, 6  ;;  %v5424_v2 = vld [vmem:[%s7436_s1 + $0x30] sm:$0xff]   ;;  %v5425_v3 = vld [vmem:[%s7436_s1 + $0x28] sm:$0xff]   ;;  %vm2609_vm0 = vcmask 1041408  }
   0xd   : > { %2616 = vmatprep.subr.bf16.mxu0 %v5929_v1  ;;  %5364 = vmatprep.subr.bf16.mxu1 %v5929_v1  ;;  %p206_p4 = scmp.lt.s32.totalorder %s4554_s18, 127  ;;  %v5426_v4 = vld [vmem:[%s7436_s1 + $0x20] sm:$0xff]   ;;  %v5427_v5 = vld [vmem:[%s7436_s1 + $0x18] sm:$0xff]   ;;  %v5428_v7 = vld [vmem:[%s7436_s1 + $0x10] sm:$0xff]   ;;  %vm2610_vm1 = vcmask 1042432   ;;  %vm2512_vm2 = vcmask 39936  }
   0xe   : > { %2617 = vmatpush1.bf16.msra.mxu0 %v5423_v0  ;;  %5380 = vmatpush1.bf16.msra.mxu1 %v5423_v0  ;;  %v5429_v9 = vld [vmem:[%s7436_s1 + $0x8] sm:$0xff]   ;;  %v5430_v10 = vld [vmem:[%s7436_s1] sm:$0xff]   ;;  %v5431_v11 = vld [vmem:[%s7436_s1 + $0x78] sm:$0xff]  }
   0xf   : > { %2618 = vmatprep.subr.bf16.mxu0 %v5929_v1  ;;  %5365 = vmatprep.subr.bf16.mxu1 %v5929_v1  ;;  %s7540_s18 = smov (!%p206_p4, %s4554_s18), 127  ;;  %v5432_v12 = vld [vmem:[%s7436_s1 + $0x70] sm:$0xff]   ;;  %v5433_v13 = vld [vmem:[%s7436_s1 + $0x68] sm:$0xff]   ;;  %v5434_v14 = vld [vmem:[%s7436_s1 + $0x60] sm:$0xff]  }
  0x10   : > { %s5396_s25 = smul.u32 36, %s7540_s18  ;;  %v5435_v15 = vld [vmem:[%s7436_s1 + $0x58] sm:$0xff]   ;;  %v5436_v16 = vld [vmem:[%s7436_s1 + $0x50] sm:$0xff]   ;;  %v5437_v17 = vld [vmem:[%s7436_s1 + $0x48] sm:$0xff]  }
  0x11   : > { %v5438_v18 = vld [vmem:[%s7436_s1 + $0x40] sm:$0xff]   ;;  %v5445_v21 = vld [vmem:[%s7436_s1 + $0xb8] sm:$0xff]   ;;  %v5447_v25 = vld [vmem:[%s7436_s1 + $0xb0] sm:$0xff]  }
  0x12   : > { %2619 = vmatpush1.bf16.msra.mxu0 %v5424_v2  ;;  %5381 = vmatpush1.bf16.msra.mxu1 %v5424_v2  ;;  %s5998_s30 = scalar_lea.vmem %s7435_s0, %s5396_s25  ;;  %v5446_v22 = vld [vmem:[%s7436_s1 + $0x138] sm:$0xff]   ;;  %v5456_v26 = vld [vmem:[%s7436_s1 + $0x130] sm:$0xff]   ;;  %v5454_v29 = vld [vmem:[%s7436_s1 + $0xa8] sm:$0xff]  }
  0x13   : > { %2620 = vmatprep.subr.bf16.mxu0 %v5929_v1  ;;  %5366 = vmatprep.subr.bf16.mxu1 %v5929_v1  ;;  %v5441_v6 = vld [vmem:[%s5998_s30 + $0x4] ss:$36 sps:$4 sm:$0xff]   ;;  %v5448_v23 = vld [vmem:[%s5998_s30 + $0x4c] ss:$36 sps:$4 sm:$0xff]   ;;  %v5457_v30 = vld [vmem:[%s5998_s30 + $0x94] ss:$36 sps:$4 sm:$0xff]  }
  0x14   : > { %v5444_v8 = vld [vmem:[%s5998_s30 + $0x6c4] ss:$36 sps:$4 sm:$0xff]   ;;  %2648 = vmatprep.mubr.bf16.mxu0 %v5441_v6  ;;  %v5450_v24 = vld [vmem:[%s5998_s30 + $0x70c] ss:$36 sps:$4 sm:$0xff]   ;;  %v5459_v31 = vld [vmem:[%s5998_s30 + $0x754] ss:$36 sps:$4 sm:$0xff]  }
  0x15   : > { %2840 = vmatprep.mubr.bf16.mxu1 %v5444_v8  ;;  %v5439_v19 = vld [vmem:[%s5998_s30] ss:$36 sps:$4 sm:$0xff]   ;;  %v5452_v27 = vld [vmem:[%s5998_s30 + $0x48] ss:$36 sps:$4 sm:$0xff]   ;;  %v5461_v34 = vld [vmem:[%s5998_s30 + $0x90] ss:$36 sps:$4 sm:$0xff]  }
  0x16   : > { %2621 = vmatpush1.bf16.msra.mxu0 %v5425_v3  ;;  %5382 = vmatpush1.bf16.msra.mxu1 %v5425_v3  ;;  %v5442_v20 = vld [vmem:[%s5998_s30 + $0x6c0] ss:$36 sps:$4 sm:$0xff]   ;;  %v5453_v28 = vld [vmem:[%s5998_s30 + $0x708] ss:$36 sps:$4 sm:$0xff]   ;;  %v5462_v35 = vld [vmem:[%s5998_s30 + $0x750] ss:$36 sps:$4 sm:$0xff]  }
  0x17   : > { %2622 = vmatprep.subr.bf16.mxu0 %v5929_v1  ;;  %5367 = vmatprep.subr.bf16.mxu1 %v5929_v1  ;;  %v5472_v32 = vld [vmem:[%s7436_s1 + $0x128] sm:$0xff]   ;;  %v5455_v33 = vld [vmem:[%s7436_s1 + $0xa0] sm:$0xff]   ;;  %v5463_v37 = vld [vmem:[%s7436_s1 + $0x98] sm:$0xff]  }
  0x18   : > { %v5482_v36 = vld [vmem:[%s7436_s1 + $0x120] sm:$0xff]   ;;  %v5498_v40 = vld [vmem:[%s7436_s1 + $0x118] sm:$0xff]   ;;  %v5464_v41 = vld [vmem:[%s7436_s1 + $0x90] sm:$0xff]  }
  0x19   : > { %v5465_v38 = vld [vmem:[%s5998_s30 + $0xdc] ss:$36 sps:$4 sm:$0xff]   ;;  %v5471_v44 = vld [vmem:[%s7436_s1 + $0x88] sm:$0xff]   ;;  %v5508_v47 = vld [vmem:[%s7436_s1 + $0x110] sm:$0xff]  }
  0x1a   : > { %2623 = vmatpush1.bf16.msra.mxu0 %v5426_v4  ;;  %5383 = vmatpush1.bf16.msra.mxu1 %v5426_v4  ;;  %v5467_v39 = vld [vmem:[%s5998_s30 + $0x79c] ss:$36 sps:$4 sm:$0xff]   ;;  %v5474_v45 = vld [vmem:[%s5998_s30 + $0x124] ss:$36 sps:$4 sm:$0xff]   ;;  %v5483_v53 = vld [vmem:[%s5998_s30 + $0x16c] ss:$36 sps:$4 sm:$0xff]  }
  0x1b   : > { %2624 = vmatprep.subr.bf16.mxu0 %v5929_v1  ;;  %5368 = vmatprep.subr.bf16.mxu1 %v5929_v1  ;;  %v5469_v42 = vld [vmem:[%s5998_s30 + $0xd8] ss:$36 sps:$4 sm:$0xff]   ;;  %v5476_v46 = vld [vmem:[%s5998_s30 + $0x7e4] ss:$36 sps:$4 sm:$0xff]   ;;  %v5485_v54 = vld [vmem:[%s5998_s30 + $0x82c] ss:$36 sps:$4 sm:$0xff]  }
  0x1c   : > { %v5470_v43 = vld [vmem:[%s5998_s30 + $0x798] ss:$36 sps:$4 sm:$0xff]   ;;  %v5473_v48 = vld [vmem:[%s7436_s1 + $0x80] sm:$0xff]   ;;  %v5522_v51 = vld [vmem:[%s7436_s1 + $0x108] sm:$0xff]  }
  0x1d   : > { %v5478_v49 = vld [vmem:[%s5998_s30 + $0x120] ss:$36 sps:$4 sm:$0xff]   ;;  %v5480_v52 = vld [vmem:[%s7436_s1 + $0xf8] sm:$0xff]   ;;  %v5481_v56 = vld [vmem:[%s7436_s1 + $0xf0] sm:$0xff]  }
  0x1e   : > { %2625 = vmatpush1.bf16.msra.mxu0 %v5427_v5  ;;  %5384 = vmatpush1.bf16.msra.mxu1 %v5427_v5  ;;  %v5479_v50 = vld [vmem:[%s5998_s30 + $0x7e0] ss:$36 sps:$4 sm:$0xff]   ;;  %v5487_v57 = vld [vmem:[%s5998_s30 + $0x168] ss:$36 sps:$4 sm:$0xff]   ;;  %v5491_v60 = vld [vmem:[%s5998_s30 + $0x1b4] ss:$36 sps:$4 sm:$0xff]  }
  0x1f   : > { %2626 = vmatprep.subr.bf16.mxu0 %v5929_v1  ;;  %5369 = vmatprep.subr.bf16.mxu1 %v5929_v1  ;;  %v5530_v55 = vld [vmem:[%s7436_s1 + $0x100] sm:$0xff]   ;;  %v5488_v58 = vld [vmem:[%s5998_s30 + $0x828] ss:$36 sps:$4 sm:$0xff]   ;;  %v5493_v61 = vld [vmem:[%s5998_s30 + $0x874] ss:$36 sps:$4 sm:$0xff]  }
  0x20   : > { %v5489_v59 = vld [vmem:[%s7436_s1 + $0xe8] sm:$0xff]   ;;  %v5543_v62 = vld [vmem:[%s7436_s1 + $0x178] sm:$0xff]   ;;  %v5490_v63 = vld [vmem:[%s7436_s1 + $0xe0] sm:$0xff]  }
  0x21   : > { %v5495_v0 = vld [vmem:[%s5998_s30 + $0x1b0] ss:$36 sps:$4 sm:$0xff]   ;;  %v5497_v4 = vld [vmem:[%s7436_s1 + $0xd8] sm:$0xff]  }
  0x22   : > { %2627 = vmatpush1.bf16.msra.mxu0 %v5428_v7  ;;  %5385 = vmatpush1.bf16.msra.mxu1 %v5428_v7  ;;  %v5496_v2 = vld [vmem:[%s5998_s30 + $0x870] ss:$36 sps:$4 sm:$0xff]   ;;  %v5500_v5 = vld [vmem:[%s5998_s30 + $0x1fc] ss:$36 sps:$4 sm:$0xff]   ;;  %v5565_v7 = vld [vmem:[%s7436_s1 + $0x168] sm:$0xff]  }
  0x23   : > { %2628 = vmatprep.subr.bf16.mxu0 %v5929_v1  ;;  %5370 = vmatprep.subr.bf16.mxu1 %v5929_v1  ;;  %v5551_v3 = vld [vmem:[%s7436_s1 + $0x170] sm:$0xff]   ;;  %v5502_v6 = vld [vmem:[%s5998_s30 + $0x8bc] ss:$36 sps:$4 sm:$0xff]  }
  0x24   : > { %v5499_v8 = vld [vmem:[%s7436_s1 + $0xd0] sm:$0xff]  }
  0x26   : > { %2629 = vmatpush1.bf16.msra.mxu0 %v5429_v9  ;;  %5386 = vmatpush1.bf16.msra.mxu1 %v5429_v9  ;;  %v5504_v9 = vld [vmem:[%s5998_s30 + $0x1f8] ss:$36 sps:$4 sm:$0xff]  }
  0x27   : > { %2630 = vmatprep.subr.bf16.mxu0 %v5929_v1  ;;  %5371 = vmatprep.subr.bf16.mxu1 %v5929_v1 }
  0x2a   : > { %2631 = vmatpush1.bf16.msra.mxu0 %v5430_v10  ;;  %5387 = vmatpush1.bf16.msra.mxu1 %v5430_v10  ;;  %v5505_v10 = vld [vmem:[%s5998_s30 + $0x8b8] ss:$36 sps:$4 sm:$0xff]  }
  0x2b   : > { %2632 = vmatprep.subr.bf16.mxu0 %v5929_v1  ;;  %5372 = vmatprep.subr.bf16.mxu1 %v5929_v1 }
  0x2e   : > { %2633 = vmatpush2.bf16.msra.mxu0 %v5431_v11  ;;  %5388 = vmatpush2.bf16.msra.mxu1 %v5431_v11  ;;  %v5506_v11 = vld [vmem:[%s7436_s1 + $0xc8] sm:$0xff]  }
  0x2f   : > { %2634 = vmatprep.subr.bf16.mxu0 %v5929_v1  ;;  %5373 = vmatprep.subr.bf16.mxu1 %v5929_v1 }
  0x32   : > { %2635 = vmatpush2.bf16.msra.mxu0 %v5432_v12  ;;  %5389 = vmatpush2.bf16.msra.mxu1 %v5432_v12  ;;  %v5509_v12 = vld [vmem:[%s5998_s30 + $0x244] ss:$36 sps:$4 sm:$0xff]  }
  0x33   : > { %2636 = vmatprep.subr.bf16.mxu0 %v5929_v1  ;;  %5374 = vmatprep.subr.bf16.mxu1 %v5929_v1 }
  0x36   : > { %2637 = vmatpush2.bf16.msra.mxu0 %v5433_v13  ;;  %5390 = vmatpush2.bf16.msra.mxu1 %v5433_v13  ;;  %v5513_v13 = vld [vmem:[%s5998_s30 + $0xc] ss:$36 sps:$4 sm:$0xff]  }
  0x37   : > { %2638 = vmatprep.subr.bf16.mxu0 %v5929_v1  ;;  %5375 = vmatprep.subr.bf16.mxu1 %v5929_v1 }
  0x3a   : > { %2639 = vmatpush2.bf16.msra.mxu0 %v5434_v14  ;;  %5391 = vmatpush2.bf16.msra.mxu1 %v5434_v14  ;;  %v5573_v14 = vld [vmem:[%s7436_s1 + $0x160] sm:$0xff]  }
  0x3b   : > { %2640 = vmatprep.subr.bf16.mxu0 %v5929_v1  ;;  %5376 = vmatprep.subr.bf16.mxu1 %v5929_v1 }
  0x3e   : > { %2641 = vmatpush2.bf16.msra.mxu0 %v5435_v15  ;;  %5392 = vmatpush2.bf16.msra.mxu1 %v5435_v15  ;;  %v5507_v15 = vld [vmem:[%s7436_s1 + $0xc0] sm:$0xff]  }
  0x3f   : > { %2642 = vmatprep.subr.bf16.mxu0 %v5929_v1  ;;  %5377 = vmatprep.subr.bf16.mxu1 %v5929_v1 }
  0x42   : > { %2643 = vmatpush2.bf16.msra.mxu0 %v5436_v16  ;;  %5393 = vmatpush2.bf16.msra.mxu1 %v5436_v16  ;;  %v5586_v16 = vld [vmem:[%s7436_s1 + $0x158] sm:$0xff]  }
  0x43   : > { %2644 = vmatprep.subr.bf16.mxu0 %v5929_v1  ;;  %5378 = vmatprep.subr.bf16.mxu1 %v5929_v1 }
  0x46   : > { %2645 = vmatpush2.bf16.msra.mxu0 %v5437_v17  ;;  %5394 = vmatpush2.bf16.msra.mxu1 %v5437_v17  ;;  %v5511_v17 = vld [vmem:[%s5998_s30 + $0x8] ss:$36 sps:$4 sm:$0xff]  }
  0x47   : > { %2646 = vmatprep.subr.bf16.mxu0 %v5929_v1  ;;  %5379 = vmatprep.subr.bf16.mxu1 %v5929_v1 }
  0x4a   : > { %2647 = vmatpush2.bf16.msra.mxu0 %v5438_v18  ;;  %5395 = vmatpush2.bf16.msra.mxu1 %v5438_v18  ;;  %v5514_v18 = vld [vmem:[%s5998_s30 + $0x240] ss:$36 sps:$4 sm:$0xff]  }
  0x4b   : > { %2905 = vmatprep.subr.bf16.mxu1 %v5929_v1  ;;  %3194 = vmatprep.subr.bf16.mxu0 %v5929_v1 }
  0x4d   : > { %2649 = vmatmul.mubr.bf16.vlgmr.msra.gmra.mxu0 %v5439_v19  ;;  %2841 = vmatmul.mubr.bf16.vlgmr.msra.gmra.mxu1 %v5442_v20  ;;  %v5515_v19 = vld [vmem:[%s7436_s1 + $0x1b8] sm:$0xff]   ;;  %v5516_v20 = vld [vmem:[%s5998_s30 + $0x28c] ss:$36 sps:$4 sm:$0xff]  }
  0x4e   : > { %2906 = vmatpush1.bf16.msra.mxu1 %v5445_v21  ;;  %3195 = vmatpush1.bf16.msra.mxu0 %v5446_v22  ;;  %v5518_v21 = vld [vmem:[%s5998_s30 + $0x54] ss:$36 sps:$4 sm:$0xff]  }
  0x4f   : > { %2907 = vmatprep.subr.bf16.mxu1 %v5929_v1  ;;  %2656 = vmatprep.mubr.bf16.mxu0 %v5448_v23  ;;  %v5594_v22 = vld [vmem:[%s7436_s1 + $0x150] sm:$0xff]  }
  0x50   : > { %2848 = vmatprep.mubr.bf16.mxu1 %v5450_v24  ;;  %3196 = vmatprep.subr.bf16.mxu0 %v5929_v1  ;;  %v5529_v23 = vld [vmem:[%s7436_s1 + $0x1b0] sm:$0xff]   ;;  %v5520_v24 = vld [vmem:[%s5998_s30 + $0x288] ss:$36 sps:$4 sm:$0xff]  }
  0x52   : > { %2908 = vmatpush1.bf16.msra.mxu1 %v5447_v25  ;;  %3197 = vmatpush1.bf16.msra.mxu0 %v5456_v26  ;;  %v5521_v25 = vld [vmem:[%s5998_s30 + $0x50] ss:$36 sps:$4 sm:$0xff]  }
  0x53   : > { %2909 = vmatprep.subr.bf16.mxu1 %v5929_v1  ;;  %3198 = vmatprep.subr.bf16.mxu0 %v5929_v1  ;;  %v5523_v26 = vld [vmem:[%s5998_s30 + $0x2d4] ss:$36 sps:$4 sm:$0xff]  }
  0x55   : > { %2657 = vmatmul.mubr.bf16.gmra.mxu0 %v5452_v27  ;;  %2849 = vmatmul.mubr.bf16.gmra.mxu1 %v5453_v28  ;;  %v5525_v27 = vld [vmem:[%s5998_s30 + $0x9c] ss:$36 sps:$4 sm:$0xff]   ;;  %v5544_v28 = vld [vmem:[%s7436_s1 + $0x1a8] sm:$0xff]  }
  0x56   : > { %2910 = vmatpush1.bf16.msra.mxu1 %v5454_v29  ;;  %2664 = vmatprep.mubr.bf16.mxu0 %v5457_v30  ;;  %v5930_v29 = vmov 65535  }
  0x57   : > { %2911 = vmatprep.subr.bf16.mxu1 %v5929_v1  ;;  %2856 = vmatprep.mubr.bf16.mxu1 %v5459_v31  ;;  %v2611_v30 = vsel %vm2609_vm0, 4294967295, %v5930_v29  ;;  %v5608_v31 = vld [vmem:[%s7436_s1 + $0x148] sm:$0xff]  }
  0x58   : > { %3199 = vmatpush1.bf16.msra.mxu0 %v5472_v32  ;;  %v5629_v32 = vld [vmem:[%s7436_s1 + $0x200] ss:$0 sps:$4 sm:$0x77]   ;;  %v5606_v29 = vld [vmem:[%s5998_s30 + $0x5e8] ss:$36 sps:$4 sm:$0xff]  }
  0x59   : > { %3200 = vmatprep.subr.bf16.mxu0 %v5929_v1 }
  0x5a   : > { %2912 = vmatpush1.bf16.msra.mxu1 %v5455_v33  ;;  %v5558_v33 = vld [vmem:[%s7436_s1 + $0x1a0] sm:$0xff]  }
  0x5b   : > { %2913 = vmatprep.subr.bf16.mxu1 %v5929_v1 }
  0x5c   : > { %3201 = vmatpush1.bf16.msra.mxu0 %v5482_v36  ;;  %v5527_v36 = vld [vmem:[%s5998_s30 + $0x2d0] ss:$36 sps:$4 sm:$0xff]  }
  0x5d   : > { %2665 = vmatmul.mubr.bf16.gmra.mxu0 %v5461_v34  ;;  %2857 = vmatmul.mubr.bf16.gmra.mxu1 %v5462_v35  ;;  %v5616_v34 = vld [vmem:[%s7436_s1 + $0x140] sm:$0xff]   ;;  %v2612_v35 = vsel %vm2610_vm1, %v2611_v30, 0  ;;  %v5607_v30 = vld [vmem:[%s5998_s30 + $0x3b0] ss:$36 sps:$4 sm:$0xff]  }
  0x5e   : > { %2914 = vmatpush1.bf16.msra.mxu1 %v5463_v37  ;;  %2672 = vmatprep.mubr.bf16.mxu0 %v5465_v38  ;;  %v5528_v37 = vld [vmem:[%s5998_s30 + $0x98] ss:$36 sps:$4 sm:$0xff]   ;;  %v6248_v38 = vand.u32 %v5629_v32, %v2612_v35 }
  0x5f   : > { %2915 = vmatprep.subr.bf16.mxu1 %v5929_v1  ;;  %2864 = vmatprep.mubr.bf16.mxu1 %v5467_v39  ;;  %v5531_v39 = vld [vmem:[%s5998_s30 + $0x31c] ss:$36 sps:$4 sm:$0xff]  }
  0x60   : > { %3202 = vmatprep.subr.bf16.mxu0 %v5929_v1  ;;  %v5611_v32 = vld [vmem:[%s5998_s30 + $0x3fc] ss:$36 sps:$4 sm:$0xff]  }
  0x61   : > { %3203 = vmatpush1.bf16.msra.mxu0 %v5498_v40  ;;  %v5533_v40 = vld [vmem:[%s5998_s30 + $0xe4] ss:$36 sps:$4 sm:$0xff]   ;;  %v5617_v35 = vld [vmem:[%s5998_s30 + $0x67c] ss:$36 sps:$4 sm:$0xff]  }
  0x62   : > { %2916 = vmatpush1.bf16.msra.mxu1 %v5464_v41  ;;  %3204 = vmatprep.subr.bf16.mxu0 %v5929_v1  ;;  %v5572_v41 = vld [vmem:[%s7436_s1 + $0x198] sm:$0xff]  }
  0x63   : > { %2917 = vmatprep.subr.bf16.mxu1 %v5929_v1 }
  0x65   : > { %2673 = vmatmul.mubr.bf16.gmra.mxu0 %v5469_v42  ;;  %2865 = vmatmul.mubr.bf16.gmra.mxu1 %v5470_v43  ;;  %v5587_v42 = vld [vmem:[%s7436_s1 + $0x190] sm:$0xff]   ;;  %v5535_v43 = vld [vmem:[%s5998_s30 + $0x318] ss:$36 sps:$4 sm:$0xff]  }
  0x66   : > { %2918 = vmatpush1.bf16.msra.mxu1 %v5471_v44  ;;  %2680 = vmatprep.mubr.bf16.mxu0 %v5474_v45  ;;  %v5536_v44 = vld [vmem:[%s5998_s30 + $0xe0] ss:$36 sps:$4 sm:$0xff]  }
  0x67   : > { %2919 = vmatprep.subr.bf16.mxu1 %v5929_v1  ;;  %2872 = vmatprep.mubr.bf16.mxu1 %v5476_v46  ;;  %v5537_v45 = vld [vmem:[%s5998_s30 + $0x364] ss:$36 sps:$4 sm:$0xff]   ;;  %v5539_v46 = vld [vmem:[%s5998_s30 + $0x12c] ss:$36 sps:$4 sm:$0xff]  }
  0x68   : > { %3205 = vmatpush1.bf16.msra.mxu0 %v5508_v47  ;;  %v5601_v47 = vld [vmem:[%s7436_s1 + $0x188] sm:$0xff]  }
  0x69   : > { %3206 = vmatprep.subr.bf16.mxu0 %v5929_v1 }
  0x6a   : > { %2920 = vmatpush1.bf16.msra.mxu1 %v5473_v48  ;;  %v5615_v48 = vld [vmem:[%s7436_s1 + $0x180] sm:$0xff]  }
  0x6b   : > { %2921 = vmatprep.subr.bf16.mxu1 %v5929_v1 }
  0x6c   : > { %3207 = vmatpush1.bf16.msra.mxu0 %v5522_v51  ;;  %v5545_v51 = vld [vmem:[%s5998_s30 + $0x3ac] ss:$36 sps:$4 sm:$0xff]  }
  0x6d   : > { %2681 = vmatmul.mubr.bf16.gmra.mxu0 %v5478_v49  ;;  %2873 = vmatmul.mubr.bf16.gmra.mxu1 %v5479_v50  ;;  %v5541_v49 = vld [vmem:[%s5998_s30 + $0x360] ss:$36 sps:$4 sm:$0xff]   ;;  %v5542_v50 = vld [vmem:[%s5998_s30 + $0x128] ss:$36 sps:$4 sm:$0xff]  }
  0x6e   : > { %2922 = vmatpush2.bf16.msra.mxu1 %v5480_v52  ;;  %2688 = vmatprep.mubr.bf16.mxu0 %v5483_v53  ;;  %v5547_v52 = vld [vmem:[%s5998_s30 + $0x174] ss:$36 sps:$4 sm:$0xff]  }
  0x6f   : > { %2923 = vmatprep.subr.bf16.mxu1 %v5929_v1  ;;  %2880 = vmatprep.mubr.bf16.mxu1 %v5485_v54  ;;  %v5630_v53 = vld [vmem:[%s7436_s1 + $0x1f8] sm:$0xff]   ;;  %v5643_v54 = vld [vmem:[%s7436_s1 + $0x1f0] sm:$0xff]  }
  0x70   : > { %3208 = vmatprep.subr.bf16.mxu0 %v5929_v1 }
  0x71   : > { %3209 = vmatpush1.bf16.msra.mxu0 %v5530_v55  ;;  %v5549_v55 = vld [vmem:[%s5998_s30 + $0x3a8] ss:$36 sps:$4 sm:$0xff]  }
  0x72   : > { %2924 = vmatpush2.bf16.msra.mxu1 %v5481_v56  ;;  %3210 = vmatprep.subr.bf16.mxu0 %v5929_v1  ;;  %v5550_v56 = vld [vmem:[%s5998_s30 + $0x170] ss:$36 sps:$4 sm:$0xff]  }
  0x73   : > { %2925 = vmatprep.subr.bf16.mxu1 %v5929_v1 }
  0x75   : > { %2689 = vmatmul.mubr.bf16.gmra.mxu0 %v5487_v57  ;;  %2881 = vmatmul.mubr.bf16.gmra.mxu1 %v5488_v58  ;;  %v5552_v57 = vld [vmem:[%s5998_s30 + $0x3f4] ss:$36 sps:$4 sm:$0xff]   ;;  %v5554_v58 = vld [vmem:[%s5998_s30 + $0x1bc] ss:$36 sps:$4 sm:$0xff]  }
  0x76   : > { %2926 = vmatpush2.bf16.msra.mxu1 %v5489_v59  ;;  %2696 = vmatprep.mubr.bf16.mxu0 %v5491_v60  ;;  %v5656_v59 = vld [vmem:[%s7436_s1 + $0x1e8] sm:$0xff]   ;;  %v5556_v60 = vld [vmem:[%s5998_s30 + $0x3f0] ss:$36 sps:$4 sm:$0xff]  }
  0x77   : > { %2927 = vmatprep.subr.bf16.mxu1 %v5929_v1  ;;  %2888 = vmatprep.mubr.bf16.mxu1 %v5493_v61  ;;  %v5557_v61 = vld [vmem:[%s5998_s30 + $0x1b8] ss:$36 sps:$4 sm:$0xff]  }
  0x78   : > { %3211 = vmatpush2.bf16.msra.mxu0 %v5543_v62  ;;  %v5559_v62 = vld [vmem:[%s5998_s30 + $0x43c] ss:$36 sps:$4 sm:$0xff]  }
  0x79   : > { %3212 = vmatprep.subr.bf16.mxu0 %v5929_v1 }
  0x7a   : > { %2928 = vmatpush2.bf16.msra.mxu1 %v5490_v63  ;;  %v5561_v63 = vld [vmem:[%s5998_s30 + $0x204] ss:$36 sps:$4 sm:$0xff]  }
  0x7b   : > { %2929 = vmatprep.subr.bf16.mxu1 %v5929_v1 }
  0x7c   : > { %3213 = vmatpush2.bf16.msra.mxu0 %v5551_v3  ;;  %v5564_v3 = vld [vmem:[%s5998_s30 + $0x200] ss:$36 sps:$4 sm:$0xff]  }
  0x7d   : > { %2697 = vmatmul.mubr.bf16.gmra.mxu0 %v5495_v0  ;;  %2889 = vmatmul.mubr.bf16.gmra.mxu1 %v5496_v2  ;;  %v5669_v0 = vld [vmem:[%s7436_s1 + $0x1e0] sm:$0xff]   ;;  %v5563_v2 = vld [vmem:[%s5998_s30 + $0x438] ss:$36 sps:$4 sm:$0xff]  }
  0x7e   : > { %2930 = vmatpush2.bf16.msra.mxu1 %v5497_v4  ;;  %2704 = vmatprep.mubr.bf16.mxu0 %v5500_v5  ;;  %v5566_v4 = vld [vmem:[%s5998_s30 + $0x484] ss:$36 sps:$4 sm:$0xff]   ;;  %v5568_v5 = vld [vmem:[%s5998_s30 + $0x24c] ss:$36 sps:$4 sm:$0xff]  }
  0x7f   : > { %2931 = vmatprep.subr.bf16.mxu1 %v5929_v1  ;;  %2896 = vmatprep.mubr.bf16.mxu1 %v5502_v6  ;;  %v5570_v6 = vld [vmem:[%s5998_s30 + $0x480] ss:$36 sps:$4 sm:$0xff]  }
  0x80   : > { %3214 = vmatprep.subr.bf16.mxu0 %v5929_v1 }
  0x81   : > { %3215 = vmatpush2.bf16.msra.mxu0 %v5565_v7  ;;  %v5571_v7 = vld [vmem:[%s5998_s30 + $0x248] ss:$36 sps:$4 sm:$0xff]  }
  0x82   : > { %2932 = vmatpush2.bf16.msra.mxu1 %v5499_v8  ;;  %3216 = vmatprep.subr.bf16.mxu0 %v5929_v1  ;;  %v5574_v8 = vld [vmem:[%s5998_s30 + $0x4cc] ss:$36 sps:$4 sm:$0xff]  }
  0x83   : > { %2933 = vmatprep.subr.bf16.mxu1 %v5929_v1 }
  0x85   : > { %2705 = vmatmul.mubr.bf16.gmra.mxu0 %v5504_v9  ;;  %2897 = vmatmul.mubr.bf16.gmra.mxu1 %v5505_v10  ;;  %v5576_v9 = vld [vmem:[%s5998_s30 + $0x294] ss:$36 sps:$4 sm:$0xff]  }
  0x86   : > { %2934 = vmatpush2.bf16.msra.mxu1 %v5506_v11  ;;  %2712 = vmatprep.mubr.bf16.mxu0 %v5509_v12  ;;  %v5682_v10 = vld [vmem:[%s7436_s1 + $0x1d8] sm:$0xff]   ;;  %v5578_v11 = vld [vmem:[%s5998_s30 + $0x4c8] ss:$36 sps:$4 sm:$0xff]   ;;  %v5579_v12 = vld [vmem:[%s5998_s30 + $0x290] ss:$36 sps:$4 sm:$0xff]  }
  0x87   : > { %2935 = vmatprep.subr.bf16.mxu1 %v5929_v1  ;;  %2937 = vmatprep.mubr.bf16.mxu1 %v5513_v13  ;;  %v5580_v13 = vld [vmem:[%s5998_s30 + $0x514] ss:$36 sps:$4 sm:$0xff]  }
  0x88   : > { %3217 = vmatpush2.bf16.msra.mxu0 %v5573_v14  ;;  %v5582_v14 = vld [vmem:[%s5998_s30 + $0x2dc] ss:$36 sps:$4 sm:$0xff]  }
  0x89   : > { %3218 = vmatprep.subr.bf16.mxu0 %v5929_v1 }
  0x8a   : > { %2936 = vmatpush2.bf16.msra.mxu1 %v5507_v15  ;;  %v5584_v15 = vld [vmem:[%s5998_s30 + $0x510] ss:$36 sps:$4 sm:$0xff]  }
  0x8b   : > { %3483 = vmatprep.subr.bf16.mxu1 %v5929_v1 }
  0x8c   : > { %3219 = vmatpush2.bf16.msra.mxu0 %v5586_v16  ;;  %v5585_v16 = vld [vmem:[%s5998_s30 + $0x2d8] ss:$36 sps:$4 sm:$0xff]  }
  0x8d   : > { %2713 = vmatmul.mubr.bf16.gmra.mxu0 %v5514_v18  ;;  %2938 = vmatmul.mubr.bf16.vlgmr.msra.gmra.mxu1 %v5511_v17  ;;  %v5588_v17 = vld [vmem:[%s5998_s30 + $0x55c] ss:$36 sps:$4 sm:$0xff]   ;;  %v5590_v18 = vld [vmem:[%s5998_s30 + $0x324] ss:$36 sps:$4 sm:$0xff]  }
  0x8e   : > { %3484 = vmatpush1.bf16.msra.mxu1 %v5515_v19  ;;  %2720 = vmatprep.mubr.bf16.mxu0 %v5516_v20  ;;  %v5695_v19 = vld [vmem:[%s7436_s1 + $0x1d0] sm:$0xff]   ;;  %v5592_v20 = vld [vmem:[%s5998_s30 + $0x558] ss:$36 sps:$4 sm:$0xff]  }
  0x8f   : > { %2945 = vmatprep.mubr.bf16.mxu1 %v5518_v21  ;;  %3485 = vmatprep.subr.bf16.mxu1 %v5929_v1  ;;  %v5593_v21 = vld [vmem:[%s5998_s30 + $0x320] ss:$36 sps:$4 sm:$0xff]  }
  0x90   : > { %3220 = vmatprep.subr.bf16.mxu0 %v5929_v1 }
  0x91   : > { %3221 = vmatpush2.bf16.msra.mxu0 %v5594_v22  ;;  %v5595_v22 = vld [vmem:[%s5998_s30 + $0x5a4] ss:$36 sps:$4 sm:$0xff]  }
  0x92   : > { %3486 = vmatpush1.bf16.msra.mxu1 %v5529_v23  ;;  %3222 = vmatprep.subr.bf16.mxu0 %v5929_v1  ;;  %v5597_v23 = vld [vmem:[%s5998_s30 + $0x36c] ss:$36 sps:$4 sm:$0xff]  }
  0x93   : > { %3487 = vmatprep.subr.bf16.mxu1 %v5929_v1 }
  0x95   : > { %2721 = vmatmul.mubr.bf16.gmra.mxu0 %v5520_v24  ;;  %2946 = vmatmul.mubr.bf16.gmra.mxu1 %v5521_v25  ;;  %v5599_v24 = vld [vmem:[%s5998_s30 + $0x5a0] ss:$36 sps:$4 sm:$0xff]   ;;  %v5600_v25 = vld [vmem:[%s5998_s30 + $0x368] ss:$36 sps:$4 sm:$0xff]  }
  0x96   : > { %2728 = vmatprep.mubr.bf16.mxu0 %v5523_v26  ;;  %2953 = vmatprep.mubr.bf16.mxu1 %v5525_v27  ;;  %v5602_v26 = vld [vmem:[%s5998_s30 + $0x5ec] ss:$36 sps:$4 sm:$0xff]   ;;  %v5604_v27 = vld [vmem:[%s5998_s30 + $0x3b4] ss:$36 sps:$4 sm:$0xff]  }
  0x97   : > { %3488 = vmatpush1.bf16.msra.mxu1 %v5544_v28  ;;  %3223 = vmatpush2.bf16.msra.mxu0 %v5608_v31  ;;  %v5708_v28 = vld [vmem:[%s7436_s1 + $0x1c8] sm:$0xff]   ;;  %v5609_v31 = vld [vmem:[%s5998_s30 + $0x634] ss:$36 sps:$4 sm:$0xff]  }
  0x98   : > { %3489 = vmatprep.subr.bf16.mxu1 %v5929_v1  ;;  %3224 = vmatprep.subr.bf16.mxu0 %v5929_v1 }
  0x9b   : > { %3490 = vmatpush1.bf16.msra.mxu1 %v5558_v33  ;;  %3225 = vmatpush2.bf16.msra.mxu0 %v5616_v34  ;;  %v5613_v33 = vld [vmem:[%s5998_s30 + $0x630] ss:$36 sps:$4 sm:$0xff]   ;;  %v5614_v34 = vld [vmem:[%s5998_s30 + $0x3f8] ss:$36 sps:$4 sm:$0xff]  }
  0x9c   : > { %3491 = vmatprep.subr.bf16.mxu1 %v5929_v1  ;;  %5298 = vmatprep.subr.bf16.mxu0 %v6248_v38 }
  0x9d   : > { %2729 = vmatmul.mubr.bf16.gmra.mxu0 %v5527_v36  ;;  %2954 = vmatmul.mubr.bf16.gmra.mxu1 %v5528_v37  ;;  %v5619_v36 = vld [vmem:[%s5998_s30 + $0x444] ss:$36 sps:$4 sm:$0xff]   ;;  %v5621_v37 = vld [vmem:[%s5998_s30 + $0x678] ss:$36 sps:$4 sm:$0xff]  }
  0x9e   : > { %2736 = vmatprep.mubr.bf16.mxu0 %v5531_v39  ;;  %2961 = vmatprep.mubr.bf16.mxu1 %v5533_v40  ;;  %v5622_v39 = vld [vmem:[%s5998_s30 + $0x440] ss:$36 sps:$4 sm:$0xff]   ;;  %v5623_v40 = vld [vmem:[%s5998_s30 + $0x48c] ss:$36 sps:$4 sm:$0xff]  }
  0x9f   : > { %3492 = vmatpush1.bf16.msra.mxu1 %v5572_v41  ;;  %v5627_v41 = vld [vmem:[%s5998_s30 + $0x14] ss:$36 sps:$4 sm:$0xff]  }
  0xa0   : > { %3493 = vmatprep.subr.bf16.mxu1 %v5929_v1 }
  0xa3   : > { %3494 = vmatpush1.bf16.msra.mxu1 %v5587_v42  ;;  %v5625_v42 = vld [vmem:[%s5998_s30 + $0x10] ss:$36 sps:$4 sm:$0xff]  }
  0xa4   : > { %3495 = vmatprep.subr.bf16.mxu1 %v5929_v1 }
  0xa5   : > { %2737 = vmatmul.mubr.bf16.gmra.mxu0 %v5535_v43  ;;  %2962 = vmatmul.mubr.bf16.gmra.mxu1 %v5536_v44  ;;  %v5628_v43 = vld [vmem:[%s5998_s30 + $0x488] ss:$36 sps:$4 sm:$0xff]   ;;  %v5631_v44 = vld [vmem:[%s5998_s30 + $0x4d4] ss:$36 sps:$4 sm:$0xff]  }
  0xa6   : > { %2744 = vmatprep.mubr.bf16.mxu0 %v5537_v45  ;;  %2969 = vmatprep.mubr.bf16.mxu1 %v5539_v46  ;;  %v5633_v45 = vld [vmem:[%s5998_s30 + $0x5c] ss:$36 sps:$4 sm:$0xff]  }
  0xa7   : > { %3496 = vmatpush1.bf16.msra.mxu1 %v5601_v47 }
  0xa8   : > { %3497 = vmatprep.subr.bf16.mxu1 %v5929_v1 }
  0xab   : > { %3498 = vmatpush1.bf16.msra.mxu1 %v5615_v48 }
  0xac   : > { %3499 = vmatprep.subr.bf16.mxu1 %v5929_v1 }
  0xad   : > { %2745 = vmatmul.mubr.bf16.gmra.mxu0 %v5541_v49  ;;  %2970 = vmatmul.mubr.bf16.gmra.mxu1 %v5542_v50 }
  0xae   : > { %2752 = vmatprep.mubr.bf16.mxu0 %v5545_v51  ;;  %2977 = vmatprep.mubr.bf16.mxu1 %v5547_v52  ;;  %v5635_v52 = vld [vmem:[%s5998_s30 + $0x4d0] ss:$36 sps:$4 sm:$0xff]  }
  0xaf   : > { %3500 = vmatpush2.bf16.msra.mxu1 %v5630_v53  ;;  %v5636_v53 = vld [vmem:[%s5998_s30 + $0x58] ss:$36 sps:$4 sm:$0xff]  }
  0xb0   : > { %3501 = vmatprep.subr.bf16.mxu1 %v5929_v1 }
  0xb3   : > { %3502 = vmatpush2.bf16.msra.mxu1 %v5643_v54  ;;  %v5637_v54 = vld [vmem:[%s5998_s30 + $0x51c] ss:$36 sps:$4 sm:$0xff]  }
  0xb4   : > { %3503 = vmatprep.subr.bf16.mxu1 %v5929_v1 }
  0xb5   : > { %2753 = vmatmul.mubr.bf16.gmra.mxu0 %v5549_v55  ;;  %2978 = vmatmul.mubr.bf16.gmra.mxu1 %v5550_v56  ;;  %v5639_v55 = vld [vmem:[%s5998_s30 + $0xa4] ss:$36 sps:$4 sm:$0xff]  }
  0xb6   : > { %2760 = vmatprep.mubr.bf16.mxu0 %v5552_v57  ;;  %2985 = vmatprep.mubr.bf16.mxu1 %v5554_v58 }
  0xb7   : > { %3504 = vmatpush2.bf16.msra.mxu1 %v5656_v59 }
  0xb8   : > { %3505 = vmatprep.subr.bf16.mxu1 %v5929_v1 }
  0xbb   : > { %3506 = vmatpush2.bf16.msra.mxu1 %v5669_v0  ;;  %v5642_v0 = vld [vmem:[%s5998_s30 + $0xa0] ss:$36 sps:$4 sm:$0xff]  }
  0xbc   : > { %3507 = vmatprep.subr.bf16.mxu1 %v5929_v1 }
  0xbd   : > { %2761 = vmatmul.mubr.bf16.gmra.mxu0 %v5556_v60  ;;  %2986 = vmatmul.mubr.bf16.gmra.mxu1 %v5557_v61 }
  0xbe   : > { %2768 = vmatprep.mubr.bf16.mxu0 %v5559_v62  ;;  %2993 = vmatprep.mubr.bf16.mxu1 %v5561_v63  ;;  %v5641_v63 = vld [vmem:[%s5998_s30 + $0x518] ss:$36 sps:$4 sm:$0xff]  }
  0xbf   : > { %3508 = vmatpush2.bf16.msra.mxu1 %v5682_v10 }
  0xc0   : > { %3509 = vmatprep.subr.bf16.mxu1 %v5929_v1 }
  0xc3   : > { %3510 = vmatpush2.bf16.msra.mxu1 %v5695_v19 }
  0xc4   : > { %3511 = vmatprep.subr.bf16.mxu1 %v5929_v1 }
  0xc5   : > { %2769 = vmatmul.mubr.bf16.gmra.mxu0 %v5563_v2  ;;  %2994 = vmatmul.mubr.bf16.gmra.mxu1 %v5564_v3  ;;  %v5644_v2 = vld [vmem:[%s5998_s30 + $0x564] ss:$36 sps:$4 sm:$0xff]   ;;  %v5646_v3 = vld [vmem:[%s5998_s30 + $0xec] ss:$36 sps:$4 sm:$0xff]  }
  0xc6   : > { %2776 = vmatprep.mubr.bf16.mxu0 %v5566_v4  ;;  %3001 = vmatprep.mubr.bf16.mxu1 %v5568_v5 }
  0xc7   : > { %3512 = vmatpush2.bf16.msra.mxu1 %v5708_v28 }
  0xc8   : > { %3513 = vmatprep.subr.bf16.mxu1 %v5929_v1  ;;  %v5721_v1 = vld [vmem:[%s7436_s1 + $0x1c0] sm:$0xff]  }
  0xcb   : > { %3514 = vmatpush2.bf16.msra.mxu1 %v5721_v1  ;;  %v5660_v1 = vld [vmem:[%s5998_s30 + $0x178] ss:$36 sps:$4 sm:$0xff]  }
  0xcd   : > { %2777 = vmatmul.mubr.bf16.gmra.mxu0 %v5570_v6  ;;  %3002 = vmatmul.mubr.bf16.gmra.mxu1 %v5571_v7 }
  0xce   : > { %2784 = vmatprep.mubr.bf16.mxu0 %v5574_v8  ;;  %3009 = vmatprep.mubr.bf16.mxu1 %v5576_v9 }
  0xd5   : > { %2785 = vmatmul.mubr.bf16.gmra.mxu0 %v5578_v11  ;;  %3010 = vmatmul.mubr.bf16.gmra.mxu1 %v5579_v12  ;;  %v5648_v12 = vld [vmem:[%s5998_s30 + $0x560] ss:$36 sps:$4 sm:$0xff]  }
  0xd6   : > { %2792 = vmatprep.mubr.bf16.mxu0 %v5580_v13  ;;  %3017 = vmatprep.mubr.bf16.mxu1 %v5582_v14  ;;  %v5649_v13 = vld [vmem:[%s5998_s30 + $0xe8] ss:$36 sps:$4 sm:$0xff]  }
  0xd7   : > { %v5652_v14 = vld [vmem:[%s5998_s30 + $0x5ac] ss:$36 sps:$4 sm:$0xff]  }
  0xdd   : > { %2793 = vmatmul.mubr.bf16.gmra.mxu0 %v5584_v15  ;;  %3018 = vmatmul.mubr.bf16.gmra.mxu1 %v5585_v16  ;;  %v5655_v15 = vld [vmem:[%s5998_s30 + $0x134] ss:$36 sps:$4 sm:$0xff]  }
  0xde   : > { %2800 = vmatprep.mubr.bf16.mxu0 %v5588_v17  ;;  %3025 = vmatprep.mubr.bf16.mxu1 %v5590_v18 }
  0xe5   : > { %2801 = vmatmul.mubr.bf16.gmra.mxu0 %v5592_v20  ;;  %3026 = vmatmul.mubr.bf16.gmra.mxu1 %v5593_v21 }
  0xe6   : > { %2808 = vmatprep.mubr.bf16.mxu0 %v5595_v22  ;;  %3033 = vmatprep.mubr.bf16.mxu1 %v5597_v23 }
  0xed   : > { %2809 = vmatmul.mubr.bf16.gmra.mxu0 %v5599_v24  ;;  %3034 = vmatmul.mubr.bf16.gmra.mxu1 %v5600_v25  ;;  %v5650_v24 = vld [vmem:[%s5998_s30 + $0x5a8] ss:$36 sps:$4 sm:$0xff]   ;;  %v5653_v25 = vld [vmem:[%s5998_s30 + $0x130] ss:$36 sps:$4 sm:$0xff]  }
  0xee   : > { %2816 = vmatprep.mubr.bf16.mxu0 %v5602_v26  ;;  %3041 = vmatprep.mubr.bf16.mxu1 %v5604_v27  ;;  %v5659_v26 = vld [vmem:[%s5998_s30 + $0x5f4] ss:$36 sps:$4 sm:$0xff]   ;;  %v5662_v27 = vld [vmem:[%s5998_s30 + $0x17c] ss:$36 sps:$4 sm:$0xff]  }
  0xf5   : > { %2817 = vmatmul.mubr.bf16.gmra.mxu0 %v5606_v29  ;;  %3042 = vmatmul.mubr.bf16.gmra.mxu1 %v5607_v30 }
  0xf6   : > { %2824 = vmatprep.mubr.bf16.mxu0 %v5609_v31  ;;  %3049 = vmatprep.mubr.bf16.mxu1 %v5611_v32 }
  0xfd   : > { %2825 = vmatmul.mubr.bf16.gmra.mxu0 %v5613_v33  ;;  %3050 = vmatmul.mubr.bf16.gmra.mxu1 %v5614_v34 }
  0xfe   : > { %2832 = vmatprep.mubr.bf16.mxu0 %v5617_v35  ;;  %3057 = vmatprep.mubr.bf16.mxu1 %v5619_v36  ;;  %v5657_v36 = vld [vmem:[%s5998_s30 + $0x5f0] ss:$36 sps:$4 sm:$0xff]  }
 0x105   : > { %2833 = vmatmul.mubr.bf16.gmra.mxu0 %v5621_v37  ;;  %3058 = vmatmul.mubr.bf16.gmra.mxu1 %v5622_v39  ;;  %v5665_v37 = vld [vmem:[%s5998_s30 + $0x63c] ss:$36 sps:$4 sm:$0xff]   ;;  %v5668_v39 = vld [vmem:[%s5998_s30 + $0x1c4] ss:$36 sps:$4 sm:$0xff]  }
 0x106   : > { %3065 = vmatprep.mubr.bf16.mxu1 %v5623_v40  ;;  %3226 = vmatprep.mubr.bf16.mxu0 %v5627_v41 }
 0x10d   : > { %v6357_v46 = vpop.f32.mrf.mxu0  ;;  %v6359_v47 = vpop.f32.mrf.mxu1  ;;  %3066 = vmatmul.mubr.bf16.gmra.mxu1 %v5628_v43  ;;  %3227 = vmatmul.mubr.bf16.vlgmr.msra.gmra.mxu0 %v5625_v42 }
 0x10e   : > { %5299 = vmatpush3.bf16.msra.mxu0 %v6248_v38  ;;  %3073 = vmatprep.mubr.bf16.mxu1 %v5631_v44 }
 0x10f   : > { %v2652_v48 = vpop.f32.mrf.mxu0  ;;  %v2844_v49 = vpop.f32.mrf.mxu1  ;;  %3234 = vmatprep.mubr.bf16.mxu0 %v5633_v45 }
 0x111   : > { %v6362_v50 = vpop.f32.mrf.mxu0  ;;  %v6364_v51 = vpop.f32.mrf.mxu1 }
 0x113   : > { %v2655_v56 = vpop.f32.mrf.mxu0  ;;  %v2847_v57 = vpop.f32.mrf.mxu1 }
 0x115   : > { %v6370_v58 = vpop.f32.mrf.mxu0  ;;  %v6372_v38 = vpop.f32.mrf.mxu1  ;;  %3074 = vmatmul.mubr.bf16.gmra.mxu1 %v5635_v52  ;;  %3235 = vmatmul.mubr.bf16.gmra.mxu0 %v5636_v53  ;;  %v5663_v52 = vld [vmem:[%s5998_s30 + $0x638] ss:$36 sps:$4 sm:$0xff]   ;;  %v5666_v53 = vld [vmem:[%s5998_s30 + $0x1c0] ss:$36 sps:$4 sm:$0xff]  }
 0x116   : > { %3081 = vmatprep.mubr.bf16.mxu1 %v5637_v54  ;;  %3242 = vmatprep.mubr.bf16.mxu0 %v5639_v55  ;;  %v5672_v54 = vld [vmem:[%s5998_s30 + $0x684] ss:$36 sps:$4 sm:$0xff]   ;;  %v5675_v55 = vld [vmem:[%s5998_s30 + $0x20c] ss:$36 sps:$4 sm:$0xff]  }
 0x117   : > { %v2660_v59 = vpop.f32.mrf.mxu0  ;;  %v2852_v60 = vpop.f32.mrf.mxu1 }
 0x119   : > { %v6374_v61 = vpop.f32.mrf.mxu0  ;;  %v6376_v62 = vpop.f32.mrf.mxu1 }
 0x11b   : > { %v2663_v4 = vpop.f32.mrf.mxu0  ;;  %v2855_v5 = vpop.f32.mrf.mxu1 }
 0x11c   : > { %v5670_v4 = vld [vmem:[%s5998_s30 + $0x680] ss:$36 sps:$4 sm:$0xff]   ;;  %v5673_v5 = vld [vmem:[%s5998_s30 + $0x208] ss:$36 sps:$4 sm:$0xff]  }
 0x11d   : > { %v6382_v6 = vpop.f32.mrf.mxu0  ;;  %v6384_v7 = vpop.f32.mrf.mxu1  ;;  %3082 = vmatmul.mubr.bf16.gmra.mxu1 %v5641_v63  ;;  %3243 = vmatmul.mubr.bf16.gmra.mxu0 %v5642_v0 }
 0x11e   : > { %3089 = vmatprep.mubr.bf16.mxu1 %v5644_v2  ;;  %3250 = vmatprep.mubr.bf16.mxu0 %v5646_v3 }
 0x11f   : > { %v2668_v8 = vpop.f32.mrf.mxu0  ;;  %v2860_v9 = vpop.f32.mrf.mxu1 }
 0x120   : > { %v5678_v8 = vld [vmem:[%s5998_s30 + $0x6cc] ss:$36 sps:$4 sm:$0xff]   ;;  %v5681_v9 = vld [vmem:[%s5998_s30 + $0x254] ss:$36 sps:$4 sm:$0xff]  }
 0x121   : > { %v6386_v10 = vpop.f32.mrf.mxu0  ;;  %v6388_v11 = vpop.f32.mrf.mxu1 }
 0x123   : > { %v2671_v16 = vpop.f32.mrf.mxu0  ;;  %v2863_v17 = vpop.f32.mrf.mxu1 }
 0x125   : > { %v6394_v18 = vpop.f32.mrf.mxu0  ;;  %v6396_v19 = vpop.f32.mrf.mxu1  ;;  %3090 = vmatmul.mubr.bf16.gmra.mxu1 %v5648_v12  ;;  %3251 = vmatmul.mubr.bf16.gmra.mxu0 %v5649_v13 }
 0x126   : > { %3097 = vmatprep.mubr.bf16.mxu1 %v5652_v14  ;;  %3258 = vmatprep.mubr.bf16.mxu0 %v5655_v15 }
 0x127   : > { %v2676_v20 = vpop.f32.mrf.mxu0  ;;  %v2868_v21 = vpop.f32.mrf.mxu1 }
 0x128   : > { %v6449_v20 = vld [vmem:[%s7437_s2] ss:$0 sm:$0xff] }
 0x129   : > { %v6398_v22 = vpop.f32.mrf.mxu0  ;;  %v6400_v23 = vpop.f32.mrf.mxu1 }
 0x12a   : > { %7439 = vst [vmem:[#allocation2_spill] sm:$0xff] %v6400_v23  ;;  %v5769_v23 = vld [vmem:[%s5998_s30 + $0x1cc] ss:$36 sps:$4 sm:$0xff]  }
 0x12b   : > { %v2679_v28 = vpop.f32.mrf.mxu0  ;;  %v2871_v29 = vpop.f32.mrf.mxu1 }
 0x12c   : > { %v5688_v28 = vld [vmem:[%s5998_s30 + $0x29c] ss:$36 sps:$4 sm:$0xff]  }
 0x12d   : > { %v6406_v30 = vpop.f32.mrf.mxu0  ;;  %v6408_v31 = vpop.f32.mrf.mxu1  ;;  %3098 = vmatmul.mubr.bf16.gmra.mxu1 %v5650_v24  ;;  %3259 = vmatmul.mubr.bf16.gmra.mxu0 %v5653_v25  ;;  %v5676_v25 = vld [vmem:[%s5998_s30 + $0x6c8] ss:$36 sps:$4 sm:$0xff]  }
 0x12e   : > { %7440 = vst [vmem:[#allocation3_spill] sm:$0xff] %v6408_v31  ;;  %3105 = vmatprep.mubr.bf16.mxu1 %v5659_v26  ;;  %3266 = vmatprep.mubr.bf16.mxu0 %v5662_v27  ;;  %v5679_v26 = vld [vmem:[%s5998_s30 + $0x250] ss:$36 sps:$4 sm:$0xff]   ;;  %v5763_v31 = vld [vmem:[%s5998_s30 + $0x184] ss:$36 sps:$4 sm:$0xff]  }
 0x12f   : > { %v2684_v32 = vpop.f32.mrf.mxu0  ;;  %v2876_v33 = vpop.f32.mrf.mxu1  ;;  %v5685_v27 = vld [vmem:[%s5998_s30 + $0x714] ss:$36 sps:$4 sm:$0xff]  }
 0x130   : > { %v2651_v33 = vadd.f32 %v6449_v20, %v6357_v46  ;;  %v5683_v46 = vld [vmem:[%s5998_s30 + $0x710] ss:$36 sps:$4 sm:$0xff]  }
 0x131   : > { %v6410_v34 = vpop.f32.mrf.mxu0  ;;  %v6412_v35 = vpop.f32.mrf.mxu1 }
 0x132   : > { %7441 = vst [vmem:[#allocation4_spill] sm:$0xff] %v6412_v35  ;;  %v5760_v35 = vld [vmem:[%s5998_s30 + $0x5fc] ss:$36 sps:$4 sm:$0xff]  }
 0x133   : > { %v2687_v40 = vpop.f32.mrf.mxu0  ;;  %v2879_v41 = vpop.f32.mrf.mxu1 }
 0x134   : > { %v2654_v41 = vadd.f32 %v6449_v20, %v6362_v50 }
 0x135   : > { %v6418_v42 = vpop.f32.mrf.mxu0  ;;  %v6420_v43 = vpop.f32.mrf.mxu1  ;;  %3106 = vmatmul.mubr.bf16.gmra.mxu1 %v5657_v36  ;;  %3267 = vmatmul.mubr.bf16.gmra.mxu0 %v5660_v1 }
 0x136   : > { %7442 = vst [vmem:[#allocation5_spill] sm:$0xff] %v6420_v43  ;;  %3113 = vmatprep.mubr.bf16.mxu1 %v5665_v37  ;;  %3274 = vmatprep.mubr.bf16.mxu0 %v5668_v39  ;;  %v5757_v43 = vld [vmem:[%s5998_s30 + $0x13c] ss:$36 sps:$4 sm:$0xff]  }
 0x137   : > { %v2692_v44 = vpop.f32.mrf.mxu0  ;;  %v2884_v45 = vpop.f32.mrf.mxu1 }
 0x139   : > { %v6422_v48 = vpop.f32.mrf.mxu0  ;;  %v6424_v49 = vpop.f32.mrf.mxu1 }
 0x13a   : > { %7443 = vst [vmem:[#allocation6_spill] sm:$0xff] %v6424_v49  ;;  %v5754_v49 = vld [vmem:[%s5998_s30 + $0x5b4] ss:$36 sps:$4 sm:$0xff]  }
 0x13b   : > { %v2695_v56 = vpop.f32.mrf.mxu0  ;;  %v2887_v57 = vpop.f32.mrf.mxu1 }
 0x13d   : > { %v6430_v59 = vpop.f32.mrf.mxu0  ;;  %v6432_v60 = vpop.f32.mrf.mxu1  ;;  %3114 = vmatmul.mubr.bf16.gmra.mxu1 %v5663_v52  ;;  %3275 = vmatmul.mubr.bf16.gmra.mxu0 %v5666_v53  ;;  %v5686_v52 = vld [vmem:[%s5998_s30 + $0x298] ss:$36 sps:$4 sm:$0xff]  }
 0x13e   : > { %7444 = vst [vmem:[#allocation7_spill] sm:$0xff] %v6432_v60  ;;  %3121 = vmatprep.mubr.bf16.mxu1 %v5672_v54  ;;  %3282 = vmatprep.mubr.bf16.mxu0 %v5675_v55  ;;  %v5691_v54 = vld [vmem:[%s5998_s30 + $0x75c] ss:$36 sps:$4 sm:$0xff]   ;;  %v5694_v55 = vld [vmem:[%s5998_s30 + $0x2e4] ss:$36 sps:$4 sm:$0xff]  }
 0x13f   : > { %v2700_v63 = vpop.f32.mrf.mxu0  ;;  %v2892_v0 = vpop.f32.mrf.mxu1  ;;  %v5751_v60 = vld [vmem:[%s5998_s30 + $0xf4] ss:$36 sps:$4 sm:$0xff]  }
 0x140   : > { %v2659_v63 = vadd.f32 %v6449_v20, %v6370_v58  ;;  %v5689_v58 = vld [vmem:[%s5998_s30 + $0x758] ss:$36 sps:$4 sm:$0xff]  }
 0x141   : > { %v6434_v2 = vpop.f32.mrf.mxu0  ;;  %v6436_v3 = vpop.f32.mrf.mxu1 }
 0x142   : > { %7445 = vst [vmem:[#allocation8_spill] sm:$0xff] %v6436_v3  ;;  %v5748_v3 = vld [vmem:[%s5998_s30 + $0x56c] ss:$36 sps:$4 sm:$0xff]  }
 0x143   : > { %v2703_v12 = vpop.f32.mrf.mxu0  ;;  %v2895_v13 = vpop.f32.mrf.mxu1 }
 0x145   : > { %v6442_v14 = vpop.f32.mrf.mxu0  ;;  %v6444_v15 = vpop.f32.mrf.mxu1  ;;  %3122 = vmatmul.mubr.bf16.gmra.mxu1 %v5670_v4  ;;  %3283 = vmatmul.mubr.bf16.gmra.mxu0 %v5673_v5 }
 0x146   : > { %7446 = vst [vmem:[#allocation9_spill] sm:$0xff] %v6444_v15  ;;  %3129 = vmatprep.mubr.bf16.mxu1 %v5678_v8  ;;  %3290 = vmatprep.mubr.bf16.mxu0 %v5681_v9  ;;  %v2662_v9 = vadd.f32 %v6449_v20, %v6374_v61  ;;  %v5745_v15 = vld [vmem:[%s5998_s30 + $0xac] ss:$36 sps:$4 sm:$0xff]  }
 0x147   : > { %v2708_v16 = vpop.f32.mrf.mxu0  ;;  %v2900_v17 = vpop.f32.mrf.mxu1 }
 0x148   : > { %v5692_v16 = vld [vmem:[%s5998_s30 + $0x2e0] ss:$36 sps:$4 sm:$0xff]  }
 0x149   : > { %v6451_v21 = vpop.f32.mrf.mxu0  ;;  %v6453_v24 = vpop.f32.mrf.mxu1 }
 0x14a   : > { %7447 = vst [vmem:[#allocation10_spill] sm:$0xff] %v6453_v24  ;;  %v5742_v24 = vld [vmem:[%s5998_s30 + $0x524] ss:$36 sps:$4 sm:$0xff]  }
 0x14b   : > { %v2711_v29 = vpop.f32.mrf.mxu0  ;;  %v2903_v32 = vpop.f32.mrf.mxu1 }
 0x14c   : > { %v2667_v29 = vadd.f32 %v6449_v20, %v6382_v6  ;;  %v5696_v6 = vld [vmem:[%s5998_s30 + $0x7a0] ss:$36 sps:$4 sm:$0xff]  }
 0x14d   : > { %v6461_v36 = vpop.f32.mrf.mxu0  ;;  %v2939_v1 = vpop.f32.mrf.mxu1  ;;  %3130 = vmatmul.mubr.bf16.gmra.mxu1 %v5676_v25  ;;  %3291 = vmatmul.mubr.bf16.gmra.mxu0 %v5679_v26  ;;  %v5698_v25 = vld [vmem:[%s5998_s30 + $0x7a4] ss:$36 sps:$4 sm:$0xff]   ;;  %v5701_v26 = vld [vmem:[%s5998_s30 + $0x32c] ss:$36 sps:$4 sm:$0xff]  }
 0x14e   : > { %v6463_v37 = vadd.f32 %v2939_v1, %v2651_v33  ;;  %3137 = vmatprep.mubr.bf16.mxu1 %v5685_v27  ;;  %3298 = vmatprep.mubr.bf16.mxu0 %v5688_v28 }
 0x14f   : > { %v2716_v39 = vpop.f32.mrf.mxu0  ;;  %v2941_v40 = vpop.f32.mrf.mxu1 }
 0x150   : > { %v2670_v40 = vadd.f32 %v6449_v20, %v6386_v10 }
 0x151   : > { %v6467_v44 = vpop.f32.mrf.mxu0  ;;  %v2942_v45 = vpop.f32.mrf.mxu1 }
 0x152   : > { %v6471_v53 = vadd.f32 %v2942_v45, %v2654_v41 }
 0x153   : > { %v2719_v56 = vpop.f32.mrf.mxu0  ;;  %v2944_v57 = vpop.f32.mrf.mxu1 }
 0x155   : > { %v6477_v0 = vpop.f32.mrf.mxu0  ;;  %v2947_v50 = vpop.f32.mrf.mxu1  ;;  %3138 = vmatmul.mubr.bf16.gmra.mxu1 %v5683_v46  ;;  %3299 = vmatmul.mubr.bf16.gmra.mxu0 %v5686_v52  ;;  %v5699_v46 = vld [vmem:[%s5998_s30 + $0x328] ss:$36 sps:$4 sm:$0xff]  }
 0x156   : > { %v6479_v4 = vadd.f32 %v2947_v50, %v2659_v63  ;;  %3145 = vmatprep.mubr.bf16.mxu1 %v5691_v54  ;;  %3306 = vmatprep.mubr.bf16.mxu0 %v5694_v55  ;;  %v5704_v54 = vld [vmem:[%s5998_s30 + $0x7ec] ss:$36 sps:$4 sm:$0xff]   ;;  %v5707_v55 = vld [vmem:[%s5998_s30 + $0x374] ss:$36 sps:$4 sm:$0xff]   ;;  %v2675_v63 = vadd.f32 %v6449_v20, %v6394_v18 }
 0x157   : > { %v2724_v5 = vpop.f32.mrf.mxu0  ;;  %v2949_v8 = vpop.f32.mrf.mxu1  ;;  %v5702_v18 = vld [vmem:[%s5998_s30 + $0x7e8] ss:$36 sps:$4 sm:$0xff]  }
 0x159   : > { %v6483_v12 = vpop.f32.mrf.mxu0  ;;  %v2950_v13 = vpop.f32.mrf.mxu1 }
 0x15a   : > { %v6487_v17 = vadd.f32 %v2950_v13, %v2662_v9  ;;  %v2678_v13 = vadd.f32 %v6449_v20, %v6398_v22 }
 0x15b   : > { %v2727_v27 = vpop.f32.mrf.mxu0  ;;  %v2952_v28 = vpop.f32.mrf.mxu1 }
 0x15c   : > { %v5711_v27 = vld [vmem:[%s5998_s30 + $0x834] ss:$36 sps:$4 sm:$0xff]   ;;  %v5714_v28 = vld [vmem:[%s5998_s30 + $0x3bc] ss:$36 sps:$4 sm:$0xff]  }
 0x15d   : > { %v6493_v32 = vpop.f32.mrf.mxu0  ;;  %v2955_v61 = vpop.f32.mrf.mxu1  ;;  %3146 = vmatmul.mubr.bf16.gmra.mxu1 %v5689_v58  ;;  %3307 = vmatmul.mubr.bf16.gmra.mxu0 %v5692_v16 }
 0x15e   : > { %v6495_v33 = vadd.f32 %v2955_v61, %v2667_v29  ;;  %3153 = vmatprep.mubr.bf16.mxu1 %v5698_v25  ;;  %3314 = vmatprep.mubr.bf16.mxu0 %v5701_v26  ;;  %v5705_v25 = vld [vmem:[%s5998_s30 + $0x370] ss:$36 sps:$4 sm:$0xff]  }
 0x15f   : > { %v2732_v1 = vpop.f32.mrf.mxu0  ;;  %v2957_v39 = vpop.f32.mrf.mxu1 }
 0x160   : > { %v2683_v1 = vadd.f32 %v6449_v20, %v6406_v30  ;;  %v5709_v30 = vld [vmem:[%s5998_s30 + $0x830] ss:$36 sps:$4 sm:$0xff]  }
 0x161   : > { %v6499_v41 = vpop.f32.mrf.mxu0  ;;  %v2958_v45 = vpop.f32.mrf.mxu1 }
 0x162   : > { %v6503_v52 = vadd.f32 %v2958_v45, %v2670_v40 }
 0x163   : > { %v2735_v56 = vpop.f32.mrf.mxu0  ;;  %v2960_v57 = vpop.f32.mrf.mxu1 }
 0x164   : > { %v5712_v56 = vld [vmem:[%s5998_s30 + $0x3b8] ss:$36 sps:$4 sm:$0xff]  }
 0x165   : > { %v6509_v50 = vpop.f32.mrf.mxu0  ;;  %v2963_v10 = vpop.f32.mrf.mxu1  ;;  %3154 = vmatmul.mubr.bf16.gmra.mxu1 %v5696_v6  ;;  %3315 = vmatmul.mubr.bf16.gmra.mxu0 %v5699_v46  ;;  %v2686_v46 = vadd.f32 %v6449_v20, %v6410_v34 }
 0x166   : > { %v6511_v5 = vadd.f32 %v2963_v10, %v2675_v63  ;;  %3161 = vmatprep.mubr.bf16.mxu1 %v5704_v54  ;;  %3322 = vmatprep.mubr.bf16.mxu0 %v5707_v55  ;;  %v5717_v63 = vld [vmem:[%s5998_s30 + $0x87c] ss:$36 sps:$4 sm:$0xff]   ;;  %v5720_v10 = vld [vmem:[%s5998_s30 + $0x404] ss:$36 sps:$4 sm:$0xff]  }
 0x167   : > { %v2740_v8 = vpop.f32.mrf.mxu0  ;;  %v2965_v9 = vpop.f32.mrf.mxu1 }
 0x169   : > { %v6515_v58 = vpop.f32.mrf.mxu0  ;;  %v2966_v16 = vpop.f32.mrf.mxu1 }
 0x16a   : > { %v6519_v26 = vadd.f32 %v2966_v16, %v2678_v13  ;;  %v2691_v13 = vadd.f32 %v6449_v20, %v6418_v42  ;;  %v5715_v42 = vld [vmem:[%s5998_s30 + $0x878] ss:$36 sps:$4 sm:$0xff]  }
 0x16b   : > { %v2743_v29 = vpop.f32.mrf.mxu0  ;;  %v2968_v61 = vpop.f32.mrf.mxu1 }
 0x16d   : > { %v6525_v39 = vpop.f32.mrf.mxu0  ;;  %v2971_v22 = vpop.f32.mrf.mxu1  ;;  %3162 = vmatmul.mubr.bf16.gmra.mxu1 %v5702_v18  ;;  %3323 = vmatmul.mubr.bf16.gmra.mxu0 %v5705_v25 }
 0x16e   : > { %v6527_v40 = vadd.f32 %v2971_v22, %v2683_v1  ;;  %3169 = vmatprep.mubr.bf16.mxu1 %v5711_v27  ;;  %3330 = vmatprep.mubr.bf16.mxu0 %v5714_v28  ;;  %v2694_v28 = vadd.f32 %v6449_v20, %v6422_v48  ;;  %v5718_v1 = vld [vmem:[%s5998_s30 + $0x400] ss:$36 sps:$4 sm:$0xff]  }
 0x16f   : > { %v2748_v45 = vpop.f32.mrf.mxu0  ;;  %v2973_v6 = vpop.f32.mrf.mxu1 }
 0x170   : > { %v5724_v45 = vld [vmem:[%s5998_s30 + $0x8c4] ss:$36 sps:$4 sm:$0xff]   ;;  %v5727_v6 = vld [vmem:[%s5998_s30 + $0x44c] ss:$36 sps:$4 sm:$0xff]  }
 0x171   : > { %v6531_v54 = vpop.f32.mrf.mxu0  ;;  %v2974_v55 = vpop.f32.mrf.mxu1 }
 0x172   : > { %v6535_v57 = vadd.f32 %v2974_v55, %v2686_v46 }
 0x173   : > { %v2751_v8 = vpop.f32.mrf.mxu0  ;;  %v2976_v9 = vpop.f32.mrf.mxu1 }
 0x174   : > { %v2702_v9 = vadd.f32 %v6449_v20, %v6434_v2 }
 0x175   : > { %v6541_v16 = vpop.f32.mrf.mxu0  ;;  %v2979_v34 = vpop.f32.mrf.mxu1  ;;  %3170 = vmatmul.mubr.bf16.gmra.mxu1 %v5709_v30  ;;  %3331 = vmatmul.mubr.bf16.gmra.mxu0 %v5712_v56  ;;  %v2699_v30 = vadd.f32 %v6449_v20, %v6430_v59  ;;  %v5722_v59 = vld [vmem:[%s5998_s30 + $0x8c0] ss:$36 sps:$4 sm:$0xff]  }
 0x176   : > { %v6543_v18 = vadd.f32 %v2979_v34, %v2691_v13  ;;  %3177 = vmatprep.mubr.bf16.mxu1 %v5717_v63  ;;  %3338 = vmatprep.mubr.bf16.mxu0 %v5720_v10 }
 0x177   : > { %v2756_v25 = vpop.f32.mrf.mxu0  ;;  %v2981_v27 = vpop.f32.mrf.mxu1 }
 0x178   : > { %v5725_v25 = vld [vmem:[%s5998_s30 + $0x448] ss:$36 sps:$4 sm:$0xff]  }
 0x179   : > { %v6547_v29 = vpop.f32.mrf.mxu0  ;;  %v2982_v61 = vpop.f32.mrf.mxu1 }
 0x17a   : > { %v6551_v22 = vadd.f32 %v2982_v61, %v2694_v28  ;;  %v5730_v28 = vld [vmem:[%s5998_s30 + $0x494] ss:$36 sps:$4 sm:$0xff]   ;;  %v5733_v61 = vld [vmem:[%s5998_s30 + $0x1c] ss:$36 sps:$4 sm:$0xff]  }
 0x17b   : > { %v2759_v46 = vpop.f32.mrf.mxu0  ;;  %v2984_v55 = vpop.f32.mrf.mxu1 }
 0x17d   : > { %v6557_v56 = vpop.f32.mrf.mxu0  ;;  %v2987_v48 = vpop.f32.mrf.mxu1  ;;  %3178 = vmatmul.mubr.bf16.gmra.mxu1 %v5715_v42  ;;  %3339 = vmatmul.mubr.bf16.gmra.mxu0 %v5718_v1 }
 0x17e   : > { %v6559_v63 = vadd.f32 %v2987_v48, %v2699_v30  ;;  %3185 = vmatprep.mubr.bf16.mxu1 %v5724_v45  ;;  %3346 = vmatprep.mubr.bf16.mxu0 %v5727_v6  ;;  %v2707_v45 = vadd.f32 %v6449_v20, %v6442_v14  ;;  %v2710_v48 = vadd.f32 %v6449_v20, %v6451_v21  ;;  %v5728_v14 = vld [vmem:[%s5998_s30 + $0x490] ss:$36 sps:$4 sm:$0xff]  }
 0x17f   : > { %v2764_v10 = vpop.f32.mrf.mxu0  ;;  %v2989_v8 = vpop.f32.mrf.mxu1 }
 0x181   : > { %v6563_v13 = vpop.f32.mrf.mxu0  ;;  %v2990_v34 = vpop.f32.mrf.mxu1 }
 0x182   : > { %v6567_v27 = vadd.f32 %v2990_v34, %v2702_v9  ;;  %v5731_v9 = vld [vmem:[%s5998_s30 + $0x18] ss:$36 sps:$4 sm:$0xff]  }
 0x183   : > { %v2767_v42 = vpop.f32.mrf.mxu0  ;;  %v2992_v1 = vpop.f32.mrf.mxu1 }
 0x184   : > { %v5736_v42 = vld [vmem:[%s5998_s30 + $0x4dc] ss:$36 sps:$4 sm:$0xff]   ;;  %v5739_v1 = vld [vmem:[%s5998_s30 + $0x64] ss:$36 sps:$4 sm:$0xff]  }
 0x185   : > { %v6573_v6 = vpop.f32.mrf.mxu0  ;;  %v2995_v2 = vpop.f32.mrf.mxu1  ;;  %3186 = vmatmul.mubr.bf16.gmra.mxu1 %v5722_v59  ;;  %3347 = vmatmul.mubr.bf16.gmra.mxu0 %v5725_v25 }
 0x186   : > { %v6575_v46 = vadd.f32 %v2995_v2, %v2707_v45  ;;  %3354 = vmatprep.mubr.bf16.mxu0 %v5730_v28  ;;  %3515 = vmatprep.mubr.bf16.mxu1 %v5733_v61  ;;  %v2715_v28 = vadd.f32 %v6449_v20, %v6461_v36  ;;  %v5734_v36 = vld [vmem:[%s5998_s30 + $0x4d8] ss:$36 sps:$4 sm:$0xff]  }
 0x187   : > { %v2772_v55 = vpop.f32.mrf.mxu0  ;;  %v2997_v30 = vpop.f32.mrf.mxu1 }
 0x188   : > { %v2718_v30 = vadd.f32 %v6449_v20, %v6467_v44 }
 0x189   : > { %v6579_v10 = vpop.f32.mrf.mxu0  ;;  %v2998_v8 = vpop.f32.mrf.mxu1 }
 0x18a   : > { %v6583_v34 = vadd.f32 %v2998_v8, %v2710_v48 }
 0x18b   : > { %v2775_v59 = vpop.f32.mrf.mxu0  ;;  %v3000_v25 = vpop.f32.mrf.mxu1 }
 0x18c   : > { %v5737_v59 = vld [vmem:[%s5998_s30 + $0x60] ss:$36 sps:$4 sm:$0xff]  }
 0x18d   : > { %v6589_v61 = vpop.f32.mrf.mxu0  ;;  %v3003_v21 = vpop.f32.mrf.mxu1  ;;  %3355 = vmatmul.mubr.bf16.gmra.mxu0 %v5728_v14  ;;  %3516 = vmatmul.mubr.bf16.vlgmr.msra.gmra.mxu1 %v5731_v9 }
 0x18e   : > { %v6591_v45 = vadd.f32 %v3003_v21, %v2715_v28  ;;  %3362 = vmatprep.mubr.bf16.mxu0 %v5736_v42  ;;  %3523 = vmatprep.mubr.bf16.mxu1 %v5739_v1  ;;  %v2723_v42 = vadd.f32 %v6449_v20, %v6477_v0  ;;  %v5740_v0 = vld [vmem:[%s5998_s30 + $0x520] ss:$36 sps:$4 sm:$0xff]  }
 0x18f   : > { %v2780_v2 = vpop.f32.mrf.mxu0  ;;  %v3005_v55 = vpop.f32.mrf.mxu1 }
 0x190   : > { %v2726_v55 = vadd.f32 %v6449_v20, %v6483_v12 }
 0x191   : > { %v6595_v48 = vpop.f32.mrf.mxu0  ;;  %v3006_v8 = vpop.f32.mrf.mxu1 }
 0x192   : > { %v6599_v25 = vadd.f32 %v3006_v8, %v2718_v30 }
 0x193   : > { %v2783_v14 = vpop.f32.mrf.mxu0  ;;  %v3008_v9 = vpop.f32.mrf.mxu1 }
 0x194   : > { %v5743_v14 = vld [vmem:[%s5998_s30 + $0xa8] ss:$36 sps:$4 sm:$0xff]  }
 0x195   : > { %v6605_v1 = vpop.f32.mrf.mxu0  ;;  %v3011_v44 = vpop.f32.mrf.mxu1  ;;  %3363 = vmatmul.mubr.bf16.gmra.mxu0 %v5734_v36  ;;  %3524 = vmatmul.mubr.bf16.gmra.mxu1 %v5737_v59 }
 0x196   : > { %v6607_v28 = vadd.f32 %v3011_v44, %v2723_v42  ;;  %3370 = vmatprep.mubr.bf16.mxu0 %v5742_v24  ;;  %3531 = vmatprep.mubr.bf16.mxu1 %v5745_v15  ;;  %v2731_v15 = vadd.f32 %v6449_v20, %v6493_v32  ;;  %v5746_v32 = vld [vmem:[%s5998_s30 + $0x568] ss:$36 sps:$4 sm:$0xff]  }
 0x197   : > { %v2788_v21 = vpop.f32.mrf.mxu0  ;;  %v3013_v2 = vpop.f32.mrf.mxu1 }
 0x198   : > { %v2734_v2 = vadd.f32 %v6449_v20, %v6499_v41 }
 0x199   : > { %v6611_v30 = vpop.f32.mrf.mxu0  ;;  %v3014_v8 = vpop.f32.mrf.mxu1 }
 0x19a   : > { %v6615_v9 = vadd.f32 %v3014_v8, %v2726_v55 }
 0x19b   : > { %v2791_v36 = vpop.f32.mrf.mxu0  ;;  %v3016_v59 = vpop.f32.mrf.mxu1 }
 0x19c   : > { %v5749_v36 = vld [vmem:[%s5998_s30 + $0xf0] ss:$36 sps:$4 sm:$0xff]  }
 0x19d   : > { %v6621_v24 = vpop.f32.mrf.mxu0  ;;  %v3019_v12 = vpop.f32.mrf.mxu1  ;;  %3371 = vmatmul.mubr.bf16.gmra.mxu0 %v5740_v0  ;;  %3532 = vmatmul.mubr.bf16.gmra.mxu1 %v5743_v14 }
 0x19e   : > { %v6623_v42 = vadd.f32 %v3019_v12, %v2731_v15  ;;  %3378 = vmatprep.mubr.bf16.mxu0 %v5748_v3  ;;  %3539 = vmatprep.mubr.bf16.mxu1 %v5751_v60  ;;  %v2739_v60 = vadd.f32 %v6449_v20, %v6509_v50  ;;  %v5752_v50 = vld [vmem:[%s5998_s30 + $0x5b0] ss:$36 sps:$4 sm:$0xff]  }
 0x19f   : > { %v2796_v44 = vpop.f32.mrf.mxu0  ;;  %v3021_v21 = vpop.f32.mrf.mxu1 }
 0x1a0   : > { %v2742_v21 = vadd.f32 %v6449_v20, %v6515_v58 }
 0x1a1   : > { %v6627_v55 = vpop.f32.mrf.mxu0  ;;  %v3022_v8 = vpop.f32.mrf.mxu1 }
 0x1a2   : > { %v6631_v59 = vadd.f32 %v3022_v8, %v2734_v2 }
 0x1a3   : > { %v2799_v0 = vpop.f32.mrf.mxu0  ;;  %v3024_v14 = vpop.f32.mrf.mxu1 }
 0x1a4   : > { %v5755_v0 = vld [vmem:[%s5998_s30 + $0x138] ss:$36 sps:$4 sm:$0xff]  }
 0x1a5   : > { %v6637_v3 = vpop.f32.mrf.mxu0  ;;  %v3027_v41 = vpop.f32.mrf.mxu1  ;;  %3379 = vmatmul.mubr.bf16.gmra.mxu0 %v5746_v32  ;;  %3540 = vmatmul.mubr.bf16.gmra.mxu1 %v5749_v36 }
 0x1a6   : > { %v6639_v15 = vadd.f32 %v3027_v41, %v2739_v60  ;;  %3386 = vmatprep.mubr.bf16.mxu0 %v5754_v49  ;;  %3547 = vmatprep.mubr.bf16.mxu1 %v5757_v43  ;;  %v2747_v43 = vadd.f32 %v6449_v20, %v6525_v39  ;;  %v5758_v39 = vld [vmem:[%s5998_s30 + $0x5f8] ss:$36 sps:$4 sm:$0xff]  }
 0x1a7   : > { %v2804_v12 = vpop.f32.mrf.mxu0  ;;  %v3029_v44 = vpop.f32.mrf.mxu1 }
 0x1a8   : > { %v2750_v44 = vadd.f32 %v6449_v20, %v6531_v54 }
 0x1a9   : > { %v6643_v2 = vpop.f32.mrf.mxu0  ;;  %v3030_v8 = vpop.f32.mrf.mxu1 }
 0x1aa   : > { %v6647_v14 = vadd.f32 %v3030_v8, %v2742_v21 }
 0x1ab   : > { %v2807_v32 = vpop.f32.mrf.mxu0  ;;  %v3032_v36 = vpop.f32.mrf.mxu1 }
 0x1ac   : > { %7448 = vst [vmem:[#allocation11_spill] sm:$0xff] %v6647_v14  ;;  %v5761_v32 = vld [vmem:[%s5998_s30 + $0x180] ss:$36 sps:$4 sm:$0xff]  }
 0x1ad   : > { %v6653_v49 = vpop.f32.mrf.mxu0  ;;  %v3035_v58 = vpop.f32.mrf.mxu1  ;;  %3387 = vmatmul.mubr.bf16.gmra.mxu0 %v5752_v50  ;;  %3548 = vmatmul.mubr.bf16.gmra.mxu1 %v5755_v0  ;;  %v5766_v14 = vld [vmem:[%s5998_s30 + $0x644] ss:$36 sps:$4 sm:$0xff]  }
 0x1ae   : > { %v6655_v60 = vadd.f32 %v3035_v58, %v2747_v43  ;;  %3394 = vmatprep.mubr.bf16.mxu0 %v5760_v35  ;;  %3555 = vmatprep.mubr.bf16.mxu1 %v5763_v31  ;;  %v2755_v31 = vadd.f32 %v6449_v20, %v6541_v16  ;;  %v5764_v16 = vld [vmem:[%s5998_s30 + $0x640] ss:$36 sps:$4 sm:$0xff]  }
 0x1af   : > { %v2812_v41 = vpop.f32.mrf.mxu0  ;;  %v3037_v12 = vpop.f32.mrf.mxu1 }
 0x1b0   : > { %7449 = vst [vmem:[#allocation12_spill] sm:$0xff] %v6655_v60  ;;  %v2758_v12 = vadd.f32 %v6449_v20, %v6547_v29  ;;  %v5775_v60 = vld [vmem:[%s5998_s30 + $0x214] ss:$36 sps:$4 sm:$0xff]  }
 0x1b1   : > { %v6659_v21 = vpop.f32.mrf.mxu0  ;;  %v3038_v8 = vpop.f32.mrf.mxu1 }
 0x1b2   : > { %v6663_v36 = vadd.f32 %v3038_v8, %v2750_v44 }
 0x1b3   : > { %v2815_v50 = vpop.f32.mrf.mxu0  ;;  %v3040_v0 = vpop.f32.mrf.mxu1 }
 0x1b4   : > { %7450 = vst [vmem:[#allocation13_spill] sm:$0xff] %v6663_v36  ;;  %v5767_v50 = vld [vmem:[%s5998_s30 + $0x1c8] ss:$36 sps:$4 sm:$0xff]  }
 0x1b5   : > { %v6669_v35 = vpop.f32.mrf.mxu0  ;;  %v3043_v54 = vpop.f32.mrf.mxu1  ;;  %3395 = vmatmul.mubr.bf16.gmra.mxu0 %v5758_v39  ;;  %3556 = vmatmul.mubr.bf16.gmra.mxu1 %v5761_v32  ;;  %v5772_v36 = vld [vmem:[%s5998_s30 + $0x68c] ss:$36 sps:$4 sm:$0xff]  }
 0x1b6   : > { %v6671_v43 = vadd.f32 %v3043_v54, %v2755_v31  ;;  %3402 = vmatprep.mubr.bf16.mxu0 %v5766_v14  ;;  %3563 = vmatprep.mubr.bf16.mxu1 %v5769_v23  ;;  %v2763_v23 = vadd.f32 %v6449_v20, %v6557_v56  ;;  %v5770_v56 = vld [vmem:[%s5998_s30 + $0x688] ss:$36 sps:$4 sm:$0xff]  }
 0x1b7   : > { %v2820_v58 = vpop.f32.mrf.mxu0  ;;  %v3045_v41 = vpop.f32.mrf.mxu1 }
 0x1b8   : > { %7451 = vst [vmem:[#allocation14_spill] sm:$0xff] %v6671_v43  ;;  %v2766_v41 = vadd.f32 %v6449_v20, %v6563_v13  ;;  %v5781_v43 = vld [vmem:[%s5998_s30 + $0x25c] ss:$36 sps:$4 sm:$0xff]  }
 0x1b9   : > { %v6675_v44 = vpop.f32.mrf.mxu0  ;;  %v3046_v8 = vpop.f32.mrf.mxu1 }
 0x1ba   : > { %v6679_v0 = vadd.f32 %v3046_v8, %v2758_v12 }
 0x1bb   : > { %v2823_v39 = vpop.f32.mrf.mxu0  ;;  %v3048_v32 = vpop.f32.mrf.mxu1 }
 0x1bc   : > { %7452 = vst [vmem:[#allocation15_spill] sm:$0xff] %v6679_v0  ;;  %v5773_v39 = vld [vmem:[%s5998_s30 + $0x210] ss:$36 sps:$4 sm:$0xff]  }
 0x1bd   : > { %v6685_v14 = vpop.f32.mrf.mxu0  ;;  %v3051_v29 = vpop.f32.mrf.mxu1  ;;  %3403 = vmatmul.mubr.bf16.gmra.mxu0 %v5764_v16  ;;  %3564 = vmatmul.mubr.bf16.gmra.mxu1 %v5767_v50  ;;  %v5778_v0 = vld [vmem:[%s5998_s30 + $0x6d4] ss:$36 sps:$4 sm:$0xff]  }
 0x1be   : > { %v6687_v31 = vadd.f32 %v3051_v29, %v2763_v23  ;;  %3410 = vmatprep.mubr.bf16.mxu0 %v5772_v36  ;;  %3571 = vmatprep.mubr.bf16.mxu1 %v5775_v60  ;;  %v2771_v60 = vadd.f32 %v6449_v20, %v6573_v6  ;;  %v5776_v6 = vld [vmem:[%s5998_s30 + $0x6d0] ss:$36 sps:$4 sm:$0xff]  }
 0x1bf   : > { %v2828_v54 = vpop.f32.mrf.mxu0  ;;  %v3053_v58 = vpop.f32.mrf.mxu1 }
 0x1c0   : > { %7453 = vst [vmem:[#allocation16_spill] sm:$0xff] %v6687_v31  ;;  %v2774_v58 = vadd.f32 %v6449_v20, %v6579_v10  ;;  %v5787_v31 = vld [vmem:[%s5998_s30 + $0x2a4] ss:$36 sps:$4 sm:$0xff]  }
 0x1c1   : > { %v6691_v12 = vpop.f32.mrf.mxu0  ;;  %v3054_v8 = vpop.f32.mrf.mxu1 }
 0x1c2   : > { %v6695_v32 = vadd.f32 %v3054_v8, %v2766_v41 }
 0x1c3   : > { %v2831_v16 = vpop.f32.mrf.mxu0  ;;  %v3056_v50 = vpop.f32.mrf.mxu1 }
 0x1c4   : > { %7454 = vst [vmem:[#allocation17_spill] sm:$0xff] %v6695_v32  ;;  %v5779_v16 = vld [vmem:[%s5998_s30 + $0x258] ss:$36 sps:$4 sm:$0xff]  }
 0x1c5   : > { %v6701_v36 = vpop.f32.mrf.mxu0  ;;  %v3059_v13 = vpop.f32.mrf.mxu1  ;;  %3411 = vmatmul.mubr.bf16.gmra.mxu0 %v5770_v56  ;;  %3572 = vmatmul.mubr.bf16.gmra.mxu1 %v5773_v39  ;;  %v5784_v32 = vld [vmem:[%s5998_s30 + $0x71c] ss:$36 sps:$4 sm:$0xff]  }
 0x1c6   : > { %v6703_v23 = vadd.f32 %v3059_v13, %v2771_v60  ;;  %3418 = vmatprep.mubr.bf16.mxu0 %v5778_v0  ;;  %3579 = vmatprep.mubr.bf16.mxu1 %v5781_v43  ;;  %v2779_v43 = vadd.f32 %v6449_v20, %v6589_v61 }
 0x1c7   : > { %v2836_v29 = vpop.f32.mrf.mxu0  ;;  %v3061_v54 = vpop.f32.mrf.mxu1 }
 0x1c9   : > { %v6707_v41 = vpop.f32.mrf.mxu0  ;;  %v3062_v8 = vpop.f32.mrf.mxu1 }
 0x1ca   : > { %v6711_v50 = vadd.f32 %v3062_v8, %v2774_v58  ;;  %v2782_v58 = vadd.f32 %v6449_v20, %v6595_v48 }
 0x1cb   : > { %v2839_v56 = vpop.f32.mrf.mxu0  ;;  %v3064_v39 = vpop.f32.mrf.mxu1 }
 0x1cc   : > { %7455 = vst [vmem:[#allocation18_spill] sm:$0xff] %v6711_v50  ;;  %v5782_v56 = vld [vmem:[%s5998_s30 + $0x718] ss:$36 sps:$4 sm:$0xff]   ;;  %v5785_v39 = vld [vmem:[%s5998_s30 + $0x2a0] ss:$36 sps:$4 sm:$0xff]  }
 0x1cd   : > { %v3067_v0 = vpop.f32.mrf.mxu1  ;;  %v3228_v60 = vpop.f32.mrf.mxu0  ;;  %3419 = vmatmul.mubr.bf16.gmra.mxu0 %v5776_v6  ;;  %3580 = vmatmul.mubr.bf16.gmra.mxu1 %v5779_v16  ;;  %v5790_v16 = vld [vmem:[%s5998_s30 + $0x764] ss:$36 sps:$4 sm:$0xff]  }
 0x1ce   : > { %v6717_v10 = vadd.f32 %v3067_v0, %v2779_v43  ;;  %v6720_v13 = vadd.f32 %v3228_v60, %v6463_v37  ;;  %3426 = vmatprep.mubr.bf16.mxu0 %v5784_v32  ;;  %3587 = vmatprep.mubr.bf16.mxu1 %v5787_v31  ;;  %v5793_v43 = vld [vmem:[%s5998_s30 + $0x2ec] ss:$36 sps:$4 sm:$0xff]   ;;  %v2787_v31 = vadd.f32 %v6449_v20, %v6605_v1 }
 0x1cf   : > { %v3069_v29 = vpop.f32.mrf.mxu1  ;;  %v3230_v54 = vpop.f32.mrf.mxu0 }
 0x1d1   : > { %v3070_v8 = vpop.f32.mrf.mxu1  ;;  %v3231_v61 = vpop.f32.mrf.mxu0 }
 0x1d2   : > { %v6726_v50 = vadd.f32 %v3070_v8, %v2782_v58  ;;  %v6729_v6 = vadd.f32 %v3231_v61, %v6471_v53  ;;  %v2790_v58 = vadd.f32 %v6449_v20, %v6611_v30  ;;  %v5788_v61 = vld [vmem:[%s5998_s30 + $0x760] ss:$36 sps:$4 sm:$0xff]  }
 0x1d3   : > { %v3072_v37 = vpop.f32.mrf.mxu1  ;;  %v3233_v32 = vpop.f32.mrf.mxu0 }
 0x1d4   : > { %v5791_v37 = vld [vmem:[%s5998_s30 + $0x2e8] ss:$36 sps:$4 sm:$0xff]  }
 0x1d5   : > { %v3075_v0 = vpop.f32.mrf.mxu1  ;;  %v3236_v48 = vpop.f32.mrf.mxu0  ;;  %3427 = vmatmul.mubr.bf16.gmra.mxu0 %v5782_v56  ;;  %3588 = vmatmul.mubr.bf16.gmra.mxu1 %v5785_v39  ;;  %v5796_v39 = vld [vmem:[%s5998_s30 + $0x7ac] ss:$36 sps:$4 sm:$0xff]  }
 0x1d6   : > { %v6735_v60 = vadd.f32 %v3075_v0, %v2787_v31  ;;  %v6738_v53 = vadd.f32 %v3236_v48, %v6479_v4  ;;  %3434 = vmatprep.mubr.bf16.mxu0 %v5790_v16  ;;  %3595 = vmatprep.mubr.bf16.mxu1 %v5793_v43  ;;  %v5799_v31 = vld [vmem:[%s5998_s30 + $0x334] ss:$36 sps:$4 sm:$0xff]   ;;  %v2795_v43 = vadd.f32 %v6449_v20, %v6621_v24 }
 0x1d7   : > { %v3077_v29 = vpop.f32.mrf.mxu1  ;;  %v3238_v54 = vpop.f32.mrf.mxu0 }
 0x1d9   : > { %v3078_v8 = vpop.f32.mrf.mxu1  ;;  %v3239_v1 = vpop.f32.mrf.mxu0 }
 0x1da   : > { %v6744_v32 = vadd.f32 %v3078_v8, %v2790_v58  ;;  %v6747_v56 = vadd.f32 %v3239_v1, %v6487_v17  ;;  %v2798_v58 = vadd.f32 %v6449_v20, %v6627_v55  ;;  %v5794_v1 = vld [vmem:[%s5998_s30 + $0x7a8] ss:$36 sps:$4 sm:$0xff]  }
 0x1db   : > { %v3080_v4 = vpop.f32.mrf.mxu1  ;;  %v3241_v16 = vpop.f32.mrf.mxu0 }
 0x1dc   : > { %v5797_v4 = vld [vmem:[%s5998_s30 + $0x330] ss:$36 sps:$4 sm:$0xff]  }
 0x1dd   : > { %v3083_v0 = vpop.f32.mrf.mxu1  ;;  %v3244_v30 = vpop.f32.mrf.mxu0  ;;  %3435 = vmatmul.mubr.bf16.gmra.mxu0 %v5788_v61  ;;  %3596 = vmatmul.mubr.bf16.gmra.mxu1 %v5791_v37  ;;  %v5802_v37 = vld [vmem:[%s5998_s30 + $0x7f4] ss:$36 sps:$4 sm:$0xff]  }
 0x1de   : > { %v6753_v48 = vadd.f32 %v3083_v0, %v2795_v43  ;;  %v6756_v17 = vadd.f32 %v3244_v30, %v6495_v33  ;;  %3442 = vmatprep.mubr.bf16.mxu0 %v5796_v39  ;;  %3603 = vmatprep.mubr.bf16.mxu1 %v5799_v31  ;;  %v5805_v43 = vld [vmem:[%s5998_s30 + $0x37c] ss:$36 sps:$4 sm:$0xff]   ;;  %v2803_v31 = vadd.f32 %v6449_v20, %v6637_v3 }
 0x1df   : > { %v3085_v29 = vpop.f32.mrf.mxu1  ;;  %v3246_v54 = vpop.f32.mrf.mxu0 }
 0x1e1   : > { %v3086_v8 = vpop.f32.mrf.mxu1  ;;  %v3247_v24 = vpop.f32.mrf.mxu0 }
 0x1e2   : > { %v6762_v16 = vadd.f32 %v3086_v8, %v2798_v58  ;;  %v6765_v61 = vadd.f32 %v3247_v24, %v6503_v52  ;;  %v2806_v58 = vadd.f32 %v6449_v20, %v6643_v2  ;;  %v5800_v24 = vld [vmem:[%s5998_s30 + $0x7f0] ss:$36 sps:$4 sm:$0xff]  }
 0x1e3   : > { %v3088_v33 = vpop.f32.mrf.mxu1  ;;  %v3249_v39 = vpop.f32.mrf.mxu0 }
 0x1e4   : > { %v5803_v33 = vld [vmem:[%s5998_s30 + $0x378] ss:$36 sps:$4 sm:$0xff]  }
 0x1e5   : > { %v3091_v0 = vpop.f32.mrf.mxu1  ;;  %v3252_v55 = vpop.f32.mrf.mxu0  ;;  %3443 = vmatmul.mubr.bf16.gmra.mxu0 %v5794_v1  ;;  %3604 = vmatmul.mubr.bf16.gmra.mxu1 %v5797_v4  ;;  %v5808_v4 = vld [vmem:[%s5998_s30 + $0x83c] ss:$36 sps:$4 sm:$0xff]  }
 0x1e6   : > { %v6771_v30 = vadd.f32 %v3091_v0, %v2803_v31  ;;  %v6774_v52 = vadd.f32 %v3252_v55, %v6511_v5  ;;  %3450 = vmatprep.mubr.bf16.mxu0 %v5802_v37  ;;  %3611 = vmatprep.mubr.bf16.mxu1 %v5805_v43  ;;  %v5811_v31 = vld [vmem:[%s5998_s30 + $0x3c4] ss:$36 sps:$4 sm:$0xff]   ;;  %v2811_v43 = vadd.f32 %v6449_v20, %v6653_v49 }
 0x1e7   : > { %v3093_v29 = vpop.f32.mrf.mxu1  ;;  %v3254_v54 = vpop.f32.mrf.mxu0 }
 0x1e9   : > { %v3094_v8 = vpop.f32.mrf.mxu1  ;;  %v3255_v3 = vpop.f32.mrf.mxu0 }
 0x1ea   : > { %v6780_v39 = vadd.f32 %v3094_v8, %v2806_v58  ;;  %v6783_v1 = vadd.f32 %v3255_v3, %v6519_v26  ;;  %v2814_v58 = vadd.f32 %v6449_v20, %v6659_v21  ;;  %v5806_v3 = vld [vmem:[%s5998_s30 + $0x838] ss:$36 sps:$4 sm:$0xff]  }
 0x1eb   : > { %v3096_v5 = vpop.f32.mrf.mxu1  ;;  %v3257_v37 = vpop.f32.mrf.mxu0 }
 0x1ec   : > { %v5809_v5 = vld [vmem:[%s5998_s30 + $0x3c0] ss:$36 sps:$4 sm:$0xff]  }
 0x1ed   : > { %v3099_v0 = vpop.f32.mrf.mxu1  ;;  %v3260_v2 = vpop.f32.mrf.mxu0  ;;  %3451 = vmatmul.mubr.bf16.gmra.mxu0 %v5800_v24  ;;  %3612 = vmatmul.mubr.bf16.gmra.mxu1 %v5803_v33  ;;  %v5814_v33 = vld [vmem:[%s5998_s30 + $0x884] ss:$36 sps:$4 sm:$0xff]  }
 0x1ee   : > { %v6789_v55 = vadd.f32 %v3099_v0, %v2811_v43  ;;  %v6792_v26 = vadd.f32 %v3260_v2, %v6527_v40  ;;  %3458 = vmatprep.mubr.bf16.mxu0 %v5808_v4  ;;  %3619 = vmatprep.mubr.bf16.mxu1 %v5811_v31  ;;  %v5817_v43 = vld [vmem:[%s5998_s30 + $0x40c] ss:$36 sps:$4 sm:$0xff]   ;;  %v2819_v31 = vadd.f32 %v6449_v20, %v6669_v35 }
 0x1ef   : > { %v3101_v29 = vpop.f32.mrf.mxu1  ;;  %v3262_v54 = vpop.f32.mrf.mxu0 }
 0x1f1   : > { %v3102_v8 = vpop.f32.mrf.mxu1  ;;  %v3263_v49 = vpop.f32.mrf.mxu0 }
 0x1f2   : > { %v6798_v37 = vadd.f32 %v3102_v8, %v2814_v58  ;;  %v6801_v24 = vadd.f32 %v3263_v49, %v6535_v57  ;;  %v2822_v58 = vadd.f32 %v6449_v20, %v6675_v44  ;;  %v5812_v49 = vld [vmem:[%s5998_s30 + $0x880] ss:$36 sps:$4 sm:$0xff]  }
 0x1f3   : > { %v3104_v40 = vpop.f32.mrf.mxu1  ;;  %v3265_v4 = vpop.f32.mrf.mxu0 }
 0x1f4   : > { %v5815_v40 = vld [vmem:[%s5998_s30 + $0x408] ss:$36 sps:$4 sm:$0xff]  }
 0x1f5   : > { %v3107_v0 = vpop.f32.mrf.mxu1  ;;  %v3268_v21 = vpop.f32.mrf.mxu0  ;;  %3459 = vmatmul.mubr.bf16.gmra.mxu0 %v5806_v3  ;;  %3620 = vmatmul.mubr.bf16.gmra.mxu1 %v5809_v5  ;;  %v5820_v5 = vld [vmem:[%s5998_s30 + $0x8cc] ss:$36 sps:$4 sm:$0xff]  }
 0x1f6   : > { %v6807_v2 = vadd.f32 %v3107_v0, %v2819_v31  ;;  %v6810_v57 = vadd.f32 %v3268_v21, %v6543_v18  ;;  %3466 = vmatprep.mubr.bf16.mxu0 %v5814_v33  ;;  %3627 = vmatprep.mubr.bf16.mxu1 %v5817_v43  ;;  %v5823_v31 = vld [vmem:[%s5998_s30 + $0x454] ss:$36 sps:$4 sm:$0xff]   ;;  %v2827_v43 = vadd.f32 %v6449_v20, %v6685_v14 }
 0x1f7   : > { %v3109_v29 = vpop.f32.mrf.mxu1  ;;  %v3270_v54 = vpop.f32.mrf.mxu0 }
 0x1f9   : > { %v3110_v8 = vpop.f32.mrf.mxu1  ;;  %v3271_v35 = vpop.f32.mrf.mxu0 }
 0x1fa   : > { %v6816_v4 = vadd.f32 %v3110_v8, %v2822_v58  ;;  %v6819_v3 = vadd.f32 %v3271_v35, %v6551_v22  ;;  %v2830_v58 = vadd.f32 %v6449_v20, %v6691_v12  ;;  %v5818_v35 = vld [vmem:[%s5998_s30 + $0x8c8] ss:$36 sps:$4 sm:$0xff]  }
 0x1fb   : > { %v3112_v18 = vpop.f32.mrf.mxu1  ;;  %v3273_v33 = vpop.f32.mrf.mxu0 }
 0x1fc   : > { %v5821_v18 = vld [vmem:[%s5998_s30 + $0x450] ss:$36 sps:$4 sm:$0xff]  }
 0x1fd   : > { %v3115_v0 = vpop.f32.mrf.mxu1  ;;  %v3276_v44 = vpop.f32.mrf.mxu0  ;;  %3467 = vmatmul.mubr.bf16.gmra.mxu0 %v5812_v49  ;;  %3628 = vmatmul.mubr.bf16.gmra.mxu1 %v5815_v40  ;;  %v5826_v40 = vld [vmem:[%s5998_s30 + $0x49c] ss:$36 sps:$4 sm:$0xff]  }
 0x1fe   : > { %v6825_v21 = vadd.f32 %v3115_v0, %v2827_v43  ;;  %v6828_v22 = vadd.f32 %v3276_v44, %v6559_v63  ;;  %3474 = vmatprep.mubr.bf16.mxu0 %v5820_v5  ;;  %3635 = vmatprep.mubr.bf16.mxu1 %v5823_v31  ;;  %v5827_v43 = vld [vmem:[%s5998_s30 + $0x20] ss:$36 sps:$4 sm:$0xff]   ;;  %v2835_v5 = vadd.f32 %v6449_v20, %v6701_v36 }
 0x1ff   : > { %v3117_v29 = vpop.f32.mrf.mxu1  ;;  %v3278_v54 = vpop.f32.mrf.mxu0 }
 0x201   : > { %v3118_v8 = vpop.f32.mrf.mxu1  ;;  %v3279_v14 = vpop.f32.mrf.mxu0 }
 0x202   : > { %v6834_v33 = vadd.f32 %v3118_v8, %v2830_v58  ;;  %v6837_v49 = vadd.f32 %v3279_v14, %v6567_v27  ;;  %v2838_v58 = vadd.f32 %v6449_v20, %v6707_v41  ;;  %v5824_v14 = vld [vmem:[%s5998_s30 + $0x498] ss:$36 sps:$4 sm:$0xff]  }
 0x203   : > { %v3120_v63 = vpop.f32.mrf.mxu1  ;;  %v3281_v0 = vpop.f32.mrf.mxu0 }
 0x204   : > { %v5828_v63 = vld [vmem:[%s5998_s30 + $0x68] ss:$36 sps:$4 sm:$0xff]  }
 0x205   : > { %v3123_v12 = vpop.f32.mrf.mxu1  ;;  %v3284_v31 = vpop.f32.mrf.mxu0  ;;  %3475 = vmatmul.mubr.bf16.gmra.mxu0 %v5818_v35  ;;  %3636 = vmatmul.mubr.bf16.gmra.mxu1 %v5821_v18  ;;  %v5831_v0 = vld [vmem:[%s5998_s30 + $0x4e4] ss:$36 sps:$4 sm:$0xff]  }
 0x206   : > { %v6843_v44 = vadd.f32 %v3123_v12, %v2835_v5  ;;  %v6846_v27 = vadd.f32 %v3284_v31, %v6575_v46  ;;  %3643 = vmatprep.mubr.bf16.mxu1 %v5826_v40  ;;  %5300 = vmatprep.mubr.msk.bf16.mxu0 %vm2512_vm2, %v5827_v43  ;;  %v5832_v46 = vld [vmem:[%s5998_s30 + $0xb0] ss:$36 sps:$4 sm:$0xff]   ;;  %v2843_v43 = vadd.f32 %v6449_v20, %v6359_v47  ;;  %v6872_v47 = vld [vmem:[%s7437_s2] ss:$0 sm:$0xff] }
 0x207   : > { %v3125_v29 = vpop.f32.mrf.mxu1  ;;  %v3286_v54 = vpop.f32.mrf.mxu0  ;;  %v2846_v20 = vadd.f32 %v6872_v47, %v6364_v51 }
 0x209   : > { %v3126_v36 = vpop.f32.mrf.mxu1  ;;  %v3287_v8 = vpop.f32.mrf.mxu0 }
 0x20a   : > { %v6853_v35 = vadd.f32 %v3126_v36, %v2838_v58  ;;  %v6856_v18 = vadd.f32 %v3287_v8, %v6583_v34  ;;  %v5829_v8 = vld [vmem:[%s5998_s30 + $0x4e0] ss:$36 sps:$4 sm:$0xff]  }
 0x20b   : > { %v3128_v5 = vpop.f32.mrf.mxu1  ;;  %v3289_v40 = vpop.f32.mrf.mxu0 }
 0x20d   : > { %v3131_v12 = vpop.f32.mrf.mxu1  ;;  %v3292_v41 = vpop.f32.mrf.mxu0  ;;  %3644 = vmatmul.mubr.bf16.gmra.mxu1 %v5824_v14  ;;  %5301 = vmatmul.mubr.msk.bf16.vlgmr.msra.gmra.mxu0 %vm2512_vm2, %v5828_v63  ;;  %v5833_v14 = vld [vmem:[%s5998_s30 + $0xf8] ss:$36 sps:$4 sm:$0xff]  }
 0x20e   : > { %v6863_v31 = vadd.f32 %v3131_v12, %v2843_v43  ;;  %v6866_v34 = vadd.f32 %v3292_v41, %v6591_v45  ;;  %3651 = vmatprep.mubr.bf16.mxu1 %v5831_v0  ;;  %5304 = vmatprep.mubr.msk.bf16.mxu0 %vm2512_vm2, %v5832_v46  ;;  %v5836_v0 = vld [vmem:[%s5998_s30 + $0x52c] ss:$36 sps:$4 sm:$0xff]   ;;  %v5837_v46 = vld [vmem:[%s5998_s30 + $0x140] ss:$36 sps:$4 sm:$0xff]   ;;  %v2851_v43 = vadd.f32 %v6872_v47, %v6372_v38 }
 0x20f   : > { %v3133_v29 = vpop.f32.mrf.mxu1  ;;  %v3294_v54 = vpop.f32.mrf.mxu0  ;;  %v2854_v38 = vadd.f32 %v6872_v47, %v6376_v62 }
 0x211   : > { %v3134_v58 = vpop.f32.mrf.mxu1  ;;  %v3295_v36 = vpop.f32.mrf.mxu0 }
 0x212   : > { %v6878_v63 = vadd.f32 %v3134_v58, %v2846_v20  ;;  %v6881_v45 = vadd.f32 %v3295_v36, %v6599_v25  ;;  %v5834_v36 = vld [vmem:[%s5998_s30 + $0x528] ss:$36 sps:$4 sm:$0xff]  }
 0x213   : > { %v3136_v5 = vpop.f32.mrf.mxu1  ;;  %v3297_v40 = vpop.f32.mrf.mxu0 }
 0x214   : > { %v5841_v40 = vld [vmem:[%s5998_s30 + $0x574] ss:$36 sps:$4 sm:$0xff]  }
 0x215   : > { %v3139_v12 = vpop.f32.mrf.mxu1  ;;  %v3300_v51 = vpop.f32.mrf.mxu0  ;;  %3652 = vmatmul.mubr.bf16.gmra.mxu1 %v5829_v8  ;;  %5305 = vmatmul.mubr.msk.bf16.gmra.mxu0 %vm2512_vm2, %v5833_v14  ;;  %v5838_v8 = vld [vmem:[%s5998_s30 + $0x188] ss:$36 sps:$4 sm:$0xff]  }
 0x216   : > { %v6888_v41 = vadd.f32 %v3139_v12, %v2851_v43  ;;  %v6891_v25 = vadd.f32 %v3300_v51, %v6607_v28  ;;  %3659 = vmatprep.mubr.bf16.mxu1 %v5836_v0  ;;  %5308 = vmatprep.mubr.msk.bf16.mxu0 %vm2512_vm2, %v5837_v46  ;;  %v5842_v28 = vld [vmem:[%s5998_s30 + $0x1d0] ss:$36 sps:$4 sm:$0xff]   ;;  %v2859_v46 = vadd.f32 %v6872_v47, %v6384_v7 }
 0x217   : > { %v3141_v29 = vpop.f32.mrf.mxu1  ;;  %v3302_v54 = vpop.f32.mrf.mxu0  ;;  %v2862_v7 = vadd.f32 %v6872_v47, %v6388_v11 }
 0x219   : > { %v3142_v20 = vpop.f32.mrf.mxu1  ;;  %v3303_v58 = vpop.f32.mrf.mxu0 }
 0x21a   : > { %v6898_v5 = vadd.f32 %v3142_v20, %v2854_v38  ;;  %v6901_v14 = vadd.f32 %v3303_v58, %v6615_v9  ;;  %v5839_v58 = vld [vmem:[%s5998_s30 + $0x570] ss:$36 sps:$4 sm:$0xff]  }
 0x21b   : > { %v3144_v43 = vpop.f32.mrf.mxu1  ;;  %v3305_v0 = vpop.f32.mrf.mxu0 }
 0x21c   : > { %v5846_v0 = vld [vmem:[%s5998_s30 + $0x5bc] ss:$36 sps:$4 sm:$0xff]  }
 0x21d   : > { %v3147_v12 = vpop.f32.mrf.mxu1  ;;  %v3308_v62 = vpop.f32.mrf.mxu0  ;;  %3660 = vmatmul.mubr.bf16.gmra.mxu1 %v5834_v36  ;;  %5309 = vmatmul.mubr.msk.bf16.gmra.mxu0 %vm2512_vm2, %v5838_v8  ;;  %v5843_v36 = vld [vmem:[%s5998_s30 + $0x218] ss:$36 sps:$4 sm:$0xff]  }
 0x21e   : > { %v6908_v51 = vadd.f32 %v3147_v12, %v2859_v46  ;;  %v6911_v9 = vadd.f32 %v3308_v62, %v6623_v42  ;;  %3667 = vmatprep.mubr.bf16.mxu1 %v5841_v40  ;;  %5312 = vmatprep.mubr.msk.bf16.mxu0 %vm2512_vm2, %v5842_v28  ;;  %v5847_v42 = vld [vmem:[%s5998_s30 + $0x260] ss:$36 sps:$4 sm:$0xff]   ;;  %v2867_v28 = vadd.f32 %v6872_v47, %v6396_v19 }
 0x21f   : > { %v3149_v29 = vpop.f32.mrf.mxu1  ;;  %v3310_v54 = vpop.f32.mrf.mxu0 }
 0x221   : > { %v3150_v38 = vpop.f32.mrf.mxu1  ;;  %v3311_v20 = vpop.f32.mrf.mxu0 }
 0x222   : > { %v6918_v43 = vadd.f32 %v3150_v38, %v2862_v7  ;;  %v6921_v8 = vadd.f32 %v3311_v20, %v6631_v59  ;;  %v7458_v7 = vld [vmem:[#allocation2_spill] sm:$0xff] }
 0x223   : > { %v3152_v46 = vpop.f32.mrf.mxu1  ;;  %v3313_v40 = vpop.f32.mrf.mxu0  ;;  %v2870_v19 = vadd.f32 %v6872_v47, %v7458_v7 }
 0x224   : > { %v5844_v46 = vld [vmem:[%s5998_s30 + $0x5b8] ss:$36 sps:$4 sm:$0xff]  }
 0x225   : > { %v3155_v12 = vpop.f32.mrf.mxu1  ;;  %v3316_v11 = vpop.f32.mrf.mxu0  ;;  %3668 = vmatmul.mubr.bf16.gmra.mxu1 %v5839_v58  ;;  %5313 = vmatmul.mubr.msk.bf16.gmra.mxu0 %vm2512_vm2, %v5843_v36  ;;  %v5848_v58 = vld [vmem:[%s5998_s30 + $0x2a8] ss:$36 sps:$4 sm:$0xff]  }
 0x226   : > { %v6928_v62 = vadd.f32 %v3155_v12, %v2867_v28  ;;  %v6931_v59 = vadd.f32 %v3316_v11, %v6639_v15  ;;  %3675 = vmatprep.mubr.bf16.mxu1 %v5846_v0  ;;  %5316 = vmatprep.mubr.msk.bf16.mxu0 %vm2512_vm2, %v5847_v42  ;;  %v7460_v36 = vld [vmem:[#allocation11_spill] sm:$0xff]  ;;  %v5852_v15 = vld [vmem:[%s5998_s30 + $0x2f0] ss:$36 sps:$4 sm:$0xff]  }
 0x227   : > { %v3157_v29 = vpop.f32.mrf.mxu1  ;;  %v3318_v54 = vpop.f32.mrf.mxu0  ;;  %v5851_v12 = vld [vmem:[%s5998_s30 + $0x604] ss:$36 sps:$4 sm:$0xff]  }
 0x228   : > { %7456 = vst [vmem:[#allocation19_spill] sm:$0xff] %v6928_v62  ;;  %7457 = vst [vmem:[#allocation20_spill] sm:$0xff] %v6931_v59  ;;  %v7462_v42 = vld [vmem:[#allocation3_spill] sm:$0xff]  ;;  %v5849_v59 = vld [vmem:[%s5998_s30 + $0x600] ss:$36 sps:$4 sm:$0xff]  }
 0x229   : > { %v3158_v38 = vpop.f32.mrf.mxu1  ;;  %v3319_v20 = vpop.f32.mrf.mxu0  ;;  %v2875_v29 = vadd.f32 %v6872_v47, %v7462_v42 }
 0x22a   : > { %v6938_v40 = vadd.f32 %v3158_v38, %v2870_v19  ;;  %v6941_v28 = vadd.f32 %v3319_v20, %v7460_v36  ;;  %v7464_v38 = vld [vmem:[#allocation12_spill] sm:$0xff] }
 0x22b   : > { %v3160_v11 = vpop.f32.mrf.mxu1  ;;  %v3321_v0 = vpop.f32.mrf.mxu0 }
 0x22c   : > { %7459 = vst [vmem:[#allocation2_spill] sm:$0xff] %v6938_v40  ;;  %7461 = vst [vmem:[#allocation11_spill] sm:$0xff] %v6941_v28  ;;  %v7466_v0 = vld [vmem:[#allocation4_spill] sm:$0xff] }
 0x22d   : > { %v3163_v54 = vpop.f32.mrf.mxu1  ;;  %v3324_v7 = vpop.f32.mrf.mxu0  ;;  %3676 = vmatmul.mubr.bf16.gmra.mxu1 %v5844_v46  ;;  %5317 = vmatmul.mubr.msk.bf16.gmra.mxu0 %vm2512_vm2, %v5848_v58  ;;  %v2878_v42 = vadd.f32 %v6872_v47, %v7466_v0  ;;  %v5853_v46 = vld [vmem:[%s5998_s30 + $0x338] ss:$36 sps:$4 sm:$0xff]  }
 0x22e   : > { %v6948_v19 = vadd.f32 %v3163_v54, %v2875_v29  ;;  %v6951_v20 = vadd.f32 %v3324_v7, %v7464_v38  ;;  %3683 = vmatprep.mubr.bf16.mxu1 %v5851_v12  ;;  %5320 = vmatprep.mubr.msk.bf16.mxu0 %vm2512_vm2, %v5852_v15  ;;  %v7468_v58 = vld [vmem:[#allocation13_spill] sm:$0xff]  ;;  %v5856_v54 = vld [vmem:[%s5998_s30 + $0x64c] ss:$36 sps:$4 sm:$0xff]   ;;  %v5857_v7 = vld [vmem:[%s5998_s30 + $0x380] ss:$36 sps:$4 sm:$0xff]  }
 0x22f   : > { %v3165_v36 = vpop.f32.mrf.mxu1  ;;  %v3326_v11 = vpop.f32.mrf.mxu0  ;;  %v7470_v15 = vld [vmem:[#allocation5_spill] sm:$0xff] }
 0x230   : > { %7463 = vst [vmem:[#allocation3_spill] sm:$0xff] %v6948_v19  ;;  %7465 = vst [vmem:[#allocation12_spill] sm:$0xff] %v6951_v20  ;;  %v2883_v36 = vadd.f32 %v6872_v47, %v7470_v15  ;;  %v5854_v20 = vld [vmem:[%s5998_s30 + $0x648] ss:$36 sps:$4 sm:$0xff]  }
 0x231   : > { %v3166_v28 = vpop.f32.mrf.mxu1  ;;  %v3327_v40 = vpop.f32.mrf.mxu0 }
 0x232   : > { %v6958_v62 = vadd.f32 %v3166_v28, %v2878_v42  ;;  %v6961_v29 = vadd.f32 %v3327_v40, %v7468_v58  ;;  %v7472_v40 = vld [vmem:[#allocation14_spill] sm:$0xff] }
 0x233   : > { %v3168_v38 = vpop.f32.mrf.mxu1  ;;  %v3329_v12 = vpop.f32.mrf.mxu0 }
 0x234   : > { %7467 = vst [vmem:[#allocation4_spill] sm:$0xff] %v6958_v62  ;;  %7469 = vst [vmem:[#allocation13_spill] sm:$0xff] %v6961_v29  ;;  %v7474_v12 = vld [vmem:[#allocation6_spill] sm:$0xff] }
 0x235   : > { %v3171_v11 = vpop.f32.mrf.mxu1  ;;  %v3332_v0 = vpop.f32.mrf.mxu0  ;;  %3684 = vmatmul.mubr.bf16.gmra.mxu1 %v5849_v59  ;;  %5321 = vmatmul.mubr.msk.bf16.gmra.mxu0 %vm2512_vm2, %v5853_v46  ;;  %v2886_v15 = vadd.f32 %v6872_v47, %v7474_v12  ;;  %v5858_v59 = vld [vmem:[%s5998_s30 + $0x3c8] ss:$36 sps:$4 sm:$0xff]  }
 0x236   : > { %v6968_v28 = vadd.f32 %v3171_v11, %v2883_v36  ;;  %v6971_v42 = vadd.f32 %v3332_v0, %v7472_v40  ;;  %3691 = vmatprep.mubr.bf16.mxu1 %v5856_v54  ;;  %5324 = vmatprep.mubr.msk.bf16.mxu0 %vm2512_vm2, %v5857_v7  ;;  %v7476_v46 = vld [vmem:[#allocation15_spill] sm:$0xff]  ;;  %v5861_v11 = vld [vmem:[%s5998_s30 + $0x694] ss:$36 sps:$4 sm:$0xff]  }
 0x237   : > { %v3173_v58 = vpop.f32.mrf.mxu1  ;;  %v3334_v38 = vpop.f32.mrf.mxu0  ;;  %v5862_v0 = vld [vmem:[%s5998_s30 + $0x410] ss:$36 sps:$4 sm:$0xff]   ;;  %v7478_v7 = vld [vmem:[#allocation7_spill] sm:$0xff] }
 0x238   : > { %7471 = vst [vmem:[#allocation5_spill] sm:$0xff] %v6968_v28  ;;  %7473 = vst [vmem:[#allocation14_spill] sm:$0xff] %v6971_v42  ;;  %v2891_v58 = vadd.f32 %v6872_v47, %v7478_v7  ;;  %v5859_v42 = vld [vmem:[%s5998_s30 + $0x690] ss:$36 sps:$4 sm:$0xff]  }
 0x239   : > { %v3174_v29 = vpop.f32.mrf.mxu1  ;;  %v3335_v62 = vpop.f32.mrf.mxu0 }
 0x23a   : > { %v6978_v19 = vadd.f32 %v3174_v29, %v2886_v15  ;;  %v6981_v36 = vadd.f32 %v3335_v62, %v7476_v46  ;;  %v7479_v62 = vld [vmem:[#allocation16_spill] sm:$0xff] }
 0x23b   : > { %v3176_v40 = vpop.f32.mrf.mxu1  ;;  %v3337_v54 = vpop.f32.mrf.mxu0 }
 0x23c   : > { %7475 = vst [vmem:[#allocation6_spill] sm:$0xff] %v6978_v19  ;;  %7477 = vst [vmem:[#allocation15_spill] sm:$0xff] %v6981_v36  ;;  %v7481_v54 = vld [vmem:[#allocation8_spill] sm:$0xff] }
 0x23d   : > { %v3179_v38 = vpop.f32.mrf.mxu1  ;;  %v3340_v12 = vpop.f32.mrf.mxu0  ;;  %3692 = vmatmul.mubr.bf16.gmra.mxu1 %v5854_v20  ;;  %5325 = vmatmul.mubr.msk.bf16.gmra.mxu0 %vm2512_vm2, %v5858_v59  ;;  %v2894_v7 = vadd.f32 %v6872_v47, %v7481_v54  ;;  %v5863_v20 = vld [vmem:[%s5998_s30 + $0x458] ss:$36 sps:$4 sm:$0xff]  }
 0x23e   : > { %v6988_v29 = vadd.f32 %v3179_v38, %v2891_v58  ;;  %v6991_v15 = vadd.f32 %v3340_v12, %v7479_v62  ;;  %3699 = vmatprep.mubr.bf16.mxu1 %v5861_v11  ;;  %5328 = vmatprep.mubr.msk.bf16.mxu0 %vm2512_vm2, %v5862_v0  ;;  %v7483_v59 = vld [vmem:[#allocation17_spill] sm:$0xff]  ;;  %v5867_v12 = vld [vmem:[%s5998_s30 + $0x4a0] ss:$36 sps:$4 sm:$0xff]  }
 0x23f   : > { %v3181_v46 = vpop.f32.mrf.mxu1  ;;  %v3342_v40 = vpop.f32.mrf.mxu0  ;;  %v5866_v38 = vld [vmem:[%s5998_s30 + $0x6dc] ss:$36 sps:$4 sm:$0xff]  }
 0x240   : > { %7480 = vst [vmem:[#allocation7_spill] sm:$0xff] %v6991_v15  ;;  %v7485_v0 = vld [vmem:[#allocation9_spill] sm:$0xff] }
 0x241   : > { %v3182_v36 = vpop.f32.mrf.mxu1  ;;  %v3343_v19 = vpop.f32.mrf.mxu0  ;;  %v2899_v46 = vadd.f32 %v6872_v47, %v7485_v0 }
 0x242   : > { %v6998_v28 = vadd.f32 %v3182_v36, %v2894_v7  ;;  %v7001_v58 = vadd.f32 %v3343_v19, %v7483_v59 }
 0x243   : > { %v3184_v62 = vpop.f32.mrf.mxu1  ;;  %v3345_v11 = vpop.f32.mrf.mxu0 }
 0x244   : > { %7482 = vst [vmem:[#allocation16_spill] sm:$0xff] %v6998_v28  ;;  %7484 = vst [vmem:[#allocation8_spill] sm:$0xff] %v7001_v58  ;;  %v7486_v62 = vld [vmem:[#allocation10_spill] sm:$0xff]  ;;  %v5864_v28 = vld [vmem:[%s5998_s30 + $0x6d8] ss:$36 sps:$4 sm:$0xff]  }
 0x245   : > { %v3187_v40 = vpop.f32.mrf.mxu1  ;;  %v3348_v54 = vpop.f32.mrf.mxu0  ;;  %3700 = vmatmul.mubr.bf16.gmra.mxu1 %v5859_v42  ;;  %5329 = vmatmul.mubr.msk.bf16.gmra.mxu0 %vm2512_vm2, %v5863_v20  ;;  %v2902_v11 = vadd.f32 %v6872_v47, %v7486_v62  ;;  %v5868_v42 = vld [vmem:[%s5998_s30 + $0x4e8] ss:$36 sps:$4 sm:$0xff]   ;;  %v7487_v20 = vld [vmem:[#allocation18_spill] sm:$0xff] }
 0x246   : > { %v7008_v36 = vadd.f32 %v3187_v40, %v2899_v46  ;;  %v7011_v19 = vadd.f32 %v3348_v54, %v6703_v23  ;;  %3707 = vmatprep.mubr.bf16.mxu1 %v5866_v38  ;;  %5332 = vmatprep.mubr.msk.bf16.mxu0 %vm2512_vm2, %v5867_v12  ;;  %v5871_v40 = vld [vmem:[%s5998_s30 + $0x724] ss:$36 sps:$4 sm:$0xff]   ;;  %v5872_v23 = vld [vmem:[%s5998_s30 + $0x530] ss:$36 sps:$4 sm:$0xff]  }
 0x247   : > { %v3189_v7 = vpop.f32.mrf.mxu1  ;;  %v3350_v59 = vpop.f32.mrf.mxu0 }
 0x249   : > { %v3190_v0 = vpop.f32.mrf.mxu1  ;;  %v3351_v58 = vpop.f32.mrf.mxu0 }
 0x24a   : > { %v7018_v15 = vadd.f32 %v3190_v0, %v2902_v11  ;;  %v7021_v46 = vadd.f32 %v3351_v58, %v7487_v20  ;;  %v5869_v20 = vld [vmem:[%s5998_s30 + $0x720] ss:$36 sps:$4 sm:$0xff]  }
 0x24b   : > { %v3192_v38 = vpop.f32.mrf.mxu1  ;;  %v3353_v12 = vpop.f32.mrf.mxu0 }
 0x24c   : > { %v5873_v38 = vld [vmem:[%s5998_s30 + $0x578] ss:$36 sps:$4 sm:$0xff]  }
 0x24d   : > { %v3356_v54 = vpop.f32.mrf.mxu0  ;;  %v3517_v7 = vpop.f32.mrf.mxu1  ;;  %3708 = vmatmul.mubr.bf16.gmra.mxu1 %v5864_v28  ;;  %5333 = vmatmul.mubr.msk.bf16.gmra.mxu0 %vm2512_vm2, %v5868_v42  ;;  %v5877_v42 = vld [vmem:[%s5998_s30 + $0x5c0] ss:$36 sps:$4 sm:$0xff]  }
 0x24e   : > { %v7027_v47 = vadd.f32 %v3356_v54, %v6717_v10  ;;  %v7030_v59 = vadd.f32 %v3517_v7, %v6720_v13  ;;  %3715 = vmatprep.mubr.bf16.mxu1 %v5871_v40  ;;  %5336 = vmatprep.mubr.msk.bf16.mxu0 %vm2512_vm2, %v5872_v23  ;;  %v5876_v10 = vld [vmem:[%s5998_s30 + $0x76c] ss:$36 sps:$4 sm:$0xff]  }
 0x24f   : > { %v3358_v58 = vpop.f32.mrf.mxu0  ;;  %v3519_v62 = vpop.f32.mrf.mxu1 }
 0x251   : > { %v3359_v11 = vpop.f32.mrf.mxu0  ;;  %v3520_v0 = vpop.f32.mrf.mxu1 }
 0x252   : > { %v7036_v12 = vadd.f32 %v3359_v11, %v6726_v50  ;;  %v7039_v28 = vadd.f32 %v3520_v0, %v6729_v6  ;;  %v5874_v0 = vld [vmem:[%s5998_s30 + $0x768] ss:$36 sps:$4 sm:$0xff]  }
 0x253   : > { %v3361_v13 = vpop.f32.mrf.mxu0  ;;  %v3522_v40 = vpop.f32.mrf.mxu1 }
 0x254   : > { %v5878_v13 = vld [vmem:[%s5998_s30 + $0x608] ss:$36 sps:$4 sm:$0xff]  }
 0x255   : > { %v3364_v54 = vpop.f32.mrf.mxu0  ;;  %v3525_v23 = vpop.f32.mrf.mxu1  ;;  %3716 = vmatmul.mubr.bf16.gmra.mxu1 %v5869_v20  ;;  %5337 = vmatmul.mubr.msk.bf16.gmra.mxu0 %vm2512_vm2, %v5873_v38  ;;  %v5882_v38 = vld [vmem:[%s5998_s30 + $0x650] ss:$36 sps:$4 sm:$0xff]  }
 0x256   : > { %v7045_v7 = vadd.f32 %v3364_v54, %v6735_v60  ;;  %v7048_v50 = vadd.f32 %v3525_v23, %v6738_v53  ;;  %3723 = vmatprep.mubr.bf16.mxu1 %v5876_v10  ;;  %5340 = vmatprep.mubr.msk.bf16.mxu0 %vm2512_vm2, %v5877_v42  ;;  %v5881_v60 = vld [vmem:[%s5998_s30 + $0x7b4] ss:$36 sps:$4 sm:$0xff]  }
 0x257   : > { %v3366_v6 = vpop.f32.mrf.mxu0  ;;  %v3527_v58 = vpop.f32.mrf.mxu1 }
 0x259   : > { %v3367_v62 = vpop.f32.mrf.mxu0  ;;  %v3528_v11 = vpop.f32.mrf.mxu1 }
 0x25a   : > { %v7054_v40 = vadd.f32 %v3367_v62, %v6744_v32  ;;  %v7057_v20 = vadd.f32 %v3528_v11, %v6747_v56  ;;  %v5879_v11 = vld [vmem:[%s5998_s30 + $0x7b0] ss:$36 sps:$4 sm:$0xff]  }
 0x25b   : > { %v3369_v53 = vpop.f32.mrf.mxu0  ;;  %v3530_v10 = vpop.f32.mrf.mxu1 }
 0x25c   : > { %v5883_v53 = vld [vmem:[%s5998_s30 + $0x698] ss:$36 sps:$4 sm:$0xff]  }
 0x25d   : > { %v3372_v54 = vpop.f32.mrf.mxu0  ;;  %v3533_v42 = vpop.f32.mrf.mxu1  ;;  %3724 = vmatmul.mubr.bf16.gmra.mxu1 %v5874_v0  ;;  %5341 = vmatmul.mubr.msk.bf16.gmra.mxu0 %vm2512_vm2, %v5878_v13  ;;  %v5887_v13 = vld [vmem:[%s5998_s30 + $0x6e0] ss:$36 sps:$4 sm:$0xff]  }
 0x25e   : > { %v7063_v23 = vadd.f32 %v3372_v54, %v6753_v48  ;;  %v7066_v32 = vadd.f32 %v3533_v42, %v6756_v17  ;;  %3731 = vmatprep.mubr.bf16.mxu1 %v5881_v60  ;;  %5344 = vmatprep.mubr.msk.bf16.mxu0 %vm2512_vm2, %v5882_v38  ;;  %v5886_v48 = vld [vmem:[%s5998_s30 + $0x7fc] ss:$36 sps:$4 sm:$0xff]  }
 0x25f   : > { %v3374_v56 = vpop.f32.mrf.mxu0  ;;  %v3535_v6 = vpop.f32.mrf.mxu1 }
 0x261   : > { %v3375_v58 = vpop.f32.mrf.mxu0  ;;  %v3536_v62 = vpop.f32.mrf.mxu1 }
 0x262   : > { %v7072_v10 = vadd.f32 %v3375_v58, %v6762_v16  ;;  %v7075_v0 = vadd.f32 %v3536_v62, %v6765_v61  ;;  %v5884_v62 = vld [vmem:[%s5998_s30 + $0x7f8] ss:$36 sps:$4 sm:$0xff]  }
 0x263   : > { %v3377_v17 = vpop.f32.mrf.mxu0  ;;  %v3538_v60 = vpop.f32.mrf.mxu1 }
 0x264   : > { %v5888_v17 = vld [vmem:[%s5998_s30 + $0x728] ss:$36 sps:$4 sm:$0xff]  }
 0x265   : > { %v3380_v54 = vpop.f32.mrf.mxu0  ;;  %v3541_v38 = vpop.f32.mrf.mxu1  ;;  %3732 = vmatmul.mubr.bf16.gmra.mxu1 %v5879_v11  ;;  %5345 = vmatmul.mubr.msk.bf16.gmra.mxu0 %vm2512_vm2, %v5883_v53  ;;  %v5892_v53 = vld [vmem:[%s5998_s30 + $0x770] ss:$36 sps:$4 sm:$0xff]  }
 0x266   : > { %v7081_v42 = vadd.f32 %v3380_v54, %v6771_v30  ;;  %v7084_v16 = vadd.f32 %v3541_v38, %v6774_v52  ;;  %3739 = vmatprep.mubr.bf16.mxu1 %v5886_v48  ;;  %5348 = vmatprep.mubr.msk.bf16.mxu0 %vm2512_vm2, %v5887_v13  ;;  %v5891_v30 = vld [vmem:[%s5998_s30 + $0x844] ss:$36 sps:$4 sm:$0xff]  }
 0x267   : > { %v3382_v61 = vpop.f32.mrf.mxu0  ;;  %v3543_v56 = vpop.f32.mrf.mxu1 }
 0x269   : > { %v3383_v6 = vpop.f32.mrf.mxu0  ;;  %v3544_v58 = vpop.f32.mrf.mxu1 }
 0x26a   : > { %v7090_v60 = vadd.f32 %v3383_v6, %v6780_v39  ;;  %v7093_v11 = vadd.f32 %v3544_v58, %v6783_v1  ;;  %v5889_v58 = vld [vmem:[%s5998_s30 + $0x840] ss:$36 sps:$4 sm:$0xff]  }
 0x26b   : > { %v3385_v52 = vpop.f32.mrf.mxu0  ;;  %v3546_v48 = vpop.f32.mrf.mxu1 }
 0x26c   : > { %v5893_v52 = vld [vmem:[%s5998_s30 + $0x7b8] ss:$36 sps:$4 sm:$0xff]  }
 0x26d   : > { %v3388_v54 = vpop.f32.mrf.mxu0  ;;  %v3549_v13 = vpop.f32.mrf.mxu1  ;;  %3740 = vmatmul.mubr.bf16.gmra.mxu1 %v5884_v62  ;;  %5349 = vmatmul.mubr.msk.bf16.gmra.mxu0 %vm2512_vm2, %v5888_v17  ;;  %v5897_v17 = vld [vmem:[%s5998_s30 + $0x800] ss:$36 sps:$4 sm:$0xff]  }
 0x26e   : > { %v7099_v38 = vadd.f32 %v3388_v54, %v6789_v55  ;;  %v7102_v39 = vadd.f32 %v3549_v13, %v6792_v26  ;;  %3747 = vmatprep.mubr.bf16.mxu1 %v5891_v30  ;;  %5352 = vmatprep.mubr.msk.bf16.mxu0 %vm2512_vm2, %v5892_v53  ;;  %v5896_v55 = vld [vmem:[%s5998_s30 + $0x88c] ss:$36 sps:$4 sm:$0xff]  }
 0x26f   : > { %v3390_v1 = vpop.f32.mrf.mxu0  ;;  %v3551_v61 = vpop.f32.mrf.mxu1 }
 0x271   : > { %v3391_v56 = vpop.f32.mrf.mxu0  ;;  %v3552_v6 = vpop.f32.mrf.mxu1 }
 0x272   : > { %v7108_v48 = vadd.f32 %v3391_v56, %v6798_v37  ;;  %v7111_v62 = vadd.f32 %v3552_v6, %v6801_v24  ;;  %v5894_v6 = vld [vmem:[%s5998_s30 + $0x888] ss:$36 sps:$4 sm:$0xff]  }
 0x273   : > { %v3393_v26 = vpop.f32.mrf.mxu0  ;;  %v3554_v30 = vpop.f32.mrf.mxu1 }
 0x274   : > { %v5898_v26 = vld [vmem:[%s5998_s30 + $0x848] ss:$36 sps:$4 sm:$0xff]  }
 0x275   : > { %v3396_v54 = vpop.f32.mrf.mxu0  ;;  %v3557_v53 = vpop.f32.mrf.mxu1  ;;  %3748 = vmatmul.mubr.bf16.gmra.mxu1 %v5889_v58  ;;  %5353 = vmatmul.mubr.msk.bf16.gmra.mxu0 %vm2512_vm2, %v5893_v52  ;;  %v5902_v52 = vld [vmem:[%s5998_s30 + $0x890] ss:$36 sps:$4 sm:$0xff]  }
 0x276   : > { %v7117_v13 = vadd.f32 %v3396_v54, %v6807_v2  ;;  %v7120_v37 = vadd.f32 %v3557_v53, %v6810_v57  ;;  %3755 = vmatprep.mubr.bf16.mxu1 %v5896_v55  ;;  %5356 = vmatprep.mubr.msk.bf16.mxu0 %vm2512_vm2, %v5897_v17  ;;  %v5901_v2 = vld [vmem:[%s5998_s30 + $0x8d4] ss:$36 sps:$4 sm:$0xff]  }
 0x277   : > { %v3398_v24 = vpop.f32.mrf.mxu0  ;;  %v3559_v1 = vpop.f32.mrf.mxu1 }
 0x279   : > { %v3399_v61 = vpop.f32.mrf.mxu0  ;;  %v3560_v56 = vpop.f32.mrf.mxu1 }
 0x27a   : > { %v7126_v30 = vadd.f32 %v3399_v61, %v6816_v4  ;;  %v7129_v58 = vadd.f32 %v3560_v56, %v6819_v3  ;;  %v5899_v56 = vld [vmem:[%s5998_s30 + $0x8d0] ss:$36 sps:$4 sm:$0xff]  }
 0x27b   : > { %v3401_v57 = vpop.f32.mrf.mxu0  ;;  %v3562_v55 = vpop.f32.mrf.mxu1 }
 0x27c   : > { %v5903_v57 = vld [vmem:[%s5998_s30 + $0x8d8] ss:$36 sps:$4 sm:$0xff]   ;;  %s4557_s30 = sshll.u32 %s7540_s18, 2 }
 0x27d   : > { %v3404_v54 = vpop.f32.mrf.mxu0  ;;  %v3565_v17 = vpop.f32.mrf.mxu1  ;;  %3756 = vmatmul.mubr.bf16.gmra.mxu1 %v5894_v6  ;;  %5357 = vmatmul.mubr.msk.bf16.gmra.mxu0 %vm2512_vm2, %v5898_v26  ;;  %s7271_s24 = scalar_lea.vmem %s7438_s3, %s4557_s30 }
 0x27e   : > { %v7135_v53 = vadd.f32 %v3404_v54, %v6825_v21  ;;  %v7138_v4 = vadd.f32 %v3565_v17, %v6828_v22  ;;  %3763 = vmatprep.mubr.bf16.mxu1 %v5901_v2  ;;  %5360 = vmatprep.mubr.msk.bf16.mxu0 %vm2512_vm2, %v5902_v52 }
 0x27f   : > { %v3406_v3 = vpop.f32.mrf.mxu0  ;;  %v3567_v24 = vpop.f32.mrf.mxu1 }
 0x281   : > { %v3407_v1 = vpop.f32.mrf.mxu0  ;;  %v3568_v61 = vpop.f32.mrf.mxu1 }
 0x282   : > { %v7144_v55 = vadd.f32 %v3407_v1, %v6834_v33  ;;  %v7147_v6 = vadd.f32 %v3568_v61, %v6837_v49 }
 0x283   : > { %v3409_v21 = vpop.f32.mrf.mxu0  ;;  %v3570_v26 = vpop.f32.mrf.mxu1 }
 0x284   : > { %7488 = vst [vmem:[#allocation17_spill] sm:$0xff] %v7144_v55  ;;  %v7511_v55 = vld [vmem:[#allocation6_spill] sm:$0xff] }
 0x285   : > { %v3412_v54 = vpop.f32.mrf.mxu0  ;;  %v3573_v22 = vpop.f32.mrf.mxu1  ;;  %3764 = vmatmul.mubr.bf16.gmra.mxu1 %v5899_v56  ;;  %5361 = vmatmul.mubr.msk.bf16.gmra.mxu0 %vm2512_vm2, %v5903_v57 }
 0x286   : > { %v7151_v2 = vadd.f32 %v3412_v54, %v6843_v44  ;;  %v7154_v52 = vadd.f32 %v3573_v22, %v6846_v27 }
 0x287   : > { %v3414_v17 = vpop.f32.mrf.mxu0  ;;  %v3575_v3 = vpop.f32.mrf.mxu1 }
 0x289   : > { %v3415_v33 = vpop.f32.mrf.mxu0  ;;  %v3576_v24 = vpop.f32.mrf.mxu1 }
 0x28a   : > { %v7157_v49 = vadd.f32 %v3415_v33, %v6853_v35  ;;  %v7160_v1 = vadd.f32 %v3576_v24, %v6856_v18 }
 0x28b   : > { %v3417_v61 = vpop.f32.mrf.mxu0  ;;  %v3578_v56 = vpop.f32.mrf.mxu1 }
 0x28c   : > { %7489 = vst [vmem:[#allocation9_spill] sm:$0xff] %v7157_v49  ;;  %v7515_v49 = vld [vmem:[#allocation16_spill] sm:$0xff] }
 0x28d   : > { %v3420_v21 = vpop.f32.mrf.mxu0  ;;  %v3581_v57 = vpop.f32.mrf.mxu1 }
 0x28e   : > { %v7163_v44 = vadd.f32 %v3420_v21, %v6863_v31  ;;  %v7166_v27 = vadd.f32 %v3581_v57, %v6866_v34 }
 0x28f   : > { %v3422_v26 = vpop.f32.mrf.mxu0  ;;  %v3583_v54 = vpop.f32.mrf.mxu1 }
 0x290   : > { %7490 = vst [vmem:[#allocation10_spill] sm:$0xff] %v7163_v44  ;;  %v7505_v44 = vld [vmem:[#allocation4_spill] sm:$0xff] }
 0x291   : > { %v3423_v22 = vpop.f32.mrf.mxu0  ;;  %v3584_v17 = vpop.f32.mrf.mxu1 }
 0x292   : > { %v7169_v35 = vadd.f32 %v3423_v22, %v6878_v63  ;;  %v7172_v18 = vadd.f32 %v3584_v17, %v6881_v45 }
 0x293   : > { %v3425_v3 = vpop.f32.mrf.mxu0  ;;  %v3586_v33 = vpop.f32.mrf.mxu1 }
 0x294   : > { %7491 = vst [vmem:[#allocation18_spill] sm:$0xff] %v7169_v35  ;;  %v7499_v35 = vld [vmem:[#allocation2_spill] sm:$0xff] }
 0x295   : > { %v3428_v24 = vpop.f32.mrf.mxu0  ;;  %v3589_v61 = vpop.f32.mrf.mxu1 }
 0x296   : > { %v7175_v31 = vadd.f32 %v3428_v24, %v6888_v41  ;;  %v7178_v34 = vadd.f32 %v3589_v61, %v6891_v25 }
 0x297   : > { %v3430_v56 = vpop.f32.mrf.mxu0  ;;  %v3591_v21 = vpop.f32.mrf.mxu1 }
 0x298   : > { %7492 = vst [vmem:[#allocation21_spill] sm:$0xff] %v7175_v31  ;;  %v7508_v31 = vld [vmem:[#allocation5_spill] sm:$0xff] }
 0x299   : > { %v3431_v57 = vpop.f32.mrf.mxu0  ;;  %v3592_v26 = vpop.f32.mrf.mxu1 }
 0x29a   : > { %v7181_v63 = vadd.f32 %v3431_v57, %v6898_v5  ;;  %v7184_v45 = vadd.f32 %v3592_v26, %v6901_v14 }
 0x29b   : > { %v3433_v54 = vpop.f32.mrf.mxu0  ;;  %v3594_v22 = vpop.f32.mrf.mxu1 }
 0x29c   : > { %7493 = vst [vmem:[#allocation22_spill] sm:$0xff] %v7181_v63  ;;  %v7496_v22 = vld [vmem:[#allocation19_spill] sm:$0xff] }
 0x29d   : > { %v3436_v17 = vpop.f32.mrf.mxu0  ;;  %v3597_v3 = vpop.f32.mrf.mxu1  ;;  %v7502_v63 = vld [vmem:[#allocation3_spill] sm:$0xff] }
 0x29e   : > { %v7187_v41 = vadd.f32 %v3436_v17, %v6908_v51  ;;  %v7190_v25 = vadd.f32 %v3597_v3, %v6911_v9  ;;  %v7498_v17 = vld [vmem:[#allocation20_spill] sm:$0xff] }
 0x29f   : > { %v3438_v33 = vpop.f32.mrf.mxu0  ;;  %v3599_v24 = vpop.f32.mrf.mxu1 }
 0x2a0   : > { %7494 = vst [vmem:[#allocation23_spill] sm:$0xff] %v7187_v41 }
 0x2a1   : > { %v3439_v61 = vpop.f32.mrf.mxu0  ;;  %v3600_v56 = vpop.f32.mrf.mxu1 }
 0x2a2   : > { %v7193_v5 = vadd.f32 %v3439_v61, %v6918_v43  ;;  %v7196_v14 = vadd.f32 %v3600_v56, %v6921_v8  ;;  %v7501_v61 = vld [vmem:[#allocation11_spill] sm:$0xff] }
 0x2a3   : > { %v3441_v21 = vpop.f32.mrf.mxu0  ;;  %v3602_v57 = vpop.f32.mrf.mxu1 }
 0x2a4   : > { %7495 = vst [vmem:[#allocation24_spill] sm:$0xff] %v7193_v5 }
 0x2a5   : > { %v3444_v26 = vpop.f32.mrf.mxu0  ;;  %v3605_v54 = vpop.f32.mrf.mxu1 }
 0x2a6   : > { %v7199_v51 = vadd.f32 %v3444_v26, %v7496_v22  ;;  %v7202_v9 = vadd.f32 %v3605_v54, %v7498_v17  ;;  %v7504_v22 = vld [vmem:[#allocation12_spill] sm:$0xff] }
 0x2a7   : > { %v3446_v3 = vpop.f32.mrf.mxu0  ;;  %v3607_v33 = vpop.f32.mrf.mxu1 }
 0x2a8   : > { %7497 = vst [vmem:[#allocation19_spill] sm:$0xff] %v7199_v51 }
 0x2a9   : > { %v3447_v24 = vpop.f32.mrf.mxu0  ;;  %v3608_v41 = vpop.f32.mrf.mxu1 }
 0x2aa   : > { %v7205_v43 = vadd.f32 %v3447_v24, %v7499_v35  ;;  %v7208_v8 = vadd.f32 %v3608_v41, %v7501_v61  ;;  %v7507_v24 = vld [vmem:[#allocation13_spill] sm:$0xff] }
 0x2ab   : > { %v3449_v56 = vpop.f32.mrf.mxu0  ;;  %v3610_v21 = vpop.f32.mrf.mxu1 }
 0x2ac   : > { %7500 = vst [vmem:[#allocation20_spill] sm:$0xff] %v7205_v43 }
 0x2ad   : > { %v3452_v57 = vpop.f32.mrf.mxu0  ;;  %v3613_v5 = vpop.f32.mrf.mxu1 }
 0x2ae   : > { %v7211_v26 = vadd.f32 %v3452_v57, %v7502_v63  ;;  %v7214_v54 = vadd.f32 %v3613_v5, %v7504_v22  ;;  %v7510_v57 = vld [vmem:[#allocation14_spill] sm:$0xff] }
 0x2af   : > { %v3454_v17 = vpop.f32.mrf.mxu0  ;;  %v3615_v3 = vpop.f32.mrf.mxu1 }
 0x2b0   : > { %7503 = vst [vmem:[#allocation2_spill] sm:$0xff] %v7211_v26 }
 0x2b1   : > { %v3455_v33 = vpop.f32.mrf.mxu0  ;;  %v3616_v51 = vpop.f32.mrf.mxu1 }
 0x2b2   : > { %v7217_v35 = vadd.f32 %v3455_v33, %v7505_v44  ;;  %v7220_v41 = vadd.f32 %v3616_v51, %v7507_v24  ;;  %v7513_v33 = vld [vmem:[#allocation15_spill] sm:$0xff] }
 0x2b3   : > { %v3457_v61 = vpop.f32.mrf.mxu0  ;;  %v3618_v56 = vpop.f32.mrf.mxu1 }
 0x2b4   : > { %7506 = vst [vmem:[#allocation11_spill] sm:$0xff] %v7217_v35 }
 0x2b5   : > { %v3460_v21 = vpop.f32.mrf.mxu0  ;;  %v3621_v43 = vpop.f32.mrf.mxu1 }
 0x2b6   : > { %v7223_v63 = vadd.f32 %v3460_v21, %v7508_v31  ;;  %v7226_v5 = vadd.f32 %v3621_v43, %v7510_v57  ;;  %v7514_v21 = vld [vmem:[#allocation7_spill] sm:$0xff] }
 0x2b7   : > { %v3462_v22 = vpop.f32.mrf.mxu0  ;;  %v3623_v17 = vpop.f32.mrf.mxu1 }
 0x2b8   : > { %7509 = vst [vmem:[#allocation3_spill] sm:$0xff] %v7223_v63 }
 0x2b9   : > { %v3463_v3 = vpop.f32.mrf.mxu0  ;;  %v3624_v26 = vpop.f32.mrf.mxu1 }
 0x2ba   : > { %v7229_v44 = vadd.f32 %v3463_v3, %v7511_v55  ;;  %v7232_v51 = vadd.f32 %v3624_v26, %v7513_v33  ;;  %v7517_v3 = vld [vmem:[#allocation8_spill] sm:$0xff] }
 0x2bb   : > { %v3465_v24 = vpop.f32.mrf.mxu0  ;;  %v3626_v61 = vpop.f32.mrf.mxu1 }
 0x2bc   : > { %7512 = vst [vmem:[#allocation12_spill] sm:$0xff] %v7229_v44 }
 0x2bd   : > { %v3468_v56 = vpop.f32.mrf.mxu0  ;;  %v3629_v35 = vpop.f32.mrf.mxu1 }
 0x2be   : > { %v7235_v31 = vadd.f32 %v3468_v56, %v6988_v29  ;;  %v7238_v43 = vadd.f32 %v3629_v35, %v7514_v21 }
 0x2bf   : > { %v3470_v57 = vpop.f32.mrf.mxu0  ;;  %v3631_v22 = vpop.f32.mrf.mxu1 }
 0x2c1   : > { %v3471_v17 = vpop.f32.mrf.mxu0  ;;  %v3632_v63 = vpop.f32.mrf.mxu1 }
 0x2c2   : > { %v7241_v55 = vadd.f32 %v3471_v17, %v7515_v49  ;;  %v7244_v26 = vadd.f32 %v3632_v63, %v7517_v3 }
 0x2c3   : > { %v3473_v33 = vpop.f32.mrf.mxu0  ;;  %v3634_v24 = vpop.f32.mrf.mxu1 }
 0x2c4   : > { %7516 = vst [vmem:[#allocation4_spill] sm:$0xff] %v7241_v55 }
 0x2c5   : > { %v3476_v61 = vpop.f32.mrf.mxu0  ;;  %v3637_v44 = vpop.f32.mrf.mxu1 }
 0x2c6   : > { %v7247_v29 = vadd.f32 %v3476_v61, %v7008_v36  ;;  %v7250_v35 = vadd.f32 %v3637_v44, %v7011_v19 }
 0x2c7   : > { %v3478_v56 = vpop.f32.mrf.mxu0  ;;  %v3639_v21 = vpop.f32.mrf.mxu1 }
 0x2c9   : > { %v3479_v57 = vpop.f32.mrf.mxu0  ;;  %v7252_v22 = vpop.f32.mrf.mxu1 }
 0x2ca   : > { %v7255_v49 = vadd.f32 %v3479_v57, %v7018_v15 }
 0x2cb   : > { %v3481_v63 = vpop.f32.mrf.mxu0  ;;  %v3642_v17 = vpop.f32.mrf.mxu1 }
 0x2cc   : > { %7518 = vst [vmem:[#allocation13_spill] sm:$0xff] %v7255_v49 }
 0x2cd   : > { %v3645_v3 = vpop.f32.mrf.mxu1  ;;  %v5302_v33 = vpop.f32.mrf.mxu0 }
 0x2ce   : > { %v7258_v24 = vadd.f32 %v3645_v3, %v7027_v47  ;;  %v3815_v19 = vadd.f32 %v5302_v33, %v7048_v50 }
 0x2cf   : > { %v3647_v36 = vpop.f32.mrf.mxu1  ;;  %v3806_v61 = vpop.f32.mrf.mxu0 }
 0x2d0   : > { %v3807_v21 = vadd.f32 %v3806_v61, %v7030_v59  ;;  %v4063_v17 = vmax.f32 %v3815_v19, 0.0 }
 0x2d1   : > { %v3648_v44 = vpop.f32.mrf.mxu1  ;;  %v5303_v56 = vpop.f32.mrf.mxu0 }
 0x2d2   : > { %v7263_v55 = vadd.f32 %v3648_v44, %v7036_v12  ;;  %v3818_v15 = vadd.f32 %v5303_v56, %v7057_v20  ;;  %v4061_v50 = vmax.f32 %v3807_v21, 0.0 }
 0x2d3   : > { %v3650_v57 = vpop.f32.mrf.mxu1  ;;  %v3809_v63 = vpop.f32.mrf.mxu0 }
 0x2d4   : > { %v4064_v49 = vmax.f32 %v3818_v15, 0.0  ;;  %v3810_v47 = vadd.f32 %v3809_v63, %v7039_v28 }
 0x2d5   : > { %v7273_v59 = vpop.f32.mrf.mxu1  ;;  %v5306_v12 = vpop.f32.mrf.mxu0 }
 0x2d6   : > { %v5082_v3 = vpack.c.bf16 %v4064_v49, %v4063_v17  ;;  %v4062_v33 = vmax.f32 %v3810_v47, 0.0  ;;  %v3831_v19 = vadd.f32 %v5306_v12, %v7084_v16 }
 0x2d7   : > { %v3655_v20 = vpop.f32.mrf.mxu1  ;;  %v3822_v36 = vpop.f32.mrf.mxu0 }
 0x2d8   : > { %5234 = vst [vmem:[%s7271_s24 + $0x8] sm:$0xff] %v5082_v3   ;;  %v5077_v61 = vpack.c.bf16 %v4062_v33, %v4061_v50  ;;  %v3823_v56 = vadd.f32 %v3822_v36, %v7066_v32  ;;  %v4067_v49 = vmax.f32 %v3831_v19, 0.0 }
 0x2d9   : > { %v7277_v28 = vpop.f32.mrf.mxu1  ;;  %v5307_v44 = vpop.f32.mrf.mxu0 }
 0x2da   : > { %5078 = vst [vmem:[%s7271_s24] sm:$0xff] %v5077_v61   ;;  %v3834_v15 = vadd.f32 %v5307_v44, %v7093_v11  ;;  %v4065_v16 = vmax.f32 %v3823_v56, 0.0 }
 0x2db   : > { %v3658_v57 = vpop.f32.mrf.mxu1  ;;  %v3825_v63 = vpop.f32.mrf.mxu0 }
 0x2dc   : > { %v4068_v21 = vmax.f32 %v3834_v15, 0.0  ;;  %v3826_v17 = vadd.f32 %v3825_v63, %v7075_v0 }
 0x2dd   : > { %v7283_v47 = vpop.f32.mrf.mxu1  ;;  %v5310_v50 = vpop.f32.mrf.mxu0 }
 0x2de   : > { %v5092_v12 = vpack.c.bf16 %v4068_v21, %v4067_v49  ;;  %v4066_v3 = vmax.f32 %v3826_v17, 0.0  ;;  %v3847_v32 = vadd.f32 %v5310_v50, %v7120_v37 }
 0x2df   : > { %v3663_v33 = vpop.f32.mrf.mxu1  ;;  %v3838_v20 = vpop.f32.mrf.mxu0 }
 0x2e0   : > { %5236 = vst [vmem:[%s7271_s24 + $0x18] sm:$0xff] %v5092_v12   ;;  %v5087_v61 = vpack.c.bf16 %v4066_v3, %v4065_v16  ;;  %v3839_v19 = vadd.f32 %v3838_v20, %v7102_v39  ;;  %v4071_v56 = vmax.f32 %v3847_v32, 0.0 }
 0x2e1   : > { %v7287_v11 = vpop.f32.mrf.mxu1  ;;  %v5311_v36 = vpop.f32.mrf.mxu0 }
 0x2e2   : > { %5235 = vst [vmem:[%s7271_s24 + $0x10] sm:$0xff] %v5087_v61   ;;  %v3850_v0 = vadd.f32 %v5311_v36, %v7129_v58  ;;  %v4069_v37 = vmax.f32 %v3839_v19, 0.0 }
 0x2e3   : > { %v3666_v44 = vpop.f32.mrf.mxu1  ;;  %v3841_v15 = vpop.f32.mrf.mxu0 }
 0x2e4   : > { %v4072_v57 = vmax.f32 %v3850_v0, 0.0  ;;  %v3842_v63 = vadd.f32 %v3841_v15, %v7111_v62 }
 0x2e5   : > { %v7293_v49 = vpop.f32.mrf.mxu1  ;;  %v5314_v21 = vpop.f32.mrf.mxu0 }
 0x2e6   : > { %v5102_v17 = vpack.c.bf16 %v4072_v57, %v4071_v56  ;;  %v4070_v50 = vmax.f32 %v3842_v63, 0.0  ;;  %v3863_v39 = vadd.f32 %v5314_v21, %v7154_v52 }
 0x2e7   : > { %v3671_v16 = vpop.f32.mrf.mxu1  ;;  %v3854_v12 = vpop.f32.mrf.mxu0 }
 0x2e8   : > { %5238 = vst [vmem:[%s7271_s24 + $0x28] sm:$0xff] %v5102_v17   ;;  %v5097_v3 = vpack.c.bf16 %v4070_v50, %v4069_v37  ;;  %v3855_v20 = vadd.f32 %v3854_v12, %v7138_v4  ;;  %v4075_v36 = vmax.f32 %v3863_v39, 0.0 }
 0x2e9   : > { %v7297_v58 = vpop.f32.mrf.mxu1  ;;  %v5315_v33 = vpop.f32.mrf.mxu0 }
 0x2ea   : > { %5237 = vst [vmem:[%s7271_s24 + $0x20] sm:$0xff] %v5097_v3   ;;  %v3866_v62 = vadd.f32 %v5315_v33, %v7160_v1  ;;  %v4073_v52 = vmax.f32 %v3855_v20, 0.0 }
 0x2eb   : > { %v3674_v61 = vpop.f32.mrf.mxu1  ;;  %v3857_v32 = vpop.f32.mrf.mxu0 }
 0x2ec   : > { %v4076_v19 = vmax.f32 %v3866_v62, 0.0  ;;  %v3858_v0 = vadd.f32 %v3857_v32, %v7147_v6 }
 0x2ed   : > { %v7303_v44 = vpop.f32.mrf.mxu1  ;;  %v5318_v15 = vpop.f32.mrf.mxu0 }
 0x2ee   : > { %v5112_v56 = vpack.c.bf16 %v4076_v19, %v4075_v36  ;;  %v4074_v57 = vmax.f32 %v3858_v0, 0.0  ;;  %v3879_v4 = vadd.f32 %v5318_v15, %v7178_v34 }
 0x2ef   : > { %v3679_v63 = vpop.f32.mrf.mxu1  ;;  %v3870_v21 = vpop.f32.mrf.mxu0 }
 0x2f0   : > { %5240 = vst [vmem:[%s7271_s24 + $0x38] sm:$0xff] %v5112_v56   ;;  %v5107_v37 = vpack.c.bf16 %v4074_v57, %v4073_v52  ;;  %v3871_v50 = vadd.f32 %v3870_v21, %v7166_v27  ;;  %v4079_v3 = vmax.f32 %v3879_v4, 0.0 }
 0x2f1   : > { %v7307_v1 = vpop.f32.mrf.mxu1  ;;  %v5319_v17 = vpop.f32.mrf.mxu0 }
 0x2f2   : > { %5239 = vst [vmem:[%s7271_s24 + $0x30] sm:$0xff] %v5107_v37   ;;  %v3882_v6 = vadd.f32 %v5319_v17, %v7184_v45  ;;  %v4077_v34 = vmax.f32 %v3871_v50, 0.0 }
 0x2f3   : > { %v3682_v16 = vpop.f32.mrf.mxu1  ;;  %v3873_v12 = vpop.f32.mrf.mxu0 }
 0x2f4   : > { %v4080_v39 = vmax.f32 %v3882_v6, 0.0  ;;  %v3874_v33 = vadd.f32 %v3873_v12, %v7172_v18 }
 0x2f5   : > { %v7313_v20 = vpop.f32.mrf.mxu1  ;;  %v5322_v62 = vpop.f32.mrf.mxu0 }
 0x2f6   : > { %v5122_v61 = vpack.c.bf16 %v4080_v39, %v4079_v3  ;;  %v4078_v32 = vmax.f32 %v3874_v33, 0.0  ;;  %v3895_v27 = vadd.f32 %v5322_v62, %v7202_v9 }
 0x2f7   : > { %v3687_v36 = vpop.f32.mrf.mxu1  ;;  %v3886_v19 = vpop.f32.mrf.mxu0 }
 0x2f8   : > { %5242 = vst [vmem:[%s7271_s24 + $0x48] sm:$0xff] %v5122_v61   ;;  %v5117_v0 = vpack.c.bf16 %v4078_v32, %v4077_v34  ;;  %v3887_v52 = vadd.f32 %v3886_v19, %v7190_v25  ;;  %v4083_v63 = vmax.f32 %v3895_v27, 0.0 }
 0x2f9   : > { %v7317_v45 = vpop.f32.mrf.mxu1  ;;  %v5323_v15 = vpop.f32.mrf.mxu0 }
 0x2fa   : > { %5241 = vst [vmem:[%s7271_s24 + $0x40] sm:$0xff] %v5117_v0   ;;  %v3898_v18 = vadd.f32 %v5323_v15, %v7208_v8  ;;  %v4081_v9 = vmax.f32 %v3887_v52, 0.0 }
 0x2fb   : > { %v3690_v56 = vpop.f32.mrf.mxu1  ;;  %v3889_v57 = vpop.f32.mrf.mxu0 }
 0x2fc   : > { %v4084_v21 = vmax.f32 %v3898_v18, 0.0  ;;  %v3890_v37 = vadd.f32 %v3889_v57, %v7196_v14 }
 0x2fd   : > { %v7323_v4 = vpop.f32.mrf.mxu1  ;;  %v5326_v17 = vpop.f32.mrf.mxu0 }
 0x2fe   : > { %v5132_v50 = vpack.c.bf16 %v4084_v21, %v4083_v63  ;;  %v4082_v6 = vmax.f32 %v3890_v37, 0.0  ;;  %v3911_v25 = vadd.f32 %v5326_v17, %v7226_v5 }
 0x2ff   : > { %v3695_v16 = vpop.f32.mrf.mxu1  ;;  %v3902_v12 = vpop.f32.mrf.mxu0 }
 0x300   : > { %5244 = vst [vmem:[%s7271_s24 + $0x58] sm:$0xff] %v5132_v50   ;;  %v5127_v3 = vpack.c.bf16 %v4082_v6, %v4081_v9  ;;  %v3903_v33 = vadd.f32 %v3902_v12, %v7214_v54  ;;  %v4087_v61 = vmax.f32 %v3911_v25, 0.0  ;;  %v3641_v54 = vadd.f32 %v7252_v22, %v7021_v46 }
 0x301   : > { %v7327_v8 = vpop.f32.mrf.mxu1  ;;  %v5327_v39 = vpop.f32.mrf.mxu0 }
 0x302   : > { %5243 = vst [vmem:[%s7271_s24 + $0x50] sm:$0xff] %v5127_v3   ;;  %v3914_v14 = vadd.f32 %v5327_v39, %v7232_v51  ;;  %v4085_v5 = vmax.f32 %v3903_v33, 0.0  ;;  %v3657_v39 = vadd.f32 %v7277_v28, %v7054_v40  ;;  %v3670_v28 = vadd.f32 %v7293_v49, %v7081_v42 }
 0x303   : > { %v3698_v62 = vpop.f32.mrf.mxu1  ;;  %v3905_v34 = vpop.f32.mrf.mxu0  ;;  %v3665_v42 = vadd.f32 %v7287_v11, %v7072_v10 }
 0x304   : > { %v4088_v32 = vmax.f32 %v3914_v14, 0.0  ;;  %v3906_v36 = vadd.f32 %v3905_v34, %v7220_v41 }
 0x305   : > { %v7333_v19 = vpop.f32.mrf.mxu1  ;;  %v5330_v0 = vpop.f32.mrf.mxu0 }
 0x306   : > { %v5142_v27 = vpack.c.bf16 %v4088_v32, %v4087_v61  ;;  %v4086_v15 = vmax.f32 %v3906_v36, 0.0  ;;  %v3927_v56 = vadd.f32 %v5330_v0, %v7250_v35  ;;  %v3654_v35 = vadd.f32 %v7273_v59, %v7045_v7 }
 0x307   : > { %v3703_v52 = vpop.f32.mrf.mxu1  ;;  %v3918_v18 = vpop.f32.mrf.mxu0 }
 0x308   : > { %5246 = vst [vmem:[%s7271_s24 + $0x68] sm:$0xff] %v5142_v27   ;;  %v5137_v51 = vpack.c.bf16 %v4086_v15, %v4085_v5  ;;  %v3919_v41 = vadd.f32 %v3918_v18, %v7238_v43  ;;  %v4091_v9 = vmax.f32 %v3927_v56, 0.0 }
 0x309   : > { %v7339_v57 = vpop.f32.mrf.mxu1  ;;  %v5331_v63 = vpop.f32.mrf.mxu0 }
 0x30a   : > { %5245 = vst [vmem:[%s7271_s24 + $0x60] sm:$0xff] %v5137_v51   ;;  %v3930_v21 = vadd.f32 %v5331_v63, %v3641_v54  ;;  %v4089_v16 = vmax.f32 %v3919_v41, 0.0  ;;  %v3662_v54 = vadd.f32 %v7283_v47, %v7063_v23  ;;  %v3673_v51 = vadd.f32 %v7297_v58, %v7090_v60 }
 0x30b   : > { %v3706_v37 = vpop.f32.mrf.mxu1  ;;  %v3921_v17 = vpop.f32.mrf.mxu0  ;;  %v3686_v58 = vadd.f32 %v7313_v20, %v7117_v13  ;;  %v3681_v13 = vadd.f32 %v7307_v1, %v7108_v48  ;;  %v3694_v1 = vadd.f32 %v7323_v4, %v7135_v53 }
 0x30c   : > { %v4092_v50 = vmax.f32 %v3930_v21, 0.0  ;;  %v3922_v6 = vadd.f32 %v3921_v17, %v7244_v26 }
 0x30d   : > { %v7344_v46 = vpop.f32.mrf.mxu1  ;;  %v5334_v22 = vpop.f32.mrf.mxu0 }
 0x30e   : > { %v5152_v12 = vpack.c.bf16 %v4092_v50, %v4091_v9  ;;  %v4090_v3 = vmax.f32 %v3922_v6, 0.0  ;;  %v3943_v14 = vadd.f32 %v5334_v22, %v3654_v35 }
 0x30f   : > { %v3711_v25 = vpop.f32.mrf.mxu1  ;;  %v3934_v43 = vpop.f32.mrf.mxu0 }
 0x310   : > { %5248 = vst [vmem:[%s7271_s24 + $0x78] sm:$0xff] %v5152_v12   ;;  %v5147_v33 = vpack.c.bf16 %v4090_v3, %v4089_v16  ;;  %v3935_v34 = vadd.f32 %v3934_v43, %v7258_v24  ;;  %v4095_v32 = vmax.f32 %v3943_v14, 0.0  ;;  %v3678_v16 = vadd.f32 %v7303_v44, %v7099_v38 }
 0x311   : > { %v7351_v62 = vpop.f32.mrf.mxu1  ;;  %v5335_v26 = vpop.f32.mrf.mxu0  ;;  %v3689_v12 = vadd.f32 %v7317_v45, %v7126_v30  ;;  %v3702_v45 = vadd.f32 %v7333_v19, %v7151_v2 }
 0x312   : > { %5247 = vst [vmem:[%s7271_s24 + $0x70] sm:$0xff] %v5147_v33   ;;  %v3946_v61 = vadd.f32 %v5335_v26, %v3657_v39  ;;  %v4093_v27 = vmax.f32 %v3935_v34, 0.0 }
 0x313   : > { %v3714_v7 = vpop.f32.mrf.mxu1  ;;  %v3937_v59 = vpop.f32.mrf.mxu0 }
 0x314   : > { %v4096_v36 = vmax.f32 %v3946_v61, 0.0  ;;  %v3938_v0 = vadd.f32 %v3937_v59, %v7263_v55 }
 0x315   : > { %v7356_v5 = vpop.f32.mrf.mxu1  ;;  %v5338_v40 = vpop.f32.mrf.mxu0 }
 0x316   : > { %v5162_v15 = vpack.c.bf16 %v4096_v36, %v4095_v32  ;;  %v4094_v52 = vmax.f32 %v3938_v0, 0.0  ;;  %v3959_v56 = vadd.f32 %v5338_v40, %v3670_v28  ;;  %v7519_v0 = vld [vmem:[#allocation9_spill] sm:$0xff] }
 0x317   : > { %v3719_v18 = vpop.f32.mrf.mxu1  ;;  %v3950_v24 = vpop.f32.mrf.mxu0  ;;  %v3705_v40 = vadd.f32 %v7339_v57, %v7519_v0 }
 0x318   : > { %5250 = vst [vmem:[%s7271_s24 + $0x88] sm:$0xff] %v5162_v15   ;;  %v5157_v55 = vpack.c.bf16 %v4094_v52, %v4093_v27  ;;  %v3951_v49 = vadd.f32 %v3950_v24, %v3662_v54  ;;  %v4099_v9 = vmax.f32 %v3959_v56, 0.0  ;;  %v7520_v18 = vld [vmem:[#allocation17_spill] sm:$0xff] }
 0x319   : > { %v7365_v63 = vpop.f32.mrf.mxu1  ;;  %v5339_v41 = vpop.f32.mrf.mxu0  ;;  %v3697_v24 = vadd.f32 %v7327_v8, %v7520_v18 }
 0x31a   : > { %5249 = vst [vmem:[%s7271_s24 + $0x80] sm:$0xff] %v5157_v55   ;;  %v3962_v21 = vadd.f32 %v5339_v41, %v3673_v51  ;;  %v4097_v6 = vmax.f32 %v3951_v49, 0.0  ;;  %v7521_v41 = vld [vmem:[#allocation21_spill] sm:$0xff] }
 0x31b   : > { %v3722_v37 = vpop.f32.mrf.mxu1  ;;  %v3953_v17 = vpop.f32.mrf.mxu0 }
 0x31c   : > { %v4100_v23 = vmax.f32 %v3962_v21, 0.0  ;;  %v3954_v47 = vadd.f32 %v3953_v17, %v3665_v42  ;;  %v3718_v42 = vadd.f32 %v7356_v5, %v7521_v41  ;;  %v7531_v41 = vld [vmem:[#allocation12_spill] sm:$0xff] }
 0x31d   : > { %v7370_v50 = vpop.f32.mrf.mxu1  ;;  %v5342_v60 = vpop.f32.mrf.mxu0 }
 0x31e   : > { %v5172_v22 = vpack.c.bf16 %v4100_v23, %v4099_v9  ;;  %v4098_v35 = vmax.f32 %v3954_v47, 0.0  ;;  %v3975_v25 = vadd.f32 %v5342_v60, %v3686_v58  ;;  %v7522_v9 = vld [vmem:[#allocation10_spill] sm:$0xff] }
 0x31f   : > { %v3727_v10 = vpop.f32.mrf.mxu1  ;;  %v3966_v11 = vpop.f32.mrf.mxu0  ;;  %v3710_v23 = vadd.f32 %v7344_v46, %v7522_v9  ;;  %v7523_v47 = vld [vmem:[#allocation22_spill] sm:$0xff] }
 0x320   : > { %5252 = vst [vmem:[%s7271_s24 + $0x98] sm:$0xff] %v5172_v22   ;;  %v5167_v3 = vpack.c.bf16 %v4098_v35, %v4097_v6  ;;  %v3967_v20 = vadd.f32 %v3966_v11, %v3678_v16  ;;  %v4103_v34 = vmax.f32 %v3975_v25, 0.0  ;;  %v3721_v60 = vadd.f32 %v7365_v63, %v7523_v47  ;;  %v7524_v10 = vld [vmem:[#allocation18_spill] sm:$0xff] }
 0x321   : > { %v7379_v43 = vpop.f32.mrf.mxu1  ;;  %v5343_v39 = vpop.f32.mrf.mxu0  ;;  %v3713_v11 = vadd.f32 %v7351_v62, %v7524_v10  ;;  %v7526_v62 = vld [vmem:[#allocation23_spill] sm:$0xff] }
 0x322   : > { %5251 = vst [vmem:[%s7271_s24 + $0x90] sm:$0xff] %v5167_v3   ;;  %v3978_v33 = vadd.f32 %v5343_v39, %v3689_v12  ;;  %v4101_v7 = vmax.f32 %v3967_v20, 0.0  ;;  %v7525_v20 = vld [vmem:[#allocation19_spill] sm:$0xff] }
 0x323   : > { %v3730_v14 = vpop.f32.mrf.mxu1  ;;  %v3969_v26 = vpop.f32.mrf.mxu0 }
 0x324   : > { %v4104_v38 = vmax.f32 %v3978_v33, 0.0  ;;  %v3970_v44 = vadd.f32 %v3969_v26, %v3681_v13 }
 0x325   : > { %v3733_v61 = vpop.f32.mrf.mxu1  ;;  %v5346_v30 = vpop.f32.mrf.mxu0 }
 0x326   : > { %v5182_v59 = vpack.c.bf16 %v4104_v38, %v4103_v34  ;;  %v4102_v32 = vmax.f32 %v3970_v44, 0.0  ;;  %v3991_v27 = vadd.f32 %v5346_v30, %v3702_v45  ;;  %v3734_v33 = vadd.f32 %v3733_v61, %v7525_v20  ;;  %v7527_v45 = vld [vmem:[#allocation20_spill] sm:$0xff] }
 0x327   : > { %v3735_v36 = vpop.f32.mrf.mxu1  ;;  %v3982_v48 = vpop.f32.mrf.mxu0  ;;  %v3726_v30 = vadd.f32 %v7370_v50, %v7526_v62  ;;  %v7533_v20 = vld [vmem:[#allocation4_spill] sm:$0xff] }
 0x328   : > { %5254 = vst [vmem:[%s7271_s24 + $0xa8] sm:$0xff] %v5182_v59   ;;  %v5177_v28 = vpack.c.bf16 %v4102_v32, %v4101_v7  ;;  %v3983_v2 = vadd.f32 %v3982_v48, %v3694_v1  ;;  %v4107_v55 = vmax.f32 %v3991_v27, 0.0  ;;  %v7528_v1 = vld [vmem:[#allocation24_spill] sm:$0xff] }
 0x329   : > { %v3736_v15 = vpop.f32.mrf.mxu1  ;;  %v5347_v52 = vpop.f32.mrf.mxu0  ;;  %v3729_v0 = vadd.f32 %v7379_v43, %v7528_v1  ;;  %v7530_v43 = vld [vmem:[#allocation2_spill] sm:$0xff] }
 0x32a   : > { %5253 = vst [vmem:[%s7271_s24 + $0xa0] sm:$0xff] %v5177_v28   ;;  %v3994_v19 = vadd.f32 %v5347_v52, %v3705_v40  ;;  %v4105_v49 = vmax.f32 %v3983_v2, 0.0  ;;  %v3737_v7 = vadd.f32 %v3736_v15, %v7527_v45  ;;  %v7529_v2 = vld [vmem:[#allocation3_spill] sm:$0xff] }
 0x32b   : > { %v3738_v54 = vpop.f32.mrf.mxu1  ;;  %v3985_v51 = vpop.f32.mrf.mxu0 }
 0x32c   : > { %v4108_v56 = vmax.f32 %v3994_v19, 0.0  ;;  %v3986_v53 = vadd.f32 %v3985_v51, %v3697_v24 }
 0x32d   : > { %v3741_v4 = vpop.f32.mrf.mxu1  ;;  %v5350_v57 = vpop.f32.mrf.mxu0 }
 0x32e   : > { %v5192_v21 = vpack.c.bf16 %v4108_v56, %v4107_v55  ;;  %v4106_v37 = vmax.f32 %v3986_v53, 0.0  ;;  %v4007_v6 = vadd.f32 %v5350_v57, %v3718_v42  ;;  %v3742_v57 = vadd.f32 %v3741_v4, %v7530_v43 }
 0x32f   : > { %v3743_v17 = vpop.f32.mrf.mxu1  ;;  %v3998_v8 = vpop.f32.mrf.mxu0 }
 0x330   : > { %5256 = vst [vmem:[%s7271_s24 + $0xb8] sm:$0xff] %v5192_v21   ;;  %v5187_v58 = vpack.c.bf16 %v4106_v37, %v4105_v49  ;;  %v3999_v5 = vadd.f32 %v3998_v8, %v3710_v23  ;;  %v4111_v25 = vmax.f32 %v4007_v6, 0.0  ;;  %v7532_v8 = vld [vmem:[#allocation11_spill] sm:$0xff] }
 0x331   : > { %v3744_v22 = vpop.f32.mrf.mxu1  ;;  %v5351_v35 = vpop.f32.mrf.mxu0 }
 0x332   : > { %5255 = vst [vmem:[%s7271_s24 + $0xb0] sm:$0xff] %v5187_v58   ;;  %v4010_v16 = vadd.f32 %v5351_v35, %v3721_v60  ;;  %v4109_v14 = vmax.f32 %v3999_v5, 0.0  ;;  %v3745_v9 = vadd.f32 %v3744_v22, %v7532_v8 }
 0x333   : > { %v3746_v12 = vpop.f32.mrf.mxu1  ;;  %v4001_v3 = vpop.f32.mrf.mxu0 }
 0x334   : > { %v4112_v39 = vmax.f32 %v4010_v16, 0.0  ;;  %v4002_v46 = vadd.f32 %v4001_v3, %v3713_v11 }
 0x335   : > { %v3749_v13 = vpop.f32.mrf.mxu1  ;;  %v5354_v63 = vpop.f32.mrf.mxu0 }
 0x336   : > { %v5202_v26 = vpack.c.bf16 %v4112_v39, %v4111_v25  ;;  %v4110_v34 = vmax.f32 %v4002_v46, 0.0  ;;  %v4023_v32 = vadd.f32 %v5354_v63, %v3734_v33  ;;  %v3750_v19 = vadd.f32 %v3749_v13, %v7529_v2 }
 0x337   : > { %v3751_v38 = vpop.f32.mrf.mxu1  ;;  %v4014_v44 = vpop.f32.mrf.mxu0 }
 0x338   : > { %5258 = vst [vmem:[%s7271_s24 + $0xc8] sm:$0xff] %v5202_v26   ;;  %v5197_v59 = vpack.c.bf16 %v4110_v34, %v4109_v14  ;;  %v4015_v61 = vadd.f32 %v4014_v44, %v3726_v30  ;;  %v4115_v52 = vmax.f32 %v4023_v32, 0.0  ;;  %v7534_v34 = vld [vmem:[#allocation13_spill] sm:$0xff] }
 0x339   : > { %v3752_v36 = vpop.f32.mrf.mxu1  ;;  %v5355_v48 = vpop.f32.mrf.mxu0 }
 0x33a   : > { %5257 = vst [vmem:[%s7271_s24 + $0xc0] sm:$0xff] %v5197_v59   ;;  %v4026_v40 = vadd.f32 %v5355_v48, %v3737_v7  ;;  %v4113_v54 = vmax.f32 %v4015_v61, 0.0  ;;  %v3753_v42 = vadd.f32 %v3752_v36, %v7531_v41 }
 0x33b   : > { %v3754_v28 = vpop.f32.mrf.mxu1  ;;  %v4017_v27 = vpop.f32.mrf.mxu0 }
 0x33c   : > { %v4116_v18 = vmax.f32 %v4026_v40, 0.0  ;;  %v4018_v24 = vadd.f32 %v4017_v27, %v3729_v0 }
 0x33d   : > { %v3757_v50 = vpop.f32.mrf.mxu1  ;;  %v5358_v15 = vpop.f32.mrf.mxu0 }
 0x33e   : > { %v5212_v51 = vpack.c.bf16 %v4116_v18, %v4115_v52  ;;  %v4114_v55 = vmax.f32 %v4018_v24, 0.0  ;;  %v4039_v21 = vadd.f32 %v5358_v15, %v3750_v19  ;;  %v3758_v22 = vadd.f32 %v3757_v50, %v7235_v31 }
 0x33f   : > { %v3759_v56 = vpop.f32.mrf.mxu1  ;;  %v4030_v53 = vpop.f32.mrf.mxu0 }
 0x340   : > { %5260 = vst [vmem:[%s7271_s24 + $0xd8] sm:$0xff] %v5212_v51   ;;  %v5207_v49 = vpack.c.bf16 %v4114_v55, %v4113_v54  ;;  %v4031_v23 = vadd.f32 %v4030_v53, %v3742_v57  ;;  %v4119_v6 = vmax.f32 %v4039_v21, 0.0 }
 0x341   : > { %v3760_v37 = vpop.f32.mrf.mxu1  ;;  %v5359_v17 = vpop.f32.mrf.mxu0 }
 0x342   : > { %5259 = vst [vmem:[%s7271_s24 + $0xd0] sm:$0xff] %v5207_v49   ;;  %v4042_v47 = vadd.f32 %v5359_v17, %v3753_v42  ;;  %v4117_v5 = vmax.f32 %v4031_v23, 0.0  ;;  %v3761_v33 = vadd.f32 %v3760_v37, %v7533_v20 }
 0x343   : > { %v3762_v60 = vpop.f32.mrf.mxu1  ;;  %v4033_v58 = vpop.f32.mrf.mxu0 }
 0x344   : > { %v4120_v35 = vmax.f32 %v4042_v47, 0.0  ;;  %v4034_v10 = vadd.f32 %v4033_v58, %v3745_v9 }
 0x345   : > { %v3765_v4 = vpop.f32.mrf.mxu1  ;;  %v5362_v11 = vpop.f32.mrf.mxu0 }
 0x346   : > { %v5222_v16 = vpack.c.bf16 %v4120_v35, %v4119_v6  ;;  %v4118_v12 = vmax.f32 %v4034_v10, 0.0  ;;  %v3766_v3 = vadd.f32 %v3765_v4, %v7247_v29 }
 0x347   : > { %v3767_v25 = vpop.f32.mrf.mxu1  ;;  %v4046_v39 = vpop.f32.mrf.mxu0 }
 0x348   : > { %5262 = vst [vmem:[%s7271_s24 + $0xe8] sm:$0xff] %v5222_v16   ;;  %v5217_v46 = vpack.c.bf16 %v4118_v12, %v4117_v5  ;;  %v4055_v14 = vadd.f32 %v5362_v11, %v3766_v3  ;;  %v4047_v26 = vadd.f32 %v4046_v39, %v3758_v22 }
 0x349   : > { %v3768_v13 = vpop.f32.mrf.mxu1  ;;  %v5363_v63 = vpop.f32.mrf.mxu0 }
 0x34a   : > { %5261 = vst [vmem:[%s7271_s24 + $0xe0] sm:$0xff] %v5217_v46   ;;  %v3769_v38 = vadd.f32 %v3768_v13, %v7534_v34  ;;  %v4123_v45 = vmax.f32 %v4055_v14, 0.0  ;;  %v4121_v7 = vmax.f32 %v4047_v26, 0.0 }
 0x34b   : > { %v3770_v44 = vpop.f32.mrf.mxu1  ;;  %v4049_v62 = vpop.f32.mrf.mxu0 }
 0x34c   : > { %v4058_v29 = vadd.f32 %v5363_v63, %v3769_v38  ;;  %v4050_v30 = vadd.f32 %v4049_v62, %v3761_v33 }
 0x34e   : > { %v4124_v31 = vmax.f32 %v4058_v29, 0.0  ;;  %v4122_v59 = vmax.f32 %v4050_v30, 0.0 }
 0x350   : > { %v5232_v32 = vpack.c.bf16 %v4124_v31, %v4123_v45  ;;  %v5227_v36 = vpack.c.bf16 %v4122_v59, %v4121_v7 }
 0x352   : > { %5264 = vst [vmem:[%s7271_s24 + $0xf8] sm:$0xff] %v5232_v32   ;;  %5263 = vst [vmem:[%s7271_s24 + $0xf0] sm:$0xff] %v5227_v36  }
 0x353 PF: > { %s13_s14 = sadd.s32 1, %s5927_s14   ;;  %s7535_s12 = smov %s5923_s13 }
 0x354   : > { %p10_p5 = scmp.ge.s32.totalorder %s13_s14, 4   ;;  %s7536_s13 = smov %s7538_s15 }
 0x356   :  { %12 = sbr.rel (!%p10_p5) target bundleno = 2 (0x2), region = 68 }

// kernel: forward.13
= control target key start
LH: loop header
LB: loop body
LE: loop exit
PB: predicated region body
PF: predicated region fallthrough
CT: control target
= control target key end

     0   :  { %s2032_s12 = smov 0   ;;  %s2034_s13 = smov 0   ;;  %s2262_s0 = inlined_call_operand.vmem [shape: bf16[1024,108], index: 0, kind: input, shape index: {}]   ;;  %s2263_s1 = inlined_call_operand.vmem [shape: bf16[108,128], index: 1, kind: input, shape index: {}]   ;;  %s2264_s2 = inlined_call_operand.vmem [shape: f32[1,128], index: 2, kind: input, shape index: {}]   ;;  %s2265_s3 = inlined_call_operand.vmem [shape: bf16[1024,128], index: 3, kind: output, shape index: {}]  }
   0x1   :  { %s2036_s14 = smov 0  }
   0x2 LB: > { %s25_s15 = sadd.s32 1, %s2006_s13  ;;  %p1394_p0 = scmp.ge.s32.totalorder %s2010_s14, 1  ;;  %s2010_s14 = sphi %s2036_s14, %s13_s14   ;;  %s2006_s13 = sphi %s2034_s13, %s2267_s13   ;;  %s2002_s12 = sphi %s2032_s12, %s2266_s12  }
   0x3   : > { %p27_p1 = scmp.ge.s32.totalorder %s25_s15, 2  ;;  %p169_p2 = scmp.lt.s32.totalorder %s2010_s14, 3 }
   0x5   : > { %s2269_s15 = smov (%p27_p1, %s25_s15), 0  ;;  %p170_p3 = pnand %p1394_p0, %p169_p2 }
   0x6   : > { %s1395_s20 = sshll.u32 (!%p170_p3), %s2002_s12, 6 }
   0x7   : > { %173 = sbr.rel (%p170_p3) target bundleno = 303 (0x12f), region = 32  ;;  %p204_p4 = scmp.lt.s32.totalorder (!%p170_p3), %s1395_s20, 127 }
   0xc   : > { %v1949_v0 = vld [vmem:[%s2263_s1 + $0x30] sm:$0x3f]   ;;  %vm609_vm0 = vcmask 1045504   ;;  %v1950_v1 = vld [vmem:[%s2263_s1 + $0x28] sm:$0xff]   ;;  %v1951_v3 = vld [vmem:[%s2263_s1 + $0x20] sm:$0xff]   ;;  %s2271_s20 = smov (!%p204_p4, %s1395_s20), 127 }
   0xd   : > { %1923 = vmatprep.subr.msk.bf16.mxu0 %vm609_vm0, %v1949_v0  ;;  %1924 = vmatprep.subr.msk.bf16.mxu1 %vm609_vm0, %v1949_v0  ;;  %v611_v2 = vsel %vm609_vm0, %v1949_v0, 0  ;;  %v1952_v4 = vld [vmem:[%s2263_s1 + $0x18] sm:$0xff]   ;;  %s1396_s25 = sshll.u32 %s2271_s20, 2  ;;  %vm512_vm1 = vcmask 883712   ;;  %v1953_v7 = vld [vmem:[%s2263_s1 + $0x10] sm:$0xff]   ;;  %v1954_v8 = vld [vmem:[%s2263_s1 + $0x8] sm:$0xff]  }
   0xe   : > { %1832 = vmatpush3.bf16.msra.mxu0 %v611_v2  ;;  %1916 = vmatpush3.bf16.msra.mxu1 %v611_v2  ;;  %s2070_s28 = scalar_lea.vmem %s2262_s0, %s1396_s25  ;;  %v1955_v9 = vld [vmem:[%s2263_s1] sm:$0xff]   ;;  %s2163_s12 = scalar_lea.vmem %s2265_s3, %s1396_s25 }
   0xf   : > { %1833 = vmatprep.subr.bf16.mxu0 %v1950_v1  ;;  %1910 = vmatprep.subr.bf16.mxu1 %v1950_v1  ;;  %v1956_v5 = vld [vmem:[%s2070_s28] sm:$0xff]   ;;  %v1958_v10 = vld [vmem:[%s2070_s28 + $0x8] sm:$0xff]   ;;  %v1960_v12 = vld [vmem:[%s2070_s28 + $0x10] sm:$0xff]  }
  0x10   : > { %v1957_v6 = vld [vmem:[%s2070_s28 + $0x80] sm:$0xff]   ;;  %1845 = vmatprep.mubr.msk.bf16.mxu0 %vm512_vm1, %v1956_v5  ;;  %v1959_v11 = vld [vmem:[%s2070_s28 + $0x88] sm:$0xff]   ;;  %v1961_v13 = vld [vmem:[%s2070_s28 + $0x90] sm:$0xff]  }
  0x11   : > { %1877 = vmatprep.mubr.msk.bf16.mxu1 %vm512_vm1, %v1957_v6  ;;  %v1962_v14 = vld [vmem:[%s2070_s28 + $0x18] sm:$0xff]   ;;  %v1964_v16 = vld [vmem:[%s2070_s28 + $0x20] sm:$0xff]   ;;  %v1966_v18 = vld [vmem:[%s2070_s28 + $0x28] sm:$0xff]  }
  0x12   : > { %1834 = vmatpush3.bf16.msra.mxu0 %v1950_v1  ;;  %1917 = vmatpush3.bf16.msra.mxu1 %v1950_v1  ;;  %v1963_v15 = vld [vmem:[%s2070_s28 + $0x98] sm:$0xff]   ;;  %v1965_v17 = vld [vmem:[%s2070_s28 + $0xa0] sm:$0xff]   ;;  %v1967_v19 = vld [vmem:[%s2070_s28 + $0xa8] sm:$0xff]  }
  0x13   : > { %1835 = vmatprep.subr.bf16.mxu0 %v1951_v3  ;;  %1911 = vmatprep.subr.bf16.mxu1 %v1951_v3  ;;  %v1968_v20 = vld [vmem:[%s2070_s28 + $0x30] sm:$0xff]   ;;  %v1970_v22 = vld [vmem:[%s2070_s28 + $0x38] sm:$0xff]   ;;  %v1972_v24 = vld [vmem:[%s2070_s28 + $0x40] sm:$0xff]  }
  0x14   : > { %v1969_v21 = vld [vmem:[%s2070_s28 + $0xb0] sm:$0xff]   ;;  %v1971_v23 = vld [vmem:[%s2070_s28 + $0xb8] sm:$0xff]   ;;  %v1973_v25 = vld [vmem:[%s2070_s28 + $0xc0] sm:$0xff]  }
  0x15   : > { %v1974_v26 = vld [vmem:[%s2070_s28 + $0x48] sm:$0xff]   ;;  %v1976_v28 = vld [vmem:[%s2070_s28 + $0x50] sm:$0xff]   ;;  %v1978_v30 = vld [vmem:[%s2070_s28 + $0x58] sm:$0xff]  }
  0x16   : > { %1836 = vmatpush3.bf16.msra.mxu0 %v1951_v3  ;;  %1918 = vmatpush3.bf16.msra.mxu1 %v1951_v3  ;;  %v1975_v27 = vld [vmem:[%s2070_s28 + $0xc8] sm:$0xff]   ;;  %v1977_v29 = vld [vmem:[%s2070_s28 + $0xd0] sm:$0xff]   ;;  %v1979_v31 = vld [vmem:[%s2070_s28 + $0xd8] sm:$0xff]  }
  0x17   : > { %1837 = vmatprep.subr.bf16.mxu0 %v1952_v4  ;;  %1912 = vmatprep.subr.bf16.mxu1 %v1952_v4  ;;  %v1980_v32 = vld [vmem:[%s2070_s28 + $0x60] sm:$0xff]   ;;  %v1982_v34 = vld [vmem:[%s2070_s28 + $0x68] sm:$0xff]   ;;  %v1984_v36 = vld [vmem:[%s2070_s28 + $0x70] sm:$0xff]  }
  0x18   : > { %v1981_v33 = vld [vmem:[%s2070_s28 + $0xe0] sm:$0xff]   ;;  %v1983_v35 = vld [vmem:[%s2070_s28 + $0xe8] sm:$0xff]   ;;  %v1985_v37 = vld [vmem:[%s2070_s28 + $0xf0] sm:$0xff]  }
  0x19   : > { %v1986_v38 = vld [vmem:[%s2070_s28 + $0x78] sm:$0xff]   ;;  %v2148_v40 = vld [vmem:[%s2264_s2] ss:$0 sm:$0xff] }
  0x1a   : > { %1838 = vmatpush3.bf16.msra.mxu0 %v1952_v4  ;;  %1919 = vmatpush3.bf16.msra.mxu1 %v1952_v4  ;;  %v1987_v39 = vld [vmem:[%s2070_s28 + $0xf8] sm:$0xff]  }
  0x1b   : > { %1839 = vmatprep.subr.bf16.mxu0 %v1953_v7  ;;  %1913 = vmatprep.subr.bf16.mxu1 %v1953_v7 }
  0x1e   : > { %1840 = vmatpush3.bf16.msra.mxu0 %v1953_v7  ;;  %1920 = vmatpush3.bf16.msra.mxu1 %v1953_v7 }
  0x1f   : > { %1841 = vmatprep.subr.bf16.mxu0 %v1954_v8  ;;  %1914 = vmatprep.subr.bf16.mxu1 %v1954_v8 }
  0x22   : > { %1842 = vmatpush3.bf16.msra.mxu0 %v1954_v8  ;;  %1921 = vmatpush3.bf16.msra.mxu1 %v1954_v8 }
  0x23   : > { %1843 = vmatprep.subr.bf16.mxu0 %v1955_v9  ;;  %1915 = vmatprep.subr.bf16.mxu1 %v1955_v9 }
  0x26   : > { %1844 = vmatpush3.bf16.msra.mxu0 %v1955_v9  ;;  %1922 = vmatpush3.bf16.msra.mxu1 %v1955_v9 }
  0x29   : > { %1846 = vmatmul.mubr.msk.bf16.vlgmr.msra.gmra.mxu0 %vm512_vm1, %v1958_v10  ;;  %1878 = vmatmul.mubr.msk.bf16.vlgmr.msra.gmra.mxu1 %vm512_vm1, %v1959_v11 }
  0x2a   : > { %1849 = vmatprep.mubr.msk.bf16.mxu0 %vm512_vm1, %v1960_v12  ;;  %1881 = vmatprep.mubr.msk.bf16.mxu1 %vm512_vm1, %v1961_v13 }
  0x31   : > { %1850 = vmatmul.mubr.msk.bf16.gmra.mxu0 %vm512_vm1, %v1962_v14  ;;  %1882 = vmatmul.mubr.msk.bf16.gmra.mxu1 %vm512_vm1, %v1963_v15 }
  0x32   : > { %1853 = vmatprep.mubr.msk.bf16.mxu0 %vm512_vm1, %v1964_v16  ;;  %1885 = vmatprep.mubr.msk.bf16.mxu1 %vm512_vm1, %v1965_v17 }
  0x39   : > { %1854 = vmatmul.mubr.msk.bf16.gmra.mxu0 %vm512_vm1, %v1966_v18  ;;  %1886 = vmatmul.mubr.msk.bf16.gmra.mxu1 %vm512_vm1, %v1967_v19 }
  0x3a   : > { %1857 = vmatprep.mubr.msk.bf16.mxu0 %vm512_vm1, %v1968_v20  ;;  %1889 = vmatprep.mubr.msk.bf16.mxu1 %vm512_vm1, %v1969_v21 }
  0x41   : > { %1858 = vmatmul.mubr.msk.bf16.gmra.mxu0 %vm512_vm1, %v1970_v22  ;;  %1890 = vmatmul.mubr.msk.bf16.gmra.mxu1 %vm512_vm1, %v1971_v23 }
  0x42   : > { %1861 = vmatprep.mubr.msk.bf16.mxu0 %vm512_vm1, %v1972_v24  ;;  %1893 = vmatprep.mubr.msk.bf16.mxu1 %vm512_vm1, %v1973_v25 }
  0x49   : > { %1862 = vmatmul.mubr.msk.bf16.gmra.mxu0 %vm512_vm1, %v1974_v26  ;;  %1894 = vmatmul.mubr.msk.bf16.gmra.mxu1 %vm512_vm1, %v1975_v27 }
  0x4a   : > { %1865 = vmatprep.mubr.msk.bf16.mxu0 %vm512_vm1, %v1976_v28  ;;  %1897 = vmatprep.mubr.msk.bf16.mxu1 %vm512_vm1, %v1977_v29 }
  0x51   : > { %1866 = vmatmul.mubr.msk.bf16.gmra.mxu0 %vm512_vm1, %v1978_v30  ;;  %1898 = vmatmul.mubr.msk.bf16.gmra.mxu1 %vm512_vm1, %v1979_v31 }
  0x52   : > { %1869 = vmatprep.mubr.msk.bf16.mxu0 %vm512_vm1, %v1980_v32  ;;  %1901 = vmatprep.mubr.msk.bf16.mxu1 %vm512_vm1, %v1981_v33 }
  0x59   : > { %1870 = vmatmul.mubr.msk.bf16.gmra.mxu0 %vm512_vm1, %v1982_v34  ;;  %1902 = vmatmul.mubr.msk.bf16.gmra.mxu1 %vm512_vm1, %v1983_v35 }
  0x5a   : > { %1873 = vmatprep.mubr.msk.bf16.mxu0 %vm512_vm1, %v1984_v36  ;;  %1905 = vmatprep.mubr.msk.bf16.mxu1 %vm512_vm1, %v1985_v37 }
  0x61   : > { %1874 = vmatmul.mubr.msk.bf16.gmra.mxu0 %vm512_vm1, %v1986_v38  ;;  %1906 = vmatmul.mubr.msk.bf16.gmra.mxu1 %vm512_vm1, %v1987_v39 }
  0xe9   : > { %v1847_v41 = vpop.f32.mrf.mxu0  ;;  %v1879_v42 = vpop.f32.mrf.mxu1 }
  0xea   : > { %v656_v43 = vadd.f32 %v1847_v41, %v2148_v40  ;;  %v784_v44 = vadd.f32 %v1879_v42, %v2148_v40 }
  0xeb   : > { %v647_v45 = vpop.f32.mrf.mxu0  ;;  %v775_v46 = vpop.f32.mrf.mxu1 }
  0xec   : > { %v648_v47 = vadd.f32 %v2148_v40, %v647_v45  ;;  %v776_v48 = vadd.f32 %v2148_v40, %v775_v46  ;;  %v904_v53 = vmax.f32 %v656_v43, 0.0  ;;  %v936_v54 = vmax.f32 %v784_v44, 0.0 }
  0xed   : > { %v1848_v49 = vpop.f32.mrf.mxu0  ;;  %v1880_v50 = vpop.f32.mrf.mxu1 }
  0xee   : > { %v659_v51 = vadd.f32 %v1848_v49, %v2148_v40  ;;  %v787_v52 = vadd.f32 %v1880_v50, %v2148_v40  ;;  %v902_v61 = vmax.f32 %v648_v47, 0.0  ;;  %v934_v62 = vmax.f32 %v776_v48, 0.0 }
  0xef   : > { %v650_v55 = vpop.f32.mrf.mxu0  ;;  %v778_v56 = vpop.f32.mrf.mxu1 }
  0xf0   : > { %v905_v57 = vmax.f32 %v659_v51, 0.0  ;;  %v937_v58 = vmax.f32 %v787_v52, 0.0  ;;  %v651_v59 = vadd.f32 %v2148_v40, %v650_v55  ;;  %v779_v60 = vadd.f32 %v2148_v40, %v778_v56 }
  0xf1   : > { %v1851_v63 = vpop.f32.mrf.mxu0  ;;  %v1883_v0 = vpop.f32.mrf.mxu1 }
  0xf2   : > { %v1609_v1 = vpack.c.bf16 %v905_v57, %v904_v53  ;;  %v1689_v2 = vpack.c.bf16 %v937_v58, %v936_v54  ;;  %v903_v3 = vmax.f32 %v651_v59, 0.0  ;;  %v935_v4 = vmax.f32 %v779_v60, 0.0 }
  0xf3   : > { %v672_v5 = vadd.f32 %v1851_v63, %v2148_v40  ;;  %v800_v6 = vadd.f32 %v1883_v0, %v2148_v40  ;;  %v663_v7 = vpop.f32.mrf.mxu0  ;;  %v791_v8 = vpop.f32.mrf.mxu1 }
  0xf4   : > { %1761 = vst [vmem:[%s2163_s12 + $0x8] sm:$0xff] %v1609_v1   ;;  %1777 = vst [vmem:[%s2163_s12 + $0x88] sm:$0xff] %v1689_v2   ;;  %v1604_v9 = vpack.c.bf16 %v903_v3, %v902_v61  ;;  %v1684_v10 = vpack.c.bf16 %v935_v4, %v934_v62  ;;  %v664_v11 = vadd.f32 %v2148_v40, %v663_v7 }
  0xf5   : > { %v792_v12 = vadd.f32 %v2148_v40, %v791_v8  ;;  %v1852_v13 = vpop.f32.mrf.mxu0  ;;  %v1884_v14 = vpop.f32.mrf.mxu1  ;;  %v908_v17 = vmax.f32 %v672_v5, 0.0  ;;  %v940_v18 = vmax.f32 %v800_v6, 0.0 }
  0xf6   : > { %1605 = vst [vmem:[%s2163_s12] sm:$0xff] %v1604_v9   ;;  %1776 = vst [vmem:[%s2163_s12 + $0x80] sm:$0xff] %v1684_v10   ;;  %v675_v15 = vadd.f32 %v1852_v13, %v2148_v40  ;;  %v803_v16 = vadd.f32 %v1884_v14, %v2148_v40  ;;  %v906_v25 = vmax.f32 %v664_v11, 0.0 }
  0xf7   : > { %v666_v19 = vpop.f32.mrf.mxu0  ;;  %v794_v20 = vpop.f32.mrf.mxu1  ;;  %v938_v26 = vmax.f32 %v792_v12, 0.0 }
  0xf8   : > { %v909_v21 = vmax.f32 %v675_v15, 0.0  ;;  %v941_v22 = vmax.f32 %v803_v16, 0.0  ;;  %v667_v23 = vadd.f32 %v2148_v40, %v666_v19  ;;  %v795_v24 = vadd.f32 %v2148_v40, %v794_v20 }
  0xf9   : > { %v1855_v27 = vpop.f32.mrf.mxu0  ;;  %v1887_v28 = vpop.f32.mrf.mxu1 }
  0xfa   : > { %v1619_v29 = vpack.c.bf16 %v909_v21, %v908_v17  ;;  %v1699_v30 = vpack.c.bf16 %v941_v22, %v940_v18  ;;  %v907_v31 = vmax.f32 %v667_v23, 0.0  ;;  %v939_v32 = vmax.f32 %v795_v24, 0.0 }
  0xfb   : > { %v688_v33 = vadd.f32 %v1855_v27, %v2148_v40  ;;  %v816_v34 = vadd.f32 %v1887_v28, %v2148_v40  ;;  %v679_v35 = vpop.f32.mrf.mxu0  ;;  %v807_v36 = vpop.f32.mrf.mxu1 }
  0xfc   : > { %1763 = vst [vmem:[%s2163_s12 + $0x18] sm:$0xff] %v1619_v29   ;;  %1779 = vst [vmem:[%s2163_s12 + $0x98] sm:$0xff] %v1699_v30   ;;  %v1614_v37 = vpack.c.bf16 %v907_v31, %v906_v25  ;;  %v1694_v38 = vpack.c.bf16 %v939_v32, %v938_v26  ;;  %v680_v39 = vadd.f32 %v2148_v40, %v679_v35 }
  0xfd   : > { %v808_v41 = vadd.f32 %v2148_v40, %v807_v36  ;;  %v1856_v42 = vpop.f32.mrf.mxu0  ;;  %v1888_v43 = vpop.f32.mrf.mxu1  ;;  %v912_v46 = vmax.f32 %v688_v33, 0.0  ;;  %v944_v47 = vmax.f32 %v816_v34, 0.0 }
  0xfe   : > { %1762 = vst [vmem:[%s2163_s12 + $0x10] sm:$0xff] %v1614_v37   ;;  %1778 = vst [vmem:[%s2163_s12 + $0x90] sm:$0xff] %v1694_v38   ;;  %v691_v44 = vadd.f32 %v1856_v42, %v2148_v40  ;;  %v819_v45 = vadd.f32 %v1888_v43, %v2148_v40  ;;  %v910_v54 = vmax.f32 %v680_v39, 0.0 }
  0xff   : > { %v682_v48 = vpop.f32.mrf.mxu0  ;;  %v810_v49 = vpop.f32.mrf.mxu1  ;;  %v942_v55 = vmax.f32 %v808_v41, 0.0 }
 0x100   : > { %v913_v50 = vmax.f32 %v691_v44, 0.0  ;;  %v945_v51 = vmax.f32 %v819_v45, 0.0  ;;  %v683_v52 = vadd.f32 %v2148_v40, %v682_v48  ;;  %v811_v53 = vadd.f32 %v2148_v40, %v810_v49 }
 0x101   : > { %v1859_v56 = vpop.f32.mrf.mxu0  ;;  %v1891_v57 = vpop.f32.mrf.mxu1 }
 0x102   : > { %v1629_v58 = vpack.c.bf16 %v913_v50, %v912_v46  ;;  %v1709_v59 = vpack.c.bf16 %v945_v51, %v944_v47  ;;  %v911_v60 = vmax.f32 %v683_v52, 0.0  ;;  %v943_v61 = vmax.f32 %v811_v53, 0.0 }
 0x103   : > { %v704_v62 = vadd.f32 %v1859_v56, %v2148_v40  ;;  %v832_v63 = vadd.f32 %v1891_v57, %v2148_v40  ;;  %v695_v0 = vpop.f32.mrf.mxu0  ;;  %v823_v1 = vpop.f32.mrf.mxu1 }
 0x104   : > { %1765 = vst [vmem:[%s2163_s12 + $0x28] sm:$0xff] %v1629_v58   ;;  %1781 = vst [vmem:[%s2163_s12 + $0xa8] sm:$0xff] %v1709_v59   ;;  %v1624_v2 = vpack.c.bf16 %v911_v60, %v910_v54  ;;  %v1704_v3 = vpack.c.bf16 %v943_v61, %v942_v55  ;;  %v696_v4 = vadd.f32 %v2148_v40, %v695_v0 }
 0x105   : > { %v824_v5 = vadd.f32 %v2148_v40, %v823_v1  ;;  %v1860_v6 = vpop.f32.mrf.mxu0  ;;  %v1892_v7 = vpop.f32.mrf.mxu1  ;;  %v916_v10 = vmax.f32 %v704_v62, 0.0  ;;  %v948_v11 = vmax.f32 %v832_v63, 0.0 }
 0x106   : > { %1764 = vst [vmem:[%s2163_s12 + $0x20] sm:$0xff] %v1624_v2   ;;  %1780 = vst [vmem:[%s2163_s12 + $0xa0] sm:$0xff] %v1704_v3   ;;  %v707_v8 = vadd.f32 %v1860_v6, %v2148_v40  ;;  %v835_v9 = vadd.f32 %v1892_v7, %v2148_v40  ;;  %v914_v18 = vmax.f32 %v696_v4, 0.0 }
 0x107   : > { %v698_v12 = vpop.f32.mrf.mxu0  ;;  %v826_v13 = vpop.f32.mrf.mxu1  ;;  %v946_v19 = vmax.f32 %v824_v5, 0.0 }
 0x108   : > { %v917_v14 = vmax.f32 %v707_v8, 0.0  ;;  %v949_v15 = vmax.f32 %v835_v9, 0.0  ;;  %v699_v16 = vadd.f32 %v2148_v40, %v698_v12  ;;  %v827_v17 = vadd.f32 %v2148_v40, %v826_v13 }
 0x109   : > { %v1863_v20 = vpop.f32.mrf.mxu0  ;;  %v1895_v21 = vpop.f32.mrf.mxu1 }
 0x10a   : > { %v1639_v22 = vpack.c.bf16 %v917_v14, %v916_v10  ;;  %v1719_v23 = vpack.c.bf16 %v949_v15, %v948_v11  ;;  %v915_v24 = vmax.f32 %v699_v16, 0.0  ;;  %v947_v25 = vmax.f32 %v827_v17, 0.0 }
 0x10b   : > { %v720_v26 = vadd.f32 %v1863_v20, %v2148_v40  ;;  %v848_v27 = vadd.f32 %v1895_v21, %v2148_v40  ;;  %v711_v28 = vpop.f32.mrf.mxu0  ;;  %v839_v29 = vpop.f32.mrf.mxu1 }
 0x10c   : > { %1767 = vst [vmem:[%s2163_s12 + $0x38] sm:$0xff] %v1639_v22   ;;  %1783 = vst [vmem:[%s2163_s12 + $0xb8] sm:$0xff] %v1719_v23   ;;  %v1634_v30 = vpack.c.bf16 %v915_v24, %v914_v18  ;;  %v1714_v31 = vpack.c.bf16 %v947_v25, %v946_v19  ;;  %v712_v32 = vadd.f32 %v2148_v40, %v711_v28 }
 0x10d   : > { %v840_v33 = vadd.f32 %v2148_v40, %v839_v29  ;;  %v1864_v34 = vpop.f32.mrf.mxu0  ;;  %v1896_v35 = vpop.f32.mrf.mxu1  ;;  %v920_v38 = vmax.f32 %v720_v26, 0.0  ;;  %v952_v39 = vmax.f32 %v848_v27, 0.0 }
 0x10e   : > { %1766 = vst [vmem:[%s2163_s12 + $0x30] sm:$0xff] %v1634_v30   ;;  %1782 = vst [vmem:[%s2163_s12 + $0xb0] sm:$0xff] %v1714_v31   ;;  %v723_v36 = vadd.f32 %v1864_v34, %v2148_v40  ;;  %v851_v37 = vadd.f32 %v1896_v35, %v2148_v40  ;;  %v918_v47 = vmax.f32 %v712_v32, 0.0 }
 0x10f   : > { %v714_v41 = vpop.f32.mrf.mxu0  ;;  %v842_v42 = vpop.f32.mrf.mxu1  ;;  %v950_v48 = vmax.f32 %v840_v33, 0.0 }
 0x110   : > { %v921_v43 = vmax.f32 %v723_v36, 0.0  ;;  %v953_v44 = vmax.f32 %v851_v37, 0.0  ;;  %v715_v45 = vadd.f32 %v2148_v40, %v714_v41  ;;  %v843_v46 = vadd.f32 %v2148_v40, %v842_v42 }
 0x111   : > { %v1867_v49 = vpop.f32.mrf.mxu0  ;;  %v1899_v50 = vpop.f32.mrf.mxu1 }
 0x112   : > { %v1649_v51 = vpack.c.bf16 %v921_v43, %v920_v38  ;;  %v1729_v52 = vpack.c.bf16 %v953_v44, %v952_v39  ;;  %v919_v53 = vmax.f32 %v715_v45, 0.0  ;;  %v951_v54 = vmax.f32 %v843_v46, 0.0 }
 0x113   : > { %v736_v55 = vadd.f32 %v1867_v49, %v2148_v40  ;;  %v864_v56 = vadd.f32 %v1899_v50, %v2148_v40  ;;  %v727_v57 = vpop.f32.mrf.mxu0  ;;  %v855_v58 = vpop.f32.mrf.mxu1 }
 0x114   : > { %1769 = vst [vmem:[%s2163_s12 + $0x48] sm:$0xff] %v1649_v51   ;;  %1785 = vst [vmem:[%s2163_s12 + $0xc8] sm:$0xff] %v1729_v52   ;;  %v1644_v59 = vpack.c.bf16 %v919_v53, %v918_v47  ;;  %v1724_v60 = vpack.c.bf16 %v951_v54, %v950_v48  ;;  %v728_v61 = vadd.f32 %v2148_v40, %v727_v57 }
 0x115   : > { %v856_v62 = vadd.f32 %v2148_v40, %v855_v58  ;;  %v1868_v63 = vpop.f32.mrf.mxu0  ;;  %v1900_v0 = vpop.f32.mrf.mxu1  ;;  %v924_v3 = vmax.f32 %v736_v55, 0.0  ;;  %v956_v4 = vmax.f32 %v864_v56, 0.0 }
 0x116   : > { %1768 = vst [vmem:[%s2163_s12 + $0x40] sm:$0xff] %v1644_v59   ;;  %1784 = vst [vmem:[%s2163_s12 + $0xc0] sm:$0xff] %v1724_v60   ;;  %v739_v1 = vadd.f32 %v1868_v63, %v2148_v40  ;;  %v867_v2 = vadd.f32 %v1900_v0, %v2148_v40  ;;  %v922_v11 = vmax.f32 %v728_v61, 0.0 }
 0x117   : > { %v730_v5 = vpop.f32.mrf.mxu0  ;;  %v858_v6 = vpop.f32.mrf.mxu1  ;;  %v954_v12 = vmax.f32 %v856_v62, 0.0 }
 0x118   : > { %v925_v7 = vmax.f32 %v739_v1, 0.0  ;;  %v957_v8 = vmax.f32 %v867_v2, 0.0  ;;  %v731_v9 = vadd.f32 %v2148_v40, %v730_v5  ;;  %v859_v10 = vadd.f32 %v2148_v40, %v858_v6 }
 0x119   : > { %v1871_v13 = vpop.f32.mrf.mxu0  ;;  %v1903_v14 = vpop.f32.mrf.mxu1 }
 0x11a   : > { %v1659_v15 = vpack.c.bf16 %v925_v7, %v924_v3  ;;  %v1739_v16 = vpack.c.bf16 %v957_v8, %v956_v4  ;;  %v923_v17 = vmax.f32 %v731_v9, 0.0  ;;  %v955_v18 = vmax.f32 %v859_v10, 0.0 }
 0x11b   : > { %v752_v19 = vadd.f32 %v1871_v13, %v2148_v40  ;;  %v880_v20 = vadd.f32 %v1903_v14, %v2148_v40  ;;  %v743_v21 = vpop.f32.mrf.mxu0  ;;  %v871_v22 = vpop.f32.mrf.mxu1 }
 0x11c   : > { %1771 = vst [vmem:[%s2163_s12 + $0x58] sm:$0xff] %v1659_v15   ;;  %1787 = vst [vmem:[%s2163_s12 + $0xd8] sm:$0xff] %v1739_v16   ;;  %v1654_v23 = vpack.c.bf16 %v923_v17, %v922_v11  ;;  %v1734_v24 = vpack.c.bf16 %v955_v18, %v954_v12  ;;  %v744_v25 = vadd.f32 %v2148_v40, %v743_v21 }
 0x11d   : > { %v872_v26 = vadd.f32 %v2148_v40, %v871_v22  ;;  %v1872_v27 = vpop.f32.mrf.mxu0  ;;  %v1904_v28 = vpop.f32.mrf.mxu1  ;;  %v928_v31 = vmax.f32 %v752_v19, 0.0  ;;  %v960_v32 = vmax.f32 %v880_v20, 0.0 }
 0x11e   : > { %1770 = vst [vmem:[%s2163_s12 + $0x50] sm:$0xff] %v1654_v23   ;;  %1786 = vst [vmem:[%s2163_s12 + $0xd0] sm:$0xff] %v1734_v24   ;;  %v755_v29 = vadd.f32 %v1872_v27, %v2148_v40  ;;  %v883_v30 = vadd.f32 %v1904_v28, %v2148_v40  ;;  %v926_v39 = vmax.f32 %v744_v25, 0.0 }
 0x11f   : > { %v746_v33 = vpop.f32.mrf.mxu0  ;;  %v874_v34 = vpop.f32.mrf.mxu1  ;;  %v958_v41 = vmax.f32 %v872_v26, 0.0 }
 0x120   : > { %v929_v35 = vmax.f32 %v755_v29, 0.0  ;;  %v961_v36 = vmax.f32 %v883_v30, 0.0  ;;  %v747_v37 = vadd.f32 %v2148_v40, %v746_v33  ;;  %v875_v38 = vadd.f32 %v2148_v40, %v874_v34 }
 0x121   : > { %v1875_v42 = vpop.f32.mrf.mxu0  ;;  %v1907_v43 = vpop.f32.mrf.mxu1 }
 0x122   : > { %v1669_v44 = vpack.c.bf16 %v929_v35, %v928_v31  ;;  %v1749_v45 = vpack.c.bf16 %v961_v36, %v960_v32  ;;  %v927_v46 = vmax.f32 %v747_v37, 0.0  ;;  %v959_v47 = vmax.f32 %v875_v38, 0.0 }
 0x123   : > { %v768_v48 = vadd.f32 %v1875_v42, %v2148_v40  ;;  %v896_v49 = vadd.f32 %v1907_v43, %v2148_v40  ;;  %v759_v50 = vpop.f32.mrf.mxu0  ;;  %v887_v51 = vpop.f32.mrf.mxu1 }
 0x124   : > { %1773 = vst [vmem:[%s2163_s12 + $0x68] sm:$0xff] %v1669_v44   ;;  %1789 = vst [vmem:[%s2163_s12 + $0xe8] sm:$0xff] %v1749_v45   ;;  %v1664_v52 = vpack.c.bf16 %v927_v46, %v926_v39  ;;  %v1744_v53 = vpack.c.bf16 %v959_v47, %v958_v41  ;;  %v760_v54 = vadd.f32 %v2148_v40, %v759_v50 }
 0x125   : > { %v888_v55 = vadd.f32 %v2148_v40, %v887_v51  ;;  %v1876_v56 = vpop.f32.mrf.mxu0  ;;  %v1908_v57 = vpop.f32.mrf.mxu1  ;;  %v932_v60 = vmax.f32 %v768_v48, 0.0  ;;  %v964_v61 = vmax.f32 %v896_v49, 0.0 }
 0x126   : > { %1772 = vst [vmem:[%s2163_s12 + $0x60] sm:$0xff] %v1664_v52   ;;  %1788 = vst [vmem:[%s2163_s12 + $0xe0] sm:$0xff] %v1744_v53   ;;  %v771_v58 = vadd.f32 %v1876_v56, %v2148_v40  ;;  %v899_v59 = vadd.f32 %v1908_v57, %v2148_v40  ;;  %v930_v4 = vmax.f32 %v760_v54, 0.0 }
 0x127   : > { %v762_v62 = vpop.f32.mrf.mxu0  ;;  %v890_v63 = vpop.f32.mrf.mxu1  ;;  %v962_v5 = vmax.f32 %v888_v55, 0.0 }
 0x128   : > { %v933_v0 = vmax.f32 %v771_v58, 0.0  ;;  %v965_v1 = vmax.f32 %v899_v59, 0.0  ;;  %v763_v2 = vadd.f32 %v2148_v40, %v762_v62  ;;  %v891_v3 = vadd.f32 %v2148_v40, %v890_v63 }
 0x12a   : > { %v1679_v6 = vpack.c.bf16 %v933_v0, %v932_v60  ;;  %v1759_v7 = vpack.c.bf16 %v965_v1, %v964_v61  ;;  %v931_v8 = vmax.f32 %v763_v2, 0.0  ;;  %v963_v9 = vmax.f32 %v891_v3, 0.0 }
 0x12c   : > { %1775 = vst [vmem:[%s2163_s12 + $0x78] sm:$0xff] %v1679_v6   ;;  %1791 = vst [vmem:[%s2163_s12 + $0xf8] sm:$0xff] %v1759_v7   ;;  %v1674_v10 = vpack.c.bf16 %v931_v8, %v930_v4  ;;  %v1754_v11 = vpack.c.bf16 %v963_v9, %v962_v5 }
 0x12e   : > { %1774 = vst [vmem:[%s2163_s12 + $0x70] sm:$0xff] %v1674_v10   ;;  %1790 = vst [vmem:[%s2163_s12 + $0xf0] sm:$0xff] %v1754_v11  }
 0x12f PF: > { %s13_s14 = sadd.s32 1, %s2010_s14   ;;  %s2266_s12 = smov %s2006_s13 }
 0x130   : > { %p10_p5 = scmp.ge.s32.totalorder %s13_s14, 4   ;;  %s2267_s13 = smov %s2269_s15 }
 0x132   :  { %12 = sbr.rel (!%p10_p5) target bundleno = 2 (0x2), region = 68 }

// kernel: forward.14
= control target key start
LH: loop header
LB: loop body
LE: loop exit
PB: predicated region body
PF: predicated region fallthrough
CT: control target
= control target key end

     0   :  { %s2465_s15 = smov 0   ;;  %s2467_s16 = smov 0   ;;  %s2970_s0 = inlined_call_operand.vmem [shape: bf16[1024,108], index: 0, kind: input, shape index: {}]   ;;  %s2971_s1 = inlined_call_operand.vmem [shape: bf16[108,128], index: 1, kind: input, shape index: {}]   ;;  %s2972_s2 = inlined_call_operand.vmem [shape: f32[1,128], index: 2, kind: input, shape index: {}]   ;;  %s2973_s3 = inlined_call_operand.vmem [shape: bf16[1024,128], index: 3, kind: input, shape index: {}]   ;;  %s2974_s4 = inlined_call_operand.vmem [shape: bf16[1024,128], index: 4, kind: output, shape index: {}]  }
   0x1   :  { %s2469_s17 = smov 0  }
   0x2 LB: > { %s26_s18 = sadd.s32 1, %s2434_s16  ;;  %p1661_p0 = scmp.ge.s32.totalorder %s2438_s17, 1  ;;  %s2438_s17 = sphi %s2469_s17, %s14_s17   ;;  %s2434_s16 = sphi %s2467_s16, %s2985_s16   ;;  %s2430_s15 = sphi %s2465_s15, %s2984_s15  }
   0x3   : > { %p28_p1 = scmp.ge.s32.totalorder %s26_s18, 2  ;;  %p210_p2 = scmp.lt.s32.totalorder %s2438_s17, 3 }
   0x5   : > { %s2987_s18 = smov (%p28_p1, %s26_s18), 0  ;;  %p211_p3 = pnand %p1661_p0, %p210_p2 }
   0x6   : > { %s1662_s23 = sshll.u32 (!%p211_p3), %s2430_s15, 6 }
   0x7   : > { %214 = sbr.rel (%p211_p3) target bundleno = 307 (0x133), region = 36  ;;  %p255_p4 = scmp.lt.s32.totalorder (!%p211_p3), %s1662_s23, 127 }
   0xc   : > { %v2377_v0 = vld [vmem:[%s2971_s1 + $0x30] sm:$0x3f]   ;;  %vm669_vm0 = vcmask 1045504   ;;  %v2378_v1 = vld [vmem:[%s2971_s1 + $0x28] sm:$0xff]   ;;  %v2379_v3 = vld [vmem:[%s2971_s1 + $0x20] sm:$0xff]   ;;  %s2989_s23 = smov (!%p255_p4, %s1662_s23), 127 }
   0xd   : > { %2351 = vmatprep.subr.msk.bf16.mxu0 %vm669_vm0, %v2377_v0  ;;  %2352 = vmatprep.subr.msk.bf16.mxu1 %vm669_vm0, %v2377_v0  ;;  %v671_v2 = vsel %vm669_vm0, %v2377_v0, 0  ;;  %v2380_v4 = vld [vmem:[%s2971_s1 + $0x18] sm:$0xff]   ;;  %s2495_s28 = sshll.u32 %s2989_s23, 2  ;;  %vm572_vm1 = vcmask 883712   ;;  %v2381_v7 = vld [vmem:[%s2971_s1 + $0x10] sm:$0xff]   ;;  %v2382_v8 = vld [vmem:[%s2971_s1 + $0x8] sm:$0xff]  }
   0xe   : > { %2260 = vmatpush3.bf16.msra.mxu0 %v671_v2  ;;  %2344 = vmatpush3.bf16.msra.mxu1 %v671_v2  ;;  %s2501_s5 = scalar_lea.vmem %s2970_s0, %s2495_s28  ;;  %v2383_v9 = vld [vmem:[%s2971_s1] sm:$0xff]   ;;  %s2580_s14 = scalar_lea.vmem %s2973_s3, %s2495_s28 }
   0xf   : > { %2261 = vmatprep.subr.bf16.mxu0 %v2378_v1  ;;  %2338 = vmatprep.subr.bf16.mxu1 %v2378_v1  ;;  %v2384_v5 = vld [vmem:[%s2501_s5] sm:$0xff]   ;;  %v2386_v10 = vld [vmem:[%s2501_s5 + $0x8] sm:$0xff]   ;;  %v2388_v12 = vld [vmem:[%s2501_s5 + $0x10] sm:$0xff]   ;;  %s2711_s22 = scalar_lea.vmem %s2974_s4, %s2495_s28 }
  0x10   : > { %v2385_v6 = vld [vmem:[%s2501_s5 + $0x80] sm:$0xff]   ;;  %2273 = vmatprep.mubr.msk.bf16.mxu0 %vm572_vm1, %v2384_v5  ;;  %v2387_v11 = vld [vmem:[%s2501_s5 + $0x88] sm:$0xff]   ;;  %v2389_v13 = vld [vmem:[%s2501_s5 + $0x90] sm:$0xff]  }
  0x11   : > { %2305 = vmatprep.mubr.msk.bf16.mxu1 %vm572_vm1, %v2385_v6  ;;  %v2390_v14 = vld [vmem:[%s2501_s5 + $0x18] sm:$0xff]   ;;  %v2392_v16 = vld [vmem:[%s2501_s5 + $0x20] sm:$0xff]   ;;  %v2394_v18 = vld [vmem:[%s2501_s5 + $0x28] sm:$0xff]  }
  0x12   : > { %2262 = vmatpush3.bf16.msra.mxu0 %v2378_v1  ;;  %2345 = vmatpush3.bf16.msra.mxu1 %v2378_v1  ;;  %v2391_v15 = vld [vmem:[%s2501_s5 + $0x98] sm:$0xff]   ;;  %v2393_v17 = vld [vmem:[%s2501_s5 + $0xa0] sm:$0xff]   ;;  %v2395_v19 = vld [vmem:[%s2501_s5 + $0xa8] sm:$0xff]  }
  0x13   : > { %2263 = vmatprep.subr.bf16.mxu0 %v2379_v3  ;;  %2339 = vmatprep.subr.bf16.mxu1 %v2379_v3  ;;  %v2396_v20 = vld [vmem:[%s2501_s5 + $0x30] sm:$0xff]   ;;  %v2398_v22 = vld [vmem:[%s2501_s5 + $0x38] sm:$0xff]   ;;  %v2400_v24 = vld [vmem:[%s2501_s5 + $0x40] sm:$0xff]  }
  0x14   : > { %v2397_v21 = vld [vmem:[%s2501_s5 + $0xb0] sm:$0xff]   ;;  %v2399_v23 = vld [vmem:[%s2501_s5 + $0xb8] sm:$0xff]   ;;  %v2401_v25 = vld [vmem:[%s2501_s5 + $0xc0] sm:$0xff]  }
  0x15   : > { %v2402_v26 = vld [vmem:[%s2501_s5 + $0x48] sm:$0xff]   ;;  %v2404_v28 = vld [vmem:[%s2501_s5 + $0x50] sm:$0xff]   ;;  %v2406_v30 = vld [vmem:[%s2501_s5 + $0x58] sm:$0xff]  }
  0x16   : > { %2264 = vmatpush3.bf16.msra.mxu0 %v2379_v3  ;;  %2346 = vmatpush3.bf16.msra.mxu1 %v2379_v3  ;;  %v2403_v27 = vld [vmem:[%s2501_s5 + $0xc8] sm:$0xff]   ;;  %v2405_v29 = vld [vmem:[%s2501_s5 + $0xd0] sm:$0xff]   ;;  %v2407_v31 = vld [vmem:[%s2501_s5 + $0xd8] sm:$0xff]  }
  0x17   : > { %2265 = vmatprep.subr.bf16.mxu0 %v2380_v4  ;;  %2340 = vmatprep.subr.bf16.mxu1 %v2380_v4  ;;  %v2408_v32 = vld [vmem:[%s2501_s5 + $0x60] sm:$0xff]   ;;  %v2410_v34 = vld [vmem:[%s2501_s5 + $0x68] sm:$0xff]   ;;  %v2412_v36 = vld [vmem:[%s2501_s5 + $0x70] sm:$0xff]  }
  0x18   : > { %v2409_v33 = vld [vmem:[%s2501_s5 + $0xe0] sm:$0xff]   ;;  %v2411_v35 = vld [vmem:[%s2501_s5 + $0xe8] sm:$0xff]   ;;  %v2413_v37 = vld [vmem:[%s2501_s5 + $0xf0] sm:$0xff]  }
  0x19   : > { %v2414_v38 = vld [vmem:[%s2501_s5 + $0x78] sm:$0xff]   ;;  %v2583_v40 = vld [vmem:[%s2580_s14 + $0x8] sm:$0xff]   ;;  %v2589_v42 = vld [vmem:[%s2580_s14] sm:$0xff]  }
  0x1a   : > { %2266 = vmatpush3.bf16.msra.mxu0 %v2380_v4  ;;  %2347 = vmatpush3.bf16.msra.mxu1 %v2380_v4  ;;  %v2415_v39 = vld [vmem:[%s2501_s5 + $0xf8] sm:$0xff]   ;;  %v2586_v41 = vld [vmem:[%s2580_s14 + $0x88] sm:$0xff]   ;;  %v2592_v43 = vld [vmem:[%s2580_s14 + $0x80] sm:$0xff]   ;;  %v1876_v48 = vunpack.c.l.bf16 %v2583_v40  ;;  %v1872_v50 = vunpack.c.l.bf16 %v2589_v42  ;;  %v1877_v53 = vunpack.c.h.bf16 %v2583_v40  ;;  %v1873_v55 = vunpack.c.h.bf16 %v2589_v42 }
  0x1b   : > { %2267 = vmatprep.subr.bf16.mxu0 %v2381_v7  ;;  %2341 = vmatprep.subr.bf16.mxu1 %v2381_v7  ;;  %v2595_v44 = vld [vmem:[%s2580_s14 + $0x18] sm:$0xff]   ;;  %v2601_v46 = vld [vmem:[%s2580_s14 + $0x10] sm:$0xff]   ;;  %v1940_v49 = vunpack.c.l.bf16 %v2586_v41  ;;  %v1936_v51 = vunpack.c.l.bf16 %v2592_v43  ;;  %v2611_v52 = vld [vmem:[%s2580_s14 + $0x28] sm:$0xff]   ;;  %v1941_v54 = vunpack.c.h.bf16 %v2586_v41  ;;  %v1937_v56 = vunpack.c.h.bf16 %v2592_v43 }
  0x1c   : > { %v2598_v45 = vld [vmem:[%s2580_s14 + $0x98] sm:$0xff]   ;;  %v2604_v47 = vld [vmem:[%s2580_s14 + $0x90] sm:$0xff]   ;;  %v2618_v57 = vld [vmem:[%s2580_s14 + $0xa8] sm:$0xff]   ;;  %v1884_v61 = vunpack.c.l.bf16 %v2595_v44  ;;  %v1880_v63 = vunpack.c.l.bf16 %v2601_v46  ;;  %v1885_v1 = vunpack.c.h.bf16 %v2595_v44  ;;  %v1881_v3 = vunpack.c.h.bf16 %v2601_v46 }
  0x1d   : > { %v2621_v58 = vld [vmem:[%s2580_s14 + $0x20] sm:$0xff]   ;;  %v1948_v62 = vunpack.c.l.bf16 %v2598_v45  ;;  %v1944_v0 = vunpack.c.l.bf16 %v2604_v47  ;;  %v1949_v2 = vunpack.c.h.bf16 %v2598_v45  ;;  %v1945_v4 = vunpack.c.h.bf16 %v2604_v47  ;;  %v2640_v5 = vld [vmem:[%s2580_s14 + $0x38] sm:$0xff]   ;;  %v2755_v47 = vld [vmem:[%s2580_s14 + $0xd0] sm:$0xff]  }
  0x1e   : > { %2268 = vmatpush3.bf16.msra.mxu0 %v2381_v7  ;;  %2348 = vmatpush3.bf16.msra.mxu1 %v2381_v7  ;;  %v2624_v59 = vld [vmem:[%s2580_s14 + $0xa0] sm:$0xff]   ;;  %v2643_v6 = vld [vmem:[%s2580_s14 + $0xb8] sm:$0xff]  }
  0x1f   : > { %2269 = vmatprep.subr.bf16.mxu0 %v2382_v8  ;;  %2342 = vmatprep.subr.bf16.mxu1 %v2382_v8  ;;  %v2629_v60 = vld [vmem:[%s2972_s2] ss:$0 sm:$0xff] }
  0x22   : > { %2270 = vmatpush3.bf16.msra.mxu0 %v2382_v8  ;;  %2349 = vmatpush3.bf16.msra.mxu1 %v2382_v8 }
  0x23   : > { %2271 = vmatprep.subr.bf16.mxu0 %v2383_v9  ;;  %2343 = vmatprep.subr.bf16.mxu1 %v2383_v9 }
  0x26   : > { %2272 = vmatpush3.bf16.msra.mxu0 %v2383_v9  ;;  %2350 = vmatpush3.bf16.msra.mxu1 %v2383_v9  ;;  %v1892_v9 = vunpack.c.l.bf16 %v2611_v52 }
  0x29   : > { %2274 = vmatmul.mubr.msk.bf16.vlgmr.msra.gmra.mxu0 %vm572_vm1, %v2386_v10  ;;  %2306 = vmatmul.mubr.msk.bf16.vlgmr.msra.gmra.mxu1 %vm572_vm1, %v2387_v11  ;;  %v1956_v10 = vunpack.c.l.bf16 %v2618_v57  ;;  %v1888_v11 = vunpack.c.l.bf16 %v2621_v58 }
  0x2a   : > { %2277 = vmatprep.mubr.msk.bf16.mxu0 %vm572_vm1, %v2388_v12  ;;  %2309 = vmatprep.mubr.msk.bf16.mxu1 %vm572_vm1, %v2389_v13  ;;  %v1952_v12 = vunpack.c.l.bf16 %v2624_v59  ;;  %v2650_v13 = vld [vmem:[%s2580_s14 + $0x30] sm:$0xff]  }
  0x31   : > { %2278 = vmatmul.mubr.msk.bf16.gmra.mxu0 %vm572_vm1, %v2390_v14  ;;  %2310 = vmatmul.mubr.msk.bf16.gmra.mxu1 %vm572_vm1, %v2391_v15  ;;  %v2653_v14 = vld [vmem:[%s2580_s14 + $0xb0] sm:$0xff]  }
  0x32   : > { %2281 = vmatprep.mubr.msk.bf16.mxu0 %vm572_vm1, %v2392_v16  ;;  %2313 = vmatprep.mubr.msk.bf16.mxu1 %vm572_vm1, %v2393_v17  ;;  %v1893_v17 = vunpack.c.h.bf16 %v2611_v52 }
  0x39   : > { %2282 = vmatmul.mubr.msk.bf16.gmra.mxu0 %vm572_vm1, %v2394_v18  ;;  %2314 = vmatmul.mubr.msk.bf16.gmra.mxu1 %vm572_vm1, %v2395_v19  ;;  %v1957_v18 = vunpack.c.h.bf16 %v2618_v57 }
  0x3a   : > { %2285 = vmatprep.mubr.msk.bf16.mxu0 %vm572_vm1, %v2396_v20  ;;  %2317 = vmatprep.mubr.msk.bf16.mxu1 %vm572_vm1, %v2397_v21  ;;  %v1889_v21 = vunpack.c.h.bf16 %v2621_v58 }
  0x41   : > { %2286 = vmatmul.mubr.msk.bf16.gmra.mxu0 %vm572_vm1, %v2398_v22  ;;  %2318 = vmatmul.mubr.msk.bf16.gmra.mxu1 %vm572_vm1, %v2399_v23  ;;  %v1953_v22 = vunpack.c.h.bf16 %v2624_v59  ;;  %v1900_v23 = vunpack.c.l.bf16 %v2640_v5 }
  0x42   : > { %2289 = vmatprep.mubr.msk.bf16.mxu0 %vm572_vm1, %v2400_v24  ;;  %2321 = vmatprep.mubr.msk.bf16.mxu1 %vm572_vm1, %v2401_v25  ;;  %v2664_v25 = vld [vmem:[%s2580_s14 + $0x48] sm:$0xff]  }
  0x49   : > { %2290 = vmatmul.mubr.msk.bf16.gmra.mxu0 %vm572_vm1, %v2402_v26  ;;  %2322 = vmatmul.mubr.msk.bf16.gmra.mxu1 %vm572_vm1, %v2403_v27  ;;  %v2667_v26 = vld [vmem:[%s2580_s14 + $0xc8] sm:$0xff]  }
  0x4a   : > { %2293 = vmatprep.mubr.msk.bf16.mxu0 %vm572_vm1, %v2404_v28  ;;  %2325 = vmatprep.mubr.msk.bf16.mxu1 %vm572_vm1, %v2405_v29 }
  0x51   : > { %2294 = vmatmul.mubr.msk.bf16.gmra.mxu0 %vm572_vm1, %v2406_v30  ;;  %2326 = vmatmul.mubr.msk.bf16.gmra.mxu1 %vm572_vm1, %v2407_v31  ;;  %v2674_v31 = vld [vmem:[%s2580_s14 + $0x40] sm:$0xff]  }
  0x52   : > { %2297 = vmatprep.mubr.msk.bf16.mxu0 %vm572_vm1, %v2408_v32  ;;  %2329 = vmatprep.mubr.msk.bf16.mxu1 %vm572_vm1, %v2409_v33  ;;  %v2677_v32 = vld [vmem:[%s2580_s14 + $0xc0] sm:$0xff]  }
  0x59   : > { %2298 = vmatmul.mubr.msk.bf16.gmra.mxu0 %vm572_vm1, %v2410_v34  ;;  %2330 = vmatmul.mubr.msk.bf16.gmra.mxu1 %vm572_vm1, %v2411_v35 }
  0x5a   : > { %2301 = vmatprep.mubr.msk.bf16.mxu0 %vm572_vm1, %v2412_v36  ;;  %2333 = vmatprep.mubr.msk.bf16.mxu1 %vm572_vm1, %v2413_v37  ;;  %v1909_v36 = vunpack.c.h.bf16 %v2664_v25 }
  0x61   : > { %2302 = vmatmul.mubr.msk.bf16.gmra.mxu0 %vm572_vm1, %v2414_v38  ;;  %2334 = vmatmul.mubr.msk.bf16.gmra.mxu1 %vm572_vm1, %v2415_v39  ;;  %v1961_v38 = vunpack.c.h.bf16 %v2653_v14 }
  0xe9   : > { %v2275_v7 = vpop.f32.mrf.mxu0  ;;  %v2307_v8 = vpop.f32.mrf.mxu1 }
  0xea   : > { %v716_v15 = vadd.f32 %v2275_v7, %v2629_v60  ;;  %v844_v16 = vadd.f32 %v2307_v8, %v2629_v60  ;;  %v1908_v8 = vunpack.c.l.bf16 %v2664_v25 }
  0xeb   : > { %v707_v19 = vpop.f32.mrf.mxu0  ;;  %v835_v20 = vpop.f32.mrf.mxu1 }
  0xec   : > { %v708_v27 = vadd.f32 %v2629_v60, %v707_v19  ;;  %v836_v28 = vadd.f32 %v2629_v60, %v835_v20  ;;  %v1092_v39 = vadd.f32 %v1876_v48, %v716_v15  ;;  %v1124_v7 = vadd.f32 %v1940_v49, %v844_v16 }
  0xed   : > { %v2276_v33 = vpop.f32.mrf.mxu0  ;;  %v2308_v34 = vpop.f32.mrf.mxu1 }
  0xee   : > { %v719_v20 = vadd.f32 %v2276_v33, %v2629_v60  ;;  %v847_v30 = vadd.f32 %v2308_v34, %v2629_v60  ;;  %v1090_v37 = vadd.f32 %v1872_v50, %v708_v27  ;;  %v1122_v48 = vadd.f32 %v1936_v51, %v836_v28 }
  0xef   : > { %v710_v29 = vpop.f32.mrf.mxu0  ;;  %v838_v24 = vpop.f32.mrf.mxu1  ;;  %v1973_v50 = vunpack.c.h.bf16 %v2667_v26  ;;  %v1156_v27 = vmax.f32 %v1092_v39, 0.0  ;;  %v1188_v19 = vmax.f32 %v1124_v7, 0.0 }
  0xf0   : > { %v711_v49 = vadd.f32 %v2629_v60, %v710_v29  ;;  %v839_v15 = vadd.f32 %v2629_v60, %v838_v24  ;;  %v1093_v16 = vadd.f32 %v1877_v53, %v719_v20  ;;  %v1125_v33 = vadd.f32 %v1941_v54, %v847_v30 }
  0xf1   : > { %v2279_v34 = vpop.f32.mrf.mxu0  ;;  %v2311_v35 = vpop.f32.mrf.mxu1  ;;  %v1154_v30 = vmax.f32 %v1090_v37, 0.0  ;;  %v1186_v20 = vmax.f32 %v1122_v48, 0.0 }
  0xf2   : > { %v1091_v51 = vadd.f32 %v1873_v55, %v711_v49  ;;  %v1123_v24 = vadd.f32 %v1937_v56, %v839_v15  ;;  %v1157_v40 = vmax.f32 %v1093_v16, 0.0  ;;  %v1189_v53 = vmax.f32 %v1125_v33, 0.0  ;;  %v2718_v33 = vld [vmem:[%s2580_s14 + $0x58] sm:$0xff]  }
  0xf3   : > { %v732_v41 = vadd.f32 %v2279_v34, %v2629_v60  ;;  %v860_v54 = vadd.f32 %v2311_v35, %v2629_v60  ;;  %v723_v28 = vpop.f32.mrf.mxu0  ;;  %v851_v29 = vpop.f32.mrf.mxu1  ;;  %v1905_v15 = vunpack.c.h.bf16 %v2674_v31  ;;  %v1969_v16 = vunpack.c.h.bf16 %v2677_v32  ;;  %v2721_v34 = vld [vmem:[%s2580_s14 + $0xd8] sm:$0xff]  }
  0xf4   : > { %v1155_v42 = vmax.f32 %v1091_v51, 0.0  ;;  %v1187_v43 = vmax.f32 %v1123_v24, 0.0  ;;  %v2006_v55 = vpack.c.bf16 %v1157_v40, %v1156_v27  ;;  %v2086_v56 = vpack.c.bf16 %v1189_v53, %v1188_v19 }
  0xf5   : > { %v724_v39 = vadd.f32 %v2629_v60, %v723_v28  ;;  %v852_v35 = vadd.f32 %v2629_v60, %v851_v29  ;;  %v2280_v7 = vpop.f32.mrf.mxu0  ;;  %v2312_v37 = vpop.f32.mrf.mxu1  ;;  %v1096_v19 = vadd.f32 %v1884_v61, %v732_v41  ;;  %v1128_v27 = vadd.f32 %v1948_v62, %v860_v54 }
  0xf6   : > { %v2001_v48 = vpack.c.bf16 %v1155_v42, %v1154_v30  ;;  %v2081_v49 = vpack.c.bf16 %v1187_v43, %v1186_v20  ;;  %2189 = vst [vmem:[%s2711_s22 + $0x8] sm:$0xff] %v2006_v55   ;;  %2205 = vst [vmem:[%s2711_s22 + $0x88] sm:$0xff] %v2086_v56   ;;  %v735_v51 = vadd.f32 %v2280_v7, %v2629_v60  ;;  %v1916_v42 = vunpack.c.l.bf16 %v2718_v33 }
  0xf7   : > { %v863_v24 = vadd.f32 %v2312_v37, %v2629_v60  ;;  %v726_v40 = vpop.f32.mrf.mxu0  ;;  %v854_v53 = vpop.f32.mrf.mxu1  ;;  %v1094_v28 = vadd.f32 %v1880_v63, %v724_v39  ;;  %v1126_v29 = vadd.f32 %v1944_v0, %v852_v35  ;;  %v1980_v63 = vunpack.c.l.bf16 %v2721_v34 }
  0xf8   : > { %2002 = vst [vmem:[%s2711_s22] sm:$0xff] %v2001_v48   ;;  %2204 = vst [vmem:[%s2711_s22 + $0x80] sm:$0xff] %v2081_v49   ;;  %v727_v30 = vadd.f32 %v2629_v60, %v726_v40  ;;  %v855_v61 = vadd.f32 %v2629_v60, %v854_v53  ;;  %v1097_v62 = vadd.f32 %v1885_v1, %v735_v51  ;;  %v1160_v45 = vmax.f32 %v1096_v19, 0.0 }
  0xf9   : > { %v1129_v41 = vadd.f32 %v1949_v2, %v863_v24  ;;  %v2283_v54 = vpop.f32.mrf.mxu0  ;;  %v2315_v20 = vpop.f32.mrf.mxu1  ;;  %v1192_v2 = vmax.f32 %v1128_v27, 0.0  ;;  %v1158_v7 = vmax.f32 %v1094_v28, 0.0  ;;  %v1190_v37 = vmax.f32 %v1126_v29, 0.0 }
  0xfa   : > { %v1095_v0 = vadd.f32 %v1881_v3, %v727_v30  ;;  %v1127_v43 = vadd.f32 %v1945_v4, %v855_v61  ;;  %v748_v44 = vadd.f32 %v2283_v54, %v2629_v60  ;;  %v876_v1 = vadd.f32 %v2315_v20, %v2629_v60  ;;  %v2752_v3 = vld [vmem:[%s2580_s14 + $0x50] sm:$0xff]  }
  0xfb   : > { %v1161_v55 = vmax.f32 %v1097_v62, 0.0  ;;  %v1193_v56 = vmax.f32 %v1129_v41, 0.0  ;;  %v739_v39 = vpop.f32.mrf.mxu0  ;;  %v867_v35 = vpop.f32.mrf.mxu1  ;;  %v1912_v54 = vunpack.c.l.bf16 %v2752_v3  ;;  %v1976_v20 = vunpack.c.l.bf16 %v2755_v47 }
  0xfc   : > { %v1159_v46 = vmax.f32 %v1095_v0, 0.0  ;;  %v1191_v48 = vmax.f32 %v1127_v43, 0.0  ;;  %v740_v51 = vadd.f32 %v2629_v60, %v739_v39  ;;  %v868_v19 = vadd.f32 %v2629_v60, %v867_v35 }
  0xfd   : > { %v2016_v4 = vpack.c.bf16 %v1161_v55, %v1160_v45  ;;  %v2096_v49 = vpack.c.bf16 %v1193_v56, %v1192_v2  ;;  %v2284_v27 = vpop.f32.mrf.mxu0  ;;  %v2316_v24 = vpop.f32.mrf.mxu1  ;;  %v1100_v28 = vadd.f32 %v1892_v9, %v748_v44  ;;  %v1132_v29 = vadd.f32 %v1956_v10, %v876_v1 }
  0xfe   : > { %v2011_v40 = vpack.c.bf16 %v1159_v46, %v1158_v7  ;;  %v2091_v53 = vpack.c.bf16 %v1191_v48, %v1190_v37  ;;  %v751_v30 = vadd.f32 %v2284_v27, %v2629_v60  ;;  %v879_v61 = vadd.f32 %v2316_v24, %v2629_v60 }
  0xff   : > { %2191 = vst [vmem:[%s2711_s22 + $0x18] sm:$0xff] %v2016_v4   ;;  %2207 = vst [vmem:[%s2711_s22 + $0x98] sm:$0xff] %v2096_v49   ;;  %v742_v62 = vpop.f32.mrf.mxu0  ;;  %v870_v41 = vpop.f32.mrf.mxu1  ;;  %v1098_v9 = vadd.f32 %v1888_v11, %v740_v51  ;;  %v1130_v10 = vadd.f32 %v1952_v12, %v868_v19  ;;  %v1917_v55 = vunpack.c.h.bf16 %v2718_v33  ;;  %v1981_v56 = vunpack.c.h.bf16 %v2721_v34 }
 0x100   : > { %2190 = vst [vmem:[%s2711_s22 + $0x10] sm:$0xff] %v2011_v40   ;;  %2206 = vst [vmem:[%s2711_s22 + $0x90] sm:$0xff] %v2091_v53   ;;  %v743_v0 = vadd.f32 %v2629_v60, %v742_v62  ;;  %v871_v43 = vadd.f32 %v2629_v60, %v870_v41  ;;  %v1101_v44 = vadd.f32 %v1893_v17, %v751_v30  ;;  %v1164_v11 = vmax.f32 %v1100_v28, 0.0  ;;  %v2794_v28 = vld [vmem:[%s2580_s14 + $0x68] sm:$0xff]  }
 0x101   : > { %v1133_v1 = vadd.f32 %v1957_v18, %v879_v61  ;;  %v2287_v45 = vpop.f32.mrf.mxu0  ;;  %v2319_v2 = vpop.f32.mrf.mxu1  ;;  %v1196_v39 = vmax.f32 %v1132_v29, 0.0  ;;  %v1162_v46 = vmax.f32 %v1098_v9, 0.0  ;;  %v1194_v48 = vmax.f32 %v1130_v10, 0.0  ;;  %v2797_v29 = vld [vmem:[%s2580_s14 + $0xe8] sm:$0xff]  }
 0x102   : > { %v1099_v12 = vadd.f32 %v1889_v21, %v743_v0  ;;  %v1131_v35 = vadd.f32 %v1953_v22, %v871_v43  ;;  %v1165_v7 = vmax.f32 %v1101_v44, 0.0  ;;  %v764_v17 = vadd.f32 %v2287_v45, %v2629_v60 }
 0x103   : > { %v1197_v52 = vmax.f32 %v1133_v1, 0.0  ;;  %v892_v57 = vadd.f32 %v2319_v2, %v2629_v60  ;;  %v755_v18 = vpop.f32.mrf.mxu0  ;;  %v883_v37 = vpop.f32.mrf.mxu1  ;;  %v1913_v40 = vunpack.c.h.bf16 %v2752_v3  ;;  %v1977_v53 = vunpack.c.h.bf16 %v2755_v47  ;;  %v2907_v47 = vld [vmem:[%s2580_s14 + $0xf0] sm:$0xff]  }
 0x104   : > { %v1163_v4 = vmax.f32 %v1099_v12, 0.0  ;;  %v1195_v58 = vmax.f32 %v1131_v35, 0.0  ;;  %v2026_v21 = vpack.c.bf16 %v1165_v7, %v1164_v11  ;;  %v756_v59 = vadd.f32 %v2629_v60, %v755_v18 }
 0x105   : > { %v2106_v49 = vpack.c.bf16 %v1197_v52, %v1196_v39  ;;  %v884_v22 = vadd.f32 %v2629_v60, %v883_v37  ;;  %v2288_v51 = vpop.f32.mrf.mxu0  ;;  %v2320_v19 = vpop.f32.mrf.mxu1  ;;  %v1104_v30 = vadd.f32 %v1900_v23, %v764_v17  ;;  %v2975_v61 = vunpack.c.l.bf16 %v2643_v6 }
 0x106   : > { %v2021_v27 = vpack.c.bf16 %v1163_v4, %v1162_v46  ;;  %v2101_v24 = vpack.c.bf16 %v1195_v58, %v1194_v48  ;;  %2193 = vst [vmem:[%s2711_s22 + $0x28] sm:$0xff] %v2026_v21   ;;  %v767_v41 = vadd.f32 %v2288_v51, %v2629_v60  ;;  %v895_v9 = vadd.f32 %v2320_v19, %v2629_v60 }
 0x107   : > { %2209 = vst [vmem:[%s2711_s22 + $0xa8] sm:$0xff] %v2106_v49   ;;  %v1136_v62 = vadd.f32 %v2975_v61, %v892_v57  ;;  %v758_v10 = vpop.f32.mrf.mxu0  ;;  %v886_v0 = vpop.f32.mrf.mxu1  ;;  %v2976_v43 = vunpack.c.l.bf16 %v2650_v13  ;;  %v2977_v1 = vunpack.c.l.bf16 %v2653_v14  ;;  %v2978_v11 = vunpack.c.h.bf16 %v2640_v5  ;;  %v2831_v14 = vld [vmem:[%s2580_s14 + $0xe0] sm:$0xff]  }
 0x108   : > { %2192 = vst [vmem:[%s2711_s22 + $0x20] sm:$0xff] %v2021_v27   ;;  %2208 = vst [vmem:[%s2711_s22 + $0xa0] sm:$0xff] %v2101_v24   ;;  %v759_v2 = vadd.f32 %v2629_v60, %v758_v10  ;;  %v887_v23 = vadd.f32 %v2629_v60, %v886_v0  ;;  %v2979_v12 = vunpack.c.h.bf16 %v2643_v6  ;;  %v1924_v17 = vunpack.c.l.bf16 %v2794_v28  ;;  %v2828_v27 = vld [vmem:[%s2580_s14 + $0x60] sm:$0xff]  }
 0x109   : > { %v1102_v44 = vadd.f32 %v2976_v43, %v756_v59  ;;  %v1134_v45 = vadd.f32 %v2977_v1, %v884_v22  ;;  %v1105_v39 = vadd.f32 %v2978_v11, %v767_v41  ;;  %v2291_v7 = vpop.f32.mrf.mxu0  ;;  %v2323_v52 = vpop.f32.mrf.mxu1  ;;  %v1988_v57 = vunpack.c.l.bf16 %v2797_v29 }
 0x10a   : > { %v1137_v35 = vadd.f32 %v2979_v12, %v895_v9  ;;  %v2980_v18 = vunpack.c.h.bf16 %v2650_v13  ;;  %v1135_v46 = vadd.f32 %v1961_v38, %v887_v23  ;;  %v780_v5 = vadd.f32 %v2291_v7, %v2629_v60 }
 0x10b   : > { %v908_v48 = vadd.f32 %v2323_v52, %v2629_v60  ;;  %v1168_v6 = vmax.f32 %v1104_v30, 0.0  ;;  %v1200_v4 = vmax.f32 %v1136_v62, 0.0  ;;  %v1169_v58 = vmax.f32 %v1105_v39, 0.0  ;;  %v771_v49 = vpop.f32.mrf.mxu0  ;;  %v899_v59 = vpop.f32.mrf.mxu1 }
 0x10c   : > { %v1103_v37 = vadd.f32 %v2980_v18, %v759_v2  ;;  %v1201_v21 = vmax.f32 %v1137_v35, 0.0  ;;  %v1166_v22 = vmax.f32 %v1102_v44, 0.0  ;;  %v1198_v51 = vmax.f32 %v1134_v45, 0.0 }
 0x10d   : > { %v1199_v19 = vmax.f32 %v1135_v46, 0.0  ;;  %v2036_v38 = vpack.c.bf16 %v1169_v58, %v1168_v6  ;;  %v772_v61 = vadd.f32 %v2629_v60, %v771_v49  ;;  %v900_v30 = vadd.f32 %v2629_v60, %v899_v59  ;;  %v2292_v62 = vpop.f32.mrf.mxu0  ;;  %v2324_v41 = vpop.f32.mrf.mxu1 }
 0x10e   : > { %v1167_v13 = vmax.f32 %v1103_v37, 0.0  ;;  %v2116_v24 = vpack.c.bf16 %v1201_v21, %v1200_v4  ;;  %v1108_v0 = vadd.f32 %v1908_v8, %v780_v5  ;;  %v2981_v43 = vunpack.c.l.bf16 %v2667_v26 }
 0x10f   : > { %v2111_v10 = vpack.c.bf16 %v1199_v19, %v1198_v51  ;;  %2195 = vst [vmem:[%s2711_s22 + $0x38] sm:$0xff] %v2036_v38   ;;  %v783_v1 = vadd.f32 %v2292_v62, %v2629_v60  ;;  %v911_v45 = vadd.f32 %v2324_v41, %v2629_v60  ;;  %v774_v2 = vpop.f32.mrf.mxu0  ;;  %v902_v23 = vpop.f32.mrf.mxu1  ;;  %v1920_v11 = vunpack.c.l.bf16 %v2828_v27 }
 0x110   : > { %v2031_v9 = vpack.c.bf16 %v1167_v13, %v1166_v22  ;;  %v1140_v44 = vadd.f32 %v2981_v43, %v908_v48  ;;  %2211 = vst [vmem:[%s2711_s22 + $0xb8] sm:$0xff] %v2116_v24   ;;  %v1984_v39 = vunpack.c.l.bf16 %v2831_v14  ;;  %v2982_v12 = vunpack.c.l.bf16 %v2674_v31  ;;  %v2873_v43 = vld [vmem:[%s2580_s14 + $0xf8] sm:$0xff]  }
 0x111   : > { %2210 = vst [vmem:[%s2711_s22 + $0xb0] sm:$0xff] %v2111_v10   ;;  %v2983_v35 = vunpack.c.l.bf16 %v2677_v32  ;;  %v775_v52 = vadd.f32 %v2629_v60, %v774_v2  ;;  %v903_v18 = vadd.f32 %v2629_v60, %v902_v23  ;;  %v1109_v37 = vadd.f32 %v1909_v36, %v783_v1  ;;  %v2295_v5 = vpop.f32.mrf.mxu0  ;;  %v2327_v48 = vpop.f32.mrf.mxu1 }
 0x112   : > { %2194 = vst [vmem:[%s2711_s22 + $0x30] sm:$0xff] %v2031_v9   ;;  %v1106_v8 = vadd.f32 %v2982_v12, %v772_v61  ;;  %v1141_v46 = vadd.f32 %v1973_v50, %v911_v45  ;;  %v1925_v6 = vunpack.c.h.bf16 %v2794_v28  ;;  %v1989_v4 = vunpack.c.h.bf16 %v2797_v29 }
 0x113   : > { %v1138_v7 = vadd.f32 %v2983_v35, %v900_v30  ;;  %v1172_v58 = vmax.f32 %v1108_v0, 0.0  ;;  %v1204_v21 = vmax.f32 %v1140_v44, 0.0  ;;  %v1107_v49 = vadd.f32 %v1905_v15, %v775_v52  ;;  %v787_v50 = vpop.f32.mrf.mxu0  ;;  %v915_v51 = vpop.f32.mrf.mxu1  ;;  %v2870_v0 = vld [vmem:[%s2580_s14 + $0x78] sm:$0xff]  }
 0x114   : > { %v1139_v59 = vadd.f32 %v1969_v16, %v903_v18  ;;  %v1173_v22 = vmax.f32 %v1109_v37, 0.0  ;;  %v1205_v25 = vmax.f32 %v1141_v46, 0.0  ;;  %v796_v36 = vadd.f32 %v2295_v5, %v2629_v60 }
 0x115   : > { %v924_v26 = vadd.f32 %v2327_v48, %v2629_v60  ;;  %v1170_v13 = vmax.f32 %v1106_v8, 0.0  ;;  %v1202_v19 = vmax.f32 %v1138_v7, 0.0  ;;  %v1171_v38 = vmax.f32 %v1107_v49, 0.0  ;;  %v2296_v61 = vpop.f32.mrf.mxu0  ;;  %v2328_v30 = vpop.f32.mrf.mxu1 }
 0x116   : > { %v1203_v31 = vmax.f32 %v1139_v59, 0.0  ;;  %v2046_v15 = vpack.c.bf16 %v1173_v22, %v1172_v58  ;;  %v2126_v24 = vpack.c.bf16 %v1205_v25, %v1204_v21  ;;  %v788_v32 = vadd.f32 %v2629_v60, %v787_v50 }
 0x117   : > { %v916_v16 = vadd.f32 %v2629_v60, %v915_v51  ;;  %v2041_v62 = vpack.c.bf16 %v1171_v38, %v1170_v13  ;;  %v1921_v9 = vunpack.c.h.bf16 %v2828_v27  ;;  %v1985_v10 = vunpack.c.h.bf16 %v2831_v14  ;;  %v790_v23 = vpop.f32.mrf.mxu0  ;;  %v918_v12 = vpop.f32.mrf.mxu1 }
 0x118   : > { %v2121_v41 = vpack.c.bf16 %v1203_v31, %v1202_v19  ;;  %2197 = vst [vmem:[%s2711_s22 + $0x48] sm:$0xff] %v2046_v15   ;;  %2213 = vst [vmem:[%s2711_s22 + $0xc8] sm:$0xff] %v2126_v24   ;;  %v1112_v44 = vadd.f32 %v1916_v42, %v796_v36  ;;  %v1144_v1 = vadd.f32 %v1980_v63, %v924_v26  ;;  %v1932_v46 = vunpack.c.l.bf16 %v2870_v0 }
 0x119   : > { %v799_v45 = vadd.f32 %v2296_v61, %v2629_v60  ;;  %v927_v2 = vadd.f32 %v2328_v30, %v2629_v60  ;;  %2196 = vst [vmem:[%s2711_s22 + $0x40] sm:$0xff] %v2041_v62   ;;  %v1110_v8 = vadd.f32 %v1912_v54, %v788_v32  ;;  %v1142_v35 = vadd.f32 %v1976_v20, %v916_v16  ;;  %v2299_v18 = vpop.f32.mrf.mxu0  ;;  %v2331_v37 = vpop.f32.mrf.mxu1 }
 0x11a   : > { %2212 = vst [vmem:[%s2711_s22 + $0xc0] sm:$0xff] %v2121_v41   ;;  %v791_v7 = vadd.f32 %v2629_v60, %v790_v23  ;;  %v919_v42 = vadd.f32 %v2629_v60, %v918_v12  ;;  %v1996_v54 = vunpack.c.l.bf16 %v2873_v43  ;;  %v812_v33 = vadd.f32 %v2299_v18, %v2629_v60 }
 0x11b   : > { %v1113_v63 = vadd.f32 %v1917_v55, %v799_v45  ;;  %v1145_v52 = vadd.f32 %v1981_v56, %v927_v2  ;;  %v940_v55 = vadd.f32 %v2331_v37, %v2629_v60  ;;  %v1176_v34 = vmax.f32 %v1112_v44, 0.0  ;;  %v803_v21 = vpop.f32.mrf.mxu0  ;;  %v931_v49 = vpop.f32.mrf.mxu1 }
 0x11c   : > { %v1111_v20 = vadd.f32 %v1913_v40, %v791_v7  ;;  %v1143_v5 = vadd.f32 %v1977_v53, %v919_v42  ;;  %v1208_v56 = vmax.f32 %v1144_v1, 0.0  ;;  %v1174_v59 = vmax.f32 %v1110_v8, 0.0  ;;  %v2904_v40 = vld [vmem:[%s2580_s14 + $0x70] sm:$0xff]  }
 0x11d   : > { %v1177_v48 = vmax.f32 %v1113_v63, 0.0  ;;  %v1209_v58 = vmax.f32 %v1145_v52, 0.0  ;;  %v1206_v22 = vmax.f32 %v1142_v35, 0.0  ;;  %v804_v26 = vadd.f32 %v2629_v60, %v803_v21  ;;  %v2300_v51 = vpop.f32.mrf.mxu0  ;;  %v2332_v13 = vpop.f32.mrf.mxu1 }
 0x11e   : > { %v1175_v3 = vmax.f32 %v1111_v20, 0.0  ;;  %v1207_v25 = vmax.f32 %v1143_v5, 0.0  ;;  %v932_v50 = vadd.f32 %v2629_v60, %v931_v49  ;;  %v1116_v31 = vadd.f32 %v1924_v17, %v812_v33 }
 0x11f   : > { %v2056_v53 = vpack.c.bf16 %v1177_v48, %v1176_v34  ;;  %v2136_v36 = vpack.c.bf16 %v1209_v58, %v1208_v56  ;;  %v1148_v15 = vadd.f32 %v1988_v57, %v940_v55  ;;  %v815_v24 = vadd.f32 %v2300_v51, %v2629_v60  ;;  %v806_v16 = vpop.f32.mrf.mxu0  ;;  %v934_v61 = vpop.f32.mrf.mxu1 }
 0x120   : > { %v2051_v19 = vpack.c.bf16 %v1175_v3, %v1174_v59  ;;  %v2131_v38 = vpack.c.bf16 %v1207_v25, %v1206_v22  ;;  %v943_v32 = vadd.f32 %v2332_v13, %v2629_v60  ;;  %v1928_v30 = vunpack.c.l.bf16 %v2904_v40 }
 0x121   : > { %2199 = vst [vmem:[%s2711_s22 + $0x58] sm:$0xff] %v2056_v53   ;;  %2215 = vst [vmem:[%s2711_s22 + $0xd8] sm:$0xff] %v2136_v36   ;;  %v1992_v62 = vunpack.c.l.bf16 %v2907_v47  ;;  %v1114_v17 = vadd.f32 %v1920_v11, %v804_v26  ;;  %v1146_v57 = vadd.f32 %v1984_v39, %v932_v50  ;;  %v807_v41 = vadd.f32 %v2629_v60, %v806_v16  ;;  %v2303_v2 = vpop.f32.mrf.mxu0  ;;  %v2335_v23 = vpop.f32.mrf.mxu1 }
 0x122   : > { %2198 = vst [vmem:[%s2711_s22 + $0x50] sm:$0xff] %v2051_v19   ;;  %2214 = vst [vmem:[%s2711_s22 + $0xd0] sm:$0xff] %v2131_v38   ;;  %v935_v44 = vadd.f32 %v2629_v60, %v934_v61  ;;  %v1117_v1 = vadd.f32 %v1925_v6, %v815_v24  ;;  %v1149_v45 = vadd.f32 %v1989_v4, %v943_v32  ;;  %v1933_v12 = vunpack.c.h.bf16 %v2870_v0 }
 0x123   : > { %v1997_v8 = vunpack.c.h.bf16 %v2873_v43  ;;  %v1180_v11 = vmax.f32 %v1116_v31, 0.0  ;;  %v1212_v35 = vmax.f32 %v1148_v15, 0.0  ;;  %v1115_v39 = vadd.f32 %v1921_v9, %v807_v41  ;;  %v819_v4 = vpop.f32.mrf.mxu0  ;;  %v947_v63 = vpop.f32.mrf.mxu1 }
 0x124   : > { %v1147_v7 = vadd.f32 %v1985_v10, %v935_v44  ;;  %v1181_v42 = vmax.f32 %v1117_v1, 0.0  ;;  %v1213_v28 = vmax.f32 %v1149_v45, 0.0  ;;  %v828_v6 = vadd.f32 %v2303_v2, %v2629_v60 }
 0x125   : > { %v956_v29 = vadd.f32 %v2335_v23, %v2629_v60  ;;  %v1178_v52 = vmax.f32 %v1114_v17, 0.0  ;;  %v1210_v18 = vmax.f32 %v1146_v57, 0.0  ;;  %v1179_v37 = vmax.f32 %v1115_v39, 0.0  ;;  %v2304_v10 = vpop.f32.mrf.mxu0  ;;  %v2336_v33 = vpop.f32.mrf.mxu1 }
 0x126   : > { %v1211_v20 = vmax.f32 %v1147_v7, 0.0  ;;  %v2066_v5 = vpack.c.bf16 %v1181_v42, %v1180_v11  ;;  %v2146_v27 = vpack.c.bf16 %v1213_v28, %v1212_v35  ;;  %v820_v9 = vadd.f32 %v2629_v60, %v819_v4 }
 0x127   : > { %v948_v14 = vadd.f32 %v2629_v60, %v947_v63  ;;  %v2061_v55 = vpack.c.bf16 %v1179_v37, %v1178_v52  ;;  %v1929_v56 = vunpack.c.h.bf16 %v2904_v40  ;;  %v1993_v48 = vunpack.c.h.bf16 %v2907_v47  ;;  %v822_v22 = vpop.f32.mrf.mxu0  ;;  %v950_v3 = vpop.f32.mrf.mxu1 }
 0x128   : > { %v2141_v34 = vpack.c.bf16 %v1211_v20, %v1210_v18  ;;  %2201 = vst [vmem:[%s2711_s22 + $0x68] sm:$0xff] %v2066_v5   ;;  %2217 = vst [vmem:[%s2711_s22 + $0xe8] sm:$0xff] %v2146_v27   ;;  %v1120_v58 = vadd.f32 %v1932_v46, %v828_v6  ;;  %v1152_v21 = vadd.f32 %v1996_v54, %v956_v29 }
 0x129   : > { %v831_v49 = vadd.f32 %v2304_v10, %v2629_v60  ;;  %v959_v59 = vadd.f32 %v2336_v33, %v2629_v60  ;;  %2200 = vst [vmem:[%s2711_s22 + $0x60] sm:$0xff] %v2061_v55   ;;  %v1118_v25 = vadd.f32 %v1928_v30, %v820_v9  ;;  %v1150_v40 = vadd.f32 %v1992_v62, %v948_v14 }
 0x12a   : > { %2216 = vst [vmem:[%s2711_s22 + $0xe0] sm:$0xff] %v2141_v34   ;;  %v823_v47 = vadd.f32 %v2629_v60, %v822_v22  ;;  %v951_v53 = vadd.f32 %v2629_v60, %v950_v3  ;;  %v1184_v54 = vmax.f32 %v1120_v58, 0.0  ;;  %v1216_v26 = vmax.f32 %v1152_v21, 0.0 }
 0x12b   : > { %v1121_v36 = vadd.f32 %v1933_v12, %v831_v49  ;;  %v1153_v0 = vadd.f32 %v1997_v8, %v959_v59  ;;  %v1182_v13 = vmax.f32 %v1118_v25, 0.0  ;;  %v1214_v19 = vmax.f32 %v1150_v40, 0.0 }
 0x12c   : > { %v1119_v43 = vadd.f32 %v1929_v56, %v823_v47  ;;  %v1151_v46 = vadd.f32 %v1993_v48, %v951_v53 }
 0x12d   : > { %v1185_v50 = vmax.f32 %v1121_v36, 0.0  ;;  %v1217_v51 = vmax.f32 %v1153_v0, 0.0 }
 0x12e   : > { %v1183_v38 = vmax.f32 %v1119_v43, 0.0  ;;  %v1215_v31 = vmax.f32 %v1151_v46, 0.0 }
 0x12f   : > { %v2076_v15 = vpack.c.bf16 %v1185_v50, %v1184_v54  ;;  %v2156_v24 = vpack.c.bf16 %v1217_v51, %v1216_v26 }
 0x130   : > { %v2071_v32 = vpack.c.bf16 %v1183_v38, %v1182_v13  ;;  %v2151_v60 = vpack.c.bf16 %v1215_v31, %v1214_v19 }
 0x131   : > { %2203 = vst [vmem:[%s2711_s22 + $0x78] sm:$0xff] %v2076_v15   ;;  %2219 = vst [vmem:[%s2711_s22 + $0xf8] sm:$0xff] %v2156_v24  }
 0x132   : > { %2202 = vst [vmem:[%s2711_s22 + $0x70] sm:$0xff] %v2071_v32   ;;  %2218 = vst [vmem:[%s2711_s22 + $0xf0] sm:$0xff] %v2151_v60  }
 0x133 PF: > { %s14_s17 = sadd.s32 1, %s2438_s17   ;;  %s2984_s15 = smov %s2434_s16 }
 0x134   : > { %p11_p5 = scmp.ge.s32.totalorder %s14_s17, 4   ;;  %s2985_s16 = smov %s2987_s18 }
 0x136   :  { %13 = sbr.rel (!%p11_p5) target bundleno = 2 (0x2), region = 75 }

// kernel: forward.15
= control target key start
LH: loop header
LB: loop body
LE: loop exit
PB: predicated region body
PF: predicated region fallthrough
CT: control target
= control target key end

     0   :  { %s744_s12 = smov 0   ;;  %s746_s13 = smov 0   ;;  %s812_s0 = inlined_call_operand.vmem [shape: bf16[128,108], index: 0, kind: input, shape index: {}]   ;;  %s813_s1 = inlined_call_operand.vmem [shape: bf16[108,128], index: 1, kind: input, shape index: {}]   ;;  %s814_s2 = inlined_call_operand.vmem [shape: f32[1,128], index: 2, kind: input, shape index: {}]   ;;  %s815_s3 = inlined_call_operand.vmem [shape: bf16[128,128], index: 3, kind: output, shape index: {}]  }
   0x1   :  { %s748_s14 = smov 0  }
   0x2 LB: > { %s25_s15 = sadd.s32 1, %s718_s13  ;;  %p554_p0 = scmp.ge.s32.totalorder %s722_s14, 1  ;;  %s722_s14 = sphi %s748_s14, %s13_s14   ;;  %s718_s13 = sphi %s746_s13, %s817_s13   ;;  %s714_s12 = sphi %s744_s12, %s816_s12  }
   0x3   : > { %p27_p1 = scmp.ge.s32.totalorder %s25_s15, 2  ;;  %p169_p2 = scmp.lt.s32.totalorder %s722_s14, 3 }
   0x5   : > { %s819_s15 = smov (%p27_p1, %s25_s15), 0  ;;  %p170_p3 = pnand %p554_p0, %p169_p2 }
   0x6   : > { %s555_s20 = sshll.u32 (!%p170_p3), %s714_s12, 3 }
   0x7   : > { %173 = sbr.rel (%p170_p3) target bundleno = 247 (0xf7), region = 32  ;;  %p204_p4 = scmp.lt.s32.totalorder (!%p170_p3), %s555_s20, 15 }
   0xc   : > { %v689_v0 = vld [vmem:[%s813_s1 + $0x30] sm:$0x3f]   ;;  %vm329_vm0 = vcmask 1045504   ;;  %v690_v1 = vld [vmem:[%s813_s1 + $0x28] sm:$0xff]   ;;  %v691_v3 = vld [vmem:[%s813_s1 + $0x20] sm:$0xff]   ;;  %s821_s20 = smov (!%p204_p4, %s555_s20), 15 }
   0xd   : > { %663 = vmatprep.subr.msk.bf16.mxu0 %vm329_vm0, %v689_v0  ;;  %664 = vmatprep.subr.msk.bf16.mxu1 %vm329_vm0, %v689_v0  ;;  %v331_v2 = vsel %vm329_vm0, %v689_v0, 0  ;;  %v692_v4 = vld [vmem:[%s813_s1 + $0x18] sm:$0xff]   ;;  %s556_s25 = sshll.u32 %s821_s20, 2  ;;  %vm316_vm1 = vcmask 883712   ;;  %v693_v7 = vld [vmem:[%s813_s1 + $0x10] sm:$0xff]   ;;  %v694_v8 = vld [vmem:[%s813_s1 + $0x8] sm:$0xff]  }
   0xe   : > { %628 = vmatpush3.bf16.msra.mxu0 %v331_v2  ;;  %656 = vmatpush3.bf16.msra.mxu1 %v331_v2  ;;  %s207_s28 = scalar_lea.vmem %s812_s0, %s556_s25  ;;  %v695_v9 = vld [vmem:[%s813_s1] sm:$0xff]   ;;  %s223_s12 = scalar_lea.vmem %s815_s3, %s556_s25 }
   0xf   : > { %629 = vmatprep.subr.bf16.mxu0 %v690_v1  ;;  %650 = vmatprep.subr.bf16.mxu1 %v690_v1  ;;  %v696_v5 = vld [vmem:[%s207_s28] sm:$0xff]   ;;  %v697_v6 = vld [vmem:[%s207_s28 + $0x10] sm:$0xff]   ;;  %v698_v10 = vld [vmem:[%s207_s28 + $0x8] sm:$0xff]  }
  0x10   : > { %641 = vmatprep.mubr.msk.bf16.mxu0 %vm316_vm1, %v696_v5  ;;  %645 = vmatprep.mubr.msk.bf16.mxu1 %vm316_vm1, %v697_v6  ;;  %v699_v11 = vld [vmem:[%s207_s28 + $0x18] sm:$0xff]   ;;  %v559_v12 = vld [vmem:[%s814_s2] ss:$0 sm:$0xff] }
  0x12   : > { %630 = vmatpush3.bf16.msra.mxu0 %v690_v1  ;;  %657 = vmatpush3.bf16.msra.mxu1 %v690_v1 }
  0x13   : > { %631 = vmatprep.subr.bf16.mxu0 %v691_v3  ;;  %651 = vmatprep.subr.bf16.mxu1 %v691_v3 }
  0x16   : > { %632 = vmatpush3.bf16.msra.mxu0 %v691_v3  ;;  %658 = vmatpush3.bf16.msra.mxu1 %v691_v3 }
  0x17   : > { %633 = vmatprep.subr.bf16.mxu0 %v692_v4  ;;  %652 = vmatprep.subr.bf16.mxu1 %v692_v4 }
  0x1a   : > { %634 = vmatpush3.bf16.msra.mxu0 %v692_v4  ;;  %659 = vmatpush3.bf16.msra.mxu1 %v692_v4 }
  0x1b   : > { %635 = vmatprep.subr.bf16.mxu0 %v693_v7  ;;  %653 = vmatprep.subr.bf16.mxu1 %v693_v7 }
  0x1e   : > { %636 = vmatpush3.bf16.msra.mxu0 %v693_v7  ;;  %660 = vmatpush3.bf16.msra.mxu1 %v693_v7 }
  0x1f   : > { %637 = vmatprep.subr.bf16.mxu0 %v694_v8  ;;  %654 = vmatprep.subr.bf16.mxu1 %v694_v8 }
  0x22   : > { %638 = vmatpush3.bf16.msra.mxu0 %v694_v8  ;;  %661 = vmatpush3.bf16.msra.mxu1 %v694_v8 }
  0x23   : > { %639 = vmatprep.subr.bf16.mxu0 %v695_v9  ;;  %655 = vmatprep.subr.bf16.mxu1 %v695_v9 }
  0x26   : > { %640 = vmatpush3.bf16.msra.mxu0 %v695_v9  ;;  %662 = vmatpush3.bf16.msra.mxu1 %v695_v9 }
  0x29   : > { %642 = vmatmul.mubr.msk.bf16.vlgmr.msra.gmra.mxu0 %vm316_vm1, %v698_v10  ;;  %646 = vmatmul.mubr.msk.bf16.vlgmr.msra.gmra.mxu1 %vm316_vm1, %v699_v11 }
  0xe9   : > { %v643_v13 = vpop.f32.mrf.mxu0  ;;  %v647_v14 = vpop.f32.mrf.mxu1 }
  0xea   : > { %v376_v15 = vadd.f32 %v643_v13, %v559_v12  ;;  %v392_v16 = vadd.f32 %v647_v14, %v559_v12 }
  0xeb   : > { %v367_v17 = vpop.f32.mrf.mxu0  ;;  %v383_v18 = vpop.f32.mrf.mxu1 }
  0xec   : > { %v368_v19 = vadd.f32 %v559_v12, %v367_v17  ;;  %v384_v20 = vadd.f32 %v559_v12, %v383_v18  ;;  %v400_v25 = vmax.f32 %v376_v15, 0.0  ;;  %v404_v26 = vmax.f32 %v392_v16, 0.0 }
  0xed   : > { %v644_v21 = vpop.f32.mrf.mxu0  ;;  %v648_v22 = vpop.f32.mrf.mxu1 }
  0xee   : > { %v379_v23 = vadd.f32 %v644_v21, %v559_v12  ;;  %v395_v24 = vadd.f32 %v648_v22, %v559_v12  ;;  %v398_v33 = vmax.f32 %v368_v19, 0.0  ;;  %v402_v34 = vmax.f32 %v384_v20, 0.0 }
  0xef   : > { %v370_v27 = vpop.f32.mrf.mxu0  ;;  %v386_v28 = vpop.f32.mrf.mxu1 }
  0xf0   : > { %v401_v29 = vmax.f32 %v379_v23, 0.0  ;;  %v405_v30 = vmax.f32 %v395_v24, 0.0  ;;  %v371_v31 = vadd.f32 %v559_v12, %v370_v27  ;;  %v387_v32 = vadd.f32 %v559_v12, %v386_v28 }
  0xf2   : > { %v601_v35 = vpack.c.bf16 %v401_v29, %v400_v25  ;;  %v611_v36 = vpack.c.bf16 %v405_v30, %v404_v26  ;;  %v399_v37 = vmax.f32 %v371_v31, 0.0  ;;  %v403_v38 = vmax.f32 %v387_v32, 0.0 }
  0xf4   : > { %613 = vst [vmem:[%s223_s12 + $0x8] sm:$0xff] %v601_v35   ;;  %615 = vst [vmem:[%s223_s12 + $0x18] sm:$0xff] %v611_v36   ;;  %v596_v39 = vpack.c.bf16 %v399_v37, %v398_v33  ;;  %v606_v40 = vpack.c.bf16 %v403_v38, %v402_v34 }
  0xf6   : > { %597 = vst [vmem:[%s223_s12] sm:$0xff] %v596_v39   ;;  %614 = vst [vmem:[%s223_s12 + $0x10] sm:$0xff] %v606_v40  }
  0xf7 PF: > { %s13_s14 = sadd.s32 1, %s722_s14   ;;  %s816_s12 = smov %s718_s13 }
  0xf8   : > { %p10_p5 = scmp.ge.s32.totalorder %s13_s14, 4   ;;  %s817_s13 = smov %s819_s15 }
  0xfa   :  { %12 = sbr.rel (!%p10_p5) target bundleno = 2 (0x2), region = 68 }

// kernel: forward.16
= control target key start
LH: loop header
LB: loop body
LE: loop exit
PB: predicated region body
PF: predicated region fallthrough
CT: control target
= control target key end

     0   :  { %s638_s12 = smov 0   ;;  %s640_s13 = smov 0   ;;  %s677_s0 = inlined_call_operand.vmem [shape: bf16[128,4], index: 0, kind: input, shape index: {}]   ;;  %s678_s1 = inlined_call_operand.vmem [shape: bf16[4,128], index: 1, kind: input, shape index: {}]   ;;  %s679_s2 = inlined_call_operand.vmem [shape: f32[1,128], index: 2, kind: input, shape index: {}]   ;;  %s680_s3 = inlined_call_operand.vmem [shape: bf16[128,128], index: 3, kind: output, shape index: {}]  }
   0x1   :  { %s642_s14 = smov 0  }
   0x2 LB: > { %s25_s15 = sadd.s32 1, %s612_s13  ;;  %p492_p0 = scmp.ge.s32.totalorder %s616_s14, 1  ;;  %s616_s14 = sphi %s642_s14, %s13_s14   ;;  %s612_s13 = sphi %s640_s13, %s682_s13   ;;  %s608_s12 = sphi %s638_s12, %s681_s12  }
   0x3   : > { %p27_p1 = scmp.ge.s32.totalorder %s25_s15, 2  ;;  %p169_p2 = scmp.lt.s32.totalorder %s616_s14, 3 }
   0x5   : > { %s684_s15 = smov (%p27_p1, %s25_s15), 0  ;;  %p170_p3 = pnand %p492_p0, %p169_p2 }
   0x6   : > { %s493_s18 = sshll.u32 (!%p170_p3), %s608_s12, 3 }
   0x7   : > { %173 = sbr.rel (%p170_p3) target bundleno = 221 (0xdd), region = 32  ;;  %p204_p4 = scmp.lt.s32.totalorder (!%p170_p3), %s493_s18, 15 }
   0xc   : > { %v234_v0 = vld [vmem:[%s678_s1] sm:$0x3]  ;;  %vm275_vm0 = vcmask 1041408   ;;  %s686_s18 = smov (!%p204_p4, %s493_s18), 15  ;;  %vm262_vm1 = vcmask 31744  }
   0xd   : > { %564 = vmatprep.subr.msk.bf16.mxu0 %vm275_vm0, %v234_v0  ;;  %565 = vmatprep.subr.msk.bf16.mxu1 %vm275_vm0, %v234_v0  ;;  %v277_v1 = vsel %vm275_vm0, %v234_v0, 0  ;;  %s494_s19 = sshll.u32 %s686_s18, 2  ;;  %v497_v8 = vld [vmem:[%s679_s2] ss:$0 sm:$0xff] }
   0xe   : > { %553 = vmatpush3.bf16.msra.mxu0 %v277_v1  ;;  %563 = vmatpush3.bf16.msra.mxu1 %v277_v1  ;;  %s207_s22 = scalar_lea.vmem %s677_s0, %s494_s19  ;;  %s223_s27 = scalar_lea.vmem %s680_s3, %s494_s19 }
   0xf   : > { %v590_v2 = vld [vmem:[%s207_s22] sm:$0xff]   ;;  %v591_v3 = vld [vmem:[%s207_s22 + $0x10] sm:$0xff]   ;;  %v592_v4 = vld [vmem:[%s207_s22 + $0x8] sm:$0xff]  }
  0x10   : > { %554 = vmatprep.mubr.msk.bf16.mxu0 %vm262_vm1, %v590_v2  ;;  %558 = vmatprep.mubr.msk.bf16.mxu1 %vm262_vm1, %v591_v3  ;;  %v593_v5 = vld [vmem:[%s207_s22 + $0x18] sm:$0xff]  }
  0x11   : > { %555 = vmatmul.mubr.msk.bf16.vlgmr.msra.gmra.mxu0 %vm262_vm1, %v592_v4  ;;  %559 = vmatmul.mubr.msk.bf16.vlgmr.msra.gmra.mxu1 %vm262_vm1, %v593_v5 }
  0xd1   : > { %v556_v6 = vpop.f32.mrf.mxu0  ;;  %v560_v7 = vpop.f32.mrf.mxu1 }
  0xd2   : > { %v322_v12 = vadd.f32 %v556_v6, %v497_v8  ;;  %v338_v15 = vadd.f32 %v560_v7, %v497_v8 }
  0xd3   : > { %v313_v9 = vpop.f32.mrf.mxu0  ;;  %v329_v10 = vpop.f32.mrf.mxu1 }
  0xd4   : > { %v314_v18 = vadd.f32 %v497_v8, %v313_v9  ;;  %v330_v22 = vadd.f32 %v497_v8, %v329_v10 }
  0xd5   : > { %v557_v11 = vpop.f32.mrf.mxu0  ;;  %v561_v14 = vpop.f32.mrf.mxu1 }
  0xd6   : > { %v325_v13 = vadd.f32 %v557_v11, %v497_v8  ;;  %v341_v16 = vadd.f32 %v561_v14, %v497_v8 }
  0xd7   : > { %v316_v17 = vpop.f32.mrf.mxu0  ;;  %v332_v21 = vpop.f32.mrf.mxu1 }
  0xd8   : > { %v532_v19 = vpack.c.bf16 %v325_v13, %v322_v12  ;;  %v317_v20 = vadd.f32 %v497_v8, %v316_v17  ;;  %v542_v23 = vpack.c.bf16 %v341_v16, %v338_v15  ;;  %v333_v24 = vadd.f32 %v497_v8, %v332_v21 }
  0xda   : > { %544 = vst [vmem:[%s223_s27 + $0x8] sm:$0xff] %v532_v19   ;;  %v527_v25 = vpack.c.bf16 %v317_v20, %v314_v18  ;;  %546 = vst [vmem:[%s223_s27 + $0x18] sm:$0xff] %v542_v23   ;;  %v537_v26 = vpack.c.bf16 %v333_v24, %v330_v22 }
  0xdc   : > { %528 = vst [vmem:[%s223_s27] sm:$0xff] %v527_v25   ;;  %545 = vst [vmem:[%s223_s27 + $0x10] sm:$0xff] %v537_v26  }
  0xdd PF: > { %s13_s14 = sadd.s32 1, %s616_s14   ;;  %s681_s12 = smov %s612_s13 }
  0xde   : > { %p10_p5 = scmp.ge.s32.totalorder %s13_s14, 4   ;;  %s682_s13 = smov %s684_s15 }
  0xe0   :  { %12 = sbr.rel (!%p10_p5) target bundleno = 2 (0x2), region = 68 }

// kernel: forward.17
= control target key start
LH: loop header
LB: loop body
LE: loop exit
PB: predicated region body
PF: predicated region fallthrough
CT: control target
= control target key end

     0   :  { %s950_s15 = smov 0   ;;  %s952_s16 = smov 0   ;;  %s1081_s0 = inlined_call_operand.vmem [shape: bf16[128,216], index: 0, kind: input, shape index: {}]   ;;  %s1082_s1 = inlined_call_operand.vmem [shape: bf16[216,128], index: 1, kind: input, shape index: {}]   ;;  %s1083_s2 = inlined_call_operand.vmem [shape: f32[1,128], index: 2, kind: input, shape index: {}]   ;;  %s1084_s3 = inlined_call_operand.vmem [shape: bf16[128,128], index: 3, kind: input, shape index: {}]   ;;  %s1085_s4 = inlined_call_operand.vmem [shape: bf16[128,128], index: 4, kind: output, shape index: {}]  }
   0x1   :  { %s954_s17 = smov 0  }
   0x2 LB: > { %s26_s18 = sadd.s32 1, %s918_s16  ;;  %p725_p0 = scmp.ge.s32.totalorder %s922_s17, 1  ;;  %s922_s17 = sphi %s954_s17, %s14_s17   ;;  %s918_s16 = sphi %s952_s16, %s1087_s16   ;;  %s914_s15 = sphi %s950_s15, %s1086_s15  }
   0x3   : > { %p28_p1 = scmp.ge.s32.totalorder %s26_s18, 2  ;;  %p211_p2 = scmp.lt.s32.totalorder %s922_s17, 3 }
   0x5   : > { %s1089_s18 = smov (%p28_p1, %s26_s18), 0  ;;  %p212_p3 = pnand %p725_p0, %p211_p2 }
   0x6   : > { %s726_s23 = sshll.u32 (!%p212_p3), %s914_s15, 3 }
   0x7   : > { %215 = sbr.rel (%p212_p3) target bundleno = 283 (0x11b), region = 36  ;;  %p257_p4 = scmp.lt.s32.totalorder (!%p212_p3), %s726_s23, 15 }
   0xc   : > { %v874_v0 = vld [vmem:[%s1082_s1 + $0x38] sm:$0xff]   ;;  %v924_v1 = vmov 0   ;;  %v875_v2 = vld [vmem:[%s1082_s1 + $0x30] sm:$0xff]   ;;  %s1091_s23 = smov (!%p257_p4, %s726_s23), 15  ;;  %v876_v3 = vld [vmem:[%s1082_s1 + $0x28] sm:$0xff]   ;;  %vm448_vm0 = vcmask 719872  }
   0xd   : > { %465 = vmatprep.subr.bf16.mxu0 %v924_v1  ;;  %821 = vmatprep.subr.bf16.mxu1 %v924_v1  ;;  %s770_s26 = sshll.u32 %s1091_s23, 3  ;;  %v877_v4 = vld [vmem:[%s1082_s1 + $0x20] sm:$0xff]   ;;  %v878_v5 = vld [vmem:[%s1082_s1 + $0x18] sm:$0xff]   ;;  %v879_v8 = vld [vmem:[%s1082_s1 + $0x10] sm:$0xff]   ;;  %vm461_vm1 = vcmask 1043456   ;;  %s730_s30 = sshll.u32 %s1091_s23, 2 }
   0xe   : > { %466 = vmatpush1.bf16.msra.mxu0 %v874_v0  ;;  %835 = vmatpush1.bf16.msra.mxu1 %v874_v0  ;;  %s994_s5 = scalar_lea.vmem %s1081_s0, %s770_s26  ;;  %v880_v9 = vld [vmem:[%s1082_s1 + $0x8] sm:$0xff]   ;;  %v881_v10 = vld [vmem:[%s1082_s1] sm:$0xff]   ;;  %v884_v14 = vld [vmem:[%s1082_s1 + $0x58] sm:$0xff]   ;;  %s277_s8 = scalar_lea.vmem %s1084_s3, %s730_s30 }
   0xf   : > { %467 = vmatprep.subr.bf16.mxu0 %v924_v1  ;;  %822 = vmatprep.subr.bf16.mxu1 %v924_v1  ;;  %v890_v6 = vld [vmem:[%s994_s5 + $0x4] ss:$8 sps:$4 sm:$0xff]   ;;  %v882_v11 = vld [vmem:[%s1082_s1 + $0x68] ss:$0 sps:$4 sm:$0xff]   ;;  %v885_v15 = vld [vmem:[%s1082_s1 + $0x50] sm:$0xff]   ;;  %s286_s12 = scalar_lea.vmem %s1085_s4, %s730_s30 }
  0x10   : > { %756 = vmatprep.mubr.msk.bf16.mxu0 %vm448_vm0, %v890_v6  ;;  %v893_v7 = vld [vmem:[%s994_s5 + $0x24] ss:$8 sps:$4 sm:$0xff]   ;;  %v463_v12 = vsel %vm461_vm1, %v882_v11, 0  ;;  %v888_v18 = vld [vmem:[%s994_s5] ss:$8 sps:$4 sm:$0xff]   ;;  %v816_v25 = vld [vmem:[%s277_s8 + $0x10] sm:$0xff]  }
  0x11   : > { %758 = vmatprep.mubr.msk.bf16.mxu1 %vm448_vm0, %v893_v7  ;;  %v883_v13 = vld [vmem:[%s1082_s1 + $0x60] sm:$0xff]   ;;  %v886_v16 = vld [vmem:[%s1082_s1 + $0x48] sm:$0xff]   ;;  %v894_v20 = vld [vmem:[%s994_s5 + $0x14] ss:$8 sps:$4 sm:$0xff]   ;;  %v789_v30 = vunpack.c.l.bf16 %v816_v25  ;;  %v790_v36 = vunpack.c.h.bf16 %v816_v25 }
  0x12   : > { %468 = vmatpush1.bf16.msra.mxu0 %v875_v2  ;;  %836 = vmatpush1.bf16.msra.mxu1 %v875_v2  ;;  %v887_v17 = vld [vmem:[%s1082_s1 + $0x40] sm:$0xff]   ;;  %v896_v21 = vld [vmem:[%s994_s5 + $0x34] ss:$8 sps:$4 sm:$0xff]   ;;  %v898_v22 = vld [vmem:[%s994_s5 + $0x10] ss:$8 sps:$4 sm:$0xff]  }
  0x13   : > { %469 = vmatprep.subr.bf16.mxu0 %v924_v1  ;;  %823 = vmatprep.subr.bf16.mxu1 %v924_v1  ;;  %v891_v19 = vld [vmem:[%s994_s5 + $0x20] ss:$8 sps:$4 sm:$0xff]   ;;  %v899_v23 = vld [vmem:[%s994_s5 + $0x30] ss:$8 sps:$4 sm:$0xff]  }
  0x14   : > { %v780_v24 = vld [vmem:[%s277_s8] sm:$0xff]   ;;  %v815_v43 = vld [vmem:[%s277_s8 + $0x8] sm:$0xff]   ;;  %v817_v44 = vld [vmem:[%s277_s8 + $0x18] sm:$0xff]  }
  0x15   : > { %v733_v26 = vld [vmem:[%s1083_s2] ss:$0 sm:$0xff]  ;;  %v781_v28 = vunpack.c.l.bf16 %v780_v24  ;;  %v782_v35 = vunpack.c.h.bf16 %v780_v24  ;;  %v785_v52 = vunpack.c.l.bf16 %v815_v43  ;;  %v793_v54 = vunpack.c.l.bf16 %v817_v44 }
  0x16   : > { %470 = vmatpush1.bf16.msra.mxu0 %v876_v3  ;;  %837 = vmatpush1.bf16.msra.mxu1 %v876_v3  ;;  %v786_v63 = vunpack.c.h.bf16 %v815_v43  ;;  %v794_v0 = vunpack.c.h.bf16 %v817_v44 }
  0x17   : > { %471 = vmatprep.subr.bf16.mxu0 %v924_v1  ;;  %824 = vmatprep.subr.bf16.mxu1 %v924_v1 }
  0x1a   : > { %472 = vmatpush1.bf16.msra.mxu0 %v877_v4  ;;  %838 = vmatpush1.bf16.msra.mxu1 %v877_v4 }
  0x1b   : > { %473 = vmatprep.subr.bf16.mxu0 %v924_v1  ;;  %825 = vmatprep.subr.bf16.mxu1 %v924_v1 }
  0x1e   : > { %474 = vmatpush1.bf16.msra.mxu0 %v878_v5  ;;  %839 = vmatpush1.bf16.msra.mxu1 %v878_v5 }
  0x1f   : > { %475 = vmatprep.subr.bf16.mxu0 %v924_v1  ;;  %826 = vmatprep.subr.bf16.mxu1 %v924_v1 }
  0x22   : > { %476 = vmatpush1.bf16.msra.mxu0 %v879_v8  ;;  %840 = vmatpush1.bf16.msra.mxu1 %v879_v8 }
  0x23   : > { %477 = vmatprep.subr.bf16.mxu0 %v924_v1  ;;  %827 = vmatprep.subr.bf16.mxu1 %v924_v1 }
  0x26   : > { %478 = vmatpush1.bf16.msra.mxu0 %v880_v9  ;;  %841 = vmatpush1.bf16.msra.mxu1 %v880_v9 }
  0x27   : > { %479 = vmatprep.subr.bf16.mxu0 %v924_v1  ;;  %828 = vmatprep.subr.bf16.mxu1 %v924_v1 }
  0x2a   : > { %480 = vmatpush1.bf16.msra.mxu0 %v881_v10  ;;  %842 = vmatpush1.bf16.msra.mxu1 %v881_v10 }
  0x2b   : > { %485 = vmatprep.subr.bf16.mxu0 %v924_v1  ;;  %829 = vmatprep.subr.bf16.mxu1 %v924_v1 }
  0x2e   : > { %486 = vmatpush2.bf16.msra.mxu0 %v463_v12  ;;  %843 = vmatpush2.bf16.msra.mxu1 %v463_v12 }
  0x2f   : > { %487 = vmatprep.subr.bf16.mxu0 %v924_v1  ;;  %830 = vmatprep.subr.bf16.mxu1 %v924_v1 }
  0x32   : > { %488 = vmatpush2.bf16.msra.mxu0 %v883_v13  ;;  %844 = vmatpush2.bf16.msra.mxu1 %v883_v13 }
  0x33   : > { %489 = vmatprep.subr.bf16.mxu0 %v924_v1  ;;  %831 = vmatprep.subr.bf16.mxu1 %v924_v1 }
  0x36   : > { %490 = vmatpush2.bf16.msra.mxu0 %v884_v14  ;;  %845 = vmatpush2.bf16.msra.mxu1 %v884_v14 }
  0x37   : > { %491 = vmatprep.subr.bf16.mxu0 %v924_v1  ;;  %832 = vmatprep.subr.bf16.mxu1 %v924_v1 }
  0x3a   : > { %492 = vmatpush2.bf16.msra.mxu0 %v885_v15  ;;  %846 = vmatpush2.bf16.msra.mxu1 %v885_v15 }
  0x3b   : > { %493 = vmatprep.subr.bf16.mxu0 %v924_v1  ;;  %833 = vmatprep.subr.bf16.mxu1 %v924_v1 }
  0x3e   : > { %494 = vmatpush2.bf16.msra.mxu0 %v886_v16  ;;  %847 = vmatpush2.bf16.msra.mxu1 %v886_v16 }
  0x3f   : > { %495 = vmatprep.subr.bf16.mxu0 %v924_v1  ;;  %834 = vmatprep.subr.bf16.mxu1 %v924_v1 }
  0x42   : > { %496 = vmatpush2.bf16.msra.mxu0 %v887_v17  ;;  %848 = vmatpush2.bf16.msra.mxu1 %v887_v17 }
  0x45   : > { %498 = vmatmul.mubr.bf16.vlgmr.msra.gmra.mxu0 %v888_v18  ;;  %514 = vmatmul.mubr.bf16.vlgmr.msra.gmra.mxu1 %v891_v19 }
  0x46   : > { %757 = vmatprep.mubr.msk.bf16.mxu0 %vm448_vm0, %v894_v20  ;;  %759 = vmatprep.mubr.msk.bf16.mxu1 %vm448_vm0, %v896_v21 }
  0x4d   : > { %506 = vmatmul.mubr.bf16.gmra.mxu0 %v898_v22  ;;  %522 = vmatmul.mubr.bf16.gmra.mxu1 %v899_v23 }
 0x105   : > { %v499_v27 = vpop.f32.mrf.mxu0  ;;  %v515_v29 = vpop.f32.mrf.mxu1 }
 0x106   : > { %v500_v31 = vadd.f32 %v733_v26, %v499_v27  ;;  %v516_v32 = vadd.f32 %v733_v26, %v515_v29 }
 0x107   : > { %v501_v33 = vpop.f32.mrf.mxu0  ;;  %v517_v34 = vpop.f32.mrf.mxu1 }
 0x108   : > { %v546_v37 = vadd.f32 %v781_v28, %v500_v31  ;;  %v550_v38 = vadd.f32 %v789_v30, %v516_v32 }
 0x109   : > { %v502_v39 = vpop.f32.mrf.mxu0  ;;  %v518_v40 = vpop.f32.mrf.mxu1 }
 0x10a   : > { %v503_v41 = vadd.f32 %v733_v26, %v502_v39  ;;  %v519_v42 = vadd.f32 %v733_v26, %v518_v40  ;;  %v554_v49 = vmax.f32 %v546_v37, 0.0  ;;  %v558_v50 = vmax.f32 %v550_v38, 0.0 }
 0x10b   : > { %v504_v45 = vpop.f32.mrf.mxu0  ;;  %v520_v46 = vpop.f32.mrf.mxu1 }
 0x10c   : > { %v547_v47 = vadd.f32 %v782_v35, %v503_v41  ;;  %v551_v48 = vadd.f32 %v790_v36, %v519_v42 }
 0x10d   : > { %v507_v51 = vpop.f32.mrf.mxu0  ;;  %v523_v53 = vpop.f32.mrf.mxu1 }
 0x10e   : > { %v555_v55 = vmax.f32 %v547_v47, 0.0  ;;  %v559_v56 = vmax.f32 %v551_v48, 0.0  ;;  %v508_v57 = vadd.f32 %v733_v26, %v507_v51  ;;  %v524_v58 = vadd.f32 %v733_v26, %v523_v53 }
 0x10f   : > { %v509_v59 = vpop.f32.mrf.mxu0  ;;  %v525_v60 = vpop.f32.mrf.mxu1 }
 0x110   : > { %v798_v61 = vpack.c.bf16 %v555_v55, %v554_v49  ;;  %v808_v62 = vpack.c.bf16 %v559_v56, %v558_v50  ;;  %v548_v3 = vadd.f32 %v785_v52, %v508_v57  ;;  %v552_v4 = vadd.f32 %v793_v54, %v524_v58 }
 0x111   : > { %v510_v1 = vpop.f32.mrf.mxu0  ;;  %v526_v2 = vpop.f32.mrf.mxu1 }
 0x112   : > { %799 = vst [vmem:[%s286_s12] sm:$0xff] %v798_v61   ;;  %819 = vst [vmem:[%s286_s12 + $0x10] sm:$0xff] %v808_v62   ;;  %v511_v5 = vadd.f32 %v733_v26, %v510_v1  ;;  %v527_v6 = vadd.f32 %v733_v26, %v526_v2  ;;  %v556_v11 = vmax.f32 %v548_v3, 0.0  ;;  %v560_v12 = vmax.f32 %v552_v4, 0.0 }
 0x113   : > { %v512_v7 = vpop.f32.mrf.mxu0  ;;  %v528_v8 = vpop.f32.mrf.mxu1 }
 0x114   : > { %v549_v9 = vadd.f32 %v786_v63, %v511_v5  ;;  %v553_v10 = vadd.f32 %v794_v0, %v527_v6 }
 0x116   : > { %v557_v13 = vmax.f32 %v549_v9, 0.0  ;;  %v561_v14 = vmax.f32 %v553_v10, 0.0 }
 0x118   : > { %v803_v15 = vpack.c.bf16 %v557_v13, %v556_v11  ;;  %v813_v16 = vpack.c.bf16 %v561_v14, %v560_v12 }
 0x11a   : > { %818 = vst [vmem:[%s286_s12 + $0x8] sm:$0xff] %v803_v15   ;;  %820 = vst [vmem:[%s286_s12 + $0x18] sm:$0xff] %v813_v16  }
 0x11b PF: > { %s14_s17 = sadd.s32 1, %s922_s17   ;;  %s1086_s15 = smov %s918_s16 }
 0x11c   : > { %p11_p5 = scmp.ge.s32.totalorder %s14_s17, 4   ;;  %s1087_s16 = smov %s1089_s18 }
 0x11e   :  { %13 = sbr.rel (!%p11_p5) target bundleno = 2 (0x2), region = 75 }

// kernel: forward.18
= control target key start
LH: loop header
LB: loop body
LE: loop exit
PB: predicated region body
PF: predicated region fallthrough
CT: control target
= control target key end

     0   :  { %v251_v0 = vmov 0   ;;  %vm141_vm0 = vcmask 719872   ;;  %vm145_vm1 = vcmask 1043456   ;;  %s326_s1 = inlined_call_operand.vmem [shape: bf16[216,128], index: 1, kind: input, shape index: {}]   ;;  %s327_s0 = inlined_call_operand.vmem [shape: bf16[16,216], index: 0, kind: input, shape index: {}]   ;;  %s328_s2 = inlined_call_operand.vmem [shape: f32[1,128], index: 2, kind: input, shape index: {}]   ;;  %s329_s3 = inlined_call_operand.vmem [shape: bf16[16,128], index: 3, kind: output, shape index: {}]  }
   0x1   :  { %149 = vmatprep.subr.bf16.mxu0 %v251_v0  ;;  %v234_v1 = vld [vmem:[%s326_s1 + $0x38] sm:$0xff]   ;;  %v235_v2 = vld [vmem:[%s326_s1 + $0x30] sm:$0xff]   ;;  %v236_v3 = vld [vmem:[%s326_s1 + $0x28] sm:$0xff]  }
   0x2   :  { %150 = vmatpush1.bf16.msra.mxu0 %v234_v1  ;;  %v237_v4 = vld [vmem:[%s326_s1 + $0x20] sm:$0xff]   ;;  %v238_v5 = vld [vmem:[%s326_s1 + $0x18] sm:$0xff]   ;;  %v239_v7 = vld [vmem:[%s326_s1 + $0x10] sm:$0xff]  }
   0x3   :  { %151 = vmatprep.subr.bf16.mxu0 %v251_v0  ;;  %v250_v6 = vld [vmem:[%s327_s0 + $0x4] ss:$8 sps:$4 sm:$0xff]   ;;  %v242_v10 = vld [vmem:[%s326_s1 + $0x68] ss:$0 sps:$4 sm:$0xff]   ;;  %v244_v13 = vld [vmem:[%s326_s1 + $0x58] sm:$0xff]  }
   0x4   :  { %223 = vmatprep.mubr.msk.bf16.mxu0 %vm141_vm0, %v250_v6  ;;  %v240_v8 = vld [vmem:[%s326_s1 + $0x8] sm:$0xff]   ;;  %v241_v9 = vld [vmem:[%s326_s1] sm:$0xff]   ;;  %v147_v11 = vsel %vm145_vm1, %v242_v10, 0  ;;  %v245_v14 = vld [vmem:[%s326_s1 + $0x50] sm:$0xff]  }
   0x5   :  { %v243_v12 = vld [vmem:[%s326_s1 + $0x60] sm:$0xff]   ;;  %v246_v15 = vld [vmem:[%s326_s1 + $0x48] sm:$0xff]  }
   0x6   :  { %152 = vmatpush1.bf16.msra.mxu0 %v235_v2  ;;  %v247_v16 = vld [vmem:[%s326_s1 + $0x40] sm:$0xff]  }
   0x7   :  { %153 = vmatprep.subr.bf16.mxu0 %v251_v0  ;;  %v248_v17 = vld [vmem:[%s327_s0] ss:$8 sps:$4 sm:$0xff]  }
   0x8   :  { %v206_v18 = vld [vmem:[%s328_s2] ss:$0 sm:$0xff] }
   0xa   :  { %154 = vmatpush1.bf16.msra.mxu0 %v236_v3 }
   0xb   :  { %155 = vmatprep.subr.bf16.mxu0 %v251_v0 }
   0xe   :  { %156 = vmatpush1.bf16.msra.mxu0 %v237_v4 }
   0xf   :  { %157 = vmatprep.subr.bf16.mxu0 %v251_v0 }
  0x12   :  { %158 = vmatpush1.bf16.msra.mxu0 %v238_v5 }
  0x13   :  { %159 = vmatprep.subr.bf16.mxu0 %v251_v0 }
  0x16   :  { %160 = vmatpush1.bf16.msra.mxu0 %v239_v7 }
  0x17   :  { %161 = vmatprep.subr.bf16.mxu0 %v251_v0 }
  0x1a   :  { %162 = vmatpush1.bf16.msra.mxu0 %v240_v8 }
  0x1b   :  { %163 = vmatprep.subr.bf16.mxu0 %v251_v0 }
  0x1e   :  { %164 = vmatpush1.bf16.msra.mxu0 %v241_v9 }
  0x1f   :  { %169 = vmatprep.subr.bf16.mxu0 %v251_v0 }
  0x22   :  { %170 = vmatpush2.bf16.msra.mxu0 %v147_v11 }
  0x23   :  { %171 = vmatprep.subr.bf16.mxu0 %v251_v0 }
  0x26   :  { %172 = vmatpush2.bf16.msra.mxu0 %v243_v12 }
  0x27   :  { %173 = vmatprep.subr.bf16.mxu0 %v251_v0 }
  0x2a   :  { %174 = vmatpush2.bf16.msra.mxu0 %v244_v13 }
  0x2b   :  { %175 = vmatprep.subr.bf16.mxu0 %v251_v0 }
  0x2e   :  { %176 = vmatpush2.bf16.msra.mxu0 %v245_v14 }
  0x2f   :  { %177 = vmatprep.subr.bf16.mxu0 %v251_v0 }
  0x32   :  { %178 = vmatpush2.bf16.msra.mxu0 %v246_v15 }
  0x33   :  { %179 = vmatprep.subr.bf16.mxu0 %v251_v0 }
  0x36   :  { %180 = vmatpush2.bf16.msra.mxu0 %v247_v16 }
  0x39   :  { %182 = vmatmul.mubr.bf16.vlgmr.msra.gmra.mxu0 %v248_v17 }
  0xf9   :  { %v183_v19 = vpop.f32.mrf.mxu0 }
  0xfa   :  { %v184_v21 = vadd.f32 %v206_v18, %v183_v19 }
  0xfb   :  { %v185_v20 = vpop.f32.mrf.mxu0 }
  0xfc   :  { %v190_v25 = vmax.f32 %v184_v21, 0.0 }
  0xfd   :  { %v186_v22 = vpop.f32.mrf.mxu0 }
  0xfe   :  { %v187_v23 = vadd.f32 %v206_v18, %v186_v22 }
  0xff   :  { %v188_v24 = vpop.f32.mrf.mxu0 }
 0x100   :  { %v191_v26 = vmax.f32 %v187_v23, 0.0 }
 0x102   :  { %v231_v27 = vpack.c.bf16 %v191_v26, %v190_v25 }
 0x104   :  { %232 = vst [vmem:[%s329_s3] sm:$0xff] %v231_v27  }

// kernel: forward.19
= control target key start
LH: loop header
LB: loop body
LE: loop exit
PB: predicated region body
PF: predicated region fallthrough
CT: control target
= control target key end

     0   :  { %vm34_vm0 = vcmask 1043456   ;;  %v116_v0 = vmov 0.0   ;;  %vm117_vm1 = vmmov 0   ;;  %vm30_vm2 = vcmask 64512   ;;  %s150_s1 = inlined_call_operand.vmem [shape: bf16[8,128], index: 1, kind: input, shape index: {}]   ;;  %s151_s0 = inlined_call_operand.vmem [shape: bf16[16,8], index: 0, kind: input, shape index: {}]   ;;  %s152_s2 = inlined_call_operand.vmem [shape: f32[1,128], index: 2, kind: input, shape index: {}]   ;;  %s153_s3 = inlined_call_operand.vmem [shape: bf16[16,128], index: 3, kind: output, shape index: {}]  }
   0x1   :  { %107 = vmatprep.subr.bf16.mxu0 %v116_v0  ;;  %v17_v1 = vld [vmem:[%s150_s1] sm:$0xf]  ;;  %109 = vmatprep.mubr.msk.bf16.mxu0 %vm117_vm1, %v116_v0 }
   0x2   :  { %v36_v2 = vsel %vm34_vm0, %v17_v1, 0  ;;  %v115_v3 = vld [vmem:[%s151_s0] sm:$0xff]  }
   0x3   :  { %108 = vmatpush3.bf16.msra.mxu0 %v36_v2  ;;  %v93_v5 = vld [vmem:[%s152_s2] ss:$0 sm:$0xff] }
   0x6   :  { %110 = vmatmul.mubr.msk.bf16.vlgmr.msra.gmra.mxu0 %vm30_vm2, %v115_v3 }
  0xc6   :  { %v72_v4 = vpop.f32.mrf.mxu0 }
  0xc7   :  { %v73_v8 = vadd.f32 %v93_v5, %v72_v4 }
  0xc8   :  { %v111_v6 = vpop.f32.mrf.mxu0 }
  0xca   :  { %v75_v7 = vpop.f32.mrf.mxu0 }
  0xcb   :  { %v76_v9 = vadd.f32 %v93_v5, %v75_v7 }
  0xcc   :  { %v112_v10 = vpop.f32.mrf.mxu0 }
  0xcd   :  { %v103_v11 = vpack.c.bf16 %v76_v9, %v73_v8 }
  0xcf   :  { %104 = vst [vmem:[%s153_s3] sm:$0xff] %v103_v11  }

// kernel: forward.20
= control target key start
LH: loop header
LB: loop body
LE: loop exit
PB: predicated region body
PF: predicated region fallthrough
CT: control target
= control target key end

     0   :  { %v474_v0 = vmov 0   ;;  %vm264_vm0 = vcmask 392192   ;;  %s613_s1 = inlined_call_operand.vmem [shape: bf16[432,128], index: 1, kind: input, shape index: {}]   ;;  %s614_s0 = inlined_call_operand.vmem [shape: bf16[16,432], index: 0, kind: input, shape index: {}]   ;;  %s615_s2 = inlined_call_operand.vmem [shape: f32[1,128], index: 2, kind: input, shape index: {}]   ;;  %s616_s3 = inlined_call_operand.vmem [shape: bf16[16,128], index: 3, kind: input, shape index: {}]   ;;  %s617_s4 = inlined_call_operand.vmem [shape: bf16[16,128], index: 4, kind: output, shape index: {}]  }
   0x1   :  { %309 = vmatprep.subr.bf16.mxu1 %v474_v0  ;;  %v441_v1 = vld [vmem:[%s613_s1 + $0x78] sm:$0xff]   ;;  %v444_v4 = vld [vmem:[%s613_s1 + $0x70] sm:$0xff]   ;;  %v447_v7 = vld [vmem:[%s613_s1 + $0x68] sm:$0xff]  }
   0x2   :  { %v442_v2 = vld [vmem:[%s613_s1 + $0xb8] sm:$0xff]   ;;  %418 = vmatprep.subr.bf16.mxu0 %v441_v1  ;;  %v445_v5 = vld [vmem:[%s613_s1 + $0xb0] sm:$0xff]   ;;  %v448_v8 = vld [vmem:[%s613_s1 + $0xa8] sm:$0xff]  }
   0x3   :  { %v443_v3 = vld [vmem:[%s613_s1 + $0x38] sm:$0xff]   ;;  %310 = vmatpush1.bf16.msra.mxu1 %v442_v2  ;;  %v446_v6 = vld [vmem:[%s613_s1 + $0x30] sm:$0xff]   ;;  %v449_v9 = vld [vmem:[%s613_s1 + $0x28] sm:$0xff]  }
   0x4   :  { %419 = vmatpush3.bf16.msra.mxu0 %v443_v3  ;;  %311 = vmatprep.subr.bf16.mxu1 %v474_v0  ;;  %v450_v10 = vld [vmem:[%s613_s1 + $0x60] sm:$0xff]   ;;  %v453_v13 = vld [vmem:[%s613_s1 + $0x58] sm:$0xff]   ;;  %v456_v16 = vld [vmem:[%s613_s1 + $0x50] sm:$0xff]  }
   0x5   :  { %420 = vmatprep.subr.bf16.mxu0 %v444_v4  ;;  %v451_v11 = vld [vmem:[%s613_s1 + $0xa0] sm:$0xff]   ;;  %v454_v14 = vld [vmem:[%s613_s1 + $0x98] sm:$0xff]   ;;  %v457_v17 = vld [vmem:[%s613_s1 + $0x90] sm:$0xff]  }
   0x6   :  { %v452_v12 = vld [vmem:[%s613_s1 + $0x20] sm:$0xff]   ;;  %v455_v15 = vld [vmem:[%s613_s1 + $0x18] sm:$0xff]   ;;  %v458_v18 = vld [vmem:[%s613_s1 + $0x10] sm:$0xff]  }
   0x7   :  { %312 = vmatpush1.bf16.msra.mxu1 %v445_v5  ;;  %v459_v19 = vld [vmem:[%s613_s1 + $0x48] sm:$0xff]   ;;  %v462_v22 = vld [vmem:[%s613_s1 + $0x40] sm:$0xff]   ;;  %v468_v28 = vld [vmem:[%s613_s1 + $0xd0] sm:$0xff]  }
   0x8   :  { %421 = vmatpush3.bf16.msra.mxu0 %v446_v6  ;;  %313 = vmatprep.subr.bf16.mxu1 %v474_v0  ;;  %v460_v20 = vld [vmem:[%s613_s1 + $0x88] sm:$0xff]   ;;  %v467_v23 = vld [vmem:[%s614_s0 + $0x4] ss:$16 sps:$4 sm:$0xff]   ;;  %v465_v27 = vld [vmem:[%s614_s0] ss:$16 sps:$4 sm:$0xff]  }
   0x9   :  { %422 = vmatprep.subr.bf16.mxu0 %v447_v7  ;;  %v461_v21 = vld [vmem:[%s613_s1 + $0x8] sm:$0xff]   ;;  %v463_v24 = vld [vmem:[%s613_s1 + $0x80] sm:$0xff]   ;;  %300 = vmatprep.mubr.bf16.mxu0 %v467_v23 }
   0xa   :  { %v464_v25 = vld [vmem:[%s613_s1] sm:$0xff]   ;;  %v473_v26 = vld [vmem:[%s614_s0 + $0xc] ss:$16 sps:$4 sm:$0xff]   ;;  %v471_v31 = vld [vmem:[%s614_s0 + $0x8] ss:$16 sps:$4 sm:$0xff]  }
   0xb   :  { %314 = vmatpush1.bf16.msra.mxu1 %v448_v8  ;;  %404 = vmatprep.mubr.msk.bf16.mxu1 %vm264_vm0, %v473_v26  ;;  %v469_v29 = vld [vmem:[%s613_s1 + $0xc8] sm:$0xff]   ;;  %v470_v30 = vld [vmem:[%s613_s1 + $0xc0] sm:$0xff]  }
   0xc   :  { %423 = vmatpush3.bf16.msra.mxu0 %v449_v9  ;;  %315 = vmatprep.subr.bf16.mxu1 %v474_v0  ;;  %v372_v37 = vld [vmem:[%s615_s2] ss:$0 sm:$0xff] }
   0xd   :  { %424 = vmatprep.subr.bf16.mxu0 %v450_v10  ;;  %v410_v38 = vld [vmem:[%s616_s3] sm:$0xff]  }
   0xe   :  { %v411_v43 = vunpack.c.l.bf16 %v410_v38  ;;  %v412_v46 = vunpack.c.h.bf16 %v410_v38 }
   0xf   :  { %316 = vmatpush1.bf16.msra.mxu1 %v451_v11 }
  0x10   :  { %425 = vmatpush3.bf16.msra.mxu0 %v452_v12  ;;  %317 = vmatprep.subr.bf16.mxu1 %v474_v0 }
  0x11   :  { %426 = vmatprep.subr.bf16.mxu0 %v453_v13 }
  0x13   :  { %318 = vmatpush1.bf16.msra.mxu1 %v454_v14 }
  0x14   :  { %427 = vmatpush3.bf16.msra.mxu0 %v455_v15  ;;  %319 = vmatprep.subr.bf16.mxu1 %v474_v0 }
  0x15   :  { %428 = vmatprep.subr.bf16.mxu0 %v456_v16 }
  0x17   :  { %320 = vmatpush1.bf16.msra.mxu1 %v457_v17 }
  0x18   :  { %429 = vmatpush3.bf16.msra.mxu0 %v458_v18  ;;  %321 = vmatprep.subr.bf16.mxu1 %v474_v0 }
  0x19   :  { %430 = vmatprep.subr.bf16.mxu0 %v459_v19 }
  0x1b   :  { %322 = vmatpush1.bf16.msra.mxu1 %v460_v20 }
  0x1c   :  { %431 = vmatpush3.bf16.msra.mxu0 %v461_v21  ;;  %323 = vmatprep.subr.bf16.mxu1 %v474_v0 }
  0x1d   :  { %432 = vmatprep.subr.bf16.mxu0 %v462_v22 }
  0x1f   :  { %324 = vmatpush1.bf16.msra.mxu1 %v463_v24 }
  0x20   :  { %433 = vmatpush3.bf16.msra.mxu0 %v464_v25  ;;  %335 = vmatprep.subr.bf16.mxu1 %v474_v0 }
  0x23   :  { %301 = vmatmul.mubr.bf16.vlgmr.msra.gmra.mxu0 %v465_v27  ;;  %336 = vmatpush2.bf16.msra.mxu1 %v468_v28 }
  0x24   :  { %337 = vmatprep.subr.bf16.mxu1 %v474_v0 }
  0x27   :  { %338 = vmatpush2.bf16.msra.mxu1 %v469_v29 }
  0x28   :  { %339 = vmatprep.subr.bf16.mxu1 %v474_v0 }
  0x2b   :  { %340 = vmatpush2.bf16.msra.mxu1 %v470_v30 }
  0x2e   :  { %342 = vmatmul.mubr.bf16.vlgmr.msra.gmra.mxu1 %v471_v31 }
  0xe3   :  { %v434_v32 = vpop.f32.mrf.mxu0 }
  0xe5   :  { %v435_v33 = vpop.f32.mrf.mxu0 }
  0xe6   :  { %v436_v35 = vadd.f32 %v435_v33, %v434_v32 }
  0xe7   :  { %v437_v34 = vpop.f32.mrf.mxu0 }
  0xe8   :  { %v303_v40 = vadd.f32 %v436_v35, %v372_v37 }
  0xe9   :  { %v438_v36 = vpop.f32.mrf.mxu0 }
  0xea   :  { %v439_v39 = vadd.f32 %v438_v36, %v437_v34 }
  0xec   :  { %v306_v45 = vadd.f32 %v439_v39, %v372_v37 }
  0xee   :  { %v343_v41 = vpop.f32.mrf.mxu1 }
  0xef   :  { %v344_v42 = vadd.f32 %v343_v41, %v303_v40 }
  0xf0   :  { %v345_v44 = vpop.f32.mrf.mxu1 }
  0xf1   :  { %v354_v48 = vadd.f32 %v411_v43, %v344_v42 }
  0xf2   :  { %v346_v47 = vpop.f32.mrf.mxu1 }
  0xf3   :  { %v347_v49 = vadd.f32 %v346_v47, %v306_v45  ;;  %v356_v52 = vmax.f32 %v354_v48, 0.0 }
  0xf4   :  { %v348_v50 = vpop.f32.mrf.mxu1 }
  0xf5   :  { %v355_v51 = vadd.f32 %v412_v46, %v347_v49 }
  0xf7   :  { %v357_v53 = vmax.f32 %v355_v51, 0.0 }
  0xf9   :  { %v416_v54 = vpack.c.bf16 %v357_v53, %v356_v52 }
  0xfb   :  { %417 = vst [vmem:[%s617_s4] sm:$0xff] %v416_v54  }

// kernel: forward.21
= control target key start
LH: loop header
LB: loop body
LE: loop exit
PB: predicated region body
PF: predicated region fallthrough
CT: control target
= control target key end

     0   :  { %v439_v0 = vmov 0   ;;  %v440_v15 = vmov 1966171168   ;;  %v89_v17 = vlaneseq  ;;  %vm267_vm0 = vcmask 392192   ;;  %s562_s1 = inlined_call_operand.vmem [shape: bf16[432,128], index: 1, kind: input, shape index: {}]   ;;  %s563_s0 = inlined_call_operand.vmem [shape: bf16[2,432], index: 0, kind: input, shape index: {}]   ;;  %s564_s2 = inlined_call_operand.vmem [shape: f32[1,128], index: 2, kind: input, shape index: {}]   ;;  %s565_s3 = inlined_call_operand.vmem [shape: bf16[2,128], index: 3, kind: output, shape index: {}]  }
   0x1   :  { %311 = vmatprep.subr.bf16.mxu1 %v439_v0  ;;  %v412_v1 = vld [vmem:[%s562_s1 + $0x78] sm:$0xff]   ;;  %v415_v4 = vld [vmem:[%s562_s1 + $0x70] sm:$0xff]   ;;  %v418_v7 = vld [vmem:[%s562_s1 + $0x68] sm:$0xff]   ;;  %v87_v16 = vunpack.c.l.s4 %v440_v15 }
   0x2   :  { %v413_v2 = vld [vmem:[%s562_s1 + $0xb8] sm:$0xff]   ;;  %388 = vmatprep.subr.bf16.mxu0 %v412_v1  ;;  %v416_v5 = vld [vmem:[%s562_s1 + $0xb0] sm:$0xff]   ;;  %v419_v8 = vld [vmem:[%s562_s1 + $0xa8] sm:$0xff]   ;;  %v90_v22 = vshrl.u32 %v89_v17, 7 }
   0x3   :  { %v414_v3 = vld [vmem:[%s562_s1 + $0x38] sm:$0xff]   ;;  %312 = vmatpush1.bf16.msra.mxu1 %v413_v2  ;;  %v417_v6 = vld [vmem:[%s562_s1 + $0x30] sm:$0xff]   ;;  %v420_v9 = vld [vmem:[%s562_s1 + $0x28] sm:$0xff]   ;;  %v88_v21 = vunpack.c.0.s8 %v87_v16 }
   0x4   :  { %389 = vmatpush3.bf16.msra.mxu0 %v414_v3  ;;  %313 = vmatprep.subr.bf16.mxu1 %v439_v0  ;;  %v421_v10 = vld [vmem:[%s562_s1 + $0x60] sm:$0xff]   ;;  %v424_v13 = vld [vmem:[%s562_s1 + $0x58] sm:$0xff]   ;;  %v427_v19 = vld [vmem:[%s562_s1 + $0x50] sm:$0xff]  }
   0x5   :  { %390 = vmatprep.subr.bf16.mxu0 %v415_v4  ;;  %v422_v11 = vld [vmem:[%s562_s1 + $0xa0] sm:$0xff]   ;;  %v425_v14 = vld [vmem:[%s562_s1 + $0x98] sm:$0xff]   ;;  %v428_v20 = vld [vmem:[%s562_s1 + $0x90] sm:$0xff]   ;;  %v91_v27 = vsub.s32 %v88_v21, %v90_v22 }
   0x6   :  { %v423_v12 = vld [vmem:[%s562_s1 + $0x20] sm:$0xff]   ;;  %v426_v18 = vld [vmem:[%s562_s1 + $0x18] sm:$0xff]   ;;  %v429_v23 = vld [vmem:[%s562_s1 + $0x10] sm:$0xff]  }
   0x7   :  { %314 = vmatpush1.bf16.msra.mxu1 %v416_v5  ;;  %v430_v24 = vld [vmem:[%s562_s1 + $0x48] sm:$0xff]   ;;  %v359_v28 = vld.sshfl [vmem:[%s563_s0] sm:$0x33 pattern:$0x75316420]  ;;  %v436_v36 = vld [vmem:[%s562_s1 + $0xd0] sm:$0xff]  }
   0x8   :  { %391 = vmatpush3.bf16.msra.mxu0 %v417_v6  ;;  %315 = vmatprep.subr.bf16.mxu1 %v439_v0  ;;  %v431_v25 = vld [vmem:[%s562_s1 + $0x88] sm:$0xff]   ;;  %v433_v29 = vld [vmem:[%s562_s1 + $0x40] sm:$0xff]   ;;  %v85_v30 = vcombine.high %v359_v28, %v359_v28  ;;  %v92_v35 = vrot.slane %v359_v28, %v91_v27 }
   0x9   :  { %392 = vmatprep.subr.bf16.mxu0 %v418_v7  ;;  %v432_v26 = vld [vmem:[%s562_s1 + $0x8] sm:$0xff]   ;;  %v434_v31 = vld [vmem:[%s562_s1 + $0x80] sm:$0xff]  }
   0xa   :  { %v99_v32 = vrot.slane %v85_v30, %v91_v27  ;;  %v435_v33 = vld [vmem:[%s562_s1] sm:$0xff]   ;;  %v437_v37 = vld [vmem:[%s562_s1 + $0xc8] sm:$0xff]   ;;  %v100_v39 = vcombine.high %v92_v35, %v92_v35 }
   0xb   :  { %316 = vmatpush1.bf16.msra.mxu1 %v419_v8  ;;  %v438_v38 = vld [vmem:[%s562_s1 + $0xc0] sm:$0xff]  }
   0xc   :  { %393 = vmatpush3.bf16.msra.mxu0 %v420_v9  ;;  %317 = vmatprep.subr.bf16.mxu1 %v439_v0  ;;  %v101_v34 = vcombine.high %v99_v32, %v99_v32  ;;  %v358_v45 = vld [vmem:[%s564_s2] ss:$0 sm:$0xff] }
   0xd   :  { %394 = vmatprep.subr.bf16.mxu0 %v421_v10  ;;  %303 = vmatprep.mubr.bf16.mxu0 %v99_v32 }
   0xe   :  { %387 = vmatprep.mubr.msk.bf16.mxu1 %vm267_vm0, %v101_v34 }
   0xf   :  { %318 = vmatpush1.bf16.msra.mxu1 %v422_v11 }
  0x10   :  { %395 = vmatpush3.bf16.msra.mxu0 %v423_v12  ;;  %319 = vmatprep.subr.bf16.mxu1 %v439_v0 }
  0x11   :  { %396 = vmatprep.subr.bf16.mxu0 %v424_v13 }
  0x13   :  { %320 = vmatpush1.bf16.msra.mxu1 %v425_v14 }
  0x14   :  { %397 = vmatpush3.bf16.msra.mxu0 %v426_v18  ;;  %321 = vmatprep.subr.bf16.mxu1 %v439_v0 }
  0x15   :  { %398 = vmatprep.subr.bf16.mxu0 %v427_v19 }
  0x17   :  { %322 = vmatpush1.bf16.msra.mxu1 %v428_v20 }
  0x18   :  { %399 = vmatpush3.bf16.msra.mxu0 %v429_v23  ;;  %323 = vmatprep.subr.bf16.mxu1 %v439_v0 }
  0x19   :  { %400 = vmatprep.subr.bf16.mxu0 %v430_v24 }
  0x1b   :  { %324 = vmatpush1.bf16.msra.mxu1 %v431_v25 }
  0x1c   :  { %401 = vmatpush3.bf16.msra.mxu0 %v432_v26  ;;  %325 = vmatprep.subr.bf16.mxu1 %v439_v0 }
  0x1d   :  { %402 = vmatprep.subr.bf16.mxu0 %v433_v29 }
  0x1f   :  { %326 = vmatpush1.bf16.msra.mxu1 %v434_v31 }
  0x20   :  { %403 = vmatpush3.bf16.msra.mxu0 %v435_v33  ;;  %337 = vmatprep.subr.bf16.mxu1 %v439_v0 }
  0x23   :  { %304 = vmatmul.mubr.bf16.vlgmr.msra.gmra.mxu0 %v92_v35  ;;  %338 = vmatpush2.bf16.msra.mxu1 %v436_v36 }
  0x24   :  { %339 = vmatprep.subr.bf16.mxu1 %v439_v0 }
  0x27   :  { %340 = vmatpush2.bf16.msra.mxu1 %v437_v37 }
  0x28   :  { %341 = vmatprep.subr.bf16.mxu1 %v439_v0 }
  0x2b   :  { %342 = vmatpush2.bf16.msra.mxu1 %v438_v38 }
  0x2e   :  { %344 = vmatmul.mubr.bf16.vlgmr.msra.gmra.mxu1 %v100_v39 }
  0xe3   :  { %v404_v40 = vpop.f32.mrf.mxu0 }
  0xe5   :  { %v405_v41 = vpop.f32.mrf.mxu0 }
  0xe6   :  { %v406_v43 = vadd.f32 %v405_v41, %v404_v40 }
  0xe7   :  { %v407_v42 = vpop.f32.mrf.mxu0 }
  0xe8   :  { %v306_v46 = vadd.f32 %v406_v43, %v358_v45 }
  0xe9   :  { %v408_v44 = vpop.f32.mrf.mxu0 }
  0xee   :  { %v345_v47 = vpop.f32.mrf.mxu1 }
  0xef   :  { %v346_v48 = vadd.f32 %v345_v47, %v306_v46 }
  0xf0   :  { %v347_v49 = vpop.f32.mrf.mxu1 }
  0xf1   :  { %v351_v50 = vmax.f32 %v346_v48, 0.0 }
  0xf2   :  { %v348_v51 = vpop.f32.mrf.mxu1 }
  0xf3   :  { %v352_v52 = vpack.c.bf16 %v351_v50, %v351_v50 }
  0xf4   :  { %v349_v53 = vpop.f32.mrf.mxu1 }
  0xf5   :  { %353 = vst [vmem:[%s565_s3] sm:$0x1] %v352_v52 }

// kernel: forward.22
= control target key start
LH: loop header
LB: loop body
LE: loop exit
PB: predicated region body
PF: predicated region fallthrough
CT: control target
= control target key end

     0   :  { %v95_v0 = vmov 0.0   ;;  %vm96_vm0 = vmmov 0   ;;  %vm31_vm1 = vcmask 130048   ;;  %s129_s1 = inlined_call_operand.vmem [shape: bf16[16,128], index: 1, kind: input, shape index: {}]   ;;  %s130_s0 = inlined_call_operand.vmem [shape: bf16[2,16], index: 0, kind: input, shape index: {}]   ;;  %s131_s2 = inlined_call_operand.vmem [shape: f32[1,128], index: 2, kind: input, shape index: {}]   ;;  %s132_s3 = inlined_call_operand.vmem [shape: bf16[2,128], index: 3, kind: output, shape index: {}]  }
   0x1   :  { %86 = vmatprep.subr.bf16.mxu0 %v95_v0  ;;  %v94_v1 = vld [vmem:[%s129_s1] sm:$0xff]   ;;  %88 = vmatprep.mubr.msk.bf16.mxu0 %vm96_vm0, %v95_v0 }
   0x2   :  { %87 = vmatpush3.bf16.msra.mxu0 %v94_v1  ;;  %v15_v2 = vld [vmem:[%s130_s0] sm:$0x1] }
   0x3   :  { %v81_v3 = vld [vmem:[%s131_s2] ss:$0 sm:$0xff] }
   0x5   :  { %89 = vmatmul.mubr.msk.bf16.vlgmr.msra.gmra.mxu0 %vm31_vm1, %v15_v2 }
  0xc5   :  { %v69_v4 = vpop.f32.mrf.mxu0 }
  0xc6   :  { %v70_v5 = vadd.f32 %v81_v3, %v69_v4 }
  0xc7   :  { %v90_v6 = vpop.f32.mrf.mxu0 }
  0xc8   :  { %v75_v7 = vpack.c.bf16 %v70_v5, %v70_v5 }
  0xc9   :  { %v72_v8 = vpop.f32.mrf.mxu0 }
  0xca   :  { %76 = vst [vmem:[%s132_s3] sm:$0x1] %v75_v7 }
  0xcb   :  { %v91_v9 = vpop.f32.mrf.mxu0 }

// kernel: forward.23
= control target key start
LH: loop header
LB: loop body
LE: loop exit
PB: predicated region body
PF: predicated region fallthrough
CT: control target
= control target key end

     0   :  { %v890_v21 = vmov 1966171168   ;;  %v139_v23 = vlaneseq  ;;  %v891_v45 = vmov 0.0   ;;  %vm892_vm0 = vmmov 0   ;;  %s1100_s1 = inlined_call_operand.vmem [shape: bf16[864,128], index: 1, kind: input, shape index: {}]   ;;  %s1101_s0 = inlined_call_operand.vmem [shape: bf16[2,864], index: 0, kind: input, shape index: {}]   ;;  %s1102_s2 = inlined_call_operand.vmem [shape: f32[1,128], index: 2, kind: input, shape index: {}]   ;;  %s1103_s3 = inlined_call_operand.vmem [shape: bf16[2,128], index: 3, kind: input, shape index: {}]   ;;  %s1104_s4 = inlined_call_operand.vmem [shape: bf16[2,128], index: 4, kind: output, shape index: {}]  }
   0x1   :  { %v835_v0 = vld [vmem:[%s1100_s1 + $0x78] sm:$0xff]   ;;  %v839_v4 = vld [vmem:[%s1100_s1 + $0x70] sm:$0xff]   ;;  %v843_v8 = vld [vmem:[%s1100_s1 + $0x68] sm:$0xff]   ;;  %v137_v22 = vunpack.c.l.s4 %v890_v21  ;;  %vm513_vm1 = vcmask 785408  }
   0x2   :  { %v836_v1 = vld [vmem:[%s1100_s1 + $0x38] sm:$0xff]   ;;  %743 = vmatprep.subr.bf16.mxu0 %v835_v0  ;;  %v840_v5 = vld [vmem:[%s1100_s1 + $0x30] sm:$0xff]   ;;  %v844_v9 = vld [vmem:[%s1100_s1 + $0x28] sm:$0xff]   ;;  %v140_v29 = vshrl.u32 %v139_v23, 7 }
   0x3   :  { %v837_v2 = vld [vmem:[%s1100_s1 + $0xf8] sm:$0xff]   ;;  %744 = vmatpush3.bf16.msra.mxu0 %v836_v1  ;;  %v841_v6 = vld [vmem:[%s1100_s1 + $0xf0] sm:$0xff]   ;;  %v845_v10 = vld [vmem:[%s1100_s1 + $0xe8] sm:$0xff]   ;;  %v138_v28 = vunpack.c.0.s8 %v137_v22 }
   0x4   :  { %v838_v3 = vld [vmem:[%s1100_s1 + $0xb8] sm:$0xff]   ;;  %765 = vmatprep.subr.bf16.mxu1 %v837_v2  ;;  %745 = vmatprep.subr.bf16.mxu0 %v839_v4  ;;  %v842_v7 = vld [vmem:[%s1100_s1 + $0xb0] sm:$0xff]   ;;  %v846_v11 = vld [vmem:[%s1100_s1 + $0xa8] sm:$0xff]  }
   0x5   :  { %766 = vmatpush3.bf16.msra.mxu1 %v838_v3  ;;  %v847_v12 = vld [vmem:[%s1100_s1 + $0x60] sm:$0xff]   ;;  %v851_v16 = vld [vmem:[%s1100_s1 + $0x58] sm:$0xff]   ;;  %v855_v20 = vld [vmem:[%s1100_s1 + $0x50] sm:$0xff]   ;;  %v1005_v34 = vsub.s32 %v138_v28, %v140_v29 }
   0x6   :  { %767 = vmatprep.subr.bf16.mxu1 %v841_v6  ;;  %v848_v13 = vld [vmem:[%s1100_s1 + $0x20] sm:$0xff]   ;;  %v852_v17 = vld [vmem:[%s1100_s1 + $0x18] sm:$0xff]   ;;  %v856_v24 = vld [vmem:[%s1100_s1 + $0x10] sm:$0xff]  }
   0x7   :  { %746 = vmatpush3.bf16.msra.mxu0 %v840_v5  ;;  %v849_v14 = vld [vmem:[%s1100_s1 + $0xe0] sm:$0xff]   ;;  %v853_v18 = vld [vmem:[%s1100_s1 + $0xd8] sm:$0xff]   ;;  %v857_v25 = vld [vmem:[%s1100_s1 + $0xd0] sm:$0xff]  }
   0x8   :  { %747 = vmatprep.subr.bf16.mxu0 %v843_v8  ;;  %v850_v15 = vld [vmem:[%s1100_s1 + $0xa0] sm:$0xff]   ;;  %v854_v19 = vld [vmem:[%s1100_s1 + $0x98] sm:$0xff]   ;;  %v858_v26 = vld [vmem:[%s1100_s1 + $0x90] sm:$0xff]  }
   0x9   :  { %768 = vmatpush3.bf16.msra.mxu1 %v842_v7  ;;  %v859_v27 = vld [vmem:[%s1100_s1 + $0x48] sm:$0xff]   ;;  %v863_v33 = vld [vmem:[%s1100_s1 + $0x40] sm:$0xff]   ;;  %v868_v41 = vld [vmem:[%s1100_s1 + $0x178] sm:$0xff]  }
   0xa   :  { %769 = vmatprep.subr.bf16.mxu1 %v845_v10  ;;  %v860_v30 = vld [vmem:[%s1100_s1 + $0x8] sm:$0xff]   ;;  %v864_v35 = vld [vmem:[%s1100_s1] sm:$0xff]   ;;  %v869_v47 = vld [vmem:[%s1100_s1 + $0x138] sm:$0xff]  }
   0xb   :  { %748 = vmatpush3.bf16.msra.mxu0 %v844_v9  ;;  %v861_v31 = vld [vmem:[%s1100_s1 + $0xc8] sm:$0xff]   ;;  %v865_v36 = vld [vmem:[%s1100_s1 + $0xc0] sm:$0xff]   ;;  %v870_v50 = vld [vmem:[%s1100_s1 + $0x170] sm:$0xff]  }
   0xc   :  { %749 = vmatprep.subr.bf16.mxu0 %v847_v12  ;;  %v862_v32 = vld [vmem:[%s1100_s1 + $0x88] sm:$0xff]   ;;  %v18_v37 = vld [vmem:[%s1101_s0] sm:$0x7f]  ;;  %v871_v54 = vld [vmem:[%s1100_s1 + $0x130] sm:$0xff]  }
   0xd   :  { %770 = vmatpush3.bf16.msra.mxu1 %v846_v11  ;;  %v135_v38 = vcombine.high %v18_v37, %v18_v37  ;;  %v142_v39 = vrot.slane %v18_v37, %v1005_v34  ;;  %v867_v40 = vld [vmem:[%s1100_s1 + $0x80] sm:$0xff]   ;;  %v874_v53 = vld [vmem:[%s1100_s1 + $0x1a8] sm:$0xff]   ;;  %v880_v59 = vld [vmem:[%s1100_s1 + $0x198] sm:$0xff]  }
   0xe   :  { %771 = vmatprep.subr.bf16.mxu1 %v849_v14  ;;  %v872_v55 = vld [vmem:[%s1100_s1 + $0x168] sm:$0xff]   ;;  %v877_v56 = vld [vmem:[%s1100_s1 + $0x1a0] sm:$0xff]   ;;  %v878_v61 = vld [vmem:[%s1100_s1 + $0x158] sm:$0xff]  }
   0xf   :  { %750 = vmatpush3.bf16.msra.mxu0 %v848_v13  ;;  %v150_v42 = vcombine.high %v142_v39, %v142_v39  ;;  %v158_v43 = vrot.slane %v142_v39, %v1005_v34  ;;  %v149_v44 = vrot.slane %v135_v38, %v1005_v34  ;;  %v873_v57 = vld [vmem:[%s1100_s1 + $0x128] sm:$0xff]   ;;  %v875_v58 = vld [vmem:[%s1100_s1 + $0x160] sm:$0xff]   ;;  %v883_v62 = vld [vmem:[%s1100_s1 + $0x190] sm:$0xff]  }
  0x10   :  { %751 = vmatprep.subr.bf16.mxu0 %v851_v16  ;;  %v876_v60 = vld [vmem:[%s1100_s1 + $0x120] sm:$0xff]   ;;  %v879_v63 = vld [vmem:[%s1100_s1 + $0x118] sm:$0xff]   ;;  %v881_v0 = vld [vmem:[%s1100_s1 + $0x150] sm:$0xff]  }
  0x11   :  { %772 = vmatpush3.bf16.msra.mxu1 %v850_v15  ;;  %v172_v46 = vrot.slane %v150_v42, %v1005_v34  ;;  %v151_v48 = vcombine.high %v149_v44, %v149_v44  ;;  %v180_v49 = vcombine.high %v158_v43, %v158_v43  ;;  %v886_v1 = vld [vmem:[%s1100_s1 + $0x188] sm:$0xff]   ;;  %v882_v2 = vld [vmem:[%s1100_s1 + $0x110] sm:$0xff]   ;;  %v165_v4 = vrot.slane %v149_v44, %v1005_v34  ;;  %v889_v5 = vld [vmem:[%s1100_s1 + $0x180] sm:$0xff]  }
  0x12   :  { %773 = vmatprep.subr.bf16.mxu1 %v853_v18  ;;  %v884_v3 = vld [vmem:[%s1100_s1 + $0x148] sm:$0xff]   ;;  %v887_v7 = vld [vmem:[%s1100_s1 + $0x140] sm:$0xff]  }
  0x13   :  { %752 = vmatpush3.bf16.msra.mxu0 %v852_v17  ;;  %549 = vmatprep.mubr.bf16.mxu0 %v172_v46  ;;  %v182_v51 = vcombine.high %v172_v46, %v172_v46  ;;  %v179_v52 = vrot.slane %v151_v48, %v1005_v34  ;;  %v885_v6 = vld [vmem:[%s1100_s1 + $0x108] sm:$0xff]   ;;  %v181_v8 = vcombine.high %v165_v4, %v165_v4  ;;  %v888_v9 = vld [vmem:[%s1100_s1 + $0x100] sm:$0xff]  }
  0x14   :  { %753 = vmatprep.subr.bf16.mxu0 %v855_v20  ;;  %v687_v20 = vld [vmem:[%s1102_s2] ss:$0 sm:$0xff] }
  0x15   :  { %774 = vmatpush3.bf16.msra.mxu1 %v854_v19  ;;  %589 = vmatprep.mubr.bf16.mxu1 %v182_v51  ;;  %v677_v28 = vld [vmem:[%s1103_s3] sm:$0x1] }
  0x16   :  { %775 = vmatprep.subr.bf16.mxu1 %v857_v25 }
  0x17   :  { %754 = vmatpush3.bf16.msra.mxu0 %v856_v24 }
  0x18   :  { %755 = vmatprep.subr.bf16.mxu0 %v859_v27 }
  0x19   :  { %776 = vmatpush3.bf16.msra.mxu1 %v858_v26 }
  0x1a   :  { %777 = vmatprep.subr.bf16.mxu1 %v861_v31 }
  0x1b   :  { %756 = vmatpush3.bf16.msra.mxu0 %v860_v30 }
  0x1c   :  { %757 = vmatprep.subr.bf16.mxu0 %v863_v33  ;;  %v678_v33 = vunpack.c.l.bf16 %v677_v28 }
  0x1d   :  { %778 = vmatpush3.bf16.msra.mxu1 %v862_v32 }
  0x1e   :  { %779 = vmatprep.subr.bf16.mxu1 %v865_v36 }
  0x1f   :  { %758 = vmatpush3.bf16.msra.mxu0 %v864_v35 }
  0x20   :  { %787 = vmatprep.subr.bf16.mxu0 %v868_v41 }
  0x21   :  { %780 = vmatpush3.bf16.msra.mxu1 %v867_v40 }
  0x22   :  { %816 = vmatprep.subr.bf16.mxu1 %v891_v45  ;;  %550 = vmatmul.mubr.bf16.vlgmr.msra.gmra.mxu0 %v158_v43 }
  0x23   :  { %788 = vmatpush3.bf16.msra.mxu0 %v869_v47  ;;  %629 = vmatprep.mubr.bf16.mxu0 %v179_v52 }
  0x24   :  { %590 = vmatmul.mubr.bf16.vlgmr.msra.gmra.mxu1 %v180_v49  ;;  %789 = vmatprep.subr.bf16.mxu0 %v870_v50 }
  0x25   :  { %817 = vmatpush3.bf16.msra.mxu1 %v874_v53  ;;  %828 = vmatprep.mubr.msk.bf16.mxu1 %vm892_vm0, %v891_v45 }
  0x26   :  { %818 = vmatprep.subr.bf16.mxu1 %v891_v45 }
  0x27   :  { %790 = vmatpush3.bf16.msra.mxu0 %v871_v54 }
  0x28   :  { %791 = vmatprep.subr.bf16.mxu0 %v872_v55 }
  0x29   :  { %819 = vmatpush3.bf16.msra.mxu1 %v877_v56 }
  0x2a   :  { %820 = vmatprep.subr.bf16.mxu1 %v891_v45 }
  0x2b   :  { %792 = vmatpush3.bf16.msra.mxu0 %v873_v57 }
  0x2c   :  { %793 = vmatprep.subr.bf16.mxu0 %v875_v58 }
  0x2d   :  { %821 = vmatpush3.bf16.msra.mxu1 %v880_v59 }
  0x2e   :  { %822 = vmatprep.subr.bf16.mxu1 %v891_v45 }
  0x2f   :  { %794 = vmatpush3.bf16.msra.mxu0 %v876_v60 }
  0x30   :  { %795 = vmatprep.subr.bf16.mxu0 %v878_v61 }
  0x31   :  { %823 = vmatpush3.bf16.msra.mxu1 %v883_v62 }
  0x32   :  { %824 = vmatprep.subr.bf16.mxu1 %v891_v45 }
  0x33   :  { %796 = vmatpush3.bf16.msra.mxu0 %v879_v63 }
  0x34   :  { %797 = vmatprep.subr.bf16.mxu0 %v881_v0 }
  0x35   :  { %825 = vmatpush3.bf16.msra.mxu1 %v886_v1 }
  0x36   :  { %826 = vmatprep.subr.bf16.mxu1 %v891_v45 }
  0x37   :  { %798 = vmatpush3.bf16.msra.mxu0 %v882_v2 }
  0x38   :  { %799 = vmatprep.subr.bf16.mxu0 %v884_v3 }
  0x39   :  { %827 = vmatpush3.bf16.msra.mxu1 %v889_v5 }
  0x3b   :  { %800 = vmatpush3.bf16.msra.mxu0 %v885_v6 }
  0x3c   :  { %801 = vmatprep.subr.bf16.mxu0 %v887_v7  ;;  %829 = vmatmul.mubr.msk.bf16.vlgmr.msra.gmra.mxu1 %vm513_vm1, %v181_v8 }
  0x3f   :  { %802 = vmatpush3.bf16.msra.mxu0 %v888_v9 }
  0x42   :  { %630 = vmatmul.mubr.bf16.vlgmr.msra.gmra.mxu0 %v165_v4 }
  0xe2   :  { %v759_v10 = vpop.f32.mrf.mxu0 }
  0xe4   :  { %v760_v11 = vpop.f32.mrf.mxu0  ;;  %v781_v12 = vpop.f32.mrf.mxu1 }
  0xe5   :  { %v761_v19 = vadd.f32 %v760_v11, %v759_v10 }
  0xe6   :  { %v762_v13 = vpop.f32.mrf.mxu0  ;;  %v782_v14 = vpop.f32.mrf.mxu1 }
  0xe7   :  { %v552_v23 = vadd.f32 %v761_v19, %v687_v20  ;;  %v783_v24 = vadd.f32 %v782_v14, %v781_v12 }
  0xe8   :  { %v763_v15 = vpop.f32.mrf.mxu0  ;;  %v784_v16 = vpop.f32.mrf.mxu1 }
  0xe9   :  { %v592_v29 = vadd.f32 %v783_v24, %v552_v23 }
  0xea   :  { %v785_v17 = vpop.f32.mrf.mxu1 }
  0xfc   :  { %v671_v18 = vpop.f32.mrf.mxu1 }
  0xfe   :  { %v830_v21 = vpop.f32.mrf.mxu1 }
 0x100   :  { %v674_v22 = vpop.f32.mrf.mxu1 }
 0x102   :  { %v803_v25 = vpop.f32.mrf.mxu0  ;;  %v831_v26 = vpop.f32.mrf.mxu1 }
 0x104   :  { %v804_v27 = vpop.f32.mrf.mxu0 }
 0x105   :  { %v805_v30 = vadd.f32 %v804_v27, %v803_v25 }
 0x106   :  { %v806_v31 = vpop.f32.mrf.mxu0 }
 0x107   :  { %v632_v32 = vadd.f32 %v805_v30, %v592_v29 }
 0x108   :  { %v807_v34 = vpop.f32.mrf.mxu0 }
 0x109   :  { %v672_v35 = vadd.f32 %v671_v18, %v632_v32 }
 0x10b   :  { %v679_v36 = vadd.f32 %v678_v33, %v672_v35 }
 0x10d   :  { %v680_v37 = vmax.f32 %v679_v36, 0.0 }
 0x10f   :  { %v681_v38 = vpack.c.bf16 %v680_v37, %v680_v37 }
 0x111   :  { %682 = vst [vmem:[%s1104_s4] sm:$0x1] %v681_v38 }

</bundles_post_ra>
